<compile_context>
chip_gen: v5e
topology: v5e:2x2
jax: 0.10.0
libtpu: 0.0.40
codegen_flags: <defaults>
</compile_context>

<pallas_src>
import functools

import jax
import jax.numpy as jnp
from jax import lax
from jax.experimental import pallas as pl
from jax.experimental.pallas import tpu as pltpu

_LANE = 128
_SUBLANE = 8
_BF16_PACK = 16  # bf16 sublane packing (keeps bf16 hseq tiles dense)


def _round_up(n, m):
    return ((n + m - 1) // m) * m


def _choose_time_chunk(b_pad, d, h_pad, t, budget_bytes=8 * 1024 * 1024):
    """Largest time chunk whose per-chunk streaming VMEM footprint fits the budget."""
    # per-time-step bytes: x in (bf16, 2-buf) + hseq out (bf16, 2-buf)
    # + U scratch (fp32) + kernel-B z/y intermediates + fp32 out block (2-buf)
    per_t = b_pad * (4 * d + 4 * h_pad + 16 * h_pad + 12 * h_pad + 8 * h_pad)
    chunk = max(_SUBLANE, budget_bytes // per_t)
    chunk = min(chunk, 256, _round_up(t, _SUBLANE))
    return max(_SUBLANE, (chunk // _SUBLANE) * _SUBLANE)


# --------------------------------------------------------------------------- #
# Kernel A: chunked input projection (one GEMM) + sequential LSTM recurrence
# --------------------------------------------------------------------------- #
def _lstm_recurrence_kernel(x_ref, wih_ref, whh_ref, b_ref, hseq_ref,
                            u_ref, h_ref, c_ref):
    """x_ref: (Tc, B, D) bf16; hseq_ref: (Tc, B, H) bf16; u_ref: (Tc, B, 4H) f32."""
    t_chunk, batch, d = x_ref.shape
    h_dim = h_ref.shape[1]

    # Zero-initialise the carried state on the first chunk only.
    @pl.when(pl.program_id(0) == 0)
    def _():
        h_ref[...] = jnp.zeros_like(h_ref)
        c_ref[...] = jnp.zeros_like(c_ref)

    # Phase 1: hoisted input projection for the whole chunk — one bf16 MXU GEMM,
    # bias folded in, fp32 accumulation, result staged in VMEM (no HBM round trip).
    x2d = x_ref[...].reshape(t_chunk * batch, d)
    u = jnp.dot(x2d, wih_ref[...], preferred_element_type=jnp.float32) + b_ref[...]
    u_ref[...] = u.reshape(t_chunk, batch, 4 * h_dim)

    # Phase 2: sequential recurrence — only h @ Whh + fused activations per step.
    # TODO(synk): overlap chunk i+1's projection GEMM with chunk i's recurrence
    #             (double-buffered U) — the recurrence is EUP/latency-bound.
    # TODO(synk): optionally pin Whh in the MXU weight registers across the loop
    #             via pltpu.matmul_push_rhs / matmul_acc_lhs / matmul_pop.
    def step(t, carry):
        h, c = carry
        gates = u_ref[t] + jnp.dot(
            h.astype(jnp.bfloat16), whh_ref[...],
            preferred_element_type=jnp.float32)
        # packed gate order (i, f, o, g): one contiguous sigmoid + one tanh
        sig = jax.nn.sigmoid(gates[:, : 3 * h_dim])
        i_g = sig[:, :h_dim]
        f_g = sig[:, h_dim:2 * h_dim]
        o_g = sig[:, 2 * h_dim:3 * h_dim]
        g_g = jnp.tanh(gates[:, 3 * h_dim:])
        c_new = f_g * c + i_g * g_g
        h_new = o_g * jnp.tanh(c_new)
        hseq_ref[t] = h_new.astype(hseq_ref.dtype)
        return h_new, c_new

    # ---- Dropout: eval mode => identity ----
    # TODO(synk): training-mode dropout (scaled Bernoulli mask) not emitted.
    unroll = 8 if t_chunk % 8 == 0 else (4 if t_chunk % 4 == 0 else 1)
    h_fin, c_fin = lax.fori_loop(
        0, t_chunk, step, (h_ref[...], c_ref[...]), unroll=unroll)
    h_ref[...] = h_fin
    c_ref[...] = c_fin


# --------------------------------------------------------------------------- #
# Kernel B: fused GLU-Linear + GLU + LayerNorm, batch-first output
# --------------------------------------------------------------------------- #
def _glu_layernorm_kernel(hseq_ref, wglu_ref, bglu_ref, gamma_ref, beta_ref,
                          out_ref, y_scratch, *, h_valid):
    """hseq_ref: (Tt, B, H) bf16 time-major; out_ref: (B, Tt, H) batch-first."""
    t_tile, batch, h_dim = hseq_ref.shape

    # One fused GEMM over all T_tile*B rows (MXU M-dim well filled).
    hb = hseq_ref[...].reshape(t_tile * batch, h_dim)
    z = jnp.dot(hb, wglu_ref[...], preferred_element_type=jnp.float32) + bglu_ref[...]
    y = z[:, :h_dim] * jax.nn.sigmoid(z[:, h_dim:])           # GLU

    # LayerNorm with the true feature count (padded columns are exactly zero).
    inv_n = 1.0 / h_valid
    mean = jnp.sum(y, axis=-1, keepdims=True) * inv_n
    var = jnp.sum(y * y, axis=-1, keepdims=True) * inv_n - mean * mean
    y = (y - mean) * lax.rsqrt(var + 1e-5)
    y = (y * gamma_ref[...] + beta_ref[...]).astype(out_ref.dtype)

    # Stage the tile and emit batch-first (B, Tt, H) through the out BlockSpec.
    y_scratch[...] = y.reshape(t_tile, batch, h_dim)
    for b in range(batch):                                     # static, small
        out_ref[b] = y_scratch[:, b, :]


# --------------------------------------------------------------------------- #
# Wrapper
# --------------------------------------------------------------------------- #
@functools.partial(jax.jit, static_argnames=("output_dim",))
def lstm_embedding(x, params, *, output_dim):
    """x: (B, T, input_dim) batch-first, returns (B, T, output_dim)."""
    batch, seq, d = x.shape
    h_pad = params["whh_t"].shape[0]
    b_pad = _round_up(max(batch, _BF16_PACK), _BF16_PACK)

    t_chunk = _choose_time_chunk(b_pad, d, h_pad, seq)
    t_pad = _round_up(seq, t_chunk)
    n_chunks = t_pad // t_chunk

    # Zero-pad batch/time, relayout to time-major, bf16 MXU operand.
    # TODO(synk): for large input_dim fold this relayout into the chunked DMA
    #             (index_map over the batch-first x) instead of a wrapper pass.
    x_tm = jnp.zeros((t_pad, b_pad, d), jnp.bfloat16)
    x_tm = x_tm.at[:seq, :batch, :].set(
        jnp.transpose(x, (1, 0, 2)).astype(jnp.bfloat16))

    cparams_seq = pltpu.CompilerParams(
        dimension_semantics=("arbitrary",),
        vmem_limit_bytes=32 * 1024 * 1024,
    )
    # TODO(synk): v7x — add a leading "parallel" batch-halves grid axis so the
    #             two TensorCores each carry their own (h, c) for B/2 rows.
    hseq = pl.pallas_call(
        _lstm_recurrence_kernel,
        out_shape=jax.ShapeDtypeStruct((t_pad, b_pad, h_pad), jnp.bfloat16),
        grid=(n_chunks,),
        in_specs=[
            pl.BlockSpec((t_chunk, b_pad, d), lambda i: (i, 0, 0)),
            pl.BlockSpec((d, 4 * h_pad), lambda i: (0, 0)),
            pl.BlockSpec((h_pad, 4 * h_pad), lambda i: (0, 0)),
            pl.BlockSpec((1, 4 * h_pad), lambda i: (0, 0)),
        ],
        out_specs=pl.BlockSpec((t_chunk, b_pad, h_pad), lambda i: (i, 0, 0)),
        scratch_shapes=[
            pltpu.VMEM((t_chunk, b_pad, 4 * h_pad), jnp.float32),  # U
            pltpu.VMEM((b_pad, h_pad), jnp.float32),               # h carry
            pltpu.VMEM((b_pad, h_pad), jnp.float32),               # c carry
        ],
        compiler_params=cparams_seq,
    )(x_tm, params["wih_t"], params["whh_t"], params["bias"])

    kernel_b = functools.partial(_glu_layernorm_kernel, h_valid=float(output_dim))
    cparams_par = pltpu.CompilerParams(
        dimension_semantics=("parallel",),
        vmem_limit_bytes=32 * 1024 * 1024,
    )
    y = pl.pallas_call(
        kernel_b,
        out_shape=jax.ShapeDtypeStruct((b_pad, t_pad, h_pad), x.dtype),
        grid=(n_chunks,),
        in_specs=[
            pl.BlockSpec((t_chunk, b_pad, h_pad), lambda i: (i, 0, 0)),
            pl.BlockSpec((h_pad, 2 * h_pad), lambda i: (0, 0)),
            pl.BlockSpec((1, 2 * h_pad), lambda i: (0, 0)),
            pl.BlockSpec((1, h_pad), lambda i: (0, 0)),
            pl.BlockSpec((1, h_pad), lambda i: (0, 0)),
        ],
        out_specs=pl.BlockSpec((b_pad, t_chunk, h_pad), lambda i: (0, i, 0)),
        scratch_shapes=[pltpu.VMEM((t_chunk, b_pad, h_pad), x.dtype)],
        compiler_params=cparams_par,
    )(hseq, params["wglu_t"], params["bglu"], params["gamma"], params["beta"])

    return y[:batch, :seq, :output_dim]


# --------------------------------------------------------------------------- #
# Parameters (PyTorch layout) + repacking into the padded kernel layout
# --------------------------------------------------------------------------- #
def init_params(key, input_dim, output_dim):
    """Deterministic synthetic parameters with PyTorch-module shapes / gate order."""
    h = output_dim
    ks = jax.random.split(key, 6)
    s = 1.0 / jnp.sqrt(jnp.float32(h))
    # torch.nn.LSTM: weight_ih (4H, D), weight_hh (4H, H), biases (4H,), order (i,f,g,o)
    w_ih = jax.random.uniform(ks[0], (4 * h, input_dim), jnp.float32, -s, s)
    w_hh = jax.random.uniform(ks[1], (4 * h, h), jnp.float32, -s, s)
    b_ih = jax.random.uniform(ks[2], (4 * h,), jnp.float32, -s, s)
    b_hh = jax.random.uniform(ks[3], (4 * h,), jnp.float32, -s, s)
    # GatedLinearUnit: Linear(H, 2H)
    w_glu = jax.random.uniform(ks[4], (2 * h, h), jnp.float32, -s, s)
    b_glu = jax.random.uniform(ks[5], (2 * h,), jnp.float32, -s, s)
    # LayerNorm(H)
    gamma = jnp.ones((h,), jnp.float32)
    beta = jnp.zeros((h,), jnp.float32)
    return {
        "w_ih": w_ih, "w_hh": w_hh, "b_ih": b_ih, "b_hh": b_hh,
        "w_glu": w_glu, "b_glu": b_glu, "gamma": gamma, "beta": beta,
    }


def prepare_kernel_params(p):
    """Repack gate order (i,f,g,o)->(i,f,o,g), zero-pad H to a lane multiple,
    transpose for right-multiplication, sum biases, cast MXU operands to bf16."""
    h = p["w_hh"].shape[1]
    h_pad = _round_up(h, _LANE)

    def reorder(w):  # leading 4H axis: PyTorch (i,f,g,o) -> kernel (i,f,o,g)
        return jnp.concatenate([w[: 2 * h], w[3 * h: 4 * h], w[2 * h: 3 * h]], axis=0)

    def pad_groups(w, n_groups):  # zero-pad each H-group of the leading axis to h_pad
        tail = w.shape[1:]
        w = w.reshape((n_groups, h) + tail)
        pad = [(0, 0), (0, h_pad - h)] + [(0, 0)] * len(tail)
        return jnp.pad(w, pad).reshape((n_groups * h_pad,) + tail)

    w_ih = pad_groups(reorder(p["w_ih"]), 4)                          # (4Hp, D)
    w_hh = pad_groups(reorder(p["w_hh"]), 4)                          # (4Hp, H)
    w_hh = jnp.pad(w_hh, ((0, 0), (0, h_pad - h)))                    # (4Hp, Hp)
    bias = pad_groups(reorder(p["b_ih"] + p["b_hh"]), 4)              # (4Hp,)
    w_glu = pad_groups(p["w_glu"], 2)                                 # (2Hp, H)
    w_glu = jnp.pad(w_glu, ((0, 0), (0, h_pad - h)))                  # (2Hp, Hp)
    b_glu = pad_groups(p["b_glu"], 2)                                 # (2Hp,)
    gamma = jnp.pad(p["gamma"], (0, h_pad - h))
    beta = jnp.pad(p["beta"], (0, h_pad - h))
    return {
        "wih_t": jnp.transpose(w_ih).astype(jnp.bfloat16),            # (D, 4Hp)
        "whh_t": jnp.transpose(w_hh).astype(jnp.bfloat16),            # (Hp, 4Hp)
        "bias": bias.reshape(1, 4 * h_pad),                           # (1, 4Hp) f32
        "wglu_t": jnp.transpose(w_glu).astype(jnp.bfloat16),          # (Hp, 2Hp)
        "bglu": b_glu.reshape(1, 2 * h_pad),                          # (1, 2Hp) f32
        "gamma": gamma.reshape(1, h_pad),                             # (1, Hp)  f32
        "beta": beta.reshape(1, h_pad),                               # (1, Hp)  f32
    }


# --------------------------------------------------------------------------- #
# Pure-JAX reference (raw PyTorch-layout params, fp32, gate order (i,f,g,o))
# --------------------------------------------------------------------------- #
def _reference(x, p):
    batch, _, _ = x.shape
    h_dim = p["w_hh"].shape[1]
    wih_t = jnp.transpose(p["w_ih"])
    whh_t = jnp.transpose(p["w_hh"])
    bias = (p["b_ih"] + p["b_hh"]).reshape(1, 4 * h_dim)

    def cell(carry, x_t):
        h, c = carry
        gates = x_t @ wih_t + h @ whh_t + bias
        i = jax.nn.sigmoid(gates[:, :h_dim])
        f = jax.nn.sigmoid(gates[:, h_dim:2 * h_dim])
        g = jnp.tanh(gates[:, 2 * h_dim:3 * h_dim])
        o = jax.nn.sigmoid(gates[:, 3 * h_dim:])
        c = f * c + i * g
        h = o * jnp.tanh(c)
        return (h, c), h

    h0 = jnp.zeros((batch, h_dim), jnp.float32)
    (_, _), hs = lax.scan(cell, (h0, h0), jnp.transpose(x, (1, 0, 2)))
    hs = jnp.transpose(hs, (1, 0, 2))                                 # (B, T, H)
    z = hs @ jnp.transpose(p["w_glu"]) + p["b_glu"]
    y = z[..., :h_dim] * jax.nn.sigmoid(z[..., h_dim:])
    mean = jnp.mean(y, axis=-1, keepdims=True)
    var = jnp.mean(jnp.square(y - mean), axis=-1, keepdims=True)
    y = (y - mean) * lax.rsqrt(var + 1e-5)
    return y * p["gamma"] + p["beta"]


if __name__ == "__main__":
    key = jax.random.PRNGKey(0)
    k_x, k_p = jax.random.split(key)

    batch, seq_len, input_dim, output_dim = 2, 8, 4, 32
    x = jax.random.normal(k_x, (batch, seq_len, input_dim), jnp.float32)
    raw_params = init_params(k_p, input_dim, output_dim)
    params = prepare_kernel_params(raw_params)

    out = jax.block_until_ready(lstm_embedding(x, params, output_dim=output_dim))
    ref = jax.block_until_ready(_reference(x, raw_params))

    assert out.shape == (batch, seq_len, output_dim)
    max_err = float(jnp.max(jnp.abs(out - ref)))
    # bf16 MXU operands + bf16 hseq intermediate => loosened tolerance vs fp32 ref.
    assert jnp.allclose(out, ref, atol=5e-2, rtol=5e-2), max_err

    print("KERNEL_OK")
</pallas_src>

<mosaic_0001>
module attributes {stable_mosaic.version = 11 : i64} {
  func.func @_lstm_recurrence_kernel(%arg0: i32, %arg1: memref<8x16x4xbf16, #tpu.memory_space<vmem>>, %arg2: memref<4x512xbf16, #tpu.memory_space<vmem>>, %arg3: memref<128x512xbf16, #tpu.memory_space<vmem>>, %arg4: memref<1x512xf32, #tpu.memory_space<vmem>>, %arg5: memref<8x16x128xbf16, #tpu.memory_space<vmem>>, %arg6: memref<8x16x512xf32, #tpu.memory_space<vmem>>, %arg7: memref<16x128xf32, #tpu.memory_space<vmem>>, %arg8: memref<16x128xf32, #tpu.memory_space<vmem>>) attributes {dimension_semantics = [#tpu.dimension_semantics<arbitrary>], iteration_bounds = array<i64: 1>, scalar_prefetch = 0 : i64, scratch_operands = 3 : i64, tpu.core_type = #tpu.core_type<tc>, window_params = [{transform_indices = @transform_0, window_bounds = array<i64: 8, 16, 4>}, {pipeline_mode = #tpu.pipeline_mode<synchronous>, transform_indices = @transform_1, window_bounds = array<i64: 4, 512>}, {pipeline_mode = #tpu.pipeline_mode<synchronous>, transform_indices = @transform_2, window_bounds = array<i64: 128, 512>}, {pipeline_mode = #tpu.pipeline_mode<synchronous>, transform_indices = @transform_3, window_bounds = array<i64: 1, 512>}, {transform_indices = @transform_4, window_bounds = array<i64: 8, 16, 128>}]} {
    %c0_i32 = arith.constant 0 : i32
    %0 = arith.cmpi eq, %arg0, %c0_i32 : i32
    %1 = arith.extui %0 : i1 to i32
    %c0_i32_0 = arith.constant 0 : i32
    %2 = arith.cmpi ne, %1, %c0_i32_0 : i32
    scf.if %2 {
      %cst_83 = arith.constant 0.000000e+00 : f32
      %240 = vector.broadcast %cst_83 : f32 to vector<16x128xf32>
      %c0_84 = arith.constant 0 : index
      %c0_85 = arith.constant 0 : index
      %241 = vector.load %arg7[%c0_84, %c0_85] : memref<16x128xf32, #tpu.memory_space<vmem>>, vector<16x128xf32>
      tpu.vector_store %arg7[%c0_84, %c0_85], %240 {strides = array<i32>} : memref<16x128xf32, #tpu.memory_space<vmem>>, vector<16x128xf32>,
      %cst_86 = arith.constant 0.000000e+00 : f32
      %242 = vector.broadcast %cst_86 : f32 to vector<16x128xf32>
      %c0_87 = arith.constant 0 : index
      %c0_88 = arith.constant 0 : index
      %243 = vector.load %arg8[%c0_87, %c0_88] : memref<16x128xf32, #tpu.memory_space<vmem>>, vector<16x128xf32>
      tpu.vector_store %arg8[%c0_87, %c0_88], %242 {strides = array<i32>} : memref<16x128xf32, #tpu.memory_space<vmem>>, vector<16x128xf32>,
    } else {
    }
    %c0 = arith.constant 0 : index
    %c0_1 = arith.constant 0 : index
    %c0_2 = arith.constant 0 : index
    %3 = vector.load %arg1[%c0, %c0_1, %c0_2] : memref<8x16x4xbf16, #tpu.memory_space<vmem>>, vector<8x16x4xbf16>
    %4 = vector.shape_cast %3 : vector<8x16x4xbf16> to vector<128x4xbf16>
    %c0_3 = arith.constant 0 : index
    %c0_4 = arith.constant 0 : index
    %5 = vector.load %arg2[%c0_3, %c0_4] : memref<4x512xbf16, #tpu.memory_space<vmem>>, vector<4x512xbf16>
    %cst = arith.constant dense<0.000000e+00> : vector<128x512xf32>
    %6 = tpu.matmul %4, %5, %cst {dimension_numbers = #tpu.dot_dimension_numbers<[1], [0], [0], [1], [0, 0, 1, 1], [], []>} : vector<128x4xbf16>, vector<4x512xbf16>, vector<128x512xf32> -> vector<128x512xf32>
    %c0_5 = arith.constant 0 : index
    %c0_6 = arith.constant 0 : index
    %7 = vector.load %arg4[%c0_5, %c0_6] : memref<1x512xf32, #tpu.memory_space<vmem>>, vector<1x512xf32>
    %8 = vector.broadcast %7 : vector<1x512xf32> to vector<128x512xf32>
    %9 = arith.addf %6, %8 : vector<128x512xf32>
    %10 = vector.shape_cast %9 : vector<128x512xf32> to vector<8x16x512xf32>
    %c0_7 = arith.constant 0 : index
    %c0_8 = arith.constant 0 : index
    %c0_9 = arith.constant 0 : index
    %11 = vector.load %arg6[%c0_7, %c0_8, %c0_9] : memref<8x16x512xf32, #tpu.memory_space<vmem>>, vector<8x16x512xf32>
    tpu.vector_store %arg6[%c0_7, %c0_8, %c0_9], %10 {strides = array<i32>} : memref<8x16x512xf32, #tpu.memory_space<vmem>>, vector<8x16x512xf32>,
    %c0_10 = arith.constant 0 : index
    %c0_11 = arith.constant 0 : index
    %12 = vector.load %arg7[%c0_10, %c0_11] : memref<16x128xf32, #tpu.memory_space<vmem>>, vector<16x128xf32>
    %c0_12 = arith.constant 0 : index
    %c0_13 = arith.constant 0 : index
    %13 = vector.load %arg8[%c0_12, %c0_13] : memref<16x128xf32, #tpu.memory_space<vmem>>, vector<16x128xf32>
    %c0_i32_14 = arith.constant 0 : i32
    %14 = arith.index_cast %c0_i32_14 : i32 to index
    %c0_15 = arith.constant 0 : index
    %c0_16 = arith.constant 0 : index
    %15 = vector.load %arg6[%14, %c0_15, %c0_16] : memref<8x16x512xf32, #tpu.memory_space<vmem>>, vector<1x16x512xf32>
    %16 = vector.shape_cast %15 : vector<1x16x512xf32> to vector<16x512xf32>
    %17 = arith.truncf %12 : vector<16x128xf32> to vector<16x128xbf16>
    %c0_17 = arith.constant 0 : index
    %c0_18 = arith.constant 0 : index
    %18 = vector.load %arg3[%c0_17, %c0_18] : memref<128x512xbf16, #tpu.memory_space<vmem>>, vector<128x512xbf16>
    %cst_19 = arith.constant dense<0.000000e+00> : vector<16x512xf32>
    %19 = tpu.matmul %17, %18, %cst_19 {dimension_numbers = #tpu.dot_dimension_numbers<[1], [0], [0], [1], [0, 0, 1, 1], [], []>} : vector<16x128xbf16>, vector<128x512xbf16>, vector<16x512xf32> -> vector<16x512xf32>
    %20 = arith.addf %16, %19 : vector<16x512xf32>
    %21 = vector.extract_strided_slice %20 {offsets = [0, 0], sizes = [16, 384], strides = [1, 1]} : vector<16x512xf32> to vector<16x384xf32>
    %22 = arith.negf %21 : vector<16x384xf32>
    %23 = math.exp %22 : vector<16x384xf32>
    %cst_20 = arith.constant 1.000000e+00 : f32
    %24 = vector.broadcast %cst_20 : f32 to vector<16x384xf32>
    %25 = arith.addf %24, %23 : vector<16x384xf32>
    %26 = arith.divf %24, %25 : vector<16x384xf32>
    %27 = vector.extract_strided_slice %26 {offsets = [0, 0], sizes = [16, 128], strides = [1, 1]} : vector<16x384xf32> to vector<16x128xf32>
    %28 = vector.extract_strided_slice %26 {offsets = [0, 128], sizes = [16, 128], strides = [1, 1]} : vector<16x384xf32> to vector<16x128xf32>
    %29 = vector.extract_strided_slice %26 {offsets = [0, 256], sizes = [16, 128], strides = [1, 1]} : vector<16x384xf32> to vector<16x128xf32>
    %30 = vector.extract_strided_slice %20 {offsets = [0, 384], sizes = [16, 128], strides = [1, 1]} : vector<16x512xf32> to vector<16x128xf32>
    %31 = math.tanh %30 : vector<16x128xf32>
    %32 = arith.mulf %28, %13 : vector<16x128xf32>
    %33 = arith.mulf %27, %31 : vector<16x128xf32>
    %34 = arith.addf %32, %33 : vector<16x128xf32>
    %35 = math.tanh %34 : vector<16x128xf32>
    %36 = arith.mulf %29, %35 : vector<16x128xf32>
    %37 = arith.truncf %36 : vector<16x128xf32> to vector<16x128xbf16>
    %38 = arith.index_cast %c0_i32_14 : i32 to index
    %c0_21 = arith.constant 0 : index
    %c0_22 = arith.constant 0 : index
    %39 = vector.load %arg5[%38, %c0_21, %c0_22] : memref<8x16x128xbf16, #tpu.memory_space<vmem>>, vector<1x16x128xbf16>
    %40 = vector.shape_cast %39 : vector<1x16x128xbf16> to vector<16x128xbf16>
    %41 = vector.shape_cast %37 : vector<16x128xbf16> to vector<1x16x128xbf16>
    tpu.vector_store %arg5[%38, %c0_21, %c0_22], %41 {strides = array<i32>} : memref<8x16x128xbf16, #tpu.memory_space<vmem>>, vector<1x16x128xbf16>,
    %c1_i32 = arith.constant 1 : i32
    %42 = arith.index_cast %c1_i32 : i32 to index
    %c0_23 = arith.constant 0 : index
    %c0_24 = arith.constant 0 : index
    %43 = vector.load %arg6[%42, %c0_23, %c0_24] : memref<8x16x512xf32, #tpu.memory_space<vmem>>, vector<1x16x512xf32>
    %44 = vector.shape_cast %43 : vector<1x16x512xf32> to vector<16x512xf32>
    %45 = arith.truncf %36 : vector<16x128xf32> to vector<16x128xbf16>
    %c0_25 = arith.constant 0 : index
    %c0_26 = arith.constant 0 : index
    %46 = vector.load %arg3[%c0_25, %c0_26] : memref<128x512xbf16, #tpu.memory_space<vmem>>, vector<128x512xbf16>
    %cst_27 = arith.constant dense<0.000000e+00> : vector<16x512xf32>
    %47 = tpu.matmul %45, %46, %cst_27 {dimension_numbers = #tpu.dot_dimension_numbers<[1], [0], [0], [1], [0, 0, 1, 1], [], []>} : vector<16x128xbf16>, vector<128x512xbf16>, vector<16x512xf32> -> vector<16x512xf32>
    %48 = arith.addf %44, %47 : vector<16x512xf32>
    %49 = vector.extract_strided_slice %48 {offsets = [0, 0], sizes = [16, 384], strides = [1, 1]} : vector<16x512xf32> to vector<16x384xf32>
    %50 = arith.negf %49 : vector<16x384xf32>
    %51 = math.exp %50 : vector<16x384xf32>
    %cst_28 = arith.constant 1.000000e+00 : f32
    %52 = vector.broadcast %cst_28 : f32 to vector<16x384xf32>
    %53 = arith.addf %52, %51 : vector<16x384xf32>
    %54 = arith.divf %52, %53 : vector<16x384xf32>
    %55 = vector.extract_strided_slice %54 {offsets = [0, 0], sizes = [16, 128], strides = [1, 1]} : vector<16x384xf32> to vector<16x128xf32>
    %56 = vector.extract_strided_slice %54 {offsets = [0, 128], sizes = [16, 128], strides = [1, 1]} : vector<16x384xf32> to vector<16x128xf32>
    %57 = vector.extract_strided_slice %54 {offsets = [0, 256], sizes = [16, 128], strides = [1, 1]} : vector<16x384xf32> to vector<16x128xf32>
    %58 = vector.extract_strided_slice %48 {offsets = [0, 384], sizes = [16, 128], strides = [1, 1]} : vector<16x512xf32> to vector<16x128xf32>
    %59 = math.tanh %58 : vector<16x128xf32>
    %60 = arith.mulf %56, %34 : vector<16x128xf32>
    %61 = arith.mulf %55, %59 : vector<16x128xf32>
    %62 = arith.addf %60, %61 : vector<16x128xf32>
    %63 = math.tanh %62 : vector<16x128xf32>
    %64 = arith.mulf %57, %63 : vector<16x128xf32>
    %65 = arith.truncf %64 : vector<16x128xf32> to vector<16x128xbf16>
    %66 = arith.index_cast %c1_i32 : i32 to index
    %c0_29 = arith.constant 0 : index
    %c0_30 = arith.constant 0 : index
    %67 = vector.load %arg5[%66, %c0_29, %c0_30] : memref<8x16x128xbf16, #tpu.memory_space<vmem>>, vector<1x16x128xbf16>
    %68 = vector.shape_cast %67 : vector<1x16x128xbf16> to vector<16x128xbf16>
    %69 = vector.shape_cast %65 : vector<16x128xbf16> to vector<1x16x128xbf16>
    tpu.vector_store %arg5[%66, %c0_29, %c0_30], %69 {strides = array<i32>} : memref<8x16x128xbf16, #tpu.memory_space<vmem>>, vector<1x16x128xbf16>,
    %c2_i32 = arith.constant 2 : i32
    %70 = arith.index_cast %c2_i32 : i32 to index
    %c0_31 = arith.constant 0 : index
    %c0_32 = arith.constant 0 : index
    %71 = vector.load %arg6[%70, %c0_31, %c0_32] : memref<8x16x512xf32, #tpu.memory_space<vmem>>, vector<1x16x512xf32>
    %72 = vector.shape_cast %71 : vector<1x16x512xf32> to vector<16x512xf32>
    %73 = arith.truncf %64 : vector<16x128xf32> to vector<16x128xbf16>
    %c0_33 = arith.constant 0 : index
    %c0_34 = arith.constant 0 : index
    %74 = vector.load %arg3[%c0_33, %c0_34] : memref<128x512xbf16, #tpu.memory_space<vmem>>, vector<128x512xbf16>
    %cst_35 = arith.constant dense<0.000000e+00> : vector<16x512xf32>
    %75 = tpu.matmul %73, %74, %cst_35 {dimension_numbers = #tpu.dot_dimension_numbers<[1], [0], [0], [1], [0, 0, 1, 1], [], []>} : vector<16x128xbf16>, vector<128x512xbf16>, vector<16x512xf32> -> vector<16x512xf32>
    %76 = arith.addf %72, %75 : vector<16x512xf32>
    %77 = vector.extract_strided_slice %76 {offsets = [0, 0], sizes = [16, 384], strides = [1, 1]} : vector<16x512xf32> to vector<16x384xf32>
    %78 = arith.negf %77 : vector<16x384xf32>
    %79 = math.exp %78 : vector<16x384xf32>
    %cst_36 = arith.constant 1.000000e+00 : f32
    %80 = vector.broadcast %cst_36 : f32 to vector<16x384xf32>
    %81 = arith.addf %80, %79 : vector<16x384xf32>
    %82 = arith.divf %80, %81 : vector<16x384xf32>
    %83 = vector.extract_strided_slice %82 {offsets = [0, 0], sizes = [16, 128], strides = [1, 1]} : vector<16x384xf32> to vector<16x128xf32>
    %84 = vector.extract_strided_slice %82 {offsets = [0, 128], sizes = [16, 128], strides = [1, 1]} : vector<16x384xf32> to vector<16x128xf32>
    %85 = vector.extract_strided_slice %82 {offsets = [0, 256], sizes = [16, 128], strides = [1, 1]} : vector<16x384xf32> to vector<16x128xf32>
    %86 = vector.extract_strided_slice %76 {offsets = [0, 384], sizes = [16, 128], strides = [1, 1]} : vector<16x512xf32> to vector<16x128xf32>
    %87 = math.tanh %86 : vector<16x128xf32>
    %88 = arith.mulf %84, %62 : vector<16x128xf32>
    %89 = arith.mulf %83, %87 : vector<16x128xf32>
    %90 = arith.addf %88, %89 : vector<16x128xf32>
    %91 = math.tanh %90 : vector<16x128xf32>
    %92 = arith.mulf %85, %91 : vector<16x128xf32>
    %93 = arith.truncf %92 : vector<16x128xf32> to vector<16x128xbf16>
    %94 = arith.index_cast %c2_i32 : i32 to index
    %c0_37 = arith.constant 0 : index
    %c0_38 = arith.constant 0 : index
    %95 = vector.load %arg5[%94, %c0_37, %c0_38] : memref<8x16x128xbf16, #tpu.memory_space<vmem>>, vector<1x16x128xbf16>
    %96 = vector.shape_cast %95 : vector<1x16x128xbf16> to vector<16x128xbf16>
    %97 = vector.shape_cast %93 : vector<16x128xbf16> to vector<1x16x128xbf16>
    tpu.vector_store %arg5[%94, %c0_37, %c0_38], %97 {strides = array<i32>} : memref<8x16x128xbf16, #tpu.memory_space<vmem>>, vector<1x16x128xbf16>,
    %c3_i32 = arith.constant 3 : i32
    %98 = arith.index_cast %c3_i32 : i32 to index
    %c0_39 = arith.constant 0 : index
    %c0_40 = arith.constant 0 : index
    %99 = vector.load %arg6[%98, %c0_39, %c0_40] : memref<8x16x512xf32, #tpu.memory_space<vmem>>, vector<1x16x512xf32>
    %100 = vector.shape_cast %99 : vector<1x16x512xf32> to vector<16x512xf32>
    %101 = arith.truncf %92 : vector<16x128xf32> to vector<16x128xbf16>
    %c0_41 = arith.constant 0 : index
    %c0_42 = arith.constant 0 : index
    %102 = vector.load %arg3[%c0_41, %c0_42] : memref<128x512xbf16, #tpu.memory_space<vmem>>, vector<128x512xbf16>
    %cst_43 = arith.constant dense<0.000000e+00> : vector<16x512xf32>
    %103 = tpu.matmul %101, %102, %cst_43 {dimension_numbers = #tpu.dot_dimension_numbers<[1], [0], [0], [1], [0, 0, 1, 1], [], []>} : vector<16x128xbf16>, vector<128x512xbf16>, vector<16x512xf32> -> vector<16x512xf32>
    %104 = arith.addf %100, %103 : vector<16x512xf32>
    %105 = vector.extract_strided_slice %104 {offsets = [0, 0], sizes = [16, 384], strides = [1, 1]} : vector<16x512xf32> to vector<16x384xf32>
    %106 = arith.negf %105 : vector<16x384xf32>
    %107 = math.exp %106 : vector<16x384xf32>
    %cst_44 = arith.constant 1.000000e+00 : f32
    %108 = vector.broadcast %cst_44 : f32 to vector<16x384xf32>
    %109 = arith.addf %108, %107 : vector<16x384xf32>
    %110 = arith.divf %108, %109 : vector<16x384xf32>
    %111 = vector.extract_strided_slice %110 {offsets = [0, 0], sizes = [16, 128], strides = [1, 1]} : vector<16x384xf32> to vector<16x128xf32>
    %112 = vector.extract_strided_slice %110 {offsets = [0, 128], sizes = [16, 128], strides = [1, 1]} : vector<16x384xf32> to vector<16x128xf32>
    %113 = vector.extract_strided_slice %110 {offsets = [0, 256], sizes = [16, 128], strides = [1, 1]} : vector<16x384xf32> to vector<16x128xf32>
    %114 = vector.extract_strided_slice %104 {offsets = [0, 384], sizes = [16, 128], strides = [1, 1]} : vector<16x512xf32> to vector<16x128xf32>
    %115 = math.tanh %114 : vector<16x128xf32>
    %116 = arith.mulf %112, %90 : vector<16x128xf32>
    %117 = arith.mulf %111, %115 : vector<16x128xf32>
    %118 = arith.addf %116, %117 : vector<16x128xf32>
    %119 = math.tanh %118 : vector<16x128xf32>
    %120 = arith.mulf %113, %119 : vector<16x128xf32>
    %121 = arith.truncf %120 : vector<16x128xf32> to vector<16x128xbf16>
    %122 = arith.index_cast %c3_i32 : i32 to index
    %c0_45 = arith.constant 0 : index
    %c0_46 = arith.constant 0 : index
    %123 = vector.load %arg5[%122, %c0_45, %c0_46] : memref<8x16x128xbf16, #tpu.memory_space<vmem>>, vector<1x16x128xbf16>
    %124 = vector.shape_cast %123 : vector<1x16x128xbf16> to vector<16x128xbf16>
    %125 = vector.shape_cast %121 : vector<16x128xbf16> to vector<1x16x128xbf16>
    tpu.vector_store %arg5[%122, %c0_45, %c0_46], %125 {strides = array<i32>} : memref<8x16x128xbf16, #tpu.memory_space<vmem>>, vector<1x16x128xbf16>,
    %c4_i32 = arith.constant 4 : i32
    %126 = arith.index_cast %c4_i32 : i32 to index
    %c0_47 = arith.constant 0 : index
    %c0_48 = arith.constant 0 : index
    %127 = vector.load %arg6[%126, %c0_47, %c0_48] : memref<8x16x512xf32, #tpu.memory_space<vmem>>, vector<1x16x512xf32>
    %128 = vector.shape_cast %127 : vector<1x16x512xf32> to vector<16x512xf32>
    %129 = arith.truncf %120 : vector<16x128xf32> to vector<16x128xbf16>
    %c0_49 = arith.constant 0 : index
    %c0_50 = arith.constant 0 : index
    %130 = vector.load %arg3[%c0_49, %c0_50] : memref<128x512xbf16, #tpu.memory_space<vmem>>, vector<128x512xbf16>
    %cst_51 = arith.constant dense<0.000000e+00> : vector<16x512xf32>
    %131 = tpu.matmul %129, %130, %cst_51 {dimension_numbers = #tpu.dot_dimension_numbers<[1], [0], [0], [1], [0, 0, 1, 1], [], []>} : vector<16x128xbf16>, vector<128x512xbf16>, vector<16x512xf32> -> vector<16x512xf32>
    %132 = arith.addf %128, %131 : vector<16x512xf32>
    %133 = vector.extract_strided_slice %132 {offsets = [0, 0], sizes = [16, 384], strides = [1, 1]} : vector<16x512xf32> to vector<16x384xf32>
    %134 = arith.negf %133 : vector<16x384xf32>
    %135 = math.exp %134 : vector<16x384xf32>
    %cst_52 = arith.constant 1.000000e+00 : f32
    %136 = vector.broadcast %cst_52 : f32 to vector<16x384xf32>
    %137 = arith.addf %136, %135 : vector<16x384xf32>
    %138 = arith.divf %136, %137 : vector<16x384xf32>
    %139 = vector.extract_strided_slice %138 {offsets = [0, 0], sizes = [16, 128], strides = [1, 1]} : vector<16x384xf32> to vector<16x128xf32>
    %140 = vector.extract_strided_slice %138 {offsets = [0, 128], sizes = [16, 128], strides = [1, 1]} : vector<16x384xf32> to vector<16x128xf32>
    %141 = vector.extract_strided_slice %138 {offsets = [0, 256], sizes = [16, 128], strides = [1, 1]} : vector<16x384xf32> to vector<16x128xf32>
    %142 = vector.extract_strided_slice %132 {offsets = [0, 384], sizes = [16, 128], strides = [1, 1]} : vector<16x512xf32> to vector<16x128xf32>
    %143 = math.tanh %142 : vector<16x128xf32>
    %144 = arith.mulf %140, %118 : vector<16x128xf32>
    %145 = arith.mulf %139, %143 : vector<16x128xf32>
    %146 = arith.addf %144, %145 : vector<16x128xf32>
    %147 = math.tanh %146 : vector<16x128xf32>
    %148 = arith.mulf %141, %147 : vector<16x128xf32>
    %149 = arith.truncf %148 : vector<16x128xf32> to vector<16x128xbf16>
    %150 = arith.index_cast %c4_i32 : i32 to index
    %c0_53 = arith.constant 0 : index
    %c0_54 = arith.constant 0 : index
    %151 = vector.load %arg5[%150, %c0_53, %c0_54] : memref<8x16x128xbf16, #tpu.memory_space<vmem>>, vector<1x16x128xbf16>
    %152 = vector.shape_cast %151 : vector<1x16x128xbf16> to vector<16x128xbf16>
    %153 = vector.shape_cast %149 : vector<16x128xbf16> to vector<1x16x128xbf16>
    tpu.vector_store %arg5[%150, %c0_53, %c0_54], %153 {strides = array<i32>} : memref<8x16x128xbf16, #tpu.memory_space<vmem>>, vector<1x16x128xbf16>,
    %c5_i32 = arith.constant 5 : i32
    %154 = arith.index_cast %c5_i32 : i32 to index
    %c0_55 = arith.constant 0 : index
    %c0_56 = arith.constant 0 : index
    %155 = vector.load %arg6[%154, %c0_55, %c0_56] : memref<8x16x512xf32, #tpu.memory_space<vmem>>, vector<1x16x512xf32>
    %156 = vector.shape_cast %155 : vector<1x16x512xf32> to vector<16x512xf32>
    %157 = arith.truncf %148 : vector<16x128xf32> to vector<16x128xbf16>
    %c0_57 = arith.constant 0 : index
    %c0_58 = arith.constant 0 : index
    %158 = vector.load %arg3[%c0_57, %c0_58] : memref<128x512xbf16, #tpu.memory_space<vmem>>, vector<128x512xbf16>
    %cst_59 = arith.constant dense<0.000000e+00> : vector<16x512xf32>
    %159 = tpu.matmul %157, %158, %cst_59 {dimension_numbers = #tpu.dot_dimension_numbers<[1], [0], [0], [1], [0, 0, 1, 1], [], []>} : vector<16x128xbf16>, vector<128x512xbf16>, vector<16x512xf32> -> vector<16x512xf32>
    %160 = arith.addf %156, %159 : vector<16x512xf32>
    %161 = vector.extract_strided_slice %160 {offsets = [0, 0], sizes = [16, 384], strides = [1, 1]} : vector<16x512xf32> to vector<16x384xf32>
    %162 = arith.negf %161 : vector<16x384xf32>
    %163 = math.exp %162 : vector<16x384xf32>
    %cst_60 = arith.constant 1.000000e+00 : f32
    %164 = vector.broadcast %cst_60 : f32 to vector<16x384xf32>
    %165 = arith.addf %164, %163 : vector<16x384xf32>
    %166 = arith.divf %164, %165 : vector<16x384xf32>
    %167 = vector.extract_strided_slice %166 {offsets = [0, 0], sizes = [16, 128], strides = [1, 1]} : vector<16x384xf32> to vector<16x128xf32>
    %168 = vector.extract_strided_slice %166 {offsets = [0, 128], sizes = [16, 128], strides = [1, 1]} : vector<16x384xf32> to vector<16x128xf32>
    %169 = vector.extract_strided_slice %166 {offsets = [0, 256], sizes = [16, 128], strides = [1, 1]} : vector<16x384xf32> to vector<16x128xf32>
    %170 = vector.extract_strided_slice %160 {offsets = [0, 384], sizes = [16, 128], strides = [1, 1]} : vector<16x512xf32> to vector<16x128xf32>
    %171 = math.tanh %170 : vector<16x128xf32>
    %172 = arith.mulf %168, %146 : vector<16x128xf32>
    %173 = arith.mulf %167, %171 : vector<16x128xf32>
    %174 = arith.addf %172, %173 : vector<16x128xf32>
    %175 = math.tanh %174 : vector<16x128xf32>
    %176 = arith.mulf %169, %175 : vector<16x128xf32>
    %177 = arith.truncf %176 : vector<16x128xf32> to vector<16x128xbf16>
    %178 = arith.index_cast %c5_i32 : i32 to index
    %c0_61 = arith.constant 0 : index
    %c0_62 = arith.constant 0 : index
    %179 = vector.load %arg5[%178, %c0_61, %c0_62] : memref<8x16x128xbf16, #tpu.memory_space<vmem>>, vector<1x16x128xbf16>
    %180 = vector.shape_cast %179 : vector<1x16x128xbf16> to vector<16x128xbf16>
    %181 = vector.shape_cast %177 : vector<16x128xbf16> to vector<1x16x128xbf16>
    tpu.vector_store %arg5[%178, %c0_61, %c0_62], %181 {strides = array<i32>} : memref<8x16x128xbf16, #tpu.memory_space<vmem>>, vector<1x16x128xbf16>,
    %c6_i32 = arith.constant 6 : i32
    %182 = arith.index_cast %c6_i32 : i32 to index
    %c0_63 = arith.constant 0 : index
    %c0_64 = arith.constant 0 : index
    %183 = vector.load %arg6[%182, %c0_63, %c0_64] : memref<8x16x512xf32, #tpu.memory_space<vmem>>, vector<1x16x512xf32>
    %184 = vector.shape_cast %183 : vector<1x16x512xf32> to vector<16x512xf32>
    %185 = arith.truncf %176 : vector<16x128xf32> to vector<16x128xbf16>
    %c0_65 = arith.constant 0 : index
    %c0_66 = arith.constant 0 : index
    %186 = vector.load %arg3[%c0_65, %c0_66] : memref<128x512xbf16, #tpu.memory_space<vmem>>, vector<128x512xbf16>
    %cst_67 = arith.constant dense<0.000000e+00> : vector<16x512xf32>
    %187 = tpu.matmul %185, %186, %cst_67 {dimension_numbers = #tpu.dot_dimension_numbers<[1], [0], [0], [1], [0, 0, 1, 1], [], []>} : vector<16x128xbf16>, vector<128x512xbf16>, vector<16x512xf32> -> vector<16x512xf32>
    %188 = arith.addf %184, %187 : vector<16x512xf32>
    %189 = vector.extract_strided_slice %188 {offsets = [0, 0], sizes = [16, 384], strides = [1, 1]} : vector<16x512xf32> to vector<16x384xf32>
    %190 = arith.negf %189 : vector<16x384xf32>
    %191 = math.exp %190 : vector<16x384xf32>
    %cst_68 = arith.constant 1.000000e+00 : f32
    %192 = vector.broadcast %cst_68 : f32 to vector<16x384xf32>
    %193 = arith.addf %192, %191 : vector<16x384xf32>
    %194 = arith.divf %192, %193 : vector<16x384xf32>
    %195 = vector.extract_strided_slice %194 {offsets = [0, 0], sizes = [16, 128], strides = [1, 1]} : vector<16x384xf32> to vector<16x128xf32>
    %196 = vector.extract_strided_slice %194 {offsets = [0, 128], sizes = [16, 128], strides = [1, 1]} : vector<16x384xf32> to vector<16x128xf32>
    %197 = vector.extract_strided_slice %194 {offsets = [0, 256], sizes = [16, 128], strides = [1, 1]} : vector<16x384xf32> to vector<16x128xf32>
    %198 = vector.extract_strided_slice %188 {offsets = [0, 384], sizes = [16, 128], strides = [1, 1]} : vector<16x512xf32> to vector<16x128xf32>
    %199 = math.tanh %198 : vector<16x128xf32>
    %200 = arith.mulf %196, %174 : vector<16x128xf32>
    %201 = arith.mulf %195, %199 : vector<16x128xf32>
    %202 = arith.addf %200, %201 : vector<16x128xf32>
    %203 = math.tanh %202 : vector<16x128xf32>
    %204 = arith.mulf %197, %203 : vector<16x128xf32>
    %205 = arith.truncf %204 : vector<16x128xf32> to vector<16x128xbf16>
    %206 = arith.index_cast %c6_i32 : i32 to index
    %c0_69 = arith.constant 0 : index
    %c0_70 = arith.constant 0 : index
    %207 = vector.load %arg5[%206, %c0_69, %c0_70] : memref<8x16x128xbf16, #tpu.memory_space<vmem>>, vector<1x16x128xbf16>
    %208 = vector.shape_cast %207 : vector<1x16x128xbf16> to vector<16x128xbf16>
    %209 = vector.shape_cast %205 : vector<16x128xbf16> to vector<1x16x128xbf16>
    tpu.vector_store %arg5[%206, %c0_69, %c0_70], %209 {strides = array<i32>} : memref<8x16x128xbf16, #tpu.memory_space<vmem>>, vector<1x16x128xbf16>,
    %c7_i32 = arith.constant 7 : i32
    %210 = arith.index_cast %c7_i32 : i32 to index
    %c0_71 = arith.constant 0 : index
    %c0_72 = arith.constant 0 : index
    %211 = vector.load %arg6[%210, %c0_71, %c0_72] : memref<8x16x512xf32, #tpu.memory_space<vmem>>, vector<1x16x512xf32>
    %212 = vector.shape_cast %211 : vector<1x16x512xf32> to vector<16x512xf32>
    %213 = arith.truncf %204 : vector<16x128xf32> to vector<16x128xbf16>
    %c0_73 = arith.constant 0 : index
    %c0_74 = arith.constant 0 : index
    %214 = vector.load %arg3[%c0_73, %c0_74] : memref<128x512xbf16, #tpu.memory_space<vmem>>, vector<128x512xbf16>
    %cst_75 = arith.constant dense<0.000000e+00> : vector<16x512xf32>
    %215 = tpu.matmul %213, %214, %cst_75 {dimension_numbers = #tpu.dot_dimension_numbers<[1], [0], [0], [1], [0, 0, 1, 1], [], []>} : vector<16x128xbf16>, vector<128x512xbf16>, vector<16x512xf32> -> vector<16x512xf32>
    %216 = arith.addf %212, %215 : vector<16x512xf32>
    %217 = vector.extract_strided_slice %216 {offsets = [0, 0], sizes = [16, 384], strides = [1, 1]} : vector<16x512xf32> to vector<16x384xf32>
    %218 = arith.negf %217 : vector<16x384xf32>
    %219 = math.exp %218 : vector<16x384xf32>
    %cst_76 = arith.constant 1.000000e+00 : f32
    %220 = vector.broadcast %cst_76 : f32 to vector<16x384xf32>
    %221 = arith.addf %220, %219 : vector<16x384xf32>
    %222 = arith.divf %220, %221 : vector<16x384xf32>
    %223 = vector.extract_strided_slice %222 {offsets = [0, 0], sizes = [16, 128], strides = [1, 1]} : vector<16x384xf32> to vector<16x128xf32>
    %224 = vector.extract_strided_slice %222 {offsets = [0, 128], sizes = [16, 128], strides = [1, 1]} : vector<16x384xf32> to vector<16x128xf32>
    %225 = vector.extract_strided_slice %222 {offsets = [0, 256], sizes = [16, 128], strides = [1, 1]} : vector<16x384xf32> to vector<16x128xf32>
    %226 = vector.extract_strided_slice %216 {offsets = [0, 384], sizes = [16, 128], strides = [1, 1]} : vector<16x512xf32> to vector<16x128xf32>
    %227 = math.tanh %226 : vector<16x128xf32>
    %228 = arith.mulf %224, %202 : vector<16x128xf32>
    %229 = arith.mulf %223, %227 : vector<16x128xf32>
    %230 = arith.addf %228, %229 : vector<16x128xf32>
    %231 = math.tanh %230 : vector<16x128xf32>
    %232 = arith.mulf %225, %231 : vector<16x128xf32>
    %233 = arith.truncf %232 : vector<16x128xf32> to vector<16x128xbf16>
    %234 = arith.index_cast %c7_i32 : i32 to index
    %c0_77 = arith.constant 0 : index
    %c0_78 = arith.constant 0 : index
    %235 = vector.load %arg5[%234, %c0_77, %c0_78] : memref<8x16x128xbf16, #tpu.memory_space<vmem>>, vector<1x16x128xbf16>
    %236 = vector.shape_cast %235 : vector<1x16x128xbf16> to vector<16x128xbf16>
    %237 = vector.shape_cast %233 : vector<16x128xbf16> to vector<1x16x128xbf16>
    tpu.vector_store %arg5[%234, %c0_77, %c0_78], %237 {strides = array<i32>} : memref<8x16x128xbf16, #tpu.memory_space<vmem>>, vector<1x16x128xbf16>,
    %c8_i32 = arith.constant 8 : i32
    %c0_79 = arith.constant 0 : index
    %c0_80 = arith.constant 0 : index
    %238 = vector.load %arg7[%c0_79, %c0_80] : memref<16x128xf32, #tpu.memory_space<vmem>>, vector<16x128xf32>
    tpu.vector_store %arg7[%c0_79, %c0_80], %232 {strides = array<i32>} : memref<16x128xf32, #tpu.memory_space<vmem>>, vector<16x128xf32>,
    %c0_81 = arith.constant 0 : index
    %c0_82 = arith.constant 0 : index
    %239 = vector.load %arg8[%c0_81, %c0_82] : memref<16x128xf32, #tpu.memory_space<vmem>>, vector<16x128xf32>
    tpu.vector_store %arg8[%c0_81, %c0_82], %230 {strides = array<i32>} : memref<16x128xf32, #tpu.memory_space<vmem>>, vector<16x128xf32>,
    return
  }
  func.func @transform_0(%arg0: i32) -> (i32, i32, i32) {
    %c0_i32 = arith.constant 0 : i32
    %c0_i32_0 = arith.constant 0 : i32
    %c0_i32_1 = arith.constant 0 : i32
    return %arg0, %c0_i32, %c0_i32_0 : i32, i32, i32
  }
  func.func @transform_1(%arg0: i32) -> (i32, i32) {
    %c0_i32 = arith.constant 0 : i32
    %c0_i32_0 = arith.constant 0 : i32
    %c0_i32_1 = arith.constant 0 : i32
    return %c0_i32, %c0_i32_0 : i32, i32
  }
  func.func @transform_2(%arg0: i32) -> (i32, i32) {
    %c0_i32 = arith.constant 0 : i32
    %c0_i32_0 = arith.constant 0 : i32
    %c0_i32_1 = arith.constant 0 : i32
    return %c0_i32, %c0_i32_0 : i32, i32
  }
  func.func @transform_3(%arg0: i32) -> (i32, i32) {
    %c0_i32 = arith.constant 0 : i32
    %c0_i32_0 = arith.constant 0 : i32
    %c0_i32_1 = arith.constant 0 : i32
    return %c0_i32, %c0_i32_0 : i32, i32
  }
  func.func @transform_4(%arg0: i32) -> (i32, i32, i32) {
    %c0_i32 = arith.constant 0 : i32
    %c0_i32_0 = arith.constant 0 : i32
    %c0_i32_1 = arith.constant 0 : i32
    return %arg0, %c0_i32, %c0_i32_0 : i32, i32, i32
  }
}

module attributes {stable_mosaic.version = 11 : i64} {
  func.func @_glu_layernorm_kernel(%arg0: i32, %arg1: memref<8x16x128xbf16, #tpu.memory_space<vmem>>, %arg2: memref<128x256xbf16, #tpu.memory_space<vmem>>, %arg3: memref<1x256xf32, #tpu.memory_space<vmem>>, %arg4: memref<1x128xf32, #tpu.memory_space<vmem>>, %arg5: memref<1x128xf32, #tpu.memory_space<vmem>>, %arg6: memref<16x8x128xf32, #tpu.memory_space<vmem>>, %arg7: memref<8x16x128xf32, #tpu.memory_space<vmem>>) attributes {dimension_semantics = [#tpu.dimension_semantics<parallel>], iteration_bounds = array<i64: 1>, scalar_prefetch = 0 : i64, scratch_operands = 1 : i64, tpu.core_type = #tpu.core_type<tc>, window_params = [{transform_indices = @transform_0, window_bounds = array<i64: 8, 16, 128>}, {pipeline_mode = #tpu.pipeline_mode<synchronous>, transform_indices = @transform_1, window_bounds = array<i64: 128, 256>}, {pipeline_mode = #tpu.pipeline_mode<synchronous>, transform_indices = @transform_2, window_bounds = array<i64: 1, 256>}, {pipeline_mode = #tpu.pipeline_mode<synchronous>, transform_indices = @transform_3, window_bounds = array<i64: 1, 128>}, {pipeline_mode = #tpu.pipeline_mode<synchronous>, transform_indices = @transform_4, window_bounds = array<i64: 1, 128>}, {transform_indices = @transform_5, window_bounds = array<i64: 16, 8, 128>}]} {
    %c0 = arith.constant 0 : index
    %c0_0 = arith.constant 0 : index
    %c0_1 = arith.constant 0 : index
    %0 = vector.load %arg1[%c0, %c0_0, %c0_1] : memref<8x16x128xbf16, #tpu.memory_space<vmem>>, vector<8x16x128xbf16>
    %1 = vector.shape_cast %0 : vector<8x16x128xbf16> to vector<128x128xbf16>
    %c0_2 = arith.constant 0 : index
    %c0_3 = arith.constant 0 : index
    %2 = vector.load %arg2[%c0_2, %c0_3] : memref<128x256xbf16, #tpu.memory_space<vmem>>, vector<128x256xbf16>
    %cst = arith.constant dense<0.000000e+00> : vector<128x256xf32>
    %3 = tpu.matmul %1, %2, %cst {dimension_numbers = #tpu.dot_dimension_numbers<[1], [0], [0], [1], [0, 0, 1, 1], [], []>} : vector<128x128xbf16>, vector<128x256xbf16>, vector<128x256xf32> -> vector<128x256xf32>
    %c0_4 = arith.constant 0 : index
    %c0_5 = arith.constant 0 : index
    %4 = vector.load %arg3[%c0_4, %c0_5] : memref<1x256xf32, #tpu.memory_space<vmem>>, vector<1x256xf32>
    %5 = vector.broadcast %4 : vector<1x256xf32> to vector<128x256xf32>
    %6 = arith.addf %3, %5 : vector<128x256xf32>
    %7 = vector.extract_strided_slice %6 {offsets = [0, 0], sizes = [128, 128], strides = [1, 1]} : vector<128x256xf32> to vector<128x128xf32>
    %8 = vector.extract_strided_slice %6 {offsets = [0, 128], sizes = [128, 128], strides = [1, 1]} : vector<128x256xf32> to vector<128x128xf32>
    %9 = arith.negf %8 : vector<128x128xf32>
    %10 = math.exp %9 : vector<128x128xf32>
    %cst_6 = arith.constant 1.000000e+00 : f32
    %11 = vector.broadcast %cst_6 : f32 to vector<128x128xf32>
    %12 = arith.addf %11, %10 : vector<128x128xf32>
    %13 = arith.divf %11, %12 : vector<128x128xf32>
    %14 = arith.mulf %7, %13 : vector<128x128xf32>
    %cst_7 = arith.constant dense<0.000000e+00> : vector<128xf32>
    %15 = vector.multi_reduction <add>, %14, %cst_7 [1] : vector<128x128xf32> to vector<128xf32>
    %16 = vector.shape_cast %15 : vector<128xf32> to vector<128x1xf32>
    %cst_8 = arith.constant 3.125000e-02 : f32
    %17 = vector.broadcast %cst_8 : f32 to vector<128x1xf32>
    %18 = arith.mulf %16, %17 : vector<128x1xf32>
    %19 = arith.mulf %14, %14 : vector<128x128xf32>
    %cst_9 = arith.constant dense<0.000000e+00> : vector<128xf32>
    %20 = vector.multi_reduction <add>, %19, %cst_9 [1] : vector<128x128xf32> to vector<128xf32>
    %21 = vector.shape_cast %20 : vector<128xf32> to vector<128x1xf32>
    %cst_10 = arith.constant 3.125000e-02 : f32
    %22 = vector.broadcast %cst_10 : f32 to vector<128x1xf32>
    %23 = arith.mulf %21, %22 : vector<128x1xf32>
    %24 = arith.mulf %18, %18 : vector<128x1xf32>
    %25 = arith.subf %23, %24 : vector<128x1xf32>
    %26 = vector.broadcast %18 : vector<128x1xf32> to vector<128x128xf32>
    %27 = arith.subf %14, %26 : vector<128x128xf32>
    %cst_11 = arith.constant 9.99999974E-6 : f32
    %28 = vector.broadcast %cst_11 : f32 to vector<128x1xf32>
    %29 = arith.addf %25, %28 : vector<128x1xf32>
    %30 = math.rsqrt %29 : vector<128x1xf32>
    %31 = vector.broadcast %30 : vector<128x1xf32> to vector<128x128xf32>
    %32 = arith.mulf %27, %31 : vector<128x128xf32>
    %c0_12 = arith.constant 0 : index
    %c0_13 = arith.constant 0 : index
    %33 = vector.load %arg4[%c0_12, %c0_13] : memref<1x128xf32, #tpu.memory_space<vmem>>, vector<1x128xf32>
    %34 = vector.broadcast %33 : vector<1x128xf32> to vector<128x128xf32>
    %35 = arith.mulf %32, %34 : vector<128x128xf32>
    %c0_14 = arith.constant 0 : index
    %c0_15 = arith.constant 0 : index
    %36 = vector.load %arg5[%c0_14, %c0_15] : memref<1x128xf32, #tpu.memory_space<vmem>>, vector<1x128xf32>
    %37 = vector.broadcast %36 : vector<1x128xf32> to vector<128x128xf32>
    %38 = arith.addf %35, %37 : vector<128x128xf32>
    %39 = vector.shape_cast %38 : vector<128x128xf32> to vector<8x16x128xf32>
    %c0_16 = arith.constant 0 : index
    %c0_17 = arith.constant 0 : index
    %c0_18 = arith.constant 0 : index
    %40 = vector.load %arg7[%c0_16, %c0_17, %c0_18] : memref<8x16x128xf32, #tpu.memory_space<vmem>>, vector<8x16x128xf32>
    tpu.vector_store %arg7[%c0_16, %c0_17, %c0_18], %39 {strides = array<i32>} : memref<8x16x128xf32, #tpu.memory_space<vmem>>, vector<8x16x128xf32>,
    %c0_19 = arith.constant 0 : index
    %c0_20 = arith.constant 0 : index
    %c0_21 = arith.constant 0 : index
    %41 = vector.load %arg7[%c0_19, %c0_20, %c0_21] : memref<8x16x128xf32, #tpu.memory_space<vmem>>, vector<8x1x128xf32>
    %42 = vector.shape_cast %41 : vector<8x1x128xf32> to vector<8x128xf32>
    %c0_22 = arith.constant 0 : index
    %c0_23 = arith.constant 0 : index
    %c0_24 = arith.constant 0 : index
    %43 = vector.load %arg6[%c0_22, %c0_23, %c0_24] : memref<16x8x128xf32, #tpu.memory_space<vmem>>, vector<1x8x128xf32>
    %44 = vector.shape_cast %43 : vector<1x8x128xf32> to vector<8x128xf32>
    %45 = vector.shape_cast %42 : vector<8x128xf32> to vector<1x8x128xf32>
    tpu.vector_store %arg6[%c0_22, %c0_23, %c0_24], %45 {strides = array<i32>} : memref<16x8x128xf32, #tpu.memory_space<vmem>>, vector<1x8x128xf32>,
    %c0_25 = arith.constant 0 : index
    %c1 = arith.constant 1 : index
    %c0_26 = arith.constant 0 : index
    %46 = vector.load %arg7[%c0_25, %c1, %c0_26] : memref<8x16x128xf32, #tpu.memory_space<vmem>>, vector<8x1x128xf32>
    %47 = vector.shape_cast %46 : vector<8x1x128xf32> to vector<8x128xf32>
    %c1_27 = arith.constant 1 : index
    %c0_28 = arith.constant 0 : index
    %c0_29 = arith.constant 0 : index
    %48 = vector.load %arg6[%c1_27, %c0_28, %c0_29] : memref<16x8x128xf32, #tpu.memory_space<vmem>>, vector<1x8x128xf32>
    %49 = vector.shape_cast %48 : vector<1x8x128xf32> to vector<8x128xf32>
    %50 = vector.shape_cast %47 : vector<8x128xf32> to vector<1x8x128xf32>
    tpu.vector_store %arg6[%c1_27, %c0_28, %c0_29], %50 {strides = array<i32>} : memref<16x8x128xf32, #tpu.memory_space<vmem>>, vector<1x8x128xf32>,
    %c0_30 = arith.constant 0 : index
    %c2 = arith.constant 2 : index
    %c0_31 = arith.constant 0 : index
    %51 = vector.load %arg7[%c0_30, %c2, %c0_31] : memref<8x16x128xf32, #tpu.memory_space<vmem>>, vector<8x1x128xf32>
    %52 = vector.shape_cast %51 : vector<8x1x128xf32> to vector<8x128xf32>
    %c2_32 = arith.constant 2 : index
    %c0_33 = arith.constant 0 : index
    %c0_34 = arith.constant 0 : index
    %53 = vector.load %arg6[%c2_32, %c0_33, %c0_34] : memref<16x8x128xf32, #tpu.memory_space<vmem>>, vector<1x8x128xf32>
    %54 = vector.shape_cast %53 : vector<1x8x128xf32> to vector<8x128xf32>
    %55 = vector.shape_cast %52 : vector<8x128xf32> to vector<1x8x128xf32>
    tpu.vector_store %arg6[%c2_32, %c0_33, %c0_34], %55 {strides = array<i32>} : memref<16x8x128xf32, #tpu.memory_space<vmem>>, vector<1x8x128xf32>,
    %c0_35 = arith.constant 0 : index
    %c3 = arith.constant 3 : index
    %c0_36 = arith.constant 0 : index
    %56 = vector.load %arg7[%c0_35, %c3, %c0_36] : memref<8x16x128xf32, #tpu.memory_space<vmem>>, vector<8x1x128xf32>
    %57 = vector.shape_cast %56 : vector<8x1x128xf32> to vector<8x128xf32>
    %c3_37 = arith.constant 3 : index
    %c0_38 = arith.constant 0 : index
    %c0_39 = arith.constant 0 : index
    %58 = vector.load %arg6[%c3_37, %c0_38, %c0_39] : memref<16x8x128xf32, #tpu.memory_space<vmem>>, vector<1x8x128xf32>
    %59 = vector.shape_cast %58 : vector<1x8x128xf32> to vector<8x128xf32>
    %60 = vector.shape_cast %57 : vector<8x128xf32> to vector<1x8x128xf32>
    tpu.vector_store %arg6[%c3_37, %c0_38, %c0_39], %60 {strides = array<i32>} : memref<16x8x128xf32, #tpu.memory_space<vmem>>, vector<1x8x128xf32>,
    %c0_40 = arith.constant 0 : index
    %c4 = arith.constant 4 : index
    %c0_41 = arith.constant 0 : index
    %61 = vector.load %arg7[%c0_40, %c4, %c0_41] : memref<8x16x128xf32, #tpu.memory_space<vmem>>, vector<8x1x128xf32>
    %62 = vector.shape_cast %61 : vector<8x1x128xf32> to vector<8x128xf32>
    %c4_42 = arith.constant 4 : index
    %c0_43 = arith.constant 0 : index
    %c0_44 = arith.constant 0 : index
    %63 = vector.load %arg6[%c4_42, %c0_43, %c0_44] : memref<16x8x128xf32, #tpu.memory_space<vmem>>, vector<1x8x128xf32>
    %64 = vector.shape_cast %63 : vector<1x8x128xf32> to vector<8x128xf32>
    %65 = vector.shape_cast %62 : vector<8x128xf32> to vector<1x8x128xf32>
    tpu.vector_store %arg6[%c4_42, %c0_43, %c0_44], %65 {strides = array<i32>} : memref<16x8x128xf32, #tpu.memory_space<vmem>>, vector<1x8x128xf32>,
    %c0_45 = arith.constant 0 : index
    %c5 = arith.constant 5 : index
    %c0_46 = arith.constant 0 : index
    %66 = vector.load %arg7[%c0_45, %c5, %c0_46] : memref<8x16x128xf32, #tpu.memory_space<vmem>>, vector<8x1x128xf32>
    %67 = vector.shape_cast %66 : vector<8x1x128xf32> to vector<8x128xf32>
    %c5_47 = arith.constant 5 : index
    %c0_48 = arith.constant 0 : index
    %c0_49 = arith.constant 0 : index
    %68 = vector.load %arg6[%c5_47, %c0_48, %c0_49] : memref<16x8x128xf32, #tpu.memory_space<vmem>>, vector<1x8x128xf32>
    %69 = vector.shape_cast %68 : vector<1x8x128xf32> to vector<8x128xf32>
    %70 = vector.shape_cast %67 : vector<8x128xf32> to vector<1x8x128xf32>
    tpu.vector_store %arg6[%c5_47, %c0_48, %c0_49], %70 {strides = array<i32>} : memref<16x8x128xf32, #tpu.memory_space<vmem>>, vector<1x8x128xf32>,
    %c0_50 = arith.constant 0 : index
    %c6 = arith.constant 6 : index
    %c0_51 = arith.constant 0 : index
    %71 = vector.load %arg7[%c0_50, %c6, %c0_51] : memref<8x16x128xf32, #tpu.memory_space<vmem>>, vector<8x1x128xf32>
    %72 = vector.shape_cast %71 : vector<8x1x128xf32> to vector<8x128xf32>
    %c6_52 = arith.constant 6 : index
    %c0_53 = arith.constant 0 : index
    %c0_54 = arith.constant 0 : index
    %73 = vector.load %arg6[%c6_52, %c0_53, %c0_54] : memref<16x8x128xf32, #tpu.memory_space<vmem>>, vector<1x8x128xf32>
    %74 = vector.shape_cast %73 : vector<1x8x128xf32> to vector<8x128xf32>
    %75 = vector.shape_cast %72 : vector<8x128xf32> to vector<1x8x128xf32>
    tpu.vector_store %arg6[%c6_52, %c0_53, %c0_54], %75 {strides = array<i32>} : memref<16x8x128xf32, #tpu.memory_space<vmem>>, vector<1x8x128xf32>,
    %c0_55 = arith.constant 0 : index
    %c7 = arith.constant 7 : index
    %c0_56 = arith.constant 0 : index
    %76 = vector.load %arg7[%c0_55, %c7, %c0_56] : memref<8x16x128xf32, #tpu.memory_space<vmem>>, vector<8x1x128xf32>
    %77 = vector.shape_cast %76 : vector<8x1x128xf32> to vector<8x128xf32>
    %c7_57 = arith.constant 7 : index
    %c0_58 = arith.constant 0 : index
    %c0_59 = arith.constant 0 : index
    %78 = vector.load %arg6[%c7_57, %c0_58, %c0_59] : memref<16x8x128xf32, #tpu.memory_space<vmem>>, vector<1x8x128xf32>
    %79 = vector.shape_cast %78 : vector<1x8x128xf32> to vector<8x128xf32>
    %80 = vector.shape_cast %77 : vector<8x128xf32> to vector<1x8x128xf32>
    tpu.vector_store %arg6[%c7_57, %c0_58, %c0_59], %80 {strides = array<i32>} : memref<16x8x128xf32, #tpu.memory_space<vmem>>, vector<1x8x128xf32>,
    %c0_60 = arith.constant 0 : index
    %c8 = arith.constant 8 : index
    %c0_61 = arith.constant 0 : index
    %81 = vector.load %arg7[%c0_60, %c8, %c0_61] : memref<8x16x128xf32, #tpu.memory_space<vmem>>, vector<8x1x128xf32>
    %82 = vector.shape_cast %81 : vector<8x1x128xf32> to vector<8x128xf32>
    %c8_62 = arith.constant 8 : index
    %c0_63 = arith.constant 0 : index
    %c0_64 = arith.constant 0 : index
    %83 = vector.load %arg6[%c8_62, %c0_63, %c0_64] : memref<16x8x128xf32, #tpu.memory_space<vmem>>, vector<1x8x128xf32>
    %84 = vector.shape_cast %83 : vector<1x8x128xf32> to vector<8x128xf32>
    %85 = vector.shape_cast %82 : vector<8x128xf32> to vector<1x8x128xf32>
    tpu.vector_store %arg6[%c8_62, %c0_63, %c0_64], %85 {strides = array<i32>} : memref<16x8x128xf32, #tpu.memory_space<vmem>>, vector<1x8x128xf32>,
    %c0_65 = arith.constant 0 : index
    %c9 = arith.constant 9 : index
    %c0_66 = arith.constant 0 : index
    %86 = vector.load %arg7[%c0_65, %c9, %c0_66] : memref<8x16x128xf32, #tpu.memory_space<vmem>>, vector<8x1x128xf32>
    %87 = vector.shape_cast %86 : vector<8x1x128xf32> to vector<8x128xf32>
    %c9_67 = arith.constant 9 : index
    %c0_68 = arith.constant 0 : index
    %c0_69 = arith.constant 0 : index
    %88 = vector.load %arg6[%c9_67, %c0_68, %c0_69] : memref<16x8x128xf32, #tpu.memory_space<vmem>>, vector<1x8x128xf32>
    %89 = vector.shape_cast %88 : vector<1x8x128xf32> to vector<8x128xf32>
    %90 = vector.shape_cast %87 : vector<8x128xf32> to vector<1x8x128xf32>
    tpu.vector_store %arg6[%c9_67, %c0_68, %c0_69], %90 {strides = array<i32>} : memref<16x8x128xf32, #tpu.memory_space<vmem>>, vector<1x8x128xf32>,
    %c0_70 = arith.constant 0 : index
    %c10 = arith.constant 10 : index
    %c0_71 = arith.constant 0 : index
    %91 = vector.load %arg7[%c0_70, %c10, %c0_71] : memref<8x16x128xf32, #tpu.memory_space<vmem>>, vector<8x1x128xf32>
    %92 = vector.shape_cast %91 : vector<8x1x128xf32> to vector<8x128xf32>
    %c10_72 = arith.constant 10 : index
    %c0_73 = arith.constant 0 : index
    %c0_74 = arith.constant 0 : index
    %93 = vector.load %arg6[%c10_72, %c0_73, %c0_74] : memref<16x8x128xf32, #tpu.memory_space<vmem>>, vector<1x8x128xf32>
    %94 = vector.shape_cast %93 : vector<1x8x128xf32> to vector<8x128xf32>
    %95 = vector.shape_cast %92 : vector<8x128xf32> to vector<1x8x128xf32>
    tpu.vector_store %arg6[%c10_72, %c0_73, %c0_74], %95 {strides = array<i32>} : memref<16x8x128xf32, #tpu.memory_space<vmem>>, vector<1x8x128xf32>,
    %c0_75 = arith.constant 0 : index
    %c11 = arith.constant 11 : index
    %c0_76 = arith.constant 0 : index
    %96 = vector.load %arg7[%c0_75, %c11, %c0_76] : memref<8x16x128xf32, #tpu.memory_space<vmem>>, vector<8x1x128xf32>
    %97 = vector.shape_cast %96 : vector<8x1x128xf32> to vector<8x128xf32>
    %c11_77 = arith.constant 11 : index
    %c0_78 = arith.constant 0 : index
    %c0_79 = arith.constant 0 : index
    %98 = vector.load %arg6[%c11_77, %c0_78, %c0_79] : memref<16x8x128xf32, #tpu.memory_space<vmem>>, vector<1x8x128xf32>
    %99 = vector.shape_cast %98 : vector<1x8x128xf32> to vector<8x128xf32>
    %100 = vector.shape_cast %97 : vector<8x128xf32> to vector<1x8x128xf32>
    tpu.vector_store %arg6[%c11_77, %c0_78, %c0_79], %100 {strides = array<i32>} : memref<16x8x128xf32, #tpu.memory_space<vmem>>, vector<1x8x128xf32>,
    %c0_80 = arith.constant 0 : index
    %c12 = arith.constant 12 : index
    %c0_81 = arith.constant 0 : index
    %101 = vector.load %arg7[%c0_80, %c12, %c0_81] : memref<8x16x128xf32, #tpu.memory_space<vmem>>, vector<8x1x128xf32>
    %102 = vector.shape_cast %101 : vector<8x1x128xf32> to vector<8x128xf32>
    %c12_82 = arith.constant 12 : index
    %c0_83 = arith.constant 0 : index
    %c0_84 = arith.constant 0 : index
    %103 = vector.load %arg6[%c12_82, %c0_83, %c0_84] : memref<16x8x128xf32, #tpu.memory_space<vmem>>, vector<1x8x128xf32>
    %104 = vector.shape_cast %103 : vector<1x8x128xf32> to vector<8x128xf32>
    %105 = vector.shape_cast %102 : vector<8x128xf32> to vector<1x8x128xf32>
    tpu.vector_store %arg6[%c12_82, %c0_83, %c0_84], %105 {strides = array<i32>} : memref<16x8x128xf32, #tpu.memory_space<vmem>>, vector<1x8x128xf32>,
    %c0_85 = arith.constant 0 : index
    %c13 = arith.constant 13 : index
    %c0_86 = arith.constant 0 : index
    %106 = vector.load %arg7[%c0_85, %c13, %c0_86] : memref<8x16x128xf32, #tpu.memory_space<vmem>>, vector<8x1x128xf32>
    %107 = vector.shape_cast %106 : vector<8x1x128xf32> to vector<8x128xf32>
    %c13_87 = arith.constant 13 : index
    %c0_88 = arith.constant 0 : index
    %c0_89 = arith.constant 0 : index
    %108 = vector.load %arg6[%c13_87, %c0_88, %c0_89] : memref<16x8x128xf32, #tpu.memory_space<vmem>>, vector<1x8x128xf32>
    %109 = vector.shape_cast %108 : vector<1x8x128xf32> to vector<8x128xf32>
    %110 = vector.shape_cast %107 : vector<8x128xf32> to vector<1x8x128xf32>
    tpu.vector_store %arg6[%c13_87, %c0_88, %c0_89], %110 {strides = array<i32>} : memref<16x8x128xf32, #tpu.memory_space<vmem>>, vector<1x8x128xf32>,
    %c0_90 = arith.constant 0 : index
    %c14 = arith.constant 14 : index
    %c0_91 = arith.constant 0 : index
    %111 = vector.load %arg7[%c0_90, %c14, %c0_91] : memref<8x16x128xf32, #tpu.memory_space<vmem>>, vector<8x1x128xf32>
    %112 = vector.shape_cast %111 : vector<8x1x128xf32> to vector<8x128xf32>
    %c14_92 = arith.constant 14 : index
    %c0_93 = arith.constant 0 : index
    %c0_94 = arith.constant 0 : index
    %113 = vector.load %arg6[%c14_92, %c0_93, %c0_94] : memref<16x8x128xf32, #tpu.memory_space<vmem>>, vector<1x8x128xf32>
    %114 = vector.shape_cast %113 : vector<1x8x128xf32> to vector<8x128xf32>
    %115 = vector.shape_cast %112 : vector<8x128xf32> to vector<1x8x128xf32>
    tpu.vector_store %arg6[%c14_92, %c0_93, %c0_94], %115 {strides = array<i32>} : memref<16x8x128xf32, #tpu.memory_space<vmem>>, vector<1x8x128xf32>,
    %c0_95 = arith.constant 0 : index
    %c15 = arith.constant 15 : index
    %c0_96 = arith.constant 0 : index
    %116 = vector.load %arg7[%c0_95, %c15, %c0_96] : memref<8x16x128xf32, #tpu.memory_space<vmem>>, vector<8x1x128xf32>
    %117 = vector.shape_cast %116 : vector<8x1x128xf32> to vector<8x128xf32>
    %c15_97 = arith.constant 15 : index
    %c0_98 = arith.constant 0 : index
    %c0_99 = arith.constant 0 : index
    %118 = vector.load %arg6[%c15_97, %c0_98, %c0_99] : memref<16x8x128xf32, #tpu.memory_space<vmem>>, vector<1x8x128xf32>
    %119 = vector.shape_cast %118 : vector<1x8x128xf32> to vector<8x128xf32>
    %120 = vector.shape_cast %117 : vector<8x128xf32> to vector<1x8x128xf32>
    tpu.vector_store %arg6[%c15_97, %c0_98, %c0_99], %120 {strides = array<i32>} : memref<16x8x128xf32, #tpu.memory_space<vmem>>, vector<1x8x128xf32>,
    return
  }
  func.func @transform_0(%arg0: i32) -> (i32, i32, i32) {
    %c0_i32 = arith.constant 0 : i32
    %c0_i32_0 = arith.constant 0 : i32
    %c0_i32_1 = arith.constant 0 : i32
    return %arg0, %c0_i32, %c0_i32_0 : i32, i32, i32
  }
  func.func @transform_1(%arg0: i32) -> (i32, i32) {
    %c0_i32 = arith.constant 0 : i32
    %c0_i32_0 = arith.constant 0 : i32
    %c0_i32_1 = arith.constant 0 : i32
    return %c0_i32, %c0_i32_0 : i32, i32
  }
  func.func @transform_2(%arg0: i32) -> (i32, i32) {
    %c0_i32 = arith.constant 0 : i32
    %c0_i32_0 = arith.constant 0 : i32
    %c0_i32_1 = arith.constant 0 : i32
    return %c0_i32, %c0_i32_0 : i32, i32
  }
  func.func @transform_3(%arg0: i32) -> (i32, i32) {
    %c0_i32 = arith.constant 0 : i32
    %c0_i32_0 = arith.constant 0 : i32
    %c0_i32_1 = arith.constant 0 : i32
    return %c0_i32, %c0_i32_0 : i32, i32
  }
  func.func @transform_4(%arg0: i32) -> (i32, i32) {
    %c0_i32 = arith.constant 0 : i32
    %c0_i32_0 = arith.constant 0 : i32
    %c0_i32_1 = arith.constant 0 : i32
    return %c0_i32, %c0_i32_0 : i32, i32
  }
  func.func @transform_5(%arg0: i32) -> (i32, i32, i32) {
    %c0_i32 = arith.constant 0 : i32
    %c0_i32_0 = arith.constant 0 : i32
    %c0_i32_1 = arith.constant 0 : i32
    return %c0_i32, %arg0, %c0_i32_0 : i32, i32, i32
  }
}

</mosaic_0001>

<bundles_post_ra>
// kernel: lstm_embedding.3
= control target key start
LH: loop header
LB: loop body
LE: loop exit
PB: predicated region body
PF: predicated region fallthrough
CT: control target
= control target key end

     0   :  { %10 = vsyncpa [#allocation4], 0  ;;  %s1863_s21 = smov [#allocation3]   ;;  %s1864_s23 = smov 128   ;;  %s3100_s0 = inlined_call_operand.vmem [shape: bf16[8,16,128], index: 0, kind: input, shape index: {}]   ;;  %s3101_s1 = inlined_call_operand.hbm [shape: bf16[128,256], index: 1, kind: input, shape index: {}]   ;;  %s3102_s2 = inlined_call_operand.vmem [shape: f32[1,256], index: 2, kind: input, shape index: {}]   ;;  %s3103_s3 = inlined_call_operand.vmem [shape: f32[1,128], index: 3, kind: input, shape index: {}]   ;;  %s3104_s4 = inlined_call_operand.vmem [shape: f32[1,128], index: 4, kind: input, shape index: {}]   ;;  %s3105_s5 = inlined_call_operand.vmem [shape: f32[16,8,128], index: 5, kind: output, shape index: {}]  }
   0x1   :  { %s17_s20 = sshll.u32 %s3101_s1, 4  ;;  %s19_s22 = sshll.u32 %s1863_s21, 4  ;;  %s18_s20 = int_to_ptr.hbm [resolvable:$true] %s17_s20  ;;  %s20_s22 = int_to_ptr.vmem [resolvable:$true] %s19_s22 }
   0x2   :  { %s1865_s24 = smov 8  }
   0x3   :  { %25 = dma.hbm_to_vmem [thread:$0]  %s18_s20, 2048, %s20_s22, [#allocation4], %s1864_s23, %s1864_s23, %s1865_s24  }
   0x4   :  { %1861 = dma.done.wait [#allocation4], 2048  }
   0x5   :  { %1862 = vsyncadd [#allocation4], 4294965248  ;;  %v1716_v0 = vld [vmem:[#allocation3 + $0x74] sm:$0xf]  ;;  %v1659_v1 = vld [vmem:[#allocation3 + $0x78] sm:$0xf0] }
   0x6   :  { %v1714_v2 = vld [vmem:[#allocation3 + $0x64] sm:$0xf]  ;;  %v1662_v3 = vor.u32 %v1716_v0, %v1659_v1  ;;  %v1651_v4 = vld [vmem:[#allocation3 + $0x68] sm:$0xf0]  ;;  %v1657_v6 = vld [vmem:[#allocation3 + $0x70] sm:$0xf] }
   0x7   :  { %v1654_v5 = vor.u32 %v1714_v2, %v1651_v4  ;;  %v1717_v7 = vld [vmem:[#allocation3 + $0x74] sm:$0xf0]  ;;  %v1712_v8 = vld [vmem:[#allocation3 + $0x54] sm:$0xf]  ;;  %v1643_v9 = vld [vmem:[#allocation3 + $0x58] sm:$0xf0] }
   0x8   :  { %251 = vmatpush.bf16.msra.mxu1 %v1662_v3  ;;  %1726 = vmatpush.bf16.msra.mxu3 %v1662_v3  ;;  %v1658_v10 = vor.u32 %v1717_v7, %v1657_v6  ;;  %v1649_v11 = vld [vmem:[#allocation3 + $0x60] sm:$0xf]  ;;  %v1715_v12 = vld [vmem:[#allocation3 + $0x64] sm:$0xf0]  ;;  %v1646_v14 = vor.u32 %v1712_v8, %v1643_v9  ;;  %v1641_v15 = vld [vmem:[#allocation3 + $0x50] sm:$0xf] }
   0x9   :  { %v1650_v13 = vor.u32 %v1715_v12, %v1649_v11  ;;  %v1713_v16 = vld [vmem:[#allocation3 + $0x54] sm:$0xf0]  ;;  %v1710_v17 = vld [vmem:[#allocation3 + $0x44] sm:$0xf]  ;;  %v1635_v18 = vld [vmem:[#allocation3 + $0x48] sm:$0xf0] }
   0xa   :  { %202 = vmatpush.bf16.msra.mxu0 %v1658_v10  ;;  %1718 = vmatpush.bf16.msra.mxu2 %v1658_v10  ;;  %v1642_v19 = vor.u32 %v1713_v16, %v1641_v15  ;;  %v1633_v20 = vld [vmem:[#allocation3 + $0x40] sm:$0xf]  ;;  %v1638_v21 = vor.u32 %v1710_v17, %v1635_v18  ;;  %v1711_v22 = vld [vmem:[#allocation3 + $0x44] sm:$0xf0]  ;;  %v1708_v23 = vld [vmem:[#allocation3 + $0x34] sm:$0xf] }
   0xb   :  { %v1627_v24 = vld [vmem:[#allocation3 + $0x38] sm:$0xf0]  ;;  %v1634_v25 = vor.u32 %v1711_v22, %v1633_v20  ;;  %v1625_v27 = vld [vmem:[#allocation3 + $0x30] sm:$0xf]  ;;  %v1709_v28 = vld [vmem:[#allocation3 + $0x34] sm:$0xf0] }
   0xc   :  { %252 = vmatpush.bf16.msra.mxu1 %v1654_v5  ;;  %1727 = vmatpush.bf16.msra.mxu3 %v1654_v5  ;;  %v1630_v26 = vor.u32 %v1708_v23, %v1627_v24  ;;  %v1706_v29 = vld [vmem:[#allocation3 + $0x24] sm:$0xf]  ;;  %v1619_v30 = vld [vmem:[#allocation3 + $0x28] sm:$0xf0]  ;;  %v1626_v31 = vor.u32 %v1709_v28, %v1625_v27  ;;  %v1617_v33 = vld [vmem:[#allocation3 + $0x20] sm:$0xf] }
   0xd   :  { %v1622_v32 = vor.u32 %v1706_v29, %v1619_v30  ;;  %v1707_v34 = vld [vmem:[#allocation3 + $0x24] sm:$0xf0]  ;;  %v1704_v35 = vld [vmem:[#allocation3 + $0x14] sm:$0xf]  ;;  %v1611_v36 = vld [vmem:[#allocation3 + $0x18] sm:$0xf0] }
   0xe   :  { %203 = vmatpush.bf16.msra.mxu0 %v1650_v13  ;;  %1719 = vmatpush.bf16.msra.mxu2 %v1650_v13  ;;  %v1618_v37 = vor.u32 %v1707_v34, %v1617_v33  ;;  %v1614_v38 = vor.u32 %v1704_v35, %v1611_v36  ;;  %v1609_v39 = vld [vmem:[#allocation3 + $0x10] sm:$0xf]  ;;  %v1705_v40 = vld [vmem:[#allocation3 + $0x14] sm:$0xf0]  ;;  %v1702_v41 = vld [vmem:[#allocation3 + $0x4] sm:$0xf] }
   0xf   :  { %v1603_v42 = vld [vmem:[#allocation3 + $0x8] sm:$0xf0]  ;;  %v1610_v43 = vor.u32 %v1705_v40, %v1609_v39  ;;  %v1601_v45 = vld [vmem:[#allocation3] sm:$0xf]  ;;  %v1703_v46 = vld [vmem:[#allocation3 + $0x4] sm:$0xf0] }
  0x10   :  { %253 = vmatpush.bf16.msra.mxu1 %v1646_v14  ;;  %1728 = vmatpush.bf16.msra.mxu3 %v1646_v14  ;;  %v1606_v44 = vor.u32 %v1702_v41, %v1603_v42  ;;  %v1694_v47 = vld [vmem:[%s3100_s0] sm:$0xff]  ;;  %v1602_v49 = vor.u32 %v1703_v46, %v1601_v45  ;;  %v1695_v50 = vld [vmem:[%s3100_s0 + $0x8] sm:$0xff]  ;;  %v1696_v52 = vld [vmem:[%s3100_s0 + $0x10] sm:$0xff] }
  0x11   :  { %v1698_v48 = vld [vmem:[%s3100_s0 + $0x20] sm:$0xff]  ;;  %v1699_v51 = vld [vmem:[%s3100_s0 + $0x28] sm:$0xff]  ;;  %v1700_v53 = vld [vmem:[%s3100_s0 + $0x30] sm:$0xff] }
  0x12   :  { %204 = vmatpush.bf16.msra.mxu0 %v1642_v19  ;;  %1720 = vmatpush.bf16.msra.mxu2 %v1642_v19  ;;  %v1697_v54 = vld [vmem:[%s3100_s0 + $0x18] sm:$0xff]  ;;  %v68_v56 = vld [vmem:[%s3102_s2] sm:$0x3] }
  0x13   :  { %v1701_v55 = vld [vmem:[%s3100_s0 + $0x38] sm:$0xff]  ;;  %v1926_v57 = vperm.slane %v68_v56, 1  ;;  %v1938_v17 = vperm.slane %v68_v56, 0 }
  0x14   :  { %254 = vmatpush.bf16.msra.mxu1 %v1638_v21  ;;  %1729 = vmatpush.bf16.msra.mxu3 %v1638_v21 }
  0x16   :  { %205 = vmatpush.bf16.msra.mxu0 %v1634_v25  ;;  %1721 = vmatpush.bf16.msra.mxu2 %v1634_v25 }
  0x18   :  { %255 = vmatpush.bf16.msra.mxu1 %v1630_v26  ;;  %1730 = vmatpush.bf16.msra.mxu3 %v1630_v26 }
  0x1a   :  { %206 = vmatpush.bf16.msra.mxu0 %v1626_v31  ;;  %1722 = vmatpush.bf16.msra.mxu2 %v1626_v31 }
  0x1c   :  { %256 = vmatpush.bf16.msra.mxu1 %v1622_v32  ;;  %1731 = vmatpush.bf16.msra.mxu3 %v1622_v32 }
  0x1e   :  { %207 = vmatpush.bf16.msra.mxu0 %v1618_v37  ;;  %1723 = vmatpush.bf16.msra.mxu2 %v1618_v37 }
  0x20   :  { %257 = vmatpush.bf16.msra.mxu1 %v1614_v38  ;;  %1732 = vmatpush.bf16.msra.mxu3 %v1614_v38 }
  0x22   :  { %208 = vmatpush.bf16.msra.mxu0 %v1610_v43  ;;  %1724 = vmatpush.bf16.msra.mxu2 %v1610_v43 }
  0x24   :  { %258 = vmatpush.bf16.msra.mxu1 %v1606_v44  ;;  %1733 = vmatpush.bf16.msra.mxu3 %v1606_v44 }
  0x26   :  { %209 = vmatpush.bf16.msra.mxu0 %v1602_v49  ;;  %1725 = vmatpush.bf16.msra.mxu2 %v1602_v49 }
  0x27   :  { %259 = vmatmul.bf16.vlgmr.msra.gmra.mxu1 %v1694_v47  ;;  %279 = vmatmul.bf16.vlgmr.msra.gmra.mxu3 %v1698_v48 }
  0x29   :  { %210 = vmatmul.bf16.vlgmr.msra.gmra.mxu0 %v1694_v47  ;;  %230 = vmatmul.bf16.vlgmr.msra.gmra.mxu2 %v1698_v48 }
  0x37   :  { %264 = vmatmul.bf16.gmra.mxu1 %v1695_v50  ;;  %284 = vmatmul.bf16.gmra.mxu3 %v1699_v51 }
  0x39   :  { %215 = vmatmul.bf16.gmra.mxu0 %v1695_v50  ;;  %235 = vmatmul.bf16.gmra.mxu2 %v1699_v51 }
  0x47   :  { %269 = vmatmul.bf16.gmra.mxu1 %v1696_v52  ;;  %289 = vmatmul.bf16.gmra.mxu3 %v1700_v53 }
  0x49   :  { %220 = vmatmul.bf16.gmra.mxu0 %v1696_v52  ;;  %240 = vmatmul.bf16.gmra.mxu2 %v1700_v53 }
  0x57   :  { %274 = vmatmul.bf16.gmra.mxu1 %v1697_v54  ;;  %294 = vmatmul.bf16.gmra.mxu3 %v1701_v55 }
  0x59   :  { %225 = vmatmul.bf16.gmra.mxu0 %v1697_v54  ;;  %245 = vmatmul.bf16.gmra.mxu2 %v1701_v55 }
  0xa4   :  { %v260_v58 = vpop.f32.mrf.mxu1 }
  0xa5   :  { %v261_v59 = vadd.f32 %v260_v58, %v1926_v57 }
  0xa6   :  { %v211_v4 = vpop.f32.mrf.mxu0 }
  0xa7   :  { %v1663_v60 = vmul.f32 -1.442695, %v261_v59  ;;  %v212_v26 = vadd.f32 %v211_v4, %v1938_v17 }
  0xa9   :  { %1739 = vpow2.f32 %v1663_v60 }
  0xaa   :  { %v280_v61 = vpop.f32.mrf.mxu3 }
  0xab   :  { %v281_v62 = vadd.f32 %v280_v61, %v1926_v57 }
  0xac   :  { %v262_v63 = vpop.f32.mrf.mxu1  ;;  %v231_v25 = vpop.f32.mrf.mxu2 }
  0xad   :  { %v1671_v0 = vmul.f32 -1.442695, %v281_v62  ;;  %v263_v1 = vadd.f32 %v262_v63, %v1926_v57  ;;  %v1947_v29 = vadd.f32 %v231_v25, %v1938_v17 }
  0xae   :  { %v213_v19 = vpop.f32.mrf.mxu0 }
  0xaf   :  { %v1740_v2 = vpop.eup %1739  ;;  %1741 = vpow2.f32 %v1671_v0  ;;  %v1664_v3 = vmul.f32 -1.442695, %v263_v1  ;;  %v1944_v28 = vadd.f32 %v213_v19, %v1938_v17 }
  0xb0   :  { %v348_v5 = vadd.f32 1.0, %v1740_v2 }
  0xb1   :  { %1743 = vpow2.f32 %v1664_v3 }
  0xb2   :  { %1745 = vrcp.f32 %v348_v5  ;;  %v282_v6 = vpop.f32.mrf.mxu3  ;;  %v373_v20 = vand.u32 2147483647, %v348_v5  ;;  %v375_v21 = vand.u32 2147483648, %v348_v5  ;;  %vm369_vm1 = vweird.f32 %v348_v5 }
  0xb3   :  { %v283_v7 = vadd.f32 %v282_v6, %v1926_v57 }
  0xb4   :  { %v265_v8 = vpop.f32.mrf.mxu1  ;;  %vm1952_vm2 = vcmp.eq.f32.partialorder %v373_v20, 8.507059e+37  ;;  %v376_v37 = vor.u32 1.1754944e-38, %v375_v21 }
  0xb5   :  { %v1742_v9 = vpop.eup %1741  ;;  %v1672_v10 = vmul.f32 -1.442695, %v283_v7  ;;  %v266_v11 = vadd.f32 %v265_v8, %v1926_v57  ;;  %v233_v8 = vpop.f32.mrf.mxu2 }
  0xb6   :  { %v1933_v12 = vadd.f32 1.0, %v1742_v9  ;;  %v234_v20 = vadd.f32 %v233_v8, %v1938_v17 }
  0xb7   :  { %v1744_v13 = vpop.eup %1743  ;;  %1747 = vpow2.f32 %v1672_v10  ;;  %v1665_v14 = vmul.f32 -1.442695, %v266_v11 }
  0xb8   :  { %v1746_v15 = vpop.eup %1745  ;;  %1749 = vrcp.f32 %v1933_v12  ;;  %v1936_v16 = vadd.f32 1.0, %v1744_v13  ;;  %vm489_vm4 = vweird.f32 %v1933_v12  ;;  %v493_v44 = vand.u32 2147483647, %v1933_v12 }
  0xb9   :  { %1751 = vpow2.f32 %v1665_v14  ;;  %v365_v18 = vmul.f32 %v1746_v15, %v348_v5  ;;  %vm370_vm0 = vweird.f32 %v1746_v15  ;;  %v495_v47 = vand.u32 2147483648, %v1933_v12 }
  0xba   :  { %1753 = vrcp.f32 %v1936_v16  ;;  %v285_v22 = vpop.f32.mrf.mxu3  ;;  %vm371_vm3 = vmor %vm369_vm1, %vm370_vm0  ;;  %vm384_vm5 = vweird.f32 %v1936_v16  ;;  %v388_v53 = vand.u32 2147483647, %v1936_v16  ;;  %v390_v55 = vand.u32 2147483648, %v1936_v16 }
  0xbb   :  { %v366_v23 = vsub.f32 1.0, %v365_v18  ;;  %v286_v24 = vadd.f32 %v285_v22, %v1926_v57  ;;  %vm1982_vm8 = vcmp.eq.f32.partialorder %v493_v44, 8.507059e+37  ;;  %v496_v4 = vor.u32 1.1754944e-38, %v495_v47 }
  0xbc   :  { %v267_v27 = vpop.f32.mrf.mxu1  ;;  %vm389_vm11 = vcmp.eq.f32.partialorder %v388_v53, 8.507059e+37  ;;  %v391_v13 = vor.u32 1.1754944e-38, %v390_v55 }
  0xbd   :  { %v1748_v30 = vpop.eup %1747  ;;  %v367_v31 = vmul.f32 %v1746_v15, %v366_v23  ;;  %v1673_v32 = vmul.f32 -1.442695, %v286_v24  ;;  %v268_v33 = vadd.f32 %v267_v27, %v1926_v57 }
  0xbe   :  { %v1750_v34 = vpop.eup %1749  ;;  %v1950_v35 = vadd.f32 1.0, %v1748_v30 }
  0xbf   :  { %v1752_v38 = vpop.eup %1751  ;;  %v368_v39 = vadd.f32 %v1746_v15, %v367_v31  ;;  %1755 = vpow2.f32 %v1673_v32  ;;  %v1666_v40 = vmul.f32 -1.442695, %v268_v33  ;;  %v485_v41 = vmul.f32 %v1750_v34, %v1933_v12 }
  0xc0   :  { %v1754_v42 = vpop.eup %1753  ;;  %1757 = vrcp.f32 %v1950_v35  ;;  %v1958_v43 = vadd.f32 1.0, %v1752_v38  ;;  %vm490_vm7 = vweird.f32 %v1750_v34  ;;  %v508_v21 = vand.u32 2147483647, %v1950_v35 }
  0xc1   :  { %v372_v45 = vsel %vm371_vm3, %v1746_v15, %v368_v39  ;;  %1759 = vpow2.f32 %v1666_v40  ;;  %v380_v46 = vmul.f32 %v1754_v42, %v1936_v16  ;;  %v486_v49 = vsub.f32 1.0, %v485_v41  ;;  %vm491_vm9 = vmor %vm489_vm4, %vm490_vm7 }
  0xc2   :  { %1761 = vrcp.f32 %v1958_v43  ;;  %v377_v48 = vsel %vm1952_vm2, %v376_v37, %v372_v45  ;;  %v287_v50 = vpop.f32.mrf.mxu3  ;;  %vm385_vm6 = vweird.f32 %v1754_v42  ;;  %v510_v27 = vand.u32 2147483648, %v1950_v35 }
  0xc3   :  { %v1969_v51 = vmul.f32 %v377_v48, %v212_v26  ;;  %v381_v52 = vsub.f32 1.0, %v380_v46  ;;  %v288_v54 = vadd.f32 %v287_v50, %v1926_v57  ;;  %v487_v56 = vmul.f32 %v1750_v34, %v486_v49  ;;  %vm386_vm10 = vmor %vm384_vm5, %vm385_vm6  ;;  %v216_v26 = vpop.f32.mrf.mxu0 }
  0xc4   :  { %v270_v58 = vpop.f32.mrf.mxu1  ;;  %v2024_v37 = vadd.f32 %v216_v26, %v1938_v17  ;;  %v403_v38 = vand.u32 2147483647, %v1958_v43  ;;  %v405_v41 = vand.u32 2147483648, %v1958_v43  ;;  %vm504_vm13 = vweird.f32 %v1950_v35 }
  0xc5   :  { %v1756_v59 = vpop.eup %1755  ;;  %v382_v60 = vmul.f32 %v1754_v42, %v381_v52  ;;  %v1674_v61 = vmul.f32 -1.442695, %v288_v54  ;;  %v271_v62 = vadd.f32 %v270_v58, %v1926_v57  ;;  %620 = vadd.xlane.f32.xlu0 %v1969_v51  ;;  %v668_v63 = vmul.f32 %v1969_v51, %v1969_v51 }
  0xc6   :  { %v1978_v0 = vpop.eup %1757  ;;  %v1980_v1 = vadd.f32 1.0, %v1756_v59  ;;  %v488_v2 = vadd.f32 %v1750_v34, %v487_v56  ;;  %v511_v47 = vor.u32 1.1754944e-38, %v510_v27  ;;  %vm509_vm0 = vcmp.eq.f32.partialorder %v508_v21, 8.507059e+37 }
  0xc7   :  { %v1760_v5 = vpop.eup %1759  ;;  %v383_v6 = vadd.f32 %v1754_v42, %v382_v60  ;;  %1763 = vpow2.f32 %v1674_v61  ;;  %v1667_v7 = vmul.f32 -1.442695, %v271_v62  ;;  %684 = vadd.xlane.f32.xlu1 %v668_v63  ;;  %v500_v9 = vmul.f32 %v1978_v0, %v1950_v35 }
  0xc8   :  { %v1991_v10 = vpop.eup %1761  ;;  %v1993_v11 = vadd.f32 1.0, %v1760_v5  ;;  %v492_v14 = vsel %vm491_vm9, %v1750_v34, %v488_v2  ;;  %vm505_vm12 = vweird.f32 %v1978_v0  ;;  %vm399_vm1 = vweird.f32 %v1958_v43  ;;  %v2060_v2 = vpop.f32.mrf.mxu2 }
  0xc9   :  { %v387_v12 = vsel %vm386_vm10, %v1754_v42, %v383_v6  ;;  %v497_v15 = vsel %vm1982_vm8, %v496_v4, %v492_v14  ;;  %1765 = vpow2.f32 %v1667_v7  ;;  %v395_v18 = vmul.f32 %v1991_v10, %v1958_v43  ;;  %vm506_vm15 = vmor %vm504_vm13, %vm505_vm12 }
  0xca   :  { %1767 = vrcp.f32 %v1993_v11  ;;  %v392_v19 = vsel %vm389_vm11, %v391_v13, %v387_v12  ;;  %v290_v16 = vpop.f32.mrf.mxu3  ;;  %v501_v24 = vsub.f32 1.0, %v500_v9  ;;  %v2010_v25 = vmul.f32 %v497_v15, %v1947_v29 }
  0xcb   :  { %1769 = vrcp.f32 %v1980_v1  ;;  %v2007_v22 = vmul.f32 %v392_v19, %v1944_v28  ;;  %v396_v23 = vsub.f32 1.0, %v395_v18  ;;  %v291_v30 = vadd.f32 %v290_v16, %v1926_v57  ;;  %v218_v6 = vpop.f32.mrf.mxu0 }
  0xcc   :  { %v272_v31 = vpop.f32.mrf.mxu1  ;;  %v502_v34 = vmul.f32 %v1978_v0, %v501_v24  ;;  %vm400_vm14 = vweird.f32 %v1991_v10  ;;  %vm2043_vm2 = vcmp.eq.f32.partialorder %v403_v38, 8.507059e+37  ;;  %v406_v56 = vor.u32 1.1754944e-38, %v405_v41 }
  0xcd   :  { %v1764_v32 = vpop.eup %1763  ;;  %v397_v33 = vmul.f32 %v1991_v10, %v396_v23  ;;  %v273_v28 = vadd.f32 %v272_v31, %v1926_v57  ;;  %622 = vadd.xlane.f32.xlu0 %v2007_v22  ;;  %v669_v29 = vmul.f32 %v2007_v22, %v2007_v22  ;;  %v1675_v39 = vmul.f32 -1.442695, %v291_v30  ;;  %vm2047_vm3 = vmor %vm399_vm1, %vm400_vm14 }
  0xce   :  { %v2021_v36 = vadd.f32 1.0, %v1764_v32  ;;  %v503_v42 = vadd.f32 %v1978_v0, %v502_v34  ;;  %v418_v59 = vand.u32 2147483647, %v1993_v11  ;;  %v420_v43 = vand.u32 2147483648, %v1993_v11 }
  0xcf   :  { %v1766_v40 = vpop.eup %1765  ;;  %v1668_v44 = vmul.f32 -1.442695, %v273_v28  ;;  %686 = vadd.xlane.f32.xlu2 %v669_v29  ;;  %636 = vadd.xlane.f32.xlu1 %v2010_v25  ;;  %v398_v46 = vadd.f32 %v1991_v10, %v397_v33  ;;  %vm414_vm5 = vweird.f32 %v1993_v11  ;;  %v676_v8 = vmul.f32 %v2010_v25, %v2010_v25 }
  0xd0   :  { %v1768_v45 = vpop.eup %1767  ;;  %1771 = vrcp.f32 %v2021_v36  ;;  %v507_v49 = vsel %vm506_vm15, %v1978_v0, %v503_v42  ;;  %v2040_v50 = vadd.f32 1.0, %v1766_v40  ;;  %v421_v18 = vor.u32 1.1754944e-38, %v420_v43 }
  0xd1   :  { %v2036_v48 = vpop.eup %1769  ;;  %1773 = vpow2.f32 %v1675_v39  ;;  %v410_v35 = vmul.f32 %v1768_v45, %v1993_v11  ;;  %v512_v53 = vsel %vm509_vm0, %v511_v47, %v507_v49  ;;  %v402_v60 = vsel %vm2047_vm3, %v1991_v10, %v398_v46  ;;  %v238_v47 = vpop.f32.mrf.mxu2 }
  0xd2   :  { %v292_v54 = vpop.f32.mrf.mxu3  ;;  %1775 = vpow2.f32 %v1668_v44  ;;  %vm415_vm4 = vweird.f32 %v1768_v45  ;;  %v515_v61 = vmul.f32 %v2036_v48, %v1980_v1  ;;  %v2058_v63 = vmul.f32 %v512_v53, %v234_v20 }
  0xd3   :  { %v411_v58 = vsub.f32 1.0, %v410_v35  ;;  %v293_v3 = vadd.f32 %v292_v54, %v1926_v57  ;;  %1777 = vrcp.f32 %v2040_v50  ;;  %v407_v10 = vsel %vm2043_vm2, %v406_v56, %v402_v60  ;;  %vm416_vm6 = vmor %vm414_vm5, %vm415_vm4  ;;  %v221_v44 = vpop.f32.mrf.mxu0 }
  0xd4   :  { %v275_v62 = vpop.f32.mrf.mxu1  ;;  %v516_v7 = vsub.f32 1.0, %v515_v61  ;;  %v219_v21 = vadd.f32 %v218_v6, %v1938_v17  ;;  %vm419_vm7 = vcmp.eq.f32.partialorder %v418_v59, 8.507059e+37  ;;  %v2081_v23 = vmul.f32 %v407_v10, %v2024_v37 }
  0xd5   :  { %v412_v0 = vmul.f32 %v1768_v45, %v411_v58  ;;  %v276_v4 = vadd.f32 %v275_v62, %v1926_v57  ;;  %v1676_v14 = vmul.f32 -1.442695, %v293_v3  ;;  %vm520_vm8 = vweird.f32 %v2036_v48 }
  0xd6   :  { %v2064_v5 = vpop.eup %1771  ;;  %v517_v11 = vmul.f32 %v2036_v48, %v516_v7  ;;  %v523_v34 = vand.u32 2147483647, %v1980_v1  ;;  %v540_v37 = vand.u32 2147483648, %v2021_v36  ;;  %v677_v39 = vmul.f32 %v2058_v63, %v2058_v63 }
  0xd7   :  { %v1774_v9 = vpop.eup %1773  ;;  %v413_v13 = vadd.f32 %v1768_v45, %v412_v0  ;;  %v1669_v12 = vmul.f32 -1.442695, %v276_v4  ;;  %638 = vadd.xlane.f32.xlu2 %v2058_v63  ;;  %700 = vadd.xlane.f32.xlu1 %v676_v8  ;;  %v530_v19 = vmul.f32 %v2064_v5, %v2021_v36  ;;  %1779 = vpow2.f32 %v1676_v14 }
  0xd8   :  { %v2073_v15 = vadd.f32 1.0, %v1774_v9  ;;  %v1776_v20 = vpop.eup %1775  ;;  %v518_v33 = vadd.f32 %v2036_v48, %v517_v11  ;;  %vm535_vm9 = vweird.f32 %v2064_v5  ;;  %vm519_vm10 = vweird.f32 %v1980_v1 }
  0xd9   :  { %v417_v16 = vsel %vm416_vm6, %v1768_v45, %v413_v13  ;;  %v531_v30 = vsub.f32 1.0, %v530_v19  ;;  %v2087_v31 = vpop.eup %1777  ;;  %v2089_v32 = vadd.f32 1.0, %v1776_v20  ;;  %v525_v40 = vand.u32 2147483648, %v1980_v1  ;;  %vm2106_vm11 = vmor %vm519_vm10, %vm520_vm8 }
  0xda   :  { %1781 = vrcp.f32 %v2073_v15  ;;  %v422_v24 = vsel %vm419_vm7, %v421_v18, %v417_v16  ;;  %v295_v26 = vpop.f32.mrf.mxu3  ;;  %v538_v41 = vand.u32 2147483647, %v2021_v36  ;;  %vm534_vm12 = vweird.f32 %v2021_v36  ;;  %v241_v18 = vpop.f32.mrf.mxu2 }
  0xdb   :  { %v2084_v27 = vmul.f32 %v422_v24, %v219_v21  ;;  %1783 = vpow2.f32 %v1669_v12  ;;  %v532_v29 = vmul.f32 %v2064_v5, %v531_v30  ;;  %v425_v1 = vmul.f32 %v2087_v31, %v2040_v50  ;;  %vm536_vm14 = vmor %vm534_vm12, %vm535_vm9  ;;  %v223_v16 = vpop.f32.mrf.mxu0 }
  0xdc   :  { %v277_v28 = vpop.f32.mrf.mxu1  ;;  %1785 = vrcp.f32 %v2089_v32  ;;  %v522_v53 = vsel %vm2106_vm11, %v2036_v48, %v518_v33  ;;  %vm2120_vm13 = vcmp.eq.f32.partialorder %v523_v34, 8.507059e+37  ;;  %v541_v58 = vor.u32 1.1754944e-38, %v540_v37 }
  0xdd   :  { %v278_v38 = vadd.f32 %v277_v28, %v1926_v57  ;;  %v671_v42 = vmul.f32 %v2084_v27, %v2084_v27  ;;  %v1780_v45 = vpop.eup %1779  ;;  %v533_v49 = vadd.f32 %v2064_v5, %v532_v29  ;;  %v296_v59 = vadd.f32 %v295_v26, %v1926_v57 }
  0xde   :  { %v2124_v55 = vadd.f32 1.0, %v1780_v45  ;;  %v426_v60 = vsub.f32 1.0, %v425_v1  ;;  %v526_v48 = vor.u32 1.1754944e-38, %v525_v40  ;;  %vm539_vm15 = vcmp.eq.f32.partialorder %v538_v41, 8.507059e+37 }
  0xdf   :  { %v1670_v35 = vmul.f32 -1.442695, %v278_v38  ;;  %702 = vadd.xlane.f32.xlu2 %v677_v39  ;;  %690 = vadd.xlane.f32.xlu0 %v671_v42  ;;  %v537_v56 = vsel %vm536_vm14, %v2064_v5, %v533_v49  ;;  %v237_v4 = vadd.f32 %v2060_v2, %v1938_v17  ;;  %v239_v6 = vadd.f32 %v238_v47, %v1938_v17 }
  0xe0   :  { %v2114_v52 = vpop.eup %1781  ;;  %624 = vadd.xlane.f32.xlu1 %v2081_v23  ;;  %v542_v62 = vsel %vm539_vm15, %v541_v58, %v537_v56  ;;  %v427_v0 = vmul.f32 %v2087_v31, %v426_v60  ;;  %v527_v5 = vsel %vm2120_vm13, %v526_v48, %v522_v53  ;;  %v1677_v8 = vmul.f32 -1.442695, %v296_v59 }
  0xe1   :  { %v1784_v36 = vpop.eup %1783  ;;  %1787 = vpow2.f32 %v1670_v35  ;;  %v545_v7 = vmul.f32 %v2114_v52, %v2073_v15  ;;  %vm429_vm0 = vweird.f32 %v2040_v50  ;;  %v435_v9 = vand.u32 2147483648, %v2040_v50 }
  0xe2   :  { %v2131_v43 = vadd.f32 1.0, %v1784_v36  ;;  %v297_v61 = vpop.f32.mrf.mxu3  ;;  %1789 = vrcp.f32 %v2124_v55  ;;  %v2145_v13 = vpop.eup %1785  ;;  %v670_v14 = vmul.f32 %v2081_v23, %v2081_v23  ;;  %v428_v12 = vadd.f32 %v2087_v31, %v427_v0 }
  0xe3   :  { %v298_v3 = vadd.f32 %v297_v61, %v1926_v57  ;;  %v2148_v57 = vmul.f32 %v542_v62, %v239_v6  ;;  %v546_v2 = vsub.f32 1.0, %v545_v7  ;;  %vm430_vm1 = vweird.f32 %v2087_v31 }
  0xe4   :  { %1791 = vrcp.f32 %v2131_v43  ;;  %v555_v11 = vand.u32 2147483648, %v2073_v15  ;;  %vm549_vm2 = vweird.f32 %v2073_v15  ;;  %vm550_vm3 = vweird.f32 %v2114_v52  ;;  %vm2172_vm4 = vmor %vm429_vm0, %vm430_vm1 }
  0xe5   :  { %v1678_v10 = vmul.f32 -1.442695, %v298_v3  ;;  %v547_v20 = vmul.f32 %v2114_v52, %v546_v2  ;;  %v553_v21 = vand.u32 2147483647, %v2073_v15  ;;  %v2162_v26 = vmul.f32 %v527_v5, %v237_v4  ;;  %vm551_vm5 = vmor %vm549_vm2, %vm550_vm3  ;;  %v226_v3 = vpop.f32.mrf.mxu0 }
  0xe6   :  { %v222_v30 = vadd.f32 %v221_v44, %v1938_v17  ;;  %v440_v33 = vmul.f32 %v2145_v13, %v2089_v32  ;;  %v433_v28 = vand.u32 2147483647, %v2040_v50  ;;  %v436_v29 = vor.u32 1.1754944e-38, %v435_v9 }
  0xe7   :  { %1793 = vpow2.f32 %v1678_v10  ;;  %v1788_v19 = vpop.eup %1787  ;;  %688 = vadd.xlane.f32.xlu2 %v670_v14  ;;  %642 = vadd.xlane.f32.xlu0 %v2148_v57  ;;  %v242_v37 = vadd.f32 %v241_v18, %v1938_v17  ;;  %v548_v38 = vadd.f32 %v2114_v52, %v547_v20  ;;  %v432_v40 = vsel %vm2172_vm4, %v2087_v31, %v428_v12  ;;  %v243_v14 = vpop.f32.mrf.mxu2 }
  0xe8   :  { %v2160_v24 = vpop.eup %1789  ;;  %1795 = vpow2.f32 %v1677_v8  ;;  %626 = vadd.xlane.f32.xlu1 %v2084_v27  ;;  %v2179_v39 = vadd.f32 1.0, %v1788_v19  ;;  %v556_v41 = vor.u32 1.1754944e-38, %v555_v11  ;;  %v441_v42 = vsub.f32 1.0, %v440_v33 }
  0xe9   :  { %v552_v50 = vsel %vm551_vm5, %v2114_v52, %v548_v38  ;;  %vm554_vm6 = vcmp.eq.f32.partialorder %v553_v21, 8.507059e+37  ;;  %v450_v45 = vand.u32 2147483648, %v2089_v32  ;;  %v560_v46 = vmul.f32 %v2160_v24, %v2124_v55 }
  0xea   :  { %v2188_v44 = vpop.eup %1791  ;;  %v557_v49 = vsel %vm554_vm6, %v556_v41, %v552_v50  ;;  %v442_v31 = vmul.f32 %v2145_v13, %v441_v42  ;;  %vm445_vm7 = vweird.f32 %v2145_v13  ;;  %v448_v15 = vand.u32 2147483647, %v2089_v32 }
  0xeb   :  { %vm434_vm8 = vcmp.eq.f32.partialorder %v433_v28, 8.507059e+37  ;;  %v2197_v35 = vmul.f32 %v557_v49, %v242_v37  ;;  %v224_v1 = vadd.f32 %v223_v16, %v1938_v17  ;;  %v561_v52 = vsub.f32 1.0, %v560_v46 }
  0xec   :  { %v437_v54 = vsel %vm434_vm8, %v436_v29, %v432_v40  ;;  %v443_v36 = vadd.f32 %v2145_v13, %v442_v31  ;;  %vm444_vm9 = vweird.f32 %v2089_v32  ;;  %v679_v56 = vmul.f32 %v2148_v57, %v2148_v57 }
  0xed   :  { %v1794_v47 = vpop.eup %1793  ;;  %1797 = vrcp.f32 %v2179_v39  ;;  %vm446_vm10 = vmor %vm444_vm9, %vm445_vm7  ;;  %v451_v59 = vor.u32 1.1754944e-38, %v450_v45  ;;  %v680_v60 = vmul.f32 %v2197_v35, %v2197_v35  ;;  %vm449_vm11 = vcmp.eq.f32.partialorder %v448_v15, 8.507059e+37 }
  0xee   :  { %v1796_v53 = vpop.eup %1795  ;;  %v2205_v58 = vadd.f32 1.0, %v1794_v47  ;;  %v447_v48 = vsel %vm446_vm10, %v2145_v13, %v443_v36  ;;  %v562_v61 = vmul.f32 %v2160_v24, %v561_v52  ;;  %v455_v32 = vmul.f32 %v2188_v44, %v2131_v43 }
  0xef   :  { %640 = vadd.xlane.f32.xlu2 %v2162_v26  ;;  %706 = vadd.xlane.f32.xlu0 %v679_v56  ;;  %v2214_v62 = vadd.f32 1.0, %v1796_v53  ;;  %v452_v0 = vsel %vm449_vm11, %v451_v59, %v447_v48  ;;  %v2216_v4 = vmul.f32 %v437_v54, %v222_v30  ;;  %vm565_vm12 = vweird.f32 %v2160_v24  ;;  %v246_v53 = vpop.f32.mrf.mxu2 }
  0xf0   :  { %708 = vadd.xlane.f32.xlu1 %v680_v60  ;;  %1799 = vrcp.f32 %v2205_v58  ;;  %v2219_v5 = vmul.f32 %v452_v0, %v224_v1  ;;  %v456_v6 = vsub.f32 1.0, %v455_v32  ;;  %v563_v7 = vadd.f32 %v2160_v24, %v562_v61 }
  0xf1   :  { %1801 = vrcp.f32 %v2214_v62  ;;  %v570_v9 = vand.u32 2147483648, %v2124_v55  ;;  %vm564_vm13 = vweird.f32 %v2124_v55  ;;  %v568_v10 = vand.u32 2147483647, %v2124_v55 }
  0xf2   :  { %v678_v13 = vmul.f32 %v2162_v26, %v2162_v26  ;;  %v672_v2 = vmul.f32 %v2216_v4, %v2216_v4  ;;  %vm2231_vm14 = vmor %vm564_vm13, %vm565_vm12  ;;  %v457_v18 = vmul.f32 %v2188_v44, %v456_v6  ;;  %v673_v11 = vmul.f32 %v2219_v5, %v2219_v5 }
  0xf3   :  { %v1798_v8 = vpop.eup %1797  ;;  %v567_v55 = vsel %vm2231_vm14, %v2160_v24, %v563_v7  ;;  %v571_v21 = vor.u32 1.1754944e-38, %v570_v9  ;;  %v244_v16 = vadd.f32 %v243_v14, %v1938_v17  ;;  %vm569_vm15 = vcmp.eq.f32.partialorder %v568_v10, 8.507059e+37  ;;  %v228_v24 = vpop.f32.mrf.mxu0 }
  0xf4   :  { %v470_v19 = vmul.f32 %v1798_v8, %v2179_v39  ;;  %vm459_vm0 = vweird.f32 %v2131_v43  ;;  %v458_v28 = vadd.f32 %v2188_v44, %v457_v18  ;;  %vm460_vm1 = vweird.f32 %v2188_v44 }
  0xf5   :  { %v572_v34 = vsel %vm569_vm15, %v571_v21, %v567_v55  ;;  %v480_v29 = vand.u32 2147483648, %v2179_v39  ;;  %vm475_vm2 = vweird.f32 %v1798_v8  ;;  %v478_v38 = vand.u32 2147483647, %v2179_v39  ;;  %vm2260_vm3 = vmor %vm459_vm0, %vm460_vm1 }
  0xf6   :  { %v2242_v20 = vpop.eup %1799  ;;  %v471_v30 = vsub.f32 1.0, %v470_v19  ;;  %v463_v41 = vand.u32 2147483647, %v2131_v43  ;;  %v465_v42 = vand.u32 2147483648, %v2131_v43  ;;  %v2256_v50 = vmul.f32 %v572_v34, %v244_v16 }
  0xf7   :  { %704 = vadd.xlane.f32.xlu2 %v678_v13  ;;  %692 = vadd.xlane.f32.xlu0 %v672_v2  ;;  %v2246_v33 = vpop.eup %1801  ;;  %v590_v40 = vmul.f32 %v2242_v20, %v2205_v58  ;;  %v229_v46 = vadd.f32 %v228_v24, %v1938_v17  ;;  %vm474_vm4 = vweird.f32 %v2179_v39  ;;  %v481_v31 = vor.u32 1.1754944e-38, %v480_v29 }
  0xf8   :  { %694 = vadd.xlane.f32.xlu1 %v673_v11  ;;  %v472_v37 = vmul.f32 %v1798_v8, %v471_v30  ;;  %v575_v49 = vmul.f32 %v2246_v33, %v2214_v62  ;;  %vm476_vm5 = vmor %vm474_vm4, %vm475_vm2  ;;  %v462_v15 = vsel %vm2260_vm3, %v2188_v44, %v458_v28  ;;  %vm479_vm6 = vcmp.eq.f32.partialorder %v478_v38, 8.507059e+37 }
  0xf9   :  { %v591_v43 = vsub.f32 1.0, %v590_v40  ;;  %v466_v52 = vor.u32 1.1754944e-38, %v465_v42  ;;  %v227_v39 = vadd.f32 %v226_v3, %v1938_v17  ;;  %vm464_vm7 = vcmp.eq.f32.partialorder %v463_v41, 8.507059e+37 }
  0xfa   :  { %v473_v47 = vadd.f32 %v1798_v8, %v472_v37  ;;  %v576_v59 = vsub.f32 1.0, %v575_v49  ;;  %vm594_vm8 = vweird.f32 %v2205_v58  ;;  %vm595_vm9 = vweird.f32 %v2242_v20 }
  0xfb   :  { %v467_v56 = vsel %vm464_vm7, %v466_v52, %v462_v15  ;;  %v592_v60 = vmul.f32 %v2242_v20, %v591_v43  ;;  %v600_v48 = vand.u32 2147483648, %v2205_v58  ;;  %v598_v0 = vand.u32 2147483647, %v2205_v58  ;;  %vm2288_vm10 = vmor %vm594_vm8, %vm595_vm9 }
  0xfc   :  { %v477_v1 = vsel %vm476_vm5, %v1798_v8, %v473_v47  ;;  %v2278_v44 = vmul.f32 %v467_v56, %v227_v39  ;;  %v577_v61 = vmul.f32 %v2246_v33, %v576_v59  ;;  %vm579_vm11 = vweird.f32 %v2214_v62  ;;  %v248_v8 = vpop.f32.mrf.mxu2 }
  0xfd   :  { %v482_v54 = vsel %vm479_vm6, %v481_v31, %v477_v1  ;;  %v593_v32 = vadd.f32 %v2242_v20, %v592_v60  ;;  %vm580_vm12 = vweird.f32 %v2246_v33  ;;  %v585_v7 = vand.u32 2147483648, %v2214_v62 }
  0xfe   :  { %v2274_v36 = vmul.f32 %v482_v54, %v229_v46  ;;  %v601_v9 = vor.u32 1.1754944e-38, %v600_v48  ;;  %v578_v58 = vadd.f32 %v2246_v33, %v577_v61  ;;  %v583_v10 = vand.u32 2147483647, %v2214_v62  ;;  %vm581_vm14 = vmor %vm579_vm11, %vm580_vm12 }
  0xff   :  { %628 = vadd.xlane.f32.xlu2 %v2216_v4  ;;  %646 = vadd.xlane.f32.xlu0 %v2256_v50  ;;  %v597_v13 = vsel %vm2288_vm10, %v2242_v20, %v593_v32  ;;  %vm599_vm13 = vcmp.eq.f32.partialorder %v598_v0, 8.507059e+37  ;;  %v249_v2 = vadd.f32 %v248_v8, %v1938_v17  ;;  %v674_v14 = vmul.f32 %v2278_v44, %v2278_v44 }
 0x100   :  { %634 = vadd.xlane.f32.xlu1 %v2274_v36  ;;  %v675_v6 = vmul.f32 %v2274_v36, %v2274_v36  ;;  %v586_v12 = vor.u32 1.1754944e-38, %v585_v7  ;;  %v602_v18 = vsel %vm599_vm13, %v601_v9, %v597_v13  ;;  %v582_v11 = vsel %vm581_vm14, %v2246_v33, %v578_v58  ;;  %v2330_v7 = vld [vmem:[%s3103_s3] ss:$0 sm:$0xff] }
 0x101   :  { %vm584_vm15 = vcmp.eq.f32.partialorder %v583_v10, 8.507059e+37  ;;  %v247_v62 = vadd.f32 %v246_v53, %v1938_v17  ;;  %v2308_v55 = vmul.f32 %v602_v18, %v249_v2  ;;  %v681_v21 = vmul.f32 %v2256_v50, %v2256_v50  ;;  %v2335_v10 = vld [vmem:[%s3104_s4] ss:$0 sm:$0xff] }
 0x102   :  { %v587_v19 = vsel %vm584_vm15, %v586_v12, %v582_v11 }
 0x103   :  { %v2311_v20 = vmul.f32 %v587_v19, %v247_v62  ;;  %v683_v16 = vmul.f32 %v2308_v55, %v2308_v55 }
 0x105   :  { %v682_v17 = vmul.f32 %v2311_v20, %v2311_v20 }
 0x107   :  { %644 = vadd.xlane.f32.xlu2 %v2197_v35  ;;  %632 = vadd.xlane.f32.xlu0 %v2278_v44 }
 0x108   :  { %698 = vadd.xlane.f32.xlu1 %v675_v6 }
 0x10f   :  { %630 = vadd.xlane.f32.xlu2 %v2219_v5  ;;  %696 = vadd.xlane.f32.xlu0 %v674_v14 }
 0x110   :  { %650 = vadd.xlane.f32.xlu1 %v2308_v55 }
 0x117   :  { %710 = vadd.xlane.f32.xlu2 %v681_v21  ;;  %648 = vadd.xlane.f32.xlu0 %v2311_v20 }
 0x118   :  { %714 = vadd.xlane.f32.xlu1 %v683_v16 }
 0x11f   :  { %712 = vadd.xlane.f32.xlu0 %v682_v17 }
 0x138   :  { %v621_v30 = vpop.xlane.xlu0 %620 }
 0x139   :  { %v652_v33 = vmul.f32 0.03125, %v621_v30 }
 0x13a   :  { %v685_v34 = vpop.xlane.xlu1 %684 }
 0x13b   :  { %v732_v28 = vmul.f32 %v652_v33, %v652_v33  ;;  %v716_v24 = vmul.f32 0.03125, %v685_v34  ;;  %v764_v6 = vsub.f32 %v1969_v51, %v652_v33 }
 0x13d   :  { %v748_v29 = vsub.f32 %v716_v24, %v732_v28 }
 0x13f   :  { %v780_v37 = vadd.f32 1e-05, %v748_v29 }
 0x140   :  { %v623_v38 = vpop.xlane.xlu0 %622 }
 0x141   :  { %1803 = vrsqrt.f32 %v780_v37  ;;  %v653_v40 = vmul.f32 0.03125, %v623_v38  ;;  %vm802_vm1 = vweird.f32 %v780_v37 }
 0x142   :  { %v687_v41 = vpop.xlane.xlu2 %686  ;;  %v637_v42 = vpop.xlane.xlu1 %636 }
 0x143   :  { %v733_v45 = vmul.f32 %v653_v40, %v653_v40  ;;  %v717_v46 = vmul.f32 0.03125, %v687_v41  ;;  %v2320_v1 = vmul.f32 0.03125, %v637_v42  ;;  %v765_v33 = vsub.f32 %v2007_v22, %v653_v40 }
 0x145   :  { %v749_v47 = vsub.f32 %v717_v46, %v733_v45  ;;  %v740_v39 = vmul.f32 %v2320_v1, %v2320_v1 }
 0x147   :  { %v1804_v49 = vpop.eup %1803  ;;  %v781_v31 = vadd.f32 1e-05, %v749_v47 }
 0x148   :  { %v797_v15 = vmul.f32 %v1804_v49, %v780_v37  ;;  %vm803_vm0 = vweird.f32 %v1804_v49 }
 0x149   :  { %1805 = vrsqrt.f32 %v781_v31  ;;  %vm804_vm2 = vmor %vm802_vm1, %vm803_vm0  ;;  %vm812_vm4 = vweird.f32 %v781_v31 }
 0x14a   :  { %v798_v43 = vmul.f32 %v1804_v49, %v797_v15  ;;  %v639_v52 = vpop.xlane.xlu2 %638  ;;  %v701_v53 = vpop.xlane.xlu1 %700 }
 0x14b   :  { %v724_v56 = vmul.f32 0.03125, %v701_v53  ;;  %v2324_v61 = vmul.f32 0.03125, %v639_v52 }
 0x14c   :  { %v799_v54 = vmul.f32 0.5, %v798_v43 }
 0x14d   :  { %v756_v60 = vsub.f32 %v724_v56, %v740_v39  ;;  %v741_v2 = vmul.f32 %v2324_v61, %v2324_v61 }
 0x14e   :  { %v800_v59 = vsub.f32 1.5, %v799_v54 }
 0x14f   :  { %v1806_v48 = vpop.eup %1805  ;;  %v788_v3 = vadd.f32 1e-05, %v756_v60  ;;  %v772_v60 = vsub.f32 %v2010_v25, %v2320_v1 }
 0x150   :  { %v801_v32 = vmul.f32 %v1804_v49, %v800_v59  ;;  %v807_v0 = vmul.f32 %v1806_v48, %v781_v31  ;;  %vm813_vm3 = vweird.f32 %v1806_v48 }
 0x151   :  { %1807 = vrsqrt.f32 %v788_v3  ;;  %vm814_vm5 = vmor %vm812_vm4, %vm813_vm3  ;;  %vm882_vm7 = vweird.f32 %v788_v3 }
 0x152   :  { %v805_v8 = vsel %vm804_vm2, %v1804_v49, %v801_v32  ;;  %v808_v9 = vmul.f32 %v1806_v48, %v807_v0  ;;  %v703_v58 = vpop.xlane.xlu2 %702  ;;  %v691_v14 = vpop.xlane.xlu0 %690 }
 0x153   :  { %v956_v13 = vmul.f32 %v805_v8, %v764_v6  ;;  %v725_v51 = vmul.f32 0.03125, %v703_v58  ;;  %v625_v12 = vpop.xlane.xlu1 %624  ;;  %v719_v22 = vmul.f32 0.03125, %v691_v14 }
 0x154   :  { %v809_v18 = vmul.f32 0.5, %v808_v9  ;;  %v2342_v28 = vmul.f32 0.03125, %v625_v12 }
 0x155   :  { %v976_v11 = vmul.f32 %v2330_v7, %v956_v13  ;;  %v757_v62 = vsub.f32 %v725_v51, %v741_v2 }
 0x156   :  { %v810_v19 = vsub.f32 1.5, %v809_v18  ;;  %v734_v49 = vmul.f32 %v2342_v28, %v2342_v28 }
 0x157   :  { %v996_v21 = vadd.f32 %v2335_v10, %v976_v11  ;;  %v789_v16 = vadd.f32 1e-05, %v757_v62  ;;  %v1808_v17 = vpop.eup %1807  ;;  %v773_v11 = vsub.f32 %v2058_v63, %v2324_v61 }
 0x158   :  { %v811_v30 = vmul.f32 %v1806_v48, %v810_v19  ;;  %v877_v34 = vmul.f32 %v1808_v17, %v788_v3  ;;  %vm883_vm6 = vweird.f32 %v1808_v17 }
 0x159   :  { %1012 = vst [vmem:[#allocation2] sm:$0xff] %v996_v21  ;;  %1809 = vrsqrt.f32 %v789_v16  ;;  %vm884_vm8 = vmor %vm882_vm7, %vm883_vm6  ;;  %vm892_vm10 = vweird.f32 %v789_v16 }
 0x15a   :  { %v815_v24 = vsel %vm814_vm5, %v1806_v48, %v811_v30  ;;  %v878_v37 = vmul.f32 %v1808_v17, %v877_v34  ;;  %v689_v38 = vpop.xlane.xlu2 %688  ;;  %v643_v41 = vpop.xlane.xlu0 %642 }
 0x15b   :  { %v957_v29 = vmul.f32 %v815_v24, %v765_v33  ;;  %v718_v42 = vmul.f32 0.03125, %v689_v38  ;;  %v627_v45 = vpop.xlane.xlu1 %626  ;;  %v2352_v56 = vmul.f32 0.03125, %v643_v41 }
 0x15c   :  { %v879_v47 = vmul.f32 0.5, %v878_v37  ;;  %v2347_v31 = vmul.f32 0.03125, %v627_v45 }
 0x15d   :  { %v977_v46 = vmul.f32 %v2330_v7, %v957_v29  ;;  %v750_v52 = vsub.f32 %v718_v42, %v734_v49  ;;  %v743_v3 = vmul.f32 %v2352_v56, %v2352_v56 }
 0x15e   :  { %v880_v43 = vsub.f32 1.5, %v879_v47  ;;  %v735_v53 = vmul.f32 %v2347_v31, %v2347_v31 }
 0x15f   :  { %v1810_v40 = vpop.eup %1809  ;;  %v997_v15 = vadd.f32 %v2335_v10, %v977_v46  ;;  %v782_v0 = vadd.f32 1e-05, %v750_v52  ;;  %v766_v52 = vsub.f32 %v2081_v23, %v2342_v28  ;;  %v767_v28 = vsub.f32 %v2084_v27, %v2347_v31 }
 0x160   :  { %v887_v54 = vmul.f32 %v1810_v40, %v789_v16  ;;  %v881_v39 = vmul.f32 %v1808_v17, %v880_v43  ;;  %v751_v59 = vsub.f32 %v719_v22, %v735_v53  ;;  %vm893_vm9 = vweird.f32 %v1810_v40 }
 0x161   :  { %1013 = vst [vmem:[#allocation2 + $0x8] sm:$0xff] %v997_v15  ;;  %1811 = vrsqrt.f32 %v782_v0  ;;  %vm894_vm11 = vmor %vm892_vm10, %vm893_vm9  ;;  %vm822_vm13 = vweird.f32 %v782_v0 }
 0x162   :  { %v888_v48 = vmul.f32 %v1810_v40, %v887_v54  ;;  %v885_v32 = vsel %vm884_vm8, %v1808_v17, %v881_v39  ;;  %v2356_v6 = vadd.f32 1e-05, %v751_v59  ;;  %v641_v8 = vpop.xlane.xlu2 %640  ;;  %v707_v13 = vpop.xlane.xlu0 %706 }
 0x163   :  { %v964_v9 = vmul.f32 %v885_v32, %v772_v60  ;;  %v727_v2 = vmul.f32 0.03125, %v707_v13  ;;  %v2363_v18 = vpop.xlane.xlu1 %708  ;;  %v2367_v33 = vmul.f32 0.03125, %v641_v8 }
 0x164   :  { %v889_v58 = vmul.f32 0.5, %v888_v48  ;;  %1813 = vrsqrt.f32 %v2356_v6  ;;  %vm832_vm0 = vweird.f32 %v2356_v6 }
 0x165   :  { %v984_v51 = vmul.f32 %v2330_v7, %v964_v9  ;;  %v759_v12 = vsub.f32 %v727_v2, %v743_v3  ;;  %v742_v41 = vmul.f32 %v2367_v33, %v2367_v33 }
 0x166   :  { %v890_v14 = vsub.f32 1.5, %v889_v58 }
 0x167   :  { %v1004_v25 = vadd.f32 %v2335_v10, %v984_v51  ;;  %v1812_v19 = vpop.eup %1811  ;;  %v791_v34 = vadd.f32 1e-05, %v759_v12 }
 0x168   :  { %v891_v1 = vmul.f32 %v1810_v40, %v890_v14  ;;  %v817_v30 = vmul.f32 %v1812_v19, %v782_v0  ;;  %vm823_vm12 = vweird.f32 %v1812_v19 }
 0x169   :  { %1020 = vst [vmem:[#allocation2 + $0x40] sm:$0xff] %v1004_v25  ;;  %1815 = vrsqrt.f32 %v791_v34  ;;  %vm824_vm14 = vmor %vm822_vm13, %vm823_vm12  ;;  %vm912_vm3 = vweird.f32 %v791_v34 }
 0x16a   :  { %v895_v62 = vsel %vm894_vm11, %v1810_v40, %v891_v1  ;;  %v1814_v17 = vpop.eup %1813  ;;  %v705_v24 = vpop.xlane.xlu2 %704  ;;  %v818_v37 = vmul.f32 %v1812_v19, %v817_v30 }
 0x16b   :  { %v965_v21 = vmul.f32 %v895_v62, %v773_v11  ;;  %v827_v16 = vmul.f32 %v1814_v17, %v2356_v6  ;;  %v726_v38 = vmul.f32 0.03125, %v705_v24  ;;  %v693_v42 = vpop.xlane.xlu0 %692  ;;  %v2374_v47 = vpop.xlane.xlu1 %694  ;;  %vm833_vm15 = vweird.f32 %v1814_v17 }
 0x16c   :  { %v819_v61 = vmul.f32 0.5, %v818_v37  ;;  %v720_v9 = vmul.f32 0.03125, %v693_v42  ;;  %vm834_vm1 = vmor %vm832_vm0, %vm833_vm15 }
 0x16d   :  { %v985_v29 = vmul.f32 %v2330_v7, %v965_v21  ;;  %v828_v45 = vmul.f32 %v1814_v17, %v827_v16  ;;  %v758_v46 = vsub.f32 %v726_v38, %v742_v41 }
 0x16e   :  { %v820_v49 = vsub.f32 1.5, %v819_v61 }
 0x16f   :  { %v1005_v63 = vadd.f32 %v2335_v10, %v985_v29  ;;  %v1816_v22 = vpop.eup %1815  ;;  %v829_v43 = vmul.f32 0.5, %v828_v45  ;;  %v790_v54 = vadd.f32 1e-05, %v758_v46 }
 0x170   :  { %v821_v15 = vmul.f32 %v1812_v19, %v820_v49  ;;  %v907_v53 = vmul.f32 %v1816_v22, %v791_v34  ;;  %vm913_vm2 = vweird.f32 %v1816_v22 }
 0x171   :  { %1021 = vst [vmem:[#allocation2 + $0x48] sm:$0xff] %v1005_v63  ;;  %v830_v60 = vsub.f32 1.5, %v829_v43  ;;  %1817 = vrsqrt.f32 %v790_v54  ;;  %vm914_vm4 = vmor %vm912_vm3, %vm913_vm2  ;;  %vm902_vm6 = vweird.f32 %v790_v54 }
 0x172   :  { %v629_v40 = vpop.xlane.xlu2 %628  ;;  %v825_v59 = vsel %vm824_vm14, %v1812_v19, %v821_v15  ;;  %v908_v32 = vmul.f32 %v1816_v22, %v907_v53  ;;  %v775_v19 = vsub.f32 %v2148_v57, %v2352_v56 }
 0x173   :  { %v2378_v39 = vmul.f32 0.03125, %v629_v40  ;;  %v958_v48 = vmul.f32 %v825_v59, %v766_v52  ;;  %v831_v8 = vmul.f32 %v1814_v17, %v830_v60  ;;  %v2386_v58 = vpop.xlane.xlu0 %646  ;;  %v635_v25 = vpop.xlane.xlu1 %634  ;;  %v774_v52 = vsub.f32 %v2162_v26, %v2367_v33 }
 0x174   :  { %v909_v3 = vmul.f32 0.5, %v908_v32  ;;  %v2396_v42 = vmul.f32 0.03125, %v635_v25  ;;  %v721_v25 = vmul.f32 0.03125, %v2374_v47 }
 0x175   :  { %v736_v0 = vmul.f32 %v2378_v39, %v2378_v39  ;;  %v978_v23 = vmul.f32 %v2330_v7, %v958_v48  ;;  %v835_v13 = vsel %vm834_vm1, %v1814_v17, %v831_v8 }
 0x176   :  { %v959_v14 = vmul.f32 %v835_v13, %v767_v28  ;;  %v910_v6 = vsub.f32 1.5, %v909_v3  ;;  %v739_v43 = vmul.f32 %v2396_v42, %v2396_v42  ;;  %v768_v3 = vsub.f32 %v2216_v4, %v2378_v39 }
 0x177   :  { %v752_v2 = vsub.f32 %v720_v9, %v736_v0  ;;  %v998_v51 = vadd.f32 %v2335_v10, %v978_v23  ;;  %v1818_v12 = vpop.eup %1817 }
 0x178   :  { %v979_v11 = vmul.f32 %v2330_v7, %v959_v14  ;;  %v911_v62 = vmul.f32 %v1816_v22, %v910_v6  ;;  %v897_v27 = vmul.f32 %v1818_v12, %v790_v54  ;;  %vm903_vm5 = vweird.f32 %v1818_v12 }
 0x179   :  { %v784_v1 = vadd.f32 1e-05, %v752_v2  ;;  %1014 = vst [vmem:[#allocation2 + $0x10] sm:$0xff] %v998_v51  ;;  %vm904_vm7 = vmor %vm902_vm6, %vm903_vm5  ;;  %v2422_v2 = vmul.f32 0.03125, %v2386_v58 }
 0x17a   :  { %v645_v31 = vpop.xlane.xlu2 %644  ;;  %v999_v21 = vadd.f32 %v2335_v10, %v979_v11  ;;  %v915_v17 = vsel %vm914_vm4, %v1816_v22, %v911_v62  ;;  %v898_v30 = vmul.f32 %v1818_v12, %v897_v27  ;;  %v728_v22 = vmul.f32 0.03125, %v2363_v18 }
 0x17b   :  { %1819 = vrsqrt.f32 %v784_v1  ;;  %v967_v24 = vmul.f32 %v915_v17, %v775_v19  ;;  %v2393_v16 = vmul.f32 0.03125, %v645_v31  ;;  %v633_v37 = vpop.xlane.xlu0 %632  ;;  %v699_v63 = vpop.xlane.xlu1 %698  ;;  %vm842_vm9 = vweird.f32 %v784_v1 }
 0x17c   :  { %1015 = vst [vmem:[#allocation2 + $0x18] sm:$0xff] %v999_v21  ;;  %v899_v29 = vmul.f32 0.5, %v898_v30  ;;  %v723_v46 = vmul.f32 0.03125, %v699_v63  ;;  %v2406_v32 = vmul.f32 0.03125, %v633_v37  ;;  %v745_v39 = vmul.f32 %v2422_v2, %v2422_v2  ;;  %v2449_v37 = vld [vmem:[#allocation2 + $0x41] sm:$0x1] }
 0x17d   :  { %v987_v34 = vmul.f32 %v2330_v7, %v967_v24  ;;  %v744_v57 = vmul.f32 %v2393_v16, %v2393_v16  ;;  %v2445_v24 = vld [vmem:[#allocation2 + $0x40] sm:$0x1]  ;;  %3152 = vst [vmem:[#allocation7_spill] sm:$0xff] %v2449_v37 }
 0x17e   :  { %v900_v61 = vsub.f32 1.5, %v899_v29  ;;  %v755_v59 = vsub.f32 %v723_v46, %v739_v43  ;;  %v738_v13 = vmul.f32 %v2406_v32, %v2406_v32  ;;  %3151 = vst [vmem:[#allocation6_spill] sm:$0xff] %v2445_v24  ;;  %v2469_v43 = vld [vmem:[#allocation2 + $0x46] sm:$0x1] }
 0x17f   :  { %v1007_v56 = vadd.f32 %v2335_v10, %v987_v34  ;;  %v760_v53 = vsub.f32 %v728_v22, %v744_v57  ;;  %v2453_v34 = vld [vmem:[#allocation2 + $0x43] sm:$0x1]  ;;  %3157 = vst [vmem:[#allocation12_spill] sm:$0xff] %v2469_v43  ;;  %v1331_v43 = vld [vmem:[#allocation2 + $0x9] sm:$0x1] }
 0x180   :  { %v901_v45 = vmul.f32 %v1818_v12, %v900_v61  ;;  %v2411_v0 = vadd.f32 1e-05, %v755_v59  ;;  %3154 = vst [vmem:[#allocation9_spill] sm:$0xff] %v2453_v34 }
 0x181   :  { %v1820_v38 = vpop.eup %1819  ;;  %1023 = vst [vmem:[#allocation2 + $0x58] sm:$0xff] %v1007_v56  ;;  %v2409_v9 = vadd.f32 1e-05, %v760_v53  ;;  %v2459_v56 = vld [vmem:[#allocation2 + $0x44] sm:$0x1] }
 0x182   :  { %v837_v41 = vmul.f32 %v1820_v38, %v784_v1  ;;  %v631_v49 = vpop.xlane.xlu2 %630  ;;  %v905_v15 = vsel %vm904_vm7, %v1818_v12, %v901_v45  ;;  %vm843_vm8 = vweird.f32 %v1820_v38  ;;  %3155 = vst [vmem:[#allocation10_spill] sm:$0xff] %v2459_v56  ;;  %vm872_vm15 = vweird.f32 %v2411_v0  ;;  %v1529_v56 = vld [vmem:[#allocation2 + $0xf] sm:$0x1] }
 0x183   :  { %v966_v60 = vmul.f32 %v905_v15, %v774_v52  ;;  %v697_v54 = vpop.xlane.xlu0 %696  ;;  %v2413_v23 = vmul.f32 0.03125, %v631_v49  ;;  %1821 = vrsqrt.f32 %v2409_v9  ;;  %vm844_vm10 = vmor %vm842_vm9, %vm843_vm8  ;;  %v2467_v15 = vld [vmem:[#allocation2 + $0x45] sm:$0x1]  ;;  %vm922_vm13 = vweird.f32 %v2409_v9 }
 0x184   :  { %v838_v40 = vmul.f32 %v1820_v38, %v837_v41  ;;  %v722_v26 = vmul.f32 0.03125, %v697_v54  ;;  %1823 = vrsqrt.f32 %v2411_v0  ;;  %3156 = vst [vmem:[#allocation11_spill] sm:$0xff] %v2467_v15 }
 0x185   :  { %v986_v8 = vmul.f32 %v2330_v7, %v966_v60  ;;  %v737_v51 = vmul.f32 %v2413_v23, %v2413_v23 }
 0x186   :  { %v839_v48 = vmul.f32 0.5, %v838_v40  ;;  %v754_v1 = vsub.f32 %v722_v26, %v738_v13 }
 0x187   :  { %v1006_v33 = vadd.f32 %v2335_v10, %v986_v8  ;;  %v753_v11 = vsub.f32 %v721_v25, %v737_v51  ;;  %v2481_v8 = vld [vmem:[#allocation2 + $0x48] sm:$0x1]  ;;  %v2498_v51 = vld [vmem:[#allocation2 + $0x4a] sm:$0x1] }
 0x188   :  { %v840_v18 = vsub.f32 1.5, %v839_v48  ;;  %v2435_v31 = vadd.f32 1e-05, %v754_v1  ;;  %v2475_v48 = vld [vmem:[#allocation2 + $0x47] sm:$0x1] }
 0x189   :  { %1022 = vst [vmem:[#allocation2 + $0x50] sm:$0xff] %v1006_v33  ;;  %v2431_v58 = vpop.eup %1821  ;;  %v2433_v27 = vadd.f32 1e-05, %v753_v11  ;;  %v2510_v1 = vld [vmem:[#allocation2 + $0x4c] sm:$0x1] }
 0x18a   :  { %v841_v28 = vmul.f32 %v1820_v38, %v840_v18  ;;  %v711_v14 = vpop.xlane.xlu2 %710  ;;  %v2437_v19 = vpop.eup %1823  ;;  %v917_v21 = vmul.f32 %v2431_v58, %v2409_v9  ;;  %vm923_vm11 = vweird.f32 %v2431_v58  ;;  %3158 = vst [vmem:[#allocation13_spill] sm:$0xff] %v2475_v48  ;;  %v2483_v18 = vld [vmem:[#allocation2 + $0x49] sm:$0x1]  ;;  %v2539_v33 = vld [vmem:[#allocation2 + $0x10] sm:$0x1]  ;;  %vm862_vm5 = vweird.f32 %v2435_v31 }
 0x18b   :  { %v729_v62 = vmul.f32 0.03125, %v711_v14  ;;  %v867_v30 = vmul.f32 %v2437_v19, %v2411_v0  ;;  %1825 = vrsqrt.f32 %v2433_v27  ;;  %vm873_vm12 = vweird.f32 %v2437_v19  ;;  %vm2488_vm14 = vmor %vm922_vm13, %vm923_vm11  ;;  %v2500_v14 = vld [vmem:[#allocation2 + $0x4b] sm:$0x1]  ;;  %v2544_v0 = vld [vmem:[#allocation2 + $0x11] sm:$0x1] }
 0x18c   :  { %v845_v6 = vsel %vm844_vm10, %v1820_v38, %v841_v28  ;;  %v918_v29 = vmul.f32 %v2431_v58, %v917_v21  ;;  %1827 = vrsqrt.f32 %v2435_v31  ;;  %v2451_v38 = vld [vmem:[#allocation2 + $0x42] sm:$0x1]  ;;  %vm2504_vm0 = vmor %vm872_vm15, %vm873_vm12  ;;  %v771_v21 = vsub.f32 %v2274_v36, %v2396_v42  ;;  %v2607_v42 = vld [vmem:[#allocation2 + $0x1d] sm:$0x1] }
 0x18d   :  { %v960_v12 = vmul.f32 %v845_v6, %v768_v3  ;;  %v761_v17 = vsub.f32 %v729_v62, %v745_v39  ;;  %3153 = vst [vmem:[#allocation8_spill] sm:$0xff] %v2451_v38  ;;  %v868_v63 = vmul.f32 %v2437_v19, %v867_v30  ;;  %v2521_v39 = vld [vmem:[#allocation2 + $0x4e] sm:$0x1]  ;;  %v651_v30 = vpop.xlane.xlu1 %650  ;;  %vm852_vm3 = vweird.f32 %v2433_v27  ;;  %v2561_v3 = vld [vmem:[#allocation2 + $0x15] sm:$0x1] }
 0x18e   :  { %v919_v61 = vmul.f32 0.5, %v918_v29  ;;  %v2587_v46 = vmul.f32 0.03125, %v651_v30  ;;  %v2630_v29 = vld [vmem:[#allocation2 + $0x59] sm:$0x1]  ;;  %vm1045_vm10 = vcmask 1041409   ;;  %vm1048_vm11 = vcmask 1042434  }
 0x18f   :  { %v980_v4 = vmul.f32 %v2330_v7, %v960_v12  ;;  %v2456_v41 = vadd.f32 1e-05, %v761_v17  ;;  %v869_v45 = vmul.f32 0.5, %v868_v63  ;;  %v776_v17 = vsub.f32 %v2197_v35, %v2393_v16  ;;  %v2605_v35 = vld [vmem:[#allocation2 + $0x1c] sm:$0x1] }
 0x190   :  { %v920_v52 = vsub.f32 1.5, %v919_v61  ;;  %v649_v61 = vpop.xlane.xlu0 %648  ;;  %v747_v63 = vmul.f32 %v2587_v46, %v2587_v46  ;;  %v2662_v16 = vld [vmem:[#allocation2 + $0x50] sm:$0x1]  ;;  %v2664_v13 = vld [vmem:[#allocation2 + $0x51] sm:$0x1]  ;;  %v3176_v34 = vrot.slane %v2539_v33, 7 }
 0x191   :  { %v1000_v47 = vadd.f32 %v2335_v10, %v980_v4  ;;  %v2465_v40 = vpop.eup %1825  ;;  %v870_v53 = vsub.f32 1.5, %v869_v45  ;;  %1829 = vrsqrt.f32 %v2456_v41  ;;  %v2519_v4 = vld [vmem:[#allocation2 + $0x4d] sm:$0x1]  ;;  %vm932_vm8 = vweird.f32 %v2456_v41  ;;  %3168 = vst [vmem:[#allocation17_spill] sm:$0xff] %v2662_v16  ;;  %v1298_v48 = vld [vmem:[#allocation2 + $0x8] sm:$0x1] }
 0x192   :  { %v2472_v59 = vpop.eup %1827  ;;  %v847_v54 = vmul.f32 %v2465_v40, %v2433_v27  ;;  %v921_v26 = vmul.f32 %v2431_v58, %v920_v52  ;;  %vm853_vm1 = vweird.f32 %v2465_v40  ;;  %v2616_v52 = vld [vmem:[#allocation2 + $0x1e] sm:$0x1]  ;;  %3169 = vst [vmem:[#allocation18_spill] sm:$0xff] %v2664_v13  ;;  %v1430_v16 = vld [vmem:[#allocation2 + $0xc] sm:$0x1]  ;;  %v3177_v37 = vrot.slane %v2544_v0, 7 }
 0x193   :  { %1016 = vst [vmem:[#allocation2 + $0x20] sm:$0xff] %v1000_v47  ;;  %v871_v28 = vmul.f32 %v2437_v19, %v870_v53  ;;  %v857_v9 = vmul.f32 %v2472_v59, %v2435_v31  ;;  %v2523_v47 = vld [vmem:[#allocation2 + $0x4f] sm:$0x1]  ;;  %vm863_vm2 = vweird.f32 %v2472_v59  ;;  %vm854_vm4 = vmor %vm852_vm3, %vm853_vm1  ;;  %v1496_v13 = vld [vmem:[#allocation2 + $0xe] sm:$0x1]  ;;  %vm1051_vm12 = vcmask 1043459  }
 0x194   :  { %v848_v6 = vmul.f32 %v2465_v40, %v847_v54  ;;  %v925_v12 = vsel %vm2488_vm14, %v2431_v58, %v921_v26  ;;  %vm864_vm6 = vmor %vm862_vm5, %vm863_vm2  ;;  %vm1054_vm13 = vcmask 1044484   ;;  %vm1057_vm15 = vcmask 1045509  }
 0x195   :  { %v875_v11 = vsel %vm2504_vm0, %v2437_v19, %v871_v28  ;;  %v858_v62 = vmul.f32 %v2472_v59, %v857_v9  ;;  %v968_v53 = vmul.f32 %v925_v12, %v776_v17  ;;  %v2546_v12 = vld [vmem:[#allocation2 + $0x12] sm:$0x1]  ;;  %vm1060_vm5 = vcmask 1046534  }
 0x196   :  { %v963_v54 = vmul.f32 %v875_v11, %v771_v21  ;;  %v849_v36 = vmul.f32 0.5, %v848_v6  ;;  %v770_v6 = vsub.f32 %v2278_v44, %v2406_v32  ;;  %v2553_v21 = vld [vmem:[#allocation2 + $0x13] sm:$0x1]  ;;  %v769_v44 = vsub.f32 %v2219_v5, %v2413_v23  ;;  %v2576_v5 = vld [vmem:[#allocation2 + $0x16] sm:$0x1] }
 0x197   :  { %v2533_v45 = vpop.eup %1829  ;;  %v859_v26 = vmul.f32 0.5, %v858_v62  ;;  %v988_v28 = vmul.f32 %v2330_v7, %v968_v53  ;;  %v2578_v23 = vld [vmem:[#allocation2 + $0x17] sm:$0x1] }
 0x198   :  { %v983_v9 = vmul.f32 %v2330_v7, %v963_v54  ;;  %v850_v25 = vsub.f32 1.5, %v849_v36  ;;  %v927_v62 = vmul.f32 %v2533_v45, %v2456_v41  ;;  %v2559_v36 = vld [vmem:[#allocation2 + $0x14] sm:$0x1]  ;;  %vm933_vm7 = vweird.f32 %v2533_v45  ;;  %v2620_v41 = vld [vmem:[#allocation2 + $0x58] sm:$0x1] }
 0x199   :  { %v860_v11 = vsub.f32 1.5, %v859_v26  ;;  %v1008_v17 = vadd.f32 %v2335_v10, %v988_v28  ;;  %vm2612_vm9 = vmor %vm932_vm8, %vm933_vm7  ;;  %v1166_v28 = vld [vmem:[#allocation2 + $0x4] sm:$0x1] }
 0x19a   :  { %v1003_v53 = vadd.f32 %v2335_v10, %v983_v9  ;;  %v851_v54 = vmul.f32 %v2465_v40, %v850_v25  ;;  %v928_v26 = vmul.f32 %v2533_v45, %v927_v62  ;;  %v2687_v38 = vld [vmem:[#allocation2 + $0x20] sm:$0x1]  ;;  %v1364_v9 = vld [vmem:[#allocation2 + $0xa] sm:$0x1] }
 0x19b   :  { %v861_v32 = vmul.f32 %v2472_v59, %v860_v11  ;;  %1024 = vst [vmem:[#allocation2 + $0x60] sm:$0xff] %v1008_v17  ;;  %v2643_v17 = vld [vmem:[#allocation2 + $0x5d] sm:$0x1] }
 0x19c   :  { %v855_v25 = vsel %vm854_vm4, %v2465_v40, %v851_v54  ;;  %1019 = vst [vmem:[#allocation2 + $0x38] sm:$0xff] %v1003_v53  ;;  %v929_v62 = vmul.f32 0.5, %v928_v26  ;;  %v715_v40 = vpop.xlane.xlu1 %714  ;;  %v2584_v54 = vld [vmem:[#allocation2 + $0x18] sm:$0x1]  ;;  %v713_v53 = vpop.xlane.xlu0 %712 }
 0x19d   :  { %v961_v31 = vmul.f32 %v855_v25, %v769_v44  ;;  %v865_v11 = vsel %vm864_vm6, %v2472_v59, %v861_v32  ;;  %v2592_v32 = vld [vmem:[#allocation2 + $0x19] sm:$0x1]  ;;  %v2597_v25 = vld [vmem:[#allocation2 + $0x1a] sm:$0x1]  ;;  %v2639_v44 = vld [vmem:[#allocation2 + $0x5c] sm:$0x1] }
 0x19e   :  { %v962_v22 = vmul.f32 %v865_v11, %v770_v6  ;;  %v930_v57 = vsub.f32 1.5, %v929_v62  ;;  %v2595_v6 = vmul.f32 0.03125, %v649_v61  ;;  %v2599_v11 = vld [vmem:[#allocation2 + $0x1b] sm:$0x1]  ;;  %v731_v62 = vmul.f32 0.03125, %v715_v40  ;;  %3165 = vst [vmem:[#allocation14_spill] sm:$0xff] %v2643_v17 }
 0x19f   :  { %v981_v49 = vmul.f32 %v2330_v7, %v961_v31  ;;  %v777_v40 = vsub.f32 %v2256_v50, %v2422_v2  ;;  %v2637_v2 = vld [vmem:[#allocation2 + $0x5b] sm:$0x1]  ;;  %v2678_v59 = vld [vmem:[#allocation2 + $0x57] sm:$0x1]  ;;  %v1102_v17 = vld [vmem:[#allocation2 + $0x22] sm:$0x1] }
 0x1a0   :  { %v982_v26 = vmul.f32 %v2330_v7, %v962_v22  ;;  %v931_v31 = vmul.f32 %v2533_v45, %v930_v57  ;;  %v2618_v57 = vld [vmem:[#allocation2 + $0x1f] sm:$0x1]  ;;  %v746_v58 = vmul.f32 %v2595_v6, %v2595_v6  ;;  %3175 = vst [vmem:[#allocation24_spill] sm:$0xff] %v2678_v59  ;;  %v1199_v59 = vld [vmem:[#allocation2 + $0x5] sm:$0x1]  ;;  %v3180_v33 = vrot.slane %v2584_v54, 7 }
 0x1a1   :  { %v1001_v30 = vadd.f32 %v2335_v10, %v981_v49  ;;  %v730_v49 = vmul.f32 0.03125, %v713_v53  ;;  %v2632_v53 = vld [vmem:[#allocation2 + $0x5a] sm:$0x1]  ;;  %v3181_v0 = vrot.slane %v2592_v32, 7  ;;  %vm1063_vm6 = vcmask 1047559  }
 0x1a2   :  { %v1002_v22 = vadd.f32 %v2335_v10, %v982_v26  ;;  %v935_v26 = vsel %vm2612_vm9, %v2533_v45, %v931_v31  ;;  %v763_v45 = vsub.f32 %v731_v62, %v747_v63  ;;  %v2668_v63 = vld [vmem:[#allocation2 + $0x52] sm:$0x1]  ;;  %v2670_v62 = vld [vmem:[#allocation2 + $0x53] sm:$0x1]  ;;  %v1133_v31 = vld [vmem:[#allocation2 + $0x3] sm:$0x1] }
 0x1a3   :  { %1017 = vst [vmem:[#allocation2 + $0x28] sm:$0xff] %v1001_v30  ;;  %v969_v61 = vmul.f32 %v935_v26, %v777_v40  ;;  %v2645_v30 = vld [vmem:[#allocation2 + $0x5e] sm:$0x1]  ;;  %v762_v60 = vsub.f32 %v730_v49, %v746_v58  ;;  %v2657_v49 = vld [vmem:[#allocation2 + $0x5f] sm:$0x1] }
 0x1a4   :  { %1018 = vst [vmem:[#allocation2 + $0x30] sm:$0xff] %v1002_v22  ;;  %v2660_v19 = vadd.f32 1e-05, %v763_v45  ;;  %v2672_v40 = vld [vmem:[#allocation2 + $0x54] sm:$0x1] }
 0x1a5   :  { %3166 = vst [vmem:[#allocation15_spill] sm:$0xff] %v2645_v30  ;;  %v989_v50 = vmul.f32 %v2330_v7, %v969_v61  ;;  %v2666_v22 = vadd.f32 1e-05, %v762_v60  ;;  %v2674_v26 = vld [vmem:[#allocation2 + $0x55] sm:$0x1]  ;;  %v3179_v30 = vrot.slane %v2553_v21, 7 }
 0x1a6   :  { %3167 = vst [vmem:[#allocation16_spill] sm:$0xff] %v2657_v49  ;;  %v2676_v58 = vld [vmem:[#allocation2 + $0x56] sm:$0x1]  ;;  %v1028_v7 = vld [vmem:[#allocation2] sm:$0x1]  ;;  %1831 = vrsqrt.f32 %v2660_v19  ;;  %vm952_vm14 = vweird.f32 %v2660_v19 }
 0x1a7   :  { %3170 = vst [vmem:[#allocation19_spill] sm:$0xff] %v2668_v63  ;;  %v1067_v61 = vld [vmem:[#allocation2 + $0x1] sm:$0x1]  ;;  %v1100_v45 = vld [vmem:[#allocation2 + $0x2] sm:$0x1]  ;;  %v1009_v27 = vadd.f32 %v2335_v10, %v989_v50  ;;  %1833 = vrsqrt.f32 %v2666_v22  ;;  %v3178_v10 = vrot.slane %v2546_v12, 7  ;;  %v1150_v15 = vsel %vm1045_vm10, %v3179_v30, %v1133_v31 }
 0x1a8   :  { %3171 = vst [vmem:[#allocation20_spill] sm:$0xff] %v2670_v62  ;;  %v1397_v60 = vld [vmem:[#allocation2 + $0xb] sm:$0x1]  ;;  %v1463_v49 = vld [vmem:[#allocation2 + $0xd] sm:$0x1]  ;;  %v1046_v62 = vsel %vm1045_vm10, %v3176_v34, %v1028_v7  ;;  %v1084_v24 = vsel %vm1045_vm10, %v3177_v37, %v1067_v61  ;;  %v2709_v34 = vsel %vm1045_vm10, %v3180_v33, %v1298_v48  ;;  %v2714_v37 = vsel %vm1045_vm10, %v3181_v0, %v1331_v43 }
 0x1a9   :  { %3172 = vst [vmem:[#allocation21_spill] sm:$0xff] %v2672_v40  ;;  %v1069_v63 = vld [vmem:[#allocation2 + $0x21] sm:$0x1]  ;;  %v1117_v50 = vsel %vm1045_vm10, %v3178_v10, %v1100_v45  ;;  %v1047_v12 = vrot.slane %v2687_v38, 6  ;;  %v1168_v7 = vld [vmem:[#allocation2 + $0x24] sm:$0x1]  ;;  %vm942_vm0 = vweird.f32 %v2666_v22 }
 0x1aa   :  { %3173 = vst [vmem:[#allocation22_spill] sm:$0xff] %v2674_v26  ;;  %v1135_v26 = vld [vmem:[#allocation2 + $0x23] sm:$0x1]  ;;  %v3182_v61 = vrot.slane %v2559_v36, 7  ;;  %v1201_v31 = vld [vmem:[#allocation2 + $0x25] sm:$0x1] }
 0x1ab   :  { %3174 = vst [vmem:[#allocation23_spill] sm:$0xff] %v2676_v58  ;;  %v1232_v58 = vld [vmem:[#allocation2 + $0x6] sm:$0x1]  ;;  %v3183_v30 = vrot.slane %v2597_v25, 7  ;;  %v3184_v48 = vrot.slane %v2599_v11, 7  ;;  %v3185_v43 = vrot.slane %v2605_v35, 7 }
 0x1ac   :  { %v1183_v21 = vsel %vm1045_vm10, %v3182_v61, %v1166_v28  ;;  %1025 = vst [vmem:[#allocation2 + $0x68] sm:$0xff] %v1009_v27  ;;  %v3186_v36 = vrot.slane %v2607_v42, 7  ;;  %v1234_v27 = vld [vmem:[#allocation2 + $0x26] sm:$0x1]  ;;  %v1267_v25 = vld [vmem:[#allocation2 + $0x27] sm:$0x1] }
 0x1ad   :  { %v2723_v54 = vsel %vm1045_vm10, %v3183_v30, %v1364_v9  ;;  %v2728_v32 = vsel %vm1045_vm10, %v3184_v48, %v1397_v60  ;;  %v2733_v38 = vsel %vm1045_vm10, %v3185_v43, %v1430_v16  ;;  %v2740_v45 = vld [vmem:[#allocation2 + $0x60] sm:$0x1]  ;;  %v2742_v9 = vpop.eup %1831  ;;  %v3188_v11 = vrot.slane %v2616_v52, 7  ;;  %v2756_v33 = vld [vmem:[#allocation2 + $0x62] sm:$0x1] }
 0x1ae   :  { %v2738_v28 = vsel %vm1045_vm10, %v3186_v36, %v1463_v49  ;;  %3187 = vst [vmem:[#allocation25_spill] sm:$0xff] %v2740_v45  ;;  %v3189_v35 = vrot.slane %v2618_v57, 7  ;;  %v1085_v42 = vrot.slane %v1069_v63, 6  ;;  %v1118_v10 = vrot.slane %v1102_v17, 6  ;;  %v2754_v49 = vld [vmem:[#allocation2 + $0x61] sm:$0x1]  ;;  %v2758_v0 = vpop.eup %1833 }
 0x1af   :  { %v2747_v60 = vsel %vm1045_vm10, %v3188_v11, %v1496_v13  ;;  %3190 = vst [vmem:[#allocation26_spill] sm:$0xff] %v2754_v49  ;;  %v1151_v61 = vrot.slane %v1135_v26, 6  ;;  %v1184_v30 = vrot.slane %v1168_v7, 6  ;;  %v3192_v52 = vrot.slane %v2561_v3, 7  ;;  %v1300_v63 = vld [vmem:[#allocation2 + $0x28] sm:$0x1] }
 0x1b0   :  { %v2752_v16 = vsel %vm1045_vm10, %v3189_v35, %v1529_v56  ;;  %3191 = vst [vmem:[#allocation27_spill] sm:$0xff] %v2756_v33  ;;  %v3193_v48 = vrot.slane %v2576_v5, 7  ;;  %v2766_v56 = vld [vmem:[#allocation2 + $0x63] sm:$0x1]  ;;  %v1265_v17 = vld [vmem:[#allocation2 + $0x7] sm:$0x1]  ;;  %vm953_vm1 = vweird.f32 %v2742_v9  ;;  %vm943_vm2 = vweird.f32 %v2758_v0 }
 0x1b1   :  { %v1216_v13 = vsel %vm1045_vm10, %v3192_v52, %v1199_v59  ;;  %3194 = vst [vmem:[#allocation28_spill] sm:$0xff] %v2766_v56  ;;  %v1217_v43 = vrot.slane %v1201_v31, 6  ;;  %v1250_v36 = vrot.slane %v1234_v27, 6  ;;  %v1283_v11 = vrot.slane %v1267_v25, 6  ;;  %v2774_v7 = vld [vmem:[#allocation2 + $0x64] sm:$0x1]  ;;  %vm2843_vm3 = vmor %vm952_vm14, %vm953_vm1 }
 0x1b2   :  { %v1249_v57 = vsel %vm1045_vm10, %v3193_v48, %v1232_v58  ;;  %v3195_v26 = vrot.slane %v2578_v23, 7  ;;  %3196 = vst [vmem:[#allocation29_spill] sm:$0xff] %v2774_v7  ;;  %v1333_v58 = vld [vmem:[#allocation2 + $0x29] sm:$0x1]  ;;  %v1316_v27 = vrot.slane %v1300_v63, 6  ;;  %v947_v25 = vmul.f32 %v2742_v9, %v2660_v19  ;;  %vm944_vm4 = vmor %vm942_vm0, %vm943_vm2 }
 0x1b3   :  { %v937_v23 = vmul.f32 %v2758_v0, %v2666_v22  ;;  %v2784_v48 = vsel %vm1048_vm11, %v1047_v12, %v1046_v62  ;;  %v2793_v5 = vsel %vm1048_vm11, %v1151_v61, %v1150_v15  ;;  %v2795_v31 = vld [vmem:[#allocation2 + $0x65] sm:$0x1]  ;;  %v2797_v63 = vld [vmem:[#allocation2 + $0x66] sm:$0x1]  ;;  %v1366_v59 = vld [vmem:[#allocation2 + $0x2a] sm:$0x1]  ;;  %v2800_v35 = vsel %vm1048_vm11, %v1184_v30, %v1183_v21 }
 0x1b4   :  { %v1282_v3 = vsel %vm1045_vm10, %v3195_v26, %v1265_v17  ;;  %v2787_v17 = vsel %vm1048_vm11, %v1085_v42, %v1084_v24  ;;  %v2790_v26 = vsel %vm1048_vm11, %v1118_v10, %v1117_v50  ;;  %3197 = vst [vmem:[#allocation30_spill] sm:$0xff] %v2797_v63  ;;  %v2803_v62 = vsel %vm1048_vm11, %v1217_v43, %v1216_v13  ;;  %v1301_v12 = vld [vmem:[#allocation2 + $0x38] sm:$0x1]  ;;  %v1334_v50 = vld [vmem:[#allocation2 + $0x39] sm:$0x1] }
 0x1b5   :  { %v1349_v42 = vrot.slane %v1333_v58, 6  ;;  %v2807_v15 = vsel %vm1048_vm11, %v1250_v36, %v1249_v57  ;;  %v2810_v10 = vsel %vm1048_vm11, %v1283_v11, %v1282_v3  ;;  %v1367_v61 = vld [vmem:[#allocation2 + $0x3a] sm:$0x1]  ;;  %v1400_v52 = vld [vmem:[#allocation2 + $0x3b] sm:$0x1]  ;;  %v1317_v13 = vsel %vm1048_vm11, %v1316_v27, %v2709_v34 }
 0x1b6   :  { %v1399_v56 = vld [vmem:[#allocation2 + $0x2b] sm:$0x1]  ;;  %v1433_v30 = vld [vmem:[#allocation2 + $0x3c] sm:$0x1]  ;;  %v1382_v43 = vrot.slane %v1366_v59, 6  ;;  %v948_v57 = vmul.f32 %v2742_v9, %v947_v25  ;;  %v938_v36 = vmul.f32 %v2758_v0, %v937_v23  ;;  %v1318_v24 = vrot.slane %v1301_v12, 5 }
 0x1b7   :  { %v1432_v58 = vld [vmem:[#allocation2 + $0x2c] sm:$0x1]  ;;  %v1351_v7 = vrot.slane %v1334_v50, 5  ;;  %v1384_v21 = vrot.slane %v1367_v61, 5  ;;  %v1466_v33 = vld [vmem:[#allocation2 + $0x3d] sm:$0x1]  ;;  %v1350_v40 = vsel %vm1048_vm11, %v1349_v42, %v2714_v37 }
 0x1b8   :  { %v1415_v49 = vrot.slane %v1399_v56, 6  ;;  %v1465_v45 = vld [vmem:[#allocation2 + $0x2d] sm:$0x1]  ;;  %v1417_v34 = vrot.slane %v1400_v52, 5  ;;  %v1450_v59 = vrot.slane %v1433_v30, 5  ;;  %v1319_v27 = vsel %vm1051_vm12, %v1318_v24, %v1317_v13 }
 0x1b9   :  { %v1448_v25 = vrot.slane %v1432_v58, 6  ;;  %v1383_v23 = vsel %vm1048_vm11, %v1382_v43, %v2723_v54  ;;  %v1498_v3 = vld [vmem:[#allocation2 + $0x2e] sm:$0x1]  ;;  %v1531_v12 = vld [vmem:[#allocation2 + $0x2f] sm:$0x1]  ;;  %v949_v50 = vmul.f32 0.5, %v948_v57  ;;  %v1352_v42 = vsel %vm1051_vm12, %v1351_v7, %v1350_v40 }
 0x1ba   :  { %v939_v61 = vmul.f32 0.5, %v938_v36  ;;  %v1483_v11 = vrot.slane %v1466_v33, 5  ;;  %v1499_v37 = vld [vmem:[#allocation2 + $0x3e] sm:$0x1]  ;;  %v1532_v56 = vld [vmem:[#allocation2 + $0x3f] sm:$0x1]  ;;  %v1416_v54 = vsel %vm1048_vm11, %v1415_v49, %v2728_v32  ;;  %v1385_v43 = vsel %vm1051_vm12, %v1384_v21, %v1383_v23 }
 0x1bb   :  { %v1481_v63 = vrot.slane %v1465_v45, 6  ;;  %v3198_v52 = vrot.slane %v2481_v8, 4  ;;  %v950_v30 = vsub.f32 1.5, %v949_v50  ;;  %v1449_v33 = vsel %vm1048_vm11, %v1448_v25, %v2733_v38  ;;  %v1070_v25 = vld [vmem:[#allocation2 + $0x31] sm:$0x1] }
 0x1bc   :  { %v940_v13 = vsub.f32 1.5, %v939_v61  ;;  %v1514_v58 = vrot.slane %v1498_v3, 6  ;;  %v1547_v57 = vrot.slane %v1531_v12, 6  ;;  %v1516_v40 = vrot.slane %v1499_v37, 5  ;;  %v1103_v22 = vld [vmem:[#allocation2 + $0x32] sm:$0x1] }
 0x1bd   :  { %v1321_v24 = vsel %vm1054_vm13, %v3198_v52, %v1319_v27  ;;  %v1549_v45 = vrot.slane %v1532_v56, 5  ;;  %v951_v7 = vmul.f32 %v2742_v9, %v950_v30  ;;  %v3201_v49 = vrot.slane %v2620_v41, 3  ;;  %v1031_v27 = vld [vmem:[#allocation2 + $0x30] sm:$0x1]  ;;  %v1304_v8 = vld [vmem:[#allocation2 + $0x68] sm:$0x1] }
 0x1be   :  { %v941_v32 = vmul.f32 %v2758_v0, %v940_v13  ;;  %v3202_v21 = vrot.slane %v2483_v18, 4  ;;  %v1418_v3 = vsel %vm1051_vm12, %v1417_v34, %v1416_v54  ;;  %v1482_v19 = vsel %vm1048_vm11, %v1481_v63, %v2738_v28 }
 0x1bf   :  { %v2851_v38 = vsel %vm1057_vm15, %v3201_v49, %v1321_v24  ;;  %v3203_v41 = vrot.slane %v2498_v51, 4  ;;  %v1451_v18 = vsel %vm1051_vm12, %v1450_v59, %v1449_v33  ;;  %v955_v34 = vsel %vm2843_vm3, %v2742_v9, %v951_v7  ;;  %v1268_v7 = vld [vmem:[#allocation2 + $0x37] sm:$0x1] }
 0x1c0   :  { %v1354_v36 = vsel %vm1054_vm13, %v3202_v21, %v1352_v42  ;;  %v945_v12 = vsel %vm944_vm4, %v2758_v0, %v941_v32  ;;  %v1515_v28 = vsel %vm1048_vm11, %v1514_v58, %v2747_v60  ;;  %v1548_v63 = vsel %vm1048_vm11, %v1547_v57, %v2752_v16  ;;  %v1136_v42 = vld [vmem:[#allocation2 + $0x33] sm:$0x1] }
 0x1c1   :  { %v1387_v23 = vsel %vm1054_vm13, %v3203_v41, %v1385_v43  ;;  %v3204_v51 = vsub.f32 %v2308_v55, %v2587_v46  ;;  %v3205_v59 = vsub.f32 %v2311_v20, %v2595_v6  ;;  %v3206_v37 = vrot.slane %v2630_v29, 3  ;;  %v1169_v46 = vld [vmem:[#allocation2 + $0x34] sm:$0x1]  ;;  %v1202_v6 = vld [vmem:[#allocation2 + $0x35] sm:$0x1] }
 0x1c2   :  { %v1484_v0 = vsel %vm1051_vm12, %v1483_v11, %v1482_v19  ;;  %v1050_v60 = vrot.slane %v1031_v27, 5  ;;  %v1087_v56 = vrot.slane %v1070_v25, 5  ;;  %v3207_v16 = vrot.slane %v2632_v53, 3  ;;  %v1835_v29 = vld [vmem:[%s3103_s3] ss:$0 sm:$0xff] }
 0x1c3   :  { %v971_v50 = vmul.f32 %v955_v34, %v3204_v51  ;;  %v970_v61 = vmul.f32 %v945_v12, %v3205_v59  ;;  %v2884_v9 = vsel %vm1057_vm15, %v3206_v37, %v1354_v36  ;;  %v3208_v55 = vrot.slane %v2500_v14, 4  ;;  %v1235_v14 = vld [vmem:[#allocation2 + $0x36] sm:$0x1]  ;;  %v3217_v51 = vld [vmem:[#allocation6_spill] sm:$0xff]  ;;  %v3219_v59 = vld [vmem:[#allocation7_spill] sm:$0xff] }
 0x1c4   :  { %v2890_v52 = vsel %vm1057_vm15, %v3207_v16, %v1387_v23  ;;  %v3209_v54 = vrot.slane %v2510_v1, 4  ;;  %v1517_v53 = vsel %vm1051_vm12, %v1516_v40, %v1515_v28  ;;  %v1550_v13 = vsel %vm1051_vm12, %v1549_v45, %v1548_v63  ;;  %v1836_v1 = vld [vmem:[%s3104_s4] ss:$0 sm:$0xff] }
 0x1c5   :  { %v1420_v20 = vsel %vm1054_vm13, %v3208_v55, %v1418_v3  ;;  %v991_v24 = vmul.f32 %v1835_v29, %v971_v50  ;;  %v990_v11 = vmul.f32 %v1835_v29, %v970_v61  ;;  %v1120_v43 = vrot.slane %v1103_v22, 5  ;;  %v3215_v63 = vld [vmem:[#allocation14_spill] sm:$0xff] }
 0x1c6   :  { %v1453_v30 = vsel %vm1054_vm13, %v3209_v54, %v1451_v18  ;;  %v3210_v33 = vrot.slane %v2519_v4, 4  ;;  %v1153_v57 = vrot.slane %v1136_v42, 5  ;;  %v1052_v40 = vsel %vm1051_vm12, %v1050_v60, %v2784_v48  ;;  %v1370_v18 = vld [vmem:[#allocation2 + $0x6a] sm:$0x1]  ;;  %v1469_v60 = vld [vmem:[#allocation2 + $0x6d] sm:$0x1] }
 0x1c7   :  { %v1011_v32 = vadd.f32 %v1836_v1, %v991_v24  ;;  %v1010_v49 = vadd.f32 %v1836_v1, %v990_v11  ;;  %v1088_v45 = vsel %vm1051_vm12, %v1087_v56, %v2787_v17  ;;  %v1186_v21 = vrot.slane %v1169_v46, 5  ;;  %v1337_v17 = vld [vmem:[#allocation2 + $0x69] sm:$0x1]  ;;  %v1502_v56 = vld [vmem:[#allocation2 + $0x6e] sm:$0x1]  ;;  %v3223_v11 = vld [vmem:[#allocation16_spill] sm:$0xff] }
 0x1c8   :  { %v1486_v58 = vsel %vm1054_vm13, %v3210_v33, %v1484_v0  ;;  %v1219_v4 = vrot.slane %v1202_v6, 5  ;;  %v3211_v36 = vrot.slane %v2637_v2, 3  ;;  %v3212_v19 = vrot.slane %v2639_v44, 3  ;;  %v1403_v44 = vld [vmem:[#allocation2 + $0x6b] sm:$0x1] }
 0x1c9   :  { %v3213_v25 = vrot.slane %v2521_v39, 4  ;;  %v3214_v48 = vrot.slane %v2523_v47, 4  ;;  %1027 = vst [vmem:[#allocation2 + $0x78] sm:$0xff] %v1011_v32  ;;  %v1121_v2 = vsel %vm1051_vm12, %v1120_v43, %v2790_v26  ;;  %v1252_v34 = vrot.slane %v1235_v14, 5  ;;  %v1436_v0 = vld [vmem:[#allocation2 + $0x6c] sm:$0x1] }
 0x1ca   :  { %v1422_v3 = vsel %vm1057_vm15, %v3211_v36, %v1420_v20  ;;  %v1455_v27 = vsel %vm1057_vm15, %v3212_v19, %v1453_v30  ;;  %v1285_v12 = vrot.slane %v1268_v7, 5  ;;  %v1324_v28 = vrot.slane %v1304_v8, 2  ;;  %1026 = vst [vmem:[#allocation2 + $0x70] sm:$0xff] %v1010_v49  ;;  %v1535_v46 = vld [vmem:[#allocation2 + $0x6f] sm:$0x1]  ;;  %v3225_v30 = vld [vmem:[#allocation8_spill] sm:$0xff] }
 0x1cb   :  { %v1519_v41 = vsel %vm1054_vm13, %v3213_v25, %v1517_v53  ;;  %v1552_v23 = vsel %vm1054_vm13, %v3214_v48, %v1550_v13  ;;  %v3216_v22 = vrot.slane %v3215_v63, 3  ;;  %v3218_v50 = vrot.slane %v3217_v51, 4  ;;  %v3221_v6 = vld [vmem:[#allocation15_spill] sm:$0xff]  ;;  %v3229_v7 = vld [vmem:[#allocation10_spill] sm:$0xff] }
 0x1cc   :  { %v3220_v61 = vrot.slane %v3219_v59, 4  ;;  %v1154_v26 = vsel %vm1051_vm12, %v1153_v57, %v2793_v5  ;;  %v1187_v42 = vsel %vm1051_vm12, %v1186_v21, %v2800_v35  ;;  %v1220_v16 = vsel %vm1051_vm12, %v1219_v4, %v2803_v62  ;;  %v3227_v35 = vld [vmem:[#allocation9_spill] sm:$0xff]  ;;  %v3231_v32 = vld [vmem:[#allocation11_spill] sm:$0xff] }
 0x1cd   :  { %v1488_v39 = vsel %vm1057_vm15, %v3216_v22, %v1486_v58  ;;  %v1055_v47 = vsel %vm1054_vm13, %v3218_v50, %v1052_v40  ;;  %v1357_v55 = vrot.slane %v1337_v17, 2  ;;  %v1390_v20 = vrot.slane %v1370_v18, 2 }
 0x1ce   :  { %v2936_v37 = vsel %vm1054_vm13, %v3220_v61, %v1088_v45  ;;  %v3222_v29 = vrot.slane %v3221_v6, 3  ;;  %v3224_v54 = vrot.slane %v3223_v11, 3  ;;  %v3226_v53 = vrot.slane %v3225_v30, 4  ;;  %v3235_v6 = vld [vmem:[#allocation12_spill] sm:$0xff] }
 0x1cf   :  { %v1423_v43 = vrot.slane %v1403_v44, 2  ;;  %v3228_v14 = vrot.slane %v3227_v35, 4  ;;  %v1456_v33 = vrot.slane %v1436_v0, 2  ;;  %v1489_v58 = vrot.slane %v1469_v60, 2  ;;  %v3239_v35 = vld [vmem:[#allocation13_spill] sm:$0xff] }
 0x1d0   :  { %v1521_v24 = vsel %vm1057_vm15, %v3222_v29, %v1519_v41  ;;  %v1554_v5 = vsel %vm1057_vm15, %v3224_v54, %v1552_v23  ;;  %v1123_v13 = vsel %vm1054_vm13, %v3226_v53, %v1121_v2  ;;  %v1522_v57 = vrot.slane %v1502_v56, 2  ;;  %v1305_v41 = vld [vmem:[#allocation2 + $0x78] sm:$0x1]  ;;  %v1338_v48 = vld [vmem:[#allocation2 + $0x79] sm:$0x1]  ;;  %v3237_v54 = vld [vmem:[#allocation18_spill] sm:$0xff] }
 0x1d1   :  { %v1156_v62 = vsel %vm1054_vm13, %v3228_v14, %v1154_v26  ;;  %v3230_v8 = vrot.slane %v3229_v7, 4  ;;  %v3232_v49 = vrot.slane %v3231_v32, 4  ;;  %v1253_v45 = vsel %vm1051_vm12, %v1252_v34, %v2807_v15  ;;  %v1371_v23 = vld [vmem:[#allocation2 + $0x7a] sm:$0x1]  ;;  %v1404_v34 = vld [vmem:[#allocation2 + $0x7b] sm:$0x1] }
 0x1d2   :  { %v1555_v21 = vrot.slane %v1535_v46, 2  ;;  %v1286_v4 = vsel %vm1051_vm12, %v1285_v12, %v2810_v10  ;;  %v1325_v36 = vsel %vm1060_vm5, %v1324_v28, %v2851_v38  ;;  %v1358_v19 = vsel %vm1060_vm5, %v1357_v55, %v2884_v9  ;;  %v1437_v9 = vld [vmem:[#allocation2 + $0x7c] sm:$0x1]  ;;  %v1470_v44 = vld [vmem:[#allocation2 + $0x7d] sm:$0x1] }
 0x1d3   :  { %v2959_v1 = vsel %vm1054_vm13, %v3230_v8, %v1187_v42  ;;  %v2964_v40 = vsel %vm1054_vm13, %v3232_v49, %v1220_v16  ;;  %v1391_v25 = vsel %vm1060_vm5, %v1390_v20, %v2890_v52  ;;  %v1424_v17 = vsel %vm1060_vm5, %v1423_v43, %v1422_v3  ;;  %v1503_v51 = vld [vmem:[#allocation2 + $0x7e] sm:$0x1]  ;;  %v1536_v50 = vld [vmem:[#allocation2 + $0x7f] sm:$0x1]  ;;  %v1035_v26 = vld [vmem:[#allocation2 + $0x70] sm:$0x1] }
 0x1d4   :  { %v1326_v18 = vrot.slane %v1305_v41, 1  ;;  %v1359_v15 = vrot.slane %v1338_v48, 1  ;;  %v1392_v2 = vrot.slane %v1371_v23, 1  ;;  %v1457_v10 = vsel %vm1060_vm5, %v1456_v33, %v1455_v27  ;;  %v3233_v56 = vld [vmem:[#allocation17_spill] sm:$0xff]  ;;  %v1074_v20 = vld [vmem:[#allocation2 + $0x71] sm:$0x1] }
 0x1d5   :  { %v1490_v12 = vsel %vm1060_vm5, %v1489_v58, %v1488_v39  ;;  %v1523_v38 = vsel %vm1060_vm5, %v1522_v57, %v1521_v24  ;;  %v1425_v28 = vrot.slane %v1404_v34, 1  ;;  %v1458_v3 = vrot.slane %v1437_v9, 1  ;;  %v1107_v46 = vld [vmem:[#allocation2 + $0x72] sm:$0x1]  ;;  %v1173_v43 = vld [vmem:[#allocation2 + $0x74] sm:$0x1] }
 0x1d6   :  { %v1327_v52 = vsel %vm1063_vm6, %v1326_v18, %v1325_v36  ;;  %v1360_v63 = vsel %vm1063_vm6, %v1359_v15, %v1358_v19  ;;  %v1393_v22 = vsel %vm1063_vm6, %v1392_v2, %v1391_v25  ;;  %v1491_v39 = vrot.slane %v1470_v44, 1  ;;  %v3241_v57 = vld [vmem:[#allocation19_spill] sm:$0xff]  ;;  %v1206_v49 = vld [vmem:[#allocation2 + $0x75] sm:$0x1]  ;;  %v1239_v48 = vld [vmem:[#allocation2 + $0x76] sm:$0x1] }
 0x1d7   :  { %1686 = vst [vmem:[%s3105_s5 + $0x40] sm:$0xff] %v1327_v52  ;;  %v1426_v27 = vsel %vm1063_vm6, %v1425_v28, %v1424_v17  ;;  %v1524_v59 = vrot.slane %v1503_v51, 1  ;;  %v1557_v61 = vrot.slane %v1536_v50, 1  ;;  %v1556_v0 = vsel %vm1060_vm5, %v1555_v21, %v1554_v5  ;;  %v3245_v36 = vld [vmem:[#allocation20_spill] sm:$0xff]  ;;  %v3247_v23 = vld [vmem:[#allocation26_spill] sm:$0xff]  ;;  %v3249_v15 = vld [vmem:[#allocation21_spill] sm:$0xff] }
 0x1d8   :  { %1687 = vst [vmem:[%s3105_s5 + $0x48] sm:$0xff] %v1360_v63  ;;  %v1459_v60 = vsel %vm1063_vm6, %v1458_v3, %v1457_v10  ;;  %v3234_v42 = vrot.slane %v3233_v56, 3  ;;  %v1062_v55 = vrot.slane %v1035_v26, 1  ;;  %v3236_v29 = vrot.slane %v3235_v6, 4  ;;  %v3251_v28 = vld [vmem:[#allocation27_spill] sm:$0xff]  ;;  %v3253_v52 = vld [vmem:[#allocation22_spill] sm:$0xff] }
 0x1d9   :  { %1688 = vst [vmem:[%s3105_s5 + $0x50] sm:$0xff] %v1393_v22  ;;  %v1492_v11 = vsel %vm1063_vm6, %v1491_v39, %v1490_v12  ;;  %v3238_v5 = vrot.slane %v3237_v54, 3  ;;  %v1095_v53 = vrot.slane %v1074_v20, 1  ;;  %v3240_v14 = vrot.slane %v3239_v35, 4  ;;  %v1272_v12 = vld [vmem:[#allocation2 + $0x77] sm:$0x1] }
 0x1da   :  { %v1058_v16 = vsel %vm1057_vm15, %v3234_v42, %v1055_v47  ;;  %v1255_v24 = vsel %vm1054_vm13, %v3236_v29, %v1253_v45  ;;  %v1140_v47 = vld [vmem:[#allocation2 + $0x73] sm:$0x1]  ;;  %1689 = vst [vmem:[%s3105_s5 + $0x58] sm:$0xff] %v1426_v27  ;;  %v1525_v58 = vsel %vm1063_vm6, %v1524_v59, %v1523_v38  ;;  %v3242_v7 = vrot.slane %v3241_v57, 3  ;;  %v3243_v45 = vld [vmem:[#allocation25_spill] sm:$0xff]  ;;  %v3257_v39 = vld [vmem:[#allocation23_spill] sm:$0xff] }
 0x1db   :  { %v1092_v30 = vsel %vm1057_vm15, %v3238_v5, %v2936_v37  ;;  %v1288_v33 = vsel %vm1054_vm13, %v3240_v14, %v1286_v4  ;;  %v1128_v32 = vrot.slane %v1107_v46, 1  ;;  %1690 = vst [vmem:[%s3105_s5 + $0x60] sm:$0xff] %v1459_v60  ;;  %v1558_v37 = vsel %vm1063_vm6, %v1557_v61, %v1556_v0  ;;  %v3255_v51 = vld [vmem:[#allocation28_spill] sm:$0xff]  ;;  %v3259_v0 = vld [vmem:[#allocation29_spill] sm:$0xff]  ;;  %v3264_v54 = vld [vmem:[#allocation30_spill] sm:$0xff] }
 0x1dc   :  { %v1125_v8 = vsel %vm1057_vm15, %v3242_v7, %v1123_v13  ;;  %v3244_v21 = vrot.slane %v3243_v45, 2  ;;  %v3246_v19 = vrot.slane %v3245_v36, 3  ;;  %v1161_v41 = vrot.slane %v1140_v47, 1  ;;  %1691 = vst [vmem:[%s3105_s5 + $0x68] sm:$0xff] %v1492_v11  ;;  %v3261_v42 = vld [vmem:[#allocation24_spill] sm:$0xff] }
 0x1dd   :  { %v3248_v17 = vrot.slane %v3247_v23, 2  ;;  %v3250_v2 = vrot.slane %v3249_v15, 3  ;;  %v1194_v10 = vrot.slane %v1173_v43, 1  ;;  %1692 = vst [vmem:[%s3105_s5 + $0x70] sm:$0xff] %v1525_v58  ;;  %v3252_v9 = vrot.slane %v3251_v28, 2 }
 0x1de   :  { %v1061_v4 = vsel %vm1060_vm5, %v3244_v21, %v1058_v16  ;;  %v1158_v25 = vsel %vm1057_vm15, %v3246_v19, %v1156_v62  ;;  %v1271_v62 = vld [vmem:[#allocation2 + $0x67] sm:$0x1]  ;;  %v3254_v63 = vrot.slane %v3253_v52, 3  ;;  %v1227_v3 = vrot.slane %v1206_v49, 1  ;;  %1693 = vst [vmem:[%s3105_s5 + $0x78] sm:$0xff] %v1558_v37 }
 0x1df   :  { %v1064_v13 = vsel %vm1063_vm6, %v1062_v55, %v1061_v4  ;;  %v1094_v18 = vsel %vm1060_vm5, %v3248_v17, %v1092_v30  ;;  %v1191_v34 = vsel %vm1057_vm15, %v3250_v2, %v2959_v1  ;;  %v1127_v44 = vsel %vm1060_vm5, %v3252_v9, %v1125_v8 }
 0x1e0   :  { %v1096_v38 = vsel %vm1063_vm6, %v1095_v53, %v1094_v18  ;;  %v1224_v22 = vsel %vm1057_vm15, %v3254_v63, %v2964_v40  ;;  %v1129_v1 = vsel %vm1063_vm6, %v1128_v32, %v1127_v44  ;;  %v3256_v50 = vrot.slane %v3255_v51, 2  ;;  %1066 = vst [vmem:[%s3105_s5] sm:$0xff] %v1064_v13 }
 0x1e1   :  { %v3258_v59 = vrot.slane %v3257_v39, 3  ;;  %v1260_v26 = vrot.slane %v1239_v48, 1  ;;  %v3260_v60 = vrot.slane %v3259_v0, 2  ;;  %v3262_v16 = vrot.slane %v3261_v42, 3  ;;  %1679 = vst [vmem:[%s3105_s5 + $0x8] sm:$0xff] %v1096_v38 }
 0x1e2   :  { %v1160_v27 = vsel %vm1060_vm5, %v3256_v50, %v1158_v25  ;;  %v1293_v20 = vrot.slane %v1272_v12, 1  ;;  %v1291_v46 = vrot.slane %v1271_v62, 2  ;;  %v3263_v29 = vrot.slane %v2795_v31, 2  ;;  %1680 = vst [vmem:[%s3105_s5 + $0x10] sm:$0xff] %v1129_v1 }
 0x1e3   :  { %v1257_v61 = vsel %vm1057_vm15, %v3258_v59, %v1255_v24  ;;  %v1162_v40 = vsel %vm1063_vm6, %v1161_v41, %v1160_v27  ;;  %v1193_v56 = vsel %vm1060_vm5, %v3260_v60, %v1191_v34  ;;  %v1290_v55 = vsel %vm1057_vm15, %v3262_v16, %v1288_v33 }
 0x1e4   :  { %v1195_v6 = vsel %vm1063_vm6, %v1194_v10, %v1193_v56  ;;  %v1226_v24 = vsel %vm1060_vm5, %v3263_v29, %v1224_v22  ;;  %v3265_v5 = vrot.slane %v3264_v54, 2  ;;  %1681 = vst [vmem:[%s3105_s5 + $0x18] sm:$0xff] %v1162_v40  ;;  %v1292_v31 = vsel %vm1060_vm5, %v1291_v46, %v1290_v55 }
 0x1e5   :  { %v1228_v11 = vsel %vm1063_vm6, %v1227_v3, %v1226_v24  ;;  %1682 = vst [vmem:[%s3105_s5 + $0x20] sm:$0xff] %v1195_v6  ;;  %v1294_v47 = vsel %vm1063_vm6, %v1293_v20, %v1292_v31 }
 0x1e6   :  { %v1259_v30 = vsel %vm1060_vm5, %v3265_v5, %v1257_v61  ;;  %1683 = vst [vmem:[%s3105_s5 + $0x28] sm:$0xff] %v1228_v11 }
 0x1e7   :  { %v1261_v53 = vsel %vm1063_vm6, %v1260_v26, %v1259_v30  ;;  %1685 = vst [vmem:[%s3105_s5 + $0x38] sm:$0xff] %v1294_v47 }
 0x1e8   :  { %1684 = vst [vmem:[%s3105_s5 + $0x30] sm:$0xff] %v1261_v53 }
 0x1e9   :  { %1566 = vsyncpa [#allocation4], 1 }

// kernel: lstm_embedding.2
= control target key start
LH: loop header
LB: loop body
LE: loop exit
PB: predicated region body
PF: predicated region fallthrough
CT: control target
= control target key end

     0   :  { %9 = vsyncpa [#allocation6], 0  ;;  %s5378_s18 = smov [#allocation5]   ;;  %s5379_s20 = smov 256   ;;  %s6874_s0 = inlined_call_operand.vmem [shape: bf16[8,16,4], index: 0, kind: input, shape index: {}]   ;;  %s6875_s1 = inlined_call_operand.vmem [shape: bf16[4,512], index: 1, kind: input, shape index: {}]   ;;  %s6876_s2 = inlined_call_operand.hbm [shape: bf16[128,512], index: 2, kind: input, shape index: {}]   ;;  %s6877_s3 = inlined_call_operand.vmem [shape: f32[1,512], index: 3, kind: input, shape index: {}]   ;;  %s6878_s4 = inlined_call_operand.vmem [shape: bf16[8,16,128], index: 4, kind: output, shape index: {}]  }
   0x1   :  { %s18_s17 = sshll.u32 %s6876_s2, 4  ;;  %s20_s19 = sshll.u32 %s5378_s18, 4  ;;  %s19_s17 = int_to_ptr.hbm [resolvable:$true] %s18_s17  ;;  %s21_s19 = int_to_ptr.vmem [resolvable:$true] %s20_s19 }
   0x2   :  { %s5380_s21 = smov 16  }
   0x3   :  { %26 = dma.hbm_to_vmem [thread:$0]  %s19_s17, 4096, %s21_s19, [#allocation6], %s5379_s20, %s5379_s20, %s5380_s21  }
   0x4   :  { %5376 = dma.done.wait [#allocation6], 4096  }
   0x5   :  { %5377 = vsyncadd [#allocation6], 4294963200  ;;  %v58_v0 = vld [vmem:[%s6875_s1] sm:$0xff]  ;;  %v3809_v1 = vld [vmem:[#allocation5 + $0xe0] sm:$0xf]  ;;  %vm140_vm0 = vcmask 1041408  }
   0x6   :  { %110 = vst [vmem:[#allocation1] ss:$4 sm:$0xff] %v58_v0  ;;  %v4819_v2 = vld [vmem:[#allocation5 + $0xec] sm:$0xf0]  ;;  %v4817_v3 = vld [vmem:[#allocation5 + $0xe4] sm:$0xf] }
   0x7   :  { %v3811_v4 = vld [vmem:[#allocation5 + $0xf0] sm:$0xf0]  ;;  %v3817_v5 = vld [vmem:[#allocation5 + $0xe8] sm:$0xf]  ;;  %v4820_v6 = vld [vmem:[#allocation5 + $0xf4] sm:$0xf0]  ;;  %v3810_v9 = vor.u32 %v4819_v2, %v3809_v1 }
   0x8   :  { %v4818_v7 = vld [vmem:[#allocation5 + $0xec] sm:$0xf]  ;;  %v3819_v8 = vld [vmem:[#allocation5 + $0xf8] sm:$0xf0]  ;;  %v3793_v10 = vld [vmem:[#allocation5 + $0xc0] sm:$0xf]  ;;  %v3814_v16 = vor.u32 %v4817_v3, %v3811_v4  ;;  %v3818_v25 = vor.u32 %v4820_v6, %v3817_v5 }
   0x9   :  { %v4815_v11 = vld [vmem:[#allocation5 + $0xcc] sm:$0xf0]  ;;  %v4813_v12 = vld [vmem:[#allocation5 + $0xc4] sm:$0xf]  ;;  %v3795_v13 = vld [vmem:[#allocation5 + $0xd0] sm:$0xf0]  ;;  %v3822_v23 = vor.u32 %v4818_v7, %v3819_v8 }
   0xa   :  { %v4781_v20 = vld [vmem:[%s6874_s0] sm:$0xff]  ;;  %vm115_vm1 = vcmask 31744   ;;  %v4814_v26 = vld [vmem:[#allocation5 + $0xcc] sm:$0xf]  ;;  %v3794_v28 = vor.u32 %v4815_v11, %v3793_v10  ;;  %v3798_v29 = vor.u32 %v4813_v12, %v3795_v13  ;;  %v3801_v30 = vld [vmem:[#allocation5 + $0xc8] sm:$0xf] }
   0xb   :  { %v3803_v27 = vld [vmem:[#allocation5 + $0xd8] sm:$0xf0]  ;;  %v4816_v31 = vld [vmem:[#allocation5 + $0xd4] sm:$0xf0]  ;;  %v3777_v34 = vld [vmem:[#allocation5 + $0xa0] sm:$0xf] }
   0xc   :  { %v3806_v32 = vor.u32 %v4814_v26, %v3803_v27  ;;  %v3802_v33 = vor.u32 %v4816_v31, %v3801_v30  ;;  %v4811_v35 = vld [vmem:[#allocation5 + $0xac] sm:$0xf0]  ;;  %v4809_v36 = vld [vmem:[#allocation5 + $0xa4] sm:$0xf]  ;;  %v3779_v38 = vld [vmem:[#allocation5 + $0xb0] sm:$0xf0] }
   0xd   :  { %v111_v14 = vld.sshfl [vmem:[#allocation1] sm:$0xff pattern:$0x73625140]  ;;  %v112_v15 = vld.sshfl [vmem:[#allocation1 + $0x8] sm:$0xff pattern:$0x73625140]  ;;  %v3778_v37 = vor.u32 %v4811_v35, %v3777_v34  ;;  %v3782_v41 = vor.u32 %v4809_v36, %v3779_v38 }
   0xe   :  { %v141_v17 = vsel %vm140_vm0, %v111_v14, 0  ;;  %v143_v18 = vsel %vm140_vm0, %v112_v15, 0  ;;  %v113_v19 = vld.sshfl [vmem:[#allocation1 + $0x10] sm:$0xff pattern:$0x73625140]  ;;  %v4782_v46 = vld [vmem:[%s6874_s0 + $0x8] sm:$0xff] }
   0xf   :  { %156 = vmatpush.bf16.msra.mxu0 %v141_v17  ;;  %205 = vmatpush.bf16.msra.mxu1 %v143_v18  ;;  %v145_v21 = vsel %vm140_vm0, %v113_v19, 0  ;;  %v114_v22 = vld.sshfl [vmem:[#allocation1 + $0x18] sm:$0xff pattern:$0x73625140]  ;;  %v3785_v39 = vld [vmem:[#allocation5 + $0xa8] sm:$0xf] }
  0x10   :  { %254 = vmatpush.bf16.msra.mxu2 %v145_v21  ;;  %v147_v24 = vsel %vm140_vm0, %v114_v22, 0  ;;  %v4812_v40 = vld [vmem:[#allocation5 + $0xb4] sm:$0xf0]  ;;  %v4810_v42 = vld [vmem:[#allocation5 + $0xac] sm:$0xf]  ;;  %v4784_v8 = vld [vmem:[%s6874_s0 + $0x18] sm:$0xff] }
  0x11   :  { %303 = vmatpush.bf16.msra.mxu3 %v147_v24  ;;  %v3787_v43 = vld [vmem:[#allocation5 + $0xb8] sm:$0xf0]  ;;  %v3786_v45 = vor.u32 %v4812_v40, %v3785_v39  ;;  %v3761_v47 = vld [vmem:[#allocation5 + $0x80] sm:$0xf]  ;;  %v4807_v48 = vld [vmem:[#allocation5 + $0x8c] sm:$0xf0] }
  0x12   :  { %3663 = vmatmul.msk.bf16.vlgmr.msra.gmra.mxu0 %vm115_vm1, %v4781_v20  ;;  %3671 = vmatmul.msk.bf16.vlgmr.msra.gmra.mxu1 %vm115_vm1, %v4781_v20  ;;  %v3790_v44 = vor.u32 %v4810_v42, %v3787_v43  ;;  %v4805_v49 = vld [vmem:[#allocation5 + $0x84] sm:$0xf]  ;;  %v3762_v50 = vor.u32 %v4807_v48, %v3761_v47  ;;  %v3763_v51 = vld [vmem:[#allocation5 + $0x90] sm:$0xf0]  ;;  %v3769_v52 = vld [vmem:[#allocation5 + $0x88] sm:$0xf] }
  0x13   :  { %614 = vmatpush.bf16.msrb.mxu0 %v3810_v9  ;;  %628 = vmatpush.bf16.msrb.mxu1 %v3814_v16  ;;  %v4808_v53 = vld [vmem:[#allocation5 + $0x94] sm:$0xf0]  ;;  %v3766_v54 = vor.u32 %v4805_v49, %v3763_v51  ;;  %v4806_v56 = vld [vmem:[#allocation5 + $0x8c] sm:$0xf]  ;;  %v3771_v57 = vld [vmem:[#allocation5 + $0x98] sm:$0xf0] }
  0x14   :  { %3679 = vmatmul.msk.bf16.vlgmr.msra.gmra.mxu2 %vm115_vm1, %v4781_v20  ;;  %3687 = vmatmul.msk.bf16.vlgmr.msra.gmra.mxu3 %vm115_vm1, %v4781_v20  ;;  %v3770_v55 = vor.u32 %v4808_v53, %v3769_v52  ;;  %v3774_v58 = vor.u32 %v4806_v56, %v3771_v57  ;;  %v4783_v59 = vld [vmem:[%s6874_s0 + $0x10] sm:$0xff]  ;;  %v3745_v60 = vld [vmem:[#allocation5 + $0x60] sm:$0xf]  ;;  %v4803_v61 = vld [vmem:[#allocation5 + $0x6c] sm:$0xf0]  ;;  %v5381_v51 = vmov 0.0|0.0  }
  0x15   :  { %656 = vmatpush.bf16.msrb.mxu3 %v3822_v23  ;;  %642 = vmatpush.bf16.msrb.mxu2 %v3818_v25  ;;  %v4801_v62 = vld [vmem:[#allocation5 + $0x64] sm:$0xf]  ;;  %v3746_v63 = vor.u32 %v4803_v61, %v3745_v60  ;;  %v3747_v0 = vld [vmem:[#allocation5 + $0x70] sm:$0xf0]  ;;  %v3753_v1 = vld [vmem:[#allocation5 + $0x68] sm:$0xf] }
  0x16   :  { %v4804_v2 = vld [vmem:[#allocation5 + $0x74] sm:$0xf0]  ;;  %v3750_v3 = vor.u32 %v4801_v62, %v3747_v0  ;;  %v4802_v5 = vld [vmem:[#allocation5 + $0x6c] sm:$0xf]  ;;  %v3755_v6 = vld [vmem:[#allocation5 + $0x78] sm:$0xf0] }
  0x17   :  { %615 = vmatpush.bf16.msrb.mxu0 %v3794_v28  ;;  %629 = vmatpush.bf16.msrb.mxu1 %v3798_v29  ;;  %v3754_v4 = vor.u32 %v4804_v2, %v3753_v1  ;;  %v3758_v7 = vor.u32 %v4802_v5, %v3755_v6  ;;  %v3729_v9 = vld [vmem:[#allocation5 + $0x40] sm:$0xf]  ;;  %v4799_v10 = vld [vmem:[#allocation5 + $0x4c] sm:$0xf0]  ;;  %v4797_v11 = vld [vmem:[#allocation5 + $0x44] sm:$0xf] }
  0x18   :  { %v3730_v12 = vor.u32 %v4799_v10, %v3729_v9  ;;  %v3731_v13 = vld [vmem:[#allocation5 + $0x50] sm:$0xf0]  ;;  %v3737_v14 = vld [vmem:[#allocation5 + $0x48] sm:$0xf]  ;;  %v4800_v15 = vld [vmem:[#allocation5 + $0x54] sm:$0xf0] }
  0x19   :  { %657 = vmatpush.bf16.msrb.mxu3 %v3806_v32  ;;  %643 = vmatpush.bf16.msrb.mxu2 %v3802_v33  ;;  %v3734_v16 = vor.u32 %v4797_v11, %v3731_v13  ;;  %v3738_v17 = vor.u32 %v4800_v15, %v3737_v14  ;;  %v4798_v18 = vld [vmem:[#allocation5 + $0x4c] sm:$0xf]  ;;  %v3739_v19 = vld [vmem:[#allocation5 + $0x58] sm:$0xf0]  ;;  %v3713_v22 = vld [vmem:[#allocation5 + $0x20] sm:$0xf] }
  0x1a   :  { %v3742_v20 = vor.u32 %v4798_v18, %v3739_v19  ;;  %v4785_v21 = vld [vmem:[%s6874_s0 + $0x20] sm:$0xff]  ;;  %v4795_v23 = vld [vmem:[#allocation5 + $0x2c] sm:$0xf0]  ;;  %v4793_v24 = vld [vmem:[#allocation5 + $0x24] sm:$0xf] }
  0x1b   :  { %616 = vmatpush.bf16.msrb.mxu0 %v3778_v37  ;;  %630 = vmatpush.bf16.msrb.mxu1 %v3782_v41  ;;  %v3714_v25 = vor.u32 %v4795_v23, %v3713_v22  ;;  %v3715_v26 = vld [vmem:[#allocation5 + $0x30] sm:$0xf0]  ;;  %v3721_v27 = vld [vmem:[#allocation5 + $0x28] sm:$0xf]  ;;  %v4796_v28 = vld [vmem:[#allocation5 + $0x34] sm:$0xf0] }
  0x1c   :  { %v3718_v29 = vor.u32 %v4793_v24, %v3715_v26  ;;  %v3722_v30 = vor.u32 %v4796_v28, %v3721_v27  ;;  %v4794_v31 = vld [vmem:[#allocation5 + $0x2c] sm:$0xf]  ;;  %v3723_v32 = vld [vmem:[#allocation5 + $0x38] sm:$0xf0]  ;;  %v4786_v34 = vld [vmem:[%s6874_s0 + $0x28] sm:$0xff] }
  0x1d   :  { %658 = vmatpush.bf16.msrb.mxu3 %v3790_v44  ;;  %644 = vmatpush.bf16.msrb.mxu2 %v3786_v45  ;;  %v3726_v33 = vor.u32 %v4794_v31, %v3723_v32  ;;  %v3697_v35 = vld [vmem:[#allocation5] sm:$0xf]  ;;  %v4791_v36 = vld [vmem:[#allocation5 + $0xc] sm:$0xf0]  ;;  %v4789_v37 = vld [vmem:[#allocation5 + $0x4] sm:$0xf] }
  0x1e   :  { %v3698_v38 = vor.u32 %v4791_v36, %v3697_v35  ;;  %v3699_v39 = vld [vmem:[#allocation5 + $0x10] sm:$0xf0]  ;;  %v3705_v40 = vld [vmem:[#allocation5 + $0x8] sm:$0xf]  ;;  %v4792_v41 = vld [vmem:[#allocation5 + $0x14] sm:$0xf0] }
  0x1f   :  { %617 = vmatpush.bf16.msrb.mxu0 %v3762_v50  ;;  %631 = vmatpush.bf16.msrb.mxu1 %v3766_v54  ;;  %v3702_v42 = vor.u32 %v4789_v37, %v3699_v39  ;;  %v3706_v43 = vor.u32 %v4792_v41, %v3705_v40  ;;  %v4787_v44 = vld [vmem:[%s6874_s0 + $0x30] sm:$0xff]  ;;  %v4788_v48 = vld [vmem:[%s6874_s0 + $0x38] sm:$0xff] }
  0x20   :  { %v4790_v45 = vld [vmem:[#allocation5 + $0xc] sm:$0xf] }
  0x21   :  { %645 = vmatpush.bf16.msrb.mxu2 %v3770_v55  ;;  %659 = vmatpush.bf16.msrb.mxu3 %v3774_v58 }
  0x22   :  { %3664 = vmatmul.msk.bf16.gmra.mxu0 %vm115_vm1, %v4782_v46  ;;  %3672 = vmatmul.msk.bf16.gmra.mxu1 %vm115_vm1, %v4782_v46 }
  0x23   :  { %618 = vmatpush.bf16.msrb.mxu0 %v3746_v63  ;;  %632 = vmatpush.bf16.msrb.mxu1 %v3750_v3 }
  0x24   :  { %3680 = vmatmul.msk.bf16.gmra.mxu2 %vm115_vm1, %v4782_v46  ;;  %3688 = vmatmul.msk.bf16.gmra.mxu3 %vm115_vm1, %v4782_v46  ;;  %v3707_v46 = vld [vmem:[#allocation5 + $0x18] sm:$0xf0] }
  0x25   :  { %646 = vmatpush.bf16.msrb.mxu2 %v3754_v4  ;;  %660 = vmatpush.bf16.msrb.mxu3 %v3758_v7  ;;  %v3710_v47 = vor.u32 %v4790_v45, %v3707_v46  ;;  %v59_v45 = vld [vmem:[%s6877_s3] sm:$0xf] }
  0x27   :  { %619 = vmatpush.bf16.msrb.mxu0 %v3730_v12  ;;  %633 = vmatpush.bf16.msrb.mxu1 %v3734_v16 }
  0x29   :  { %647 = vmatpush.bf16.msrb.mxu2 %v3738_v17  ;;  %661 = vmatpush.bf16.msrb.mxu3 %v3742_v20 }
  0x2b   :  { %620 = vmatpush.bf16.msrb.mxu0 %v3714_v25  ;;  %634 = vmatpush.bf16.msrb.mxu1 %v3718_v29 }
  0x2d   :  { %648 = vmatpush.bf16.msrb.mxu2 %v3722_v30  ;;  %662 = vmatpush.bf16.msrb.mxu3 %v3726_v33 }
  0x2f   :  { %621 = vmatpush.bf16.msrb.mxu0 %v3698_v38  ;;  %635 = vmatpush.bf16.msrb.mxu1 %v3702_v42 }
  0x31   :  { %649 = vmatpush.bf16.msrb.mxu2 %v3706_v43  ;;  %663 = vmatpush.bf16.msrb.mxu3 %v3710_v47 }
  0x32   :  { %3665 = vmatmul.msk.bf16.gmra.mxu0 %vm115_vm1, %v4783_v59  ;;  %3673 = vmatmul.msk.bf16.gmra.mxu1 %vm115_vm1, %v4783_v59 }
  0x34   :  { %3681 = vmatmul.msk.bf16.gmra.mxu2 %vm115_vm1, %v4783_v59  ;;  %3689 = vmatmul.msk.bf16.gmra.mxu3 %vm115_vm1, %v4783_v59 }
  0x42   :  { %3666 = vmatmul.msk.bf16.gmra.mxu0 %vm115_vm1, %v4784_v8  ;;  %3674 = vmatmul.msk.bf16.gmra.mxu1 %vm115_vm1, %v4784_v8 }
  0x44   :  { %3682 = vmatmul.msk.bf16.gmra.mxu2 %vm115_vm1, %v4784_v8  ;;  %3690 = vmatmul.msk.bf16.gmra.mxu3 %vm115_vm1, %v4784_v8 }
  0x52   :  { %3667 = vmatmul.msk.bf16.gmra.mxu0 %vm115_vm1, %v4785_v21  ;;  %3675 = vmatmul.msk.bf16.gmra.mxu1 %vm115_vm1, %v4785_v21 }
  0x54   :  { %3683 = vmatmul.msk.bf16.gmra.mxu2 %vm115_vm1, %v4785_v21  ;;  %3691 = vmatmul.msk.bf16.gmra.mxu3 %vm115_vm1, %v4785_v21 }
  0x62   :  { %3668 = vmatmul.msk.bf16.gmra.mxu0 %vm115_vm1, %v4786_v34  ;;  %3676 = vmatmul.msk.bf16.gmra.mxu1 %vm115_vm1, %v4786_v34 }
  0x64   :  { %3684 = vmatmul.msk.bf16.gmra.mxu2 %vm115_vm1, %v4786_v34  ;;  %3692 = vmatmul.msk.bf16.gmra.mxu3 %vm115_vm1, %v4786_v34 }
  0x72   :  { %3669 = vmatmul.msk.bf16.gmra.mxu0 %vm115_vm1, %v4787_v44  ;;  %3677 = vmatmul.msk.bf16.gmra.mxu1 %vm115_vm1, %v4787_v44 }
  0x74   :  { %3685 = vmatmul.msk.bf16.gmra.mxu2 %vm115_vm1, %v4787_v44  ;;  %3693 = vmatmul.msk.bf16.gmra.mxu3 %vm115_vm1, %v4787_v44 }
  0x82   :  { %3670 = vmatmul.msk.bf16.gmra.mxu0 %vm115_vm1, %v4788_v48  ;;  %3678 = vmatmul.msk.bf16.gmra.mxu1 %vm115_vm1, %v4788_v48 }
  0x84   :  { %3686 = vmatmul.msk.bf16.gmra.mxu2 %vm115_vm1, %v4788_v48  ;;  %3694 = vmatmul.msk.bf16.gmra.mxu3 %vm115_vm1, %v4788_v48 }
  0x8f   :  { %v5473_v49 = vpop.f32.mrf.mxu0  ;;  %v5475_v50 = vpop.f32.mrf.mxu1 }
  0x92   :  { %622 = vmatmul.bf16.vlgmr.msrb.gmra.mxu0 %v5381_v51  ;;  %636 = vmatmul.bf16.vlgmr.msrb.gmra.mxu1 %v5381_v51 }
  0x94   :  { %650 = vmatmul.bf16.vlgmr.msrb.gmra.mxu2 %v5381_v51  ;;  %664 = vmatmul.bf16.vlgmr.msrb.gmra.mxu3 %v5381_v51  ;;  %v5600_v51 = vperm.slane %v59_v45, 0 }
  0x97   :  { %v5477_v52 = vpop.f32.mrf.mxu2  ;;  %v5479_v53 = vpop.f32.mrf.mxu3 }
  0x98   :  { %v5481_v54 = vpop.f32.mrf.mxu0  ;;  %v5483_v55 = vpop.f32.mrf.mxu1 }
  0x9f   :  { %v5485_v56 = vpop.f32.mrf.mxu2  ;;  %v5487_v57 = vpop.f32.mrf.mxu3 }
  0xa0   :  { %v5489_v58 = vpop.f32.mrf.mxu0  ;;  %v5491_v59 = vpop.f32.mrf.mxu1 }
  0xa7   :  { %v5493_v60 = vpop.f32.mrf.mxu2  ;;  %v5495_v61 = vpop.f32.mrf.mxu3 }
  0xa8   :  { %v5497_v62 = vpop.f32.mrf.mxu0  ;;  %v5499_v63 = vpop.f32.mrf.mxu1 }
  0xaf   :  { %v5501_v0 = vpop.f32.mrf.mxu2  ;;  %v5503_v1 = vpop.f32.mrf.mxu3 }
  0xb0   :  { %v5505_v2 = vpop.f32.mrf.mxu0  ;;  %v5507_v3 = vpop.f32.mrf.mxu1 }
  0xb7   :  { %v5509_v4 = vpop.f32.mrf.mxu2  ;;  %v5511_v5 = vpop.f32.mrf.mxu3 }
  0xb8   :  { %v5513_v6 = vpop.f32.mrf.mxu0  ;;  %v5515_v7 = vpop.f32.mrf.mxu1 }
  0xbf   :  { %v5517_v8 = vpop.f32.mrf.mxu2  ;;  %v5519_v9 = vpop.f32.mrf.mxu3 }
  0xc0   :  { %v5521_v10 = vpop.f32.mrf.mxu0  ;;  %v5523_v11 = vpop.f32.mrf.mxu1 }
  0xc1   :  { %6879 = vst [vmem:[#allocation8_spill] sm:$0xff] %v5523_v11 }
  0xc7   :  { %v5525_v12 = vpop.f32.mrf.mxu2  ;;  %v5527_v13 = vpop.f32.mrf.mxu3 }
  0xc8   :  { %6880 = vst [vmem:[#allocation9_spill] sm:$0xff] %v5525_v12  ;;  %v5529_v14 = vpop.f32.mrf.mxu0  ;;  %v5531_v15 = vpop.f32.mrf.mxu1 }
  0xc9   :  { %6881 = vst [vmem:[#allocation10_spill] sm:$0xff] %v5527_v13  ;;  %v4822_v13 = vld [vmem:[#allocation5 + $0xc] sm:$0xf] }
  0xca   :  { %6882 = vst [vmem:[#allocation11_spill] sm:$0xff] %v5529_v14 }
  0xcb   :  { %6883 = vst [vmem:[#allocation12_spill] sm:$0xff] %v5531_v15 }
  0xcf   :  { %v5533_v16 = vpop.f32.mrf.mxu2  ;;  %v5535_v17 = vpop.f32.mrf.mxu3 }
  0xd0   :  { %6884 = vst [vmem:[#allocation13_spill] sm:$0xff] %v5533_v16  ;;  %v5537_v18 = vpop.f32.mrf.mxu0  ;;  %v5539_v19 = vpop.f32.mrf.mxu1  ;;  %v3841_v16 = vld [vmem:[#allocation5 + $0x18] sm:$0xf0] }
  0xd1   :  { %6885 = vst [vmem:[#allocation14_spill] sm:$0xff] %v5535_v17 }
  0xd2   :  { %6886 = vst [vmem:[#allocation15_spill] sm:$0xff] %v5537_v18 }
  0xd3   :  { %6887 = vst [vmem:[#allocation16_spill] sm:$0xff] %v5539_v19  ;;  %v4823_v19 = vld [vmem:[#allocation5 + $0xc] sm:$0xf0] }
  0xd7   :  { %v5541_v20 = vpop.f32.mrf.mxu2  ;;  %v5543_v21 = vpop.f32.mrf.mxu3 }
  0xd8   :  { %6888 = vst [vmem:[#allocation17_spill] sm:$0xff] %v5541_v20  ;;  %v5545_v22 = vpop.f32.mrf.mxu0  ;;  %v5547_v23 = vpop.f32.mrf.mxu1 }
  0xd9   :  { %6889 = vst [vmem:[#allocation18_spill] sm:$0xff] %v5543_v21  ;;  %v3857_v21 = vld [vmem:[#allocation5 + $0x38] sm:$0xf0] }
  0xda   :  { %6890 = vst [vmem:[#allocation19_spill] sm:$0xff] %v5545_v22 }
  0xdb   :  { %6891 = vst [vmem:[#allocation20_spill] sm:$0xff] %v5547_v23 }
  0xdf   :  { %v5549_v24 = vpop.f32.mrf.mxu2  ;;  %v5551_v25 = vpop.f32.mrf.mxu3 }
  0xe0   :  { %6892 = vst [vmem:[#allocation21_spill] sm:$0xff] %v5549_v24  ;;  %v5553_v26 = vpop.f32.mrf.mxu0  ;;  %v5555_v27 = vpop.f32.mrf.mxu1 }
  0xe1   :  { %6893 = vst [vmem:[#allocation22_spill] sm:$0xff] %v5551_v25 }
  0xe2   :  { %6894 = vst [vmem:[#allocation23_spill] sm:$0xff] %v5553_v26 }
  0xe3   :  { %6895 = vst [vmem:[#allocation24_spill] sm:$0xff] %v5555_v27 }
  0xe7   :  { %v5557_v28 = vpop.f32.mrf.mxu2  ;;  %v5559_v29 = vpop.f32.mrf.mxu3 }
  0xe8   :  { %6896 = vst [vmem:[#allocation25_spill] sm:$0xff] %v5557_v28  ;;  %v5561_v30 = vpop.f32.mrf.mxu0  ;;  %v5563_v31 = vpop.f32.mrf.mxu1  ;;  %v4846_v28 = vld [vmem:[#allocation5 + $0xcc] sm:$0xf] }
  0xe9   :  { %6897 = vst [vmem:[#allocation26_spill] sm:$0xff] %v5559_v29 }
  0xea   :  { %6898 = vst [vmem:[#allocation27_spill] sm:$0xff] %v5561_v30  ;;  %v3935_v30 = vld [vmem:[#allocation5 + $0xc8] sm:$0xf] }
  0xeb   :  { %6899 = vst [vmem:[#allocation28_spill] sm:$0xff] %v5563_v31  ;;  %v4845_v31 = vld [vmem:[#allocation5 + $0xc4] sm:$0xf] }
  0xef   :  { %v5565_v32 = vpop.f32.mrf.mxu2  ;;  %v5567_v33 = vpop.f32.mrf.mxu3 }
  0xf0   :  { %6900 = vst [vmem:[#allocation29_spill] sm:$0xff] %v5565_v32  ;;  %v5569_v34 = vpop.f32.mrf.mxu0  ;;  %v5571_v35 = vpop.f32.mrf.mxu1 }
  0xf1   :  { %6901 = vst [vmem:[#allocation30_spill] sm:$0xff] %v5567_v33  ;;  %v3953_v33 = vld [vmem:[#allocation5 + $0xf8] sm:$0xf0] }
  0xf2   :  { %6902 = vst [vmem:[#allocation31_spill] sm:$0xff] %v5569_v34  ;;  %v4850_v34 = vld [vmem:[#allocation5 + $0xec] sm:$0xf] }
  0xf3   :  { %6903 = vst [vmem:[#allocation32_spill] sm:$0xff] %v5571_v35 }
  0xf7   :  { %v5573_v36 = vpop.f32.mrf.mxu2  ;;  %v5575_v37 = vpop.f32.mrf.mxu3 }
  0xf8   :  { %6904 = vst [vmem:[#allocation33_spill] sm:$0xff] %v5573_v36  ;;  %v5577_v38 = vpop.f32.mrf.mxu0  ;;  %v5579_v39 = vpop.f32.mrf.mxu1 }
  0xf9   :  { %6905 = vst [vmem:[#allocation34_spill] sm:$0xff] %v5575_v37  ;;  %v5602_v37 = vperm.slane %v59_v45, 1 }
  0xfa   :  { %6906 = vst [vmem:[#allocation35_spill] sm:$0xff] %v5577_v38  ;;  %v4852_v38 = vld [vmem:[#allocation5 + $0xf4] sm:$0xf0] }
  0xfb   :  { %6907 = vst [vmem:[#allocation36_spill] sm:$0xff] %v5579_v39  ;;  %v3945_v39 = vld [vmem:[#allocation5 + $0xf0] sm:$0xf0]  ;;  %v208_v29 = vadd.f32 %v5475_v50, %v5602_v37 }
  0xff   :  { %v5581_v40 = vpop.f32.mrf.mxu2  ;;  %v5583_v41 = vpop.f32.mrf.mxu3 }
 0x100   :  { %6908 = vst [vmem:[#allocation37_spill] sm:$0xff] %v5581_v40  ;;  %v5585_v42 = vpop.f32.mrf.mxu0  ;;  %v5587_v43 = vpop.f32.mrf.mxu1  ;;  %v4849_v40 = vld [vmem:[#allocation5 + $0xe4] sm:$0xf] }
 0x101   :  { %6909 = vst [vmem:[#allocation38_spill] sm:$0xff] %v5583_v41  ;;  %v3943_v41 = vld [vmem:[#allocation5 + $0xe0] sm:$0xf]  ;;  %v3948_v36 = vor.u32 %v4849_v40, %v3945_v39 }
 0x102   :  { %6910 = vst [vmem:[#allocation39_spill] sm:$0xff] %v5585_v42  ;;  %v4851_v42 = vld [vmem:[#allocation5 + $0xec] sm:$0xf0] }
 0x103   :  { %6911 = vst [vmem:[#allocation40_spill] sm:$0xff] %v5587_v43  ;;  %v3944_v43 = vor.u32 %v4851_v42, %v3943_v41  ;;  %1029 = vmatpush.bf16.msra.mxu1 %v3948_v36  ;;  %v3927_v41 = vld [vmem:[#allocation5 + $0xc0] sm:$0xf]  ;;  %v4847_v42 = vld [vmem:[#allocation5 + $0xcc] sm:$0xf0] }
 0x104   :  { %v3937_v36 = vld [vmem:[#allocation5 + $0xd8] sm:$0xf0] }
 0x105   :  { %1015 = vmatpush.bf16.msra.mxu0 %v3944_v43  ;;  %v5612_v43 = vperm.slane %v59_v45, 2  ;;  %v3940_v27 = vor.u32 %v4846_v28, %v3937_v36  ;;  %v5616_v28 = vperm.slane %v59_v45, 3  ;;  %v4837_v36 = vld [vmem:[#allocation5 + $0x84] sm:$0xf] }
 0x107   :  { %v5589_v44 = vpop.f32.mrf.mxu2  ;;  %v5594_v46 = vpop.f32.mrf.mxu3 }
 0x108   :  { %6912 = vst [vmem:[#allocation41_spill] sm:$0xff] %v5589_v44  ;;  %v5596_v47 = vpop.f32.mrf.mxu0  ;;  %v5598_v48 = vpop.f32.mrf.mxu1  ;;  %v3951_v44 = vld [vmem:[#allocation5 + $0xe8] sm:$0xf] }
 0x109   :  { %6913 = vst [vmem:[#allocation42_spill] sm:$0xff] %v5594_v46  ;;  %v3952_v35 = vor.u32 %v4852_v38, %v3951_v44  ;;  %v159_v46 = vadd.f32 %v5473_v49, %v5600_v51  ;;  %v3928_v44 = vor.u32 %v4847_v42, %v3927_v41  ;;  %v3929_v49 = vld [vmem:[#allocation5 + $0xd0] sm:$0xf0]  ;;  %v4841_v41 = vld [vmem:[#allocation5 + $0xa4] sm:$0xf] }
 0x10a   :  { %6914 = vst [vmem:[#allocation43_spill] sm:$0xff] %v5596_v47  ;;  %v3913_v42 = vld [vmem:[#allocation5 + $0xb0] sm:$0xf0] }
 0x10b   :  { %6915 = vst [vmem:[#allocation44_spill] sm:$0xff] %v5598_v48  ;;  %v3956_v48 = vor.u32 %v4850_v34, %v3953_v33  ;;  %1043 = vmatpush.bf16.msra.mxu2 %v3952_v35  ;;  %v3932_v34 = vor.u32 %v4845_v31, %v3929_v49  ;;  %1016 = vmatpush.bf16.msra.mxu0 %v3928_v44  ;;  %v4844_v31 = vld [vmem:[#allocation5 + $0xb4] sm:$0xf0] }
 0x10d   :  { %1057 = vmatpush.bf16.msra.mxu3 %v3956_v48  ;;  %1030 = vmatpush.bf16.msra.mxu1 %v3932_v34 }
 0x10f   :  { %v5606_v47 = vpop.f32.mrf.mxu2  ;;  %v5610_v39 = vpop.f32.mrf.mxu3 }
 0x110   :  { %6916 = vst [vmem:[#allocation45_spill] sm:$0xff] %v5606_v47  ;;  %v623_v32 = vpop.f32.mrf.mxu0  ;;  %v637_v40 = vpop.f32.mrf.mxu1  ;;  %v4848_v47 = vld [vmem:[#allocation5 + $0xd4] sm:$0xf0] }
 0x111   :  { %6917 = vst [vmem:[#allocation46_spill] sm:$0xff] %v5610_v39  ;;  %v670_v38 = vadd.f32 %v623_v32, %v159_v46  ;;  %v671_v33 = vadd.f32 %v637_v40, %v208_v29  ;;  %v3936_v50 = vor.u32 %v4848_v47, %v3935_v30  ;;  %v3911_v32 = vld [vmem:[#allocation5 + $0xa0] sm:$0xf]  ;;  %v4843_v46 = vld [vmem:[#allocation5 + $0xac] sm:$0xf0]  ;;  %1058 = vmatpush.bf16.msra.mxu3 %v3940_v27 }
 0x112   :  { %v3912_v48 = vor.u32 %v4843_v46, %v3911_v32  ;;  %v3919_v39 = vld [vmem:[#allocation5 + $0xa8] sm:$0xf]  ;;  %v257_v29 = vadd.f32 %v5477_v52, %v5612_v43  ;;  %v3916_v30 = vor.u32 %v4841_v41, %v3913_v42  ;;  %v4842_v47 = vld [vmem:[#allocation5 + $0xac] sm:$0xf]  ;;  %v161_v40 = vadd.f32 %v5481_v54, %v5600_v51  ;;  %v3895_v52 = vld [vmem:[#allocation5 + $0x80] sm:$0xf] }
 0x113   :  { %v3823_v35 = vmul.f32 -1.442695, %v670_v38  ;;  %v3824_v26 = vmul.f32 -1.442695, %v671_v33  ;;  %1044 = vmatpush.bf16.msra.mxu2 %v3936_v50  ;;  %v3921_v38 = vld [vmem:[#allocation5 + $0xb8] sm:$0xf0]  ;;  %v3920_v27 = vor.u32 %v4844_v31, %v3919_v39  ;;  %v210_v33 = vadd.f32 %v5483_v55, %v5602_v37 }
 0x114   :  { %1017 = vmatpush.bf16.msra.mxu0 %v3912_v48  ;;  %v3924_v49 = vor.u32 %v4842_v47, %v3921_v38  ;;  %1031 = vmatpush.bf16.msra.mxu1 %v3916_v30  ;;  %v3897_v46 = vld [vmem:[#allocation5 + $0x90] sm:$0xf0]  ;;  %v3903_v54 = vld [vmem:[#allocation5 + $0x88] sm:$0xf]  ;;  %v4840_v41 = vld [vmem:[#allocation5 + $0x94] sm:$0xf0] }
 0x115   :  { %5096 = vpow2.f32 %v3823_v35  ;;  %v3900_v42 = vor.u32 %v4837_v36, %v3897_v46  ;;  %v3904_v31 = vor.u32 %v4840_v41, %v3903_v54  ;;  %v4838_v47 = vld [vmem:[#allocation5 + $0x8c] sm:$0xf]  ;;  %v3905_v55 = vld [vmem:[#allocation5 + $0x98] sm:$0xf0] }
 0x116   :  { %5098 = vpow2.f32 %v3824_v26  ;;  %v4839_v26 = vld [vmem:[#allocation5 + $0x8c] sm:$0xf0]  ;;  %1059 = vmatpush.bf16.msra.mxu3 %v3924_v49  ;;  %v306_v49 = vadd.f32 %v5479_v53, %v5616_v28  ;;  %v4834_v46 = vld [vmem:[#allocation5 + $0x6c] sm:$0xf]  ;;  %v3889_v41 = vld [vmem:[#allocation5 + $0x78] sm:$0xf0] }
 0x117   :  { %v651_v44 = vpop.f32.mrf.mxu2  ;;  %1045 = vmatpush.bf16.msra.mxu2 %v3920_v27  ;;  %v3896_v45 = vor.u32 %v4839_v26, %v3895_v52  ;;  %v665_v38 = vpop.f32.mrf.mxu3  ;;  %v4835_v52 = vld [vmem:[#allocation5 + $0x6c] sm:$0xf0] }
 0x118   :  { %v672_v34 = vadd.f32 %v651_v44, %v257_v29  ;;  %v625_v50 = vpop.f32.mrf.mxu0  ;;  %v639_v32 = vpop.f32.mrf.mxu1  ;;  %v3908_v44 = vor.u32 %v4838_v47, %v3905_v55  ;;  %1032 = vmatpush.bf16.msra.mxu1 %v3900_v42  ;;  %v673_v26 = vadd.f32 %v665_v38, %v306_v49  ;;  %v3892_v47 = vor.u32 %v4834_v46, %v3889_v41  ;;  %v4831_v55 = vld [vmem:[#allocation5 + $0x4c] sm:$0xf0] }
 0x119   :  { %v674_v35 = vadd.f32 %v625_v50, %v161_v40  ;;  %v675_v39 = vadd.f32 %v639_v32, %v210_v33  ;;  %1018 = vmatpush.bf16.msra.mxu0 %v3896_v45  ;;  %v259_v33 = vadd.f32 %v5485_v56, %v5612_v43  ;;  %v3879_v50 = vld [vmem:[#allocation5 + $0x60] sm:$0xf]  ;;  %v3881_v32 = vld [vmem:[#allocation5 + $0x70] sm:$0xf0]  ;;  %v3887_v45 = vld [vmem:[#allocation5 + $0x68] sm:$0xf] }
 0x11a   :  { %v3825_v48 = vmul.f32 -1.442695, %v672_v34  ;;  %1060 = vmatpush.bf16.msra.mxu3 %v3908_v44  ;;  %v3880_v54 = vor.u32 %v4835_v52, %v3879_v50 }
 0x11b   :  { %v5097_v29 = vpop.eup %5096  ;;  %v3826_v30 = vmul.f32 -1.442695, %v674_v35  ;;  %v3827_v27 = vmul.f32 -1.442695, %v675_v39  ;;  %1046 = vmatpush.bf16.msra.mxu2 %v3904_v31  ;;  %v4833_v35 = vld [vmem:[#allocation5 + $0x64] sm:$0xf] }
 0x11c   :  { %v5099_v25 = vpop.eup %5098  ;;  %v5622_v40 = vadd.f32 1.0, %v5097_v29  ;;  %5100 = vpow2.f32 %v3825_v48  ;;  %v3863_v48 = vld [vmem:[#allocation5 + $0x40] sm:$0xf]  ;;  %v3884_v42 = vor.u32 %v4833_v35, %v3881_v32  ;;  %v4829_v29 = vld [vmem:[#allocation5 + $0x44] sm:$0xf] }
 0x11d   :  { %v5626_v34 = vadd.f32 1.0, %v5099_v25  ;;  %5102 = vpow2.f32 %v3826_v30  ;;  %v4836_v25 = vld [vmem:[#allocation5 + $0x74] sm:$0xf0]  ;;  %1019 = vmatpush.bf16.msra.mxu0 %v3880_v54  ;;  %v3864_v44 = vor.u32 %v4831_v55, %v3863_v48  ;;  %v3871_v32 = vld [vmem:[#allocation5 + $0x48] sm:$0xf] }
 0x11e   :  { %5104 = vrcp.f32 %v5622_v40  ;;  %v3888_v31 = vor.u32 %v4836_v25, %v3887_v45  ;;  %1033 = vmatpush.bf16.msra.mxu1 %v3884_v42  ;;  %1061 = vmatpush.bf16.msra.mxu3 %v3892_v47  ;;  %v4832_v45 = vld [vmem:[#allocation5 + $0x54] sm:$0xf0]  ;;  %v711_v46 = vand.u32 2147483647, %v5622_v40  ;;  %v713_v54 = vand.u32 2147483648, %v5622_v40 }
 0x11f   :  { %5106 = vrcp.f32 %v5626_v34  ;;  %v653_v36 = vpop.f32.mrf.mxu2  ;;  %vm722_vm2 = vweird.f32 %v5626_v34  ;;  %vm707_vm3 = vweird.f32 %v5622_v40  ;;  %v3872_v42 = vor.u32 %v4832_v45, %v3871_v32  ;;  %v3873_v47 = vld [vmem:[#allocation5 + $0x58] sm:$0xf0] }
 0x120   :  { %5108 = vpow2.f32 %v3827_v27  ;;  %v676_v53 = vadd.f32 %v653_v36, %v259_v33  ;;  %v3865_v27 = vld [vmem:[#allocation5 + $0x50] sm:$0xf0]  ;;  %1047 = vmatpush.bf16.msra.mxu2 %v3888_v31  ;;  %v308_v36 = vadd.f32 %v5487_v57, %v5616_v28  ;;  %v4830_v31 = vld [vmem:[#allocation5 + $0x4c] sm:$0xf]  ;;  %vm5660_vm5 = vcmp.eq.f32.partialorder %v711_v46, 8.507059e+37 }
 0x121   :  { %5110 = vtanh.f32 %v673_v26  ;;  %v3868_v50 = vor.u32 %v4829_v29, %v3865_v27  ;;  %v667_v26 = vpop.f32.mrf.mxu3  ;;  %1020 = vmatpush.bf16.msra.mxu0 %v3864_v44 }
 0x122   :  { %v5101_v39 = vpop.eup %5100  ;;  %v3828_v56 = vmul.f32 -1.442695, %v676_v53 }
 0x123   :  { %v5103_v30 = vpop.eup %5102  ;;  %v5632_v38 = vadd.f32 1.0, %v5101_v39  ;;  %v728_v39 = vand.u32 2147483648, %v5626_v34  ;;  %1034 = vmatpush.bf16.msra.mxu1 %v3868_v50  ;;  %v714_v50 = vor.u32 1.1754944e-38, %v713_v54 }
 0x124   :  { %v5634_v49 = vpop.eup %5104  ;;  %v5636_v33 = vadd.f32 1.0, %v5103_v30  ;;  %5112 = vpow2.f32 %v3828_v56  ;;  %v677_v56 = vadd.f32 %v667_v26, %v308_v36  ;;  %v726_v30 = vand.u32 2147483647, %v5626_v34  ;;  %1048 = vmatpush.bf16.msra.mxu2 %v3872_v42  ;;  %v3847_v42 = vld [vmem:[#allocation5 + $0x20] sm:$0xf] }
 0x125   :  { %v5638_v52 = vpop.eup %5106  ;;  %v703_v35 = vmul.f32 %v5634_v49, %v5622_v40  ;;  %5114 = vrcp.f32 %v5632_v38  ;;  %vm708_vm4 = vweird.f32 %v5634_v49 }
 0x126   :  { %v5109_v53 = vpop.eup %5108  ;;  %v718_v25 = vmul.f32 %v5638_v52, %v5626_v34  ;;  %5116 = vrcp.f32 %v5636_v33  ;;  %vm723_vm6 = vweird.f32 %v5638_v52  ;;  %v756_v45 = vand.u32 2147483647, %v5636_v33  ;;  %vm5681_vm7 = vmor %vm707_vm3, %vm708_vm4  ;;  %v4826_v34 = vld [vmem:[#allocation5 + $0x2c] sm:$0xf] }
 0x127   :  { %v704_v57 = vsub.f32 1.0, %v703_v35  ;;  %v5652_v41 = vadd.f32 1.0, %v5109_v53  ;;  %v5111_v55 = vpop.eup %5110  ;;  %v3876_v53 = vor.u32 %v4830_v31, %v3873_v47  ;;  %v4827_v31 = vld [vmem:[#allocation5 + $0x2c] sm:$0xf0]  ;;  %v4825_v47 = vld [vmem:[#allocation5 + $0x24] sm:$0xf]  ;;  %vm724_vm8 = vmor %vm722_vm2, %vm723_vm6  ;;  %vm752_vm11 = vweird.f32 %v5636_v33 }
 0x128   :  { %v719_v48 = vsub.f32 1.0, %v718_v25  ;;  %vm727_vm9 = vcmp.eq.f32.partialorder %v726_v30, 8.507059e+37  ;;  %vm5701_vm10 = vcmp.eq.f32.partialorder %v756_v45, 8.507059e+37  ;;  %vm737_vm3 = vweird.f32 %v5632_v38 }
 0x129   :  { %v705_v29 = vmul.f32 %v5634_v49, %v704_v57  ;;  %5118 = vrcp.f32 %v5652_v41  ;;  %v729_v57 = vor.u32 1.1754944e-38, %v728_v39  ;;  %1062 = vmatpush.bf16.msra.mxu3 %v3876_v53  ;;  %v3831_v53 = vld [vmem:[#allocation5] sm:$0xf]  ;;  %vm767_vm15 = vweird.f32 %v5652_v41 }
 0x12a   :  { %v5113_v27 = vpop.eup %5112  ;;  %v720_v44 = vmul.f32 %v5638_v52, %v719_v48  ;;  %5120 = vtanh.f32 %v677_v56  ;;  %v3855_v56 = vld [vmem:[#allocation5 + $0x28] sm:$0xf] }
 0x12b   :  { %v5665_v36 = vpop.eup %5114  ;;  %v706_v26 = vadd.f32 %v5634_v49, %v705_v29  ;;  %v5668_v32 = vadd.f32 1.0, %v5113_v27  ;;  %v3849_v29 = vld [vmem:[#allocation5 + $0x30] sm:$0xf0]  ;;  %v4828_v27 = vld [vmem:[#allocation5 + $0x34] sm:$0xf0] }
 0x12c   :  { %v5671_v25 = vpop.eup %5116  ;;  %v5675_v46 = vmul.f32 %v5665_v36, %v5632_v38  ;;  %v721_v48 = vadd.f32 %v5638_v52, %v720_v44  ;;  %v3852_v45 = vor.u32 %v4825_v47, %v3849_v29  ;;  %vm738_vm2 = vweird.f32 %v5665_v36 }
 0x12d   :  { %v710_v39 = vsel %vm5681_vm7, %v5634_v49, %v706_v26  ;;  %v748_v40 = vmul.f32 %v5671_v25, %v5636_v33  ;;  %5122 = vrcp.f32 %v5668_v32  ;;  %v773_v49 = vand.u32 2147483648, %v5652_v41  ;;  %vm739_vm4 = vmor %vm737_vm3, %vm738_vm2 }
 0x12e   :  { %v715_v44 = vsel %vm5660_vm5, %v714_v50, %v710_v39  ;;  %v725_v54 = vsel %vm724_vm8, %v5638_v52, %v721_v48  ;;  %v758_v26 = vand.u32 2147483648, %v5636_v33  ;;  %v734_v35 = vsub.f32 1.0, %v5675_v46  ;;  %v4821_v48 = vld [vmem:[#allocation5 + $0x4] sm:$0xf]  ;;  %v3833_v39 = vld [vmem:[#allocation5 + $0x10] sm:$0xf0]  ;;  %1035 = vmatpush.bf16.msra.mxu1 %v3852_v45 }
 0x12f   :  { %v5119_v30 = vpop.eup %5118  ;;  %v730_v24 = vsel %vm727_vm9, %v729_v57, %v725_v54  ;;  %v796_v23 = vmul.f32 %v5111_v55, %v715_v44  ;;  %v749_v22 = vsub.f32 1.0, %v748_v40  ;;  %vm753_vm12 = vweird.f32 %v5671_v25  ;;  %v3839_v57 = vld [vmem:[#allocation5 + $0x8] sm:$0xf]  ;;  %v4824_v40 = vld [vmem:[#allocation5 + $0x14] sm:$0xf0] }
 0x130   :  { %v794_v50 = vmul.f32 0.0, %v730_v24  ;;  %v763_v52 = vmul.f32 %v5119_v30, %v5652_v41  ;;  %v3848_v55 = vor.u32 %v4827_v31, %v3847_v42  ;;  %v5121_v44 = vpop.eup %5120  ;;  %v3856_v46 = vor.u32 %v4828_v27, %v3855_v56  ;;  %vm754_vm13 = vmor %vm752_vm11, %vm753_vm12 }
 0x131   :  { %v750_v18 = vmul.f32 %v5671_v25, %v749_v22  ;;  %v3860_v24 = vor.u32 %v4826_v34, %v3857_v21  ;;  %v759_v12 = vor.u32 1.1754944e-38, %v758_v26  ;;  %v3832_v22 = vor.u32 %v4823_v19, %v3831_v53 }
 0x132   :  { %v5710_v54 = vadd.f32 %v796_v23, %v794_v50  ;;  %v764_v17 = vsub.f32 1.0, %v763_v52  ;;  %1021 = vmatpush.bf16.msra.mxu0 %v3848_v55  ;;  %v3836_v11 = vor.u32 %v4821_v48, %v3833_v39  ;;  %vm768_vm14 = vweird.f32 %v5119_v30  ;;  %1049 = vmatpush.bf16.msra.mxu2 %v3856_v46 }
 0x133   :  { %v5123_v15 = vpop.eup %5122  ;;  %v751_v14 = vadd.f32 %v5671_v25, %v750_v18  ;;  %v771_v21 = vand.u32 2147483647, %v5652_v41  ;;  %1063 = vmatpush.bf16.msra.mxu3 %v3860_v24  ;;  %v735_v18 = vmul.f32 %v5665_v36, %v734_v35  ;;  %v3840_v47 = vor.u32 %v4824_v40, %v3839_v57  ;;  %vm769_vm0 = vmor %vm767_vm15, %vm768_vm14 }
 0x134   :  { %v765_v42 = vmul.f32 %v5119_v30, %v764_v17  ;;  %v778_v31 = vmul.f32 %v5123_v15, %v5668_v32  ;;  %v3844_v19 = vor.u32 %v4822_v13, %v3841_v16  ;;  %v774_v33 = vor.u32 1.1754944e-38, %v773_v49  ;;  %1036 = vmatpush.bf16.msra.mxu1 %v3836_v11 }
 0x135   :  { %v755_v23 = vsel %vm754_vm13, %v5671_v25, %v751_v14  ;;  %5124 = vtanh.f32 %v5710_v54  ;;  %vm772_vm1 = vcmp.eq.f32.partialorder %v771_v21, 8.507059e+37  ;;  %v736_v16 = vadd.f32 %v5665_v36, %v735_v18 }
 0x136   :  { %v779_v17 = vsub.f32 1.0, %v778_v31  ;;  %v760_v29 = vsel %vm5701_vm10, %v759_v12, %v755_v23  ;;  %v766_v56 = vadd.f32 %v5119_v30, %v765_v42  ;;  %1022 = vmatpush.bf16.msra.mxu0 %v3832_v22  ;;  %1050 = vmatpush.bf16.msra.mxu2 %v3840_v47  ;;  %v743_v12 = vand.u32 2147483648, %v5632_v38  ;;  %v4079_v47 = vld [vmem:[#allocation5 + $0xe0] sm:$0xf] }
 0x137   :  { %v797_v26 = vmul.f32 %v5121_v44, %v760_v29  ;;  %1064 = vmatpush.bf16.msra.mxu3 %v3844_v19  ;;  %v741_v11 = vand.u32 2147483647, %v5632_v38  ;;  %vm783_vm5 = vweird.f32 %v5123_v15  ;;  %v740_v25 = vsel %vm739_vm4, %v5665_v36, %v736_v16  ;;  %v4883_v19 = vld [vmem:[#allocation5 + $0xec] sm:$0xf0] }
 0x138   :  { %v770_v27 = vsel %vm769_vm0, %v5119_v30, %v766_v56  ;;  %v780_v13 = vmul.f32 %v5123_v15, %v779_v17  ;;  %v744_v30 = vor.u32 1.1754944e-38, %v743_v12  ;;  %v788_v53 = vand.u32 2147483648, %v5668_v32  ;;  %v4881_v17 = vld [vmem:[#allocation5 + $0xe4] sm:$0xf]  ;;  %v4882_v12 = vld [vmem:[#allocation5 + $0xec] sm:$0xf] }
 0x139   :  { %v775_v14 = vsel %vm772_vm1, %v774_v33, %v770_v27  ;;  %vm782_vm6 = vweird.f32 %v5668_v32  ;;  %vm742_vm7 = vcmp.eq.f32.partialorder %v741_v11, 8.507059e+37  ;;  %v786_v35 = vand.u32 2147483647, %v5668_v32  ;;  %v4081_v33 = vld [vmem:[#allocation5 + $0xf0] sm:$0xf0] }
 0x13a   :  { %v795_v20 = vmul.f32 0.0, %v775_v14  ;;  %v781_v49 = vadd.f32 %v5123_v15, %v780_v13  ;;  %vm784_vm8 = vmor %vm782_vm6, %vm783_vm5  ;;  %v745_v38 = vsel %vm742_vm7, %v744_v30, %v740_v25  ;;  %v789_v48 = vor.u32 1.1754944e-38, %v788_v53  ;;  %v4884_v27 = vld [vmem:[#allocation5 + $0xf4] sm:$0xf0]  ;;  %v4063_v53 = vld [vmem:[#allocation5 + $0xc0] sm:$0xf] }
 0x13b   :  { %v5125_v34 = vpop.eup %5124  ;;  %vm787_vm9 = vcmp.eq.f32.partialorder %v786_v35, 8.507059e+37  ;;  %v213_v32 = vadd.f32 %v5491_v59, %v5602_v37  ;;  %v262_v29 = vadd.f32 %v5493_v60, %v5612_v43  ;;  %v4080_v56 = vor.u32 %v4883_v19, %v4079_v47  ;;  %v4879_v35 = vld [vmem:[#allocation5 + $0xcc] sm:$0xf0]  ;;  %v4873_v19 = vld [vmem:[#allocation5 + $0xa4] sm:$0xf] }
 0x13c   :  { %v5730_v41 = vadd.f32 %v797_v26, %v795_v20  ;;  %v785_v50 = vsel %vm784_vm8, %v5123_v15, %v781_v49  ;;  %v802_v52 = vmul.f32 %v5125_v34, %v745_v38  ;;  %v164_v15 = vadd.f32 %v5489_v58, %v5600_v51  ;;  %v4087_v58 = vld [vmem:[#allocation5 + $0xe8] sm:$0xf]  ;;  %v4089_v20 = vld [vmem:[#allocation5 + $0xf8] sm:$0xf0] }
 0x13d   :  { %v790_v36 = vsel %vm787_vm9, %v789_v48, %v785_v50  ;;  %v166_v59 = vadd.f32 %v5497_v62, %v5600_v51  ;;  %v215_v26 = vadd.f32 %v5499_v63, %v5602_v37  ;;  %v4084_v14 = vor.u32 %v4881_v17, %v4081_v33  ;;  %1417 = vmatpush.bf16.msrb.mxu0 %v4080_v56  ;;  %v4877_v62 = vld [vmem:[#allocation5 + $0xc4] sm:$0xf]  ;;  %v4065_v50 = vld [vmem:[#allocation5 + $0xd0] sm:$0xf0]  ;;  %v4876_v56 = vld [vmem:[#allocation5 + $0xb4] sm:$0xf0] }
 0x13e   :  { %5126 = vtanh.f32 %v5730_v41  ;;  %v804_v45 = vpack.c.bf16 %v802_v52, %v802_v52  ;;  %v4088_v16 = vor.u32 %v4884_v27, %v4087_v58  ;;  %v4092_v60 = vor.u32 %v4882_v12, %v4089_v20  ;;  %v4874_v58 = vld [vmem:[#allocation5 + $0xac] sm:$0xf]  ;;  %v4057_v27 = vld [vmem:[#allocation5 + $0xb8] sm:$0xf0]  ;;  %v4871_v12 = vld [vmem:[#allocation5 + $0x8c] sm:$0xf0] }
 0x13f   :  { %1431 = vmatpush.bf16.msrb.mxu1 %v4084_v14  ;;  %v4064_v63 = vor.u32 %v4879_v35, %v4063_v53  ;;  %v4060_v14 = vor.u32 %v4874_v58, %v4057_v27 }
 0x140   :  { %v851_v44 = vunpack.c.l.b16 %v804_v45  ;;  %1445 = vmatpush.bf16.msrb.mxu2 %v4088_v16  ;;  %1459 = vmatpush.bf16.msrb.mxu3 %v4092_v60  ;;  %v4068_v45 = vor.u32 %v4877_v62, %v4065_v50  ;;  %v4031_v16 = vld [vmem:[#allocation5 + $0x80] sm:$0xf]  ;;  %v4033_v60 = vld [vmem:[#allocation5 + $0x90] sm:$0xf0] }
 0x141   :  { %1418 = vmatpush.bf16.msrb.mxu0 %v4064_v63 }
 0x143   :  { %1432 = vmatpush.bf16.msrb.mxu1 %v4068_v45 }
 0x144   :  { %v5127_v39 = vpop.eup %5126 }
 0x145   :  { %v803_v55 = vmul.f32 %v5127_v39, %v790_v36 }
 0x147   :  { %v805_v57 = vpack.c.bf16 %v803_v55, %v803_v55  ;;  %v5048_v40 = vpack.c.bf16 %v803_v55, %v802_v52  ;;  %v4071_v52 = vld [vmem:[#allocation5 + $0xc8] sm:$0xf] }
 0x149   :  { %5049 = vst [vmem:[%s6878_s4] sm:$0xff] %v5048_v40   ;;  %v852_v46 = vunpack.c.l.b16 %v805_v57  ;;  %v4880_v57 = vld [vmem:[#allocation5 + $0xd4] sm:$0xf0] }
 0x14b   :  { %v853_v24 = vpack.c.b16 %v852_v46, %v851_v44  ;;  %v4072_v46 = vor.u32 %v4880_v57, %v4071_v52  ;;  %v4872_v52 = vld [vmem:[#allocation5 + $0x94] sm:$0xf0] }
 0x14d   :  { %1023 = vmatmul.bf16.vlgmr.msra.gmra.mxu0 %v853_v24  ;;  %1037 = vmatmul.bf16.vlgmr.msra.gmra.mxu1 %v853_v24 }
 0x14e   :  { %1051 = vmatmul.bf16.vlgmr.msra.gmra.mxu2 %v853_v24  ;;  %1065 = vmatmul.bf16.vlgmr.msra.gmra.mxu3 %v853_v24  ;;  %v4878_v24 = vld [vmem:[#allocation5 + $0xcc] sm:$0xf] }
 0x14f   :  { %1446 = vmatpush.bf16.msrb.mxu2 %v4072_v46 }
 0x1ca   :  { %v1024_v22 = vpop.f32.mrf.mxu0  ;;  %v1038_v42 = vpop.f32.mrf.mxu1 }
 0x1cb   :  { %v1071_v31 = vadd.f32 %v1024_v22, %v164_v15  ;;  %v1072_v21 = vadd.f32 %v1038_v42, %v213_v32  ;;  %v4073_v15 = vld [vmem:[#allocation5 + $0xd8] sm:$0xf0]  ;;  %v311_v32 = vadd.f32 %v5495_v61, %v5616_v28  ;;  %v4049_v61 = vld [vmem:[#allocation5 + $0xb0] sm:$0xf0] }
 0x1cc   :  { %v4076_v42 = vor.u32 %v4878_v24, %v4073_v15 }
 0x1cd   :  { %v3957_v18 = vmul.f32 -1.442695, %v1071_v31  ;;  %v3958_v23 = vmul.f32 -1.442695, %v1072_v21  ;;  %v264_v31 = vadd.f32 %v5501_v0, %v5612_v43  ;;  %v4047_v21 = vld [vmem:[#allocation5 + $0xa0] sm:$0xf] }
 0x1ce   :  { %1460 = vmatpush.bf16.msrb.mxu3 %v4076_v42  ;;  %v4041_v42 = vld [vmem:[#allocation5 + $0x98] sm:$0xf0] }
 0x1cf   :  { %5128 = vpow2.f32 %v3957_v18  ;;  %v4875_v18 = vld [vmem:[#allocation5 + $0xac] sm:$0xf0] }
 0x1d0   :  { %5130 = vpow2.f32 %v3958_v23  ;;  %v4048_v33 = vor.u32 %v4875_v18, %v4047_v21 }
 0x1d1   :  { %v1052_v13 = vpop.f32.mrf.mxu2  ;;  %v1066_v39 = vpop.f32.mrf.mxu3 }
 0x1d2   :  { %v1073_v11 = vadd.f32 %v1052_v13, %v262_v29  ;;  %v1026_v25 = vpop.f32.mrf.mxu0  ;;  %v1040_v49 = vpop.f32.mrf.mxu1  ;;  %v1074_v23 = vadd.f32 %v1066_v39, %v311_v32  ;;  %v4055_v29 = vld [vmem:[#allocation5 + $0xa8] sm:$0xf]  ;;  %1419 = vmatpush.bf16.msrb.mxu0 %v4048_v33  ;;  %1461 = vmatpush.bf16.msrb.mxu3 %v4060_v14  ;;  %v4870_v32 = vld [vmem:[#allocation5 + $0x8c] sm:$0xf] }
 0x1d3   :  { %v1075_v34 = vadd.f32 %v1026_v25, %v166_v59  ;;  %v1076_v30 = vadd.f32 %v1040_v49, %v215_v26  ;;  %v4052_v26 = vor.u32 %v4873_v19, %v4049_v61  ;;  %v4056_v13 = vor.u32 %v4876_v56, %v4055_v29  ;;  %v4869_v49 = vld [vmem:[#allocation5 + $0x84] sm:$0xf] }
 0x1d4   :  { %v3959_v38 = vmul.f32 -1.442695, %v1073_v11  ;;  %v4032_v25 = vor.u32 %v4871_v12, %v4031_v16  ;;  %v4036_v35 = vor.u32 %v4869_v49, %v4033_v60  ;;  %v4015_v16 = vld [vmem:[#allocation5 + $0x60] sm:$0xf]  ;;  %v4867_v12 = vld [vmem:[#allocation5 + $0x6c] sm:$0xf0] }
 0x1d5   :  { %v5129_v48 = vpop.eup %5128  ;;  %v3960_v36 = vmul.f32 -1.442695, %v1075_v34  ;;  %v3961_v55 = vmul.f32 -1.442695, %v1076_v30  ;;  %v313_v30 = vadd.f32 %v5503_v1, %v5616_v28  ;;  %1433 = vmatpush.bf16.msrb.mxu1 %v4052_v26  ;;  %1447 = vmatpush.bf16.msrb.mxu2 %v4056_v13  ;;  %v4039_v1 = vld [vmem:[#allocation5 + $0x88] sm:$0xf] }
 0x1d6   :  { %v5131_v40 = vpop.eup %5130  ;;  %v5750_v44 = vadd.f32 1.0, %v5129_v48  ;;  %5132 = vpow2.f32 %v3959_v38  ;;  %1420 = vmatpush.bf16.msrb.mxu0 %v4032_v25  ;;  %v4040_v15 = vor.u32 %v4872_v52, %v4039_v1  ;;  %v4017_v60 = vld [vmem:[#allocation5 + $0x70] sm:$0xf0]  ;;  %v4866_v1 = vld [vmem:[#allocation5 + $0x6c] sm:$0xf] }
 0x1d7   :  { %v5754_v22 = vadd.f32 1.0, %v5131_v40  ;;  %5134 = vpow2.f32 %v3960_v36 }
 0x1d8   :  { %5136 = vrcp.f32 %v5750_v44  ;;  %vm1108_vm10 = vweird.f32 %v5750_v44  ;;  %v1112_v63 = vand.u32 2147483647, %v5750_v44 }
 0x1d9   :  { %5138 = vrcp.f32 %v5754_v22  ;;  %v1054_v47 = vpop.f32.mrf.mxu2  ;;  %v1068_v50 = vpop.f32.mrf.mxu3  ;;  %v1129_v36 = vand.u32 2147483648, %v5754_v22  ;;  %vm1123_vm11 = vweird.f32 %v5754_v22  ;;  %v1127_v57 = vand.u32 2147483647, %v5754_v22  ;;  %1434 = vmatpush.bf16.msrb.mxu1 %v4036_v35  ;;  %1448 = vmatpush.bf16.msrb.mxu2 %v4040_v15  ;;  %v4868_v35 = vld [vmem:[#allocation5 + $0x74] sm:$0xf0] }
 0x1da   :  { %5140 = vpow2.f32 %v3961_v55  ;;  %v1077_v17 = vadd.f32 %v1054_v47, %v264_v31  ;;  %v1114_v55 = vand.u32 2147483648, %v5750_v44  ;;  %v1078_v24 = vadd.f32 %v1068_v50, %v313_v30  ;;  %v4023_v30 = vld [vmem:[#allocation5 + $0x68] sm:$0xf]  ;;  %v4861_v15 = vld [vmem:[#allocation5 + $0x44] sm:$0xf] }
 0x1db   :  { %5142 = vtanh.f32 %v1074_v23  ;;  %vm5787_vm14 = vcmp.eq.f32.partialorder %v1112_v63, 8.507059e+37  ;;  %v1130_v19 = vor.u32 1.1754944e-38, %v1129_v36  ;;  %vm5819_vm1 = vcmp.eq.f32.partialorder %v1127_v57, 8.507059e+37  ;;  %v3999_v57 = vld [vmem:[#allocation5 + $0x40] sm:$0xf] }
 0x1dc   :  { %v5133_v0 = vpop.eup %5132  ;;  %v3962_v59 = vmul.f32 -1.442695, %v1077_v17  ;;  %v1115_v61 = vor.u32 1.1754944e-38, %v1114_v55  ;;  %v4855_v50 = vld [vmem:[#allocation5 + $0xc] sm:$0xf0] }
 0x1dd   :  { %v5135_v20 = vpop.eup %5134  ;;  %v5760_v11 = vadd.f32 1.0, %v5133_v0  ;;  %v4044_v0 = vor.u32 %v4870_v32, %v4041_v42  ;;  %v4001_v32 = vld [vmem:[#allocation5 + $0x50] sm:$0xf0] }
 0x1de   :  { %v5762_v34 = vpop.eup %5136  ;;  %v5766_v53 = vadd.f32 1.0, %v5135_v20  ;;  %5144 = vpow2.f32 %v3962_v59  ;;  %v4865_v20 = vld [vmem:[#allocation5 + $0x64] sm:$0xf] }
 0x1df   :  { %v5768_v62 = vpop.eup %5138  ;;  %v1104_v38 = vmul.f32 %v5762_v34, %v5750_v44  ;;  %5146 = vrcp.f32 %v5760_v11  ;;  %vm1109_vm13 = vweird.f32 %v5762_v34  ;;  %1462 = vmatpush.bf16.msrb.mxu3 %v4044_v0  ;;  %v4020_v18 = vor.u32 %v4865_v20, %v4017_v60  ;;  %v3983_v20 = vld [vmem:[#allocation5 + $0x20] sm:$0xf]  ;;  %v3991_v60 = vld [vmem:[#allocation5 + $0x28] sm:$0xf] }
 0x1e0   :  { %v5141_v48 = vpop.eup %5140  ;;  %v1119_v39 = vmul.f32 %v5768_v62, %v5754_v22  ;;  %5148 = vrcp.f32 %v5766_v53  ;;  %vm1124_vm12 = vweird.f32 %v5768_v62  ;;  %v1157_v17 = vand.u32 2147483647, %v5766_v53  ;;  %vm5814_vm0 = vmor %vm1108_vm10, %vm1109_vm13 }
 0x1e1   :  { %v1105_v45 = vsub.f32 1.0, %v1104_v38  ;;  %v5782_v40 = vadd.f32 1.0, %v5141_v48  ;;  %v5143_v31 = vpop.eup %5142  ;;  %vm5800_vm15 = vmor %vm1123_vm11, %vm1124_vm12  ;;  %v1159_v27 = vand.u32 2147483648, %v5766_v53  ;;  %vm1153_vm3 = vweird.f32 %v5766_v53  ;;  %1435 = vmatpush.bf16.msrb.mxu1 %v4020_v18 }
 0x1e2   :  { %v1120_v46 = vsub.f32 1.0, %v1119_v39  ;;  %vm5839_vm2 = vcmp.eq.f32.partialorder %v1157_v17, 8.507059e+37  ;;  %v4024_v17 = vor.u32 %v4868_v35, %v4023_v30  ;;  %vm1138_vm11 = vweird.f32 %v5760_v11 }
 0x1e3   :  { %v1106_v21 = vmul.f32 %v5762_v34, %v1105_v45  ;;  %5150 = vrcp.f32 %v5782_v40  ;;  %v1174_v14 = vand.u32 2147483648, %v5782_v40  ;;  %v1160_v55 = vor.u32 1.1754944e-38, %v1159_v27  ;;  %v4025_v45 = vld [vmem:[#allocation5 + $0x78] sm:$0xf0] }
 0x1e4   :  { %v5145_v23 = vpop.eup %5144  ;;  %v1121_v47 = vmul.f32 %v5768_v62, %v1120_v46  ;;  %5152 = vtanh.f32 %v1078_v24  ;;  %v4863_v24 = vld [vmem:[#allocation5 + $0x4c] sm:$0xf0]  ;;  %v4028_v56 = vor.u32 %v4866_v1, %v4025_v45  ;;  %v4009_v27 = vld [vmem:[#allocation5 + $0x58] sm:$0xf0]  ;;  %1449 = vmatpush.bf16.msrb.mxu2 %v4024_v17  ;;  %vm1168_vm7 = vweird.f32 %v5782_v40  ;;  %v4858_v1 = vld [vmem:[#allocation5 + $0x2c] sm:$0xf] }
 0x1e5   :  { %v5794_v29 = vpop.eup %5146  ;;  %v1107_v33 = vadd.f32 %v5762_v34, %v1106_v21  ;;  %v5805_v58 = vadd.f32 1.0, %v5145_v23  ;;  %v4016_v21 = vor.u32 %v4867_v12, %v4015_v16  ;;  %v4007_v23 = vld [vmem:[#allocation5 + $0x48] sm:$0xf]  ;;  %v1175_v26 = vor.u32 1.1754944e-38, %v1174_v14 }
 0x1e6   :  { %v5808_v59 = vpop.eup %5148  ;;  %v1122_v22 = vadd.f32 %v5768_v62, %v1121_v47  ;;  %v5826_v25 = vmul.f32 %v5794_v29, %v5760_v11  ;;  %v4864_v47 = vld [vmem:[#allocation5 + $0x54] sm:$0xf0]  ;;  %v4000_v16 = vor.u32 %v4863_v24, %v3999_v57  ;;  %v4004_v12 = vor.u32 %v4861_v15, %v4001_v32  ;;  %1463 = vmatpush.bf16.msrb.mxu3 %v4028_v56  ;;  %v3967_v15 = vld [vmem:[#allocation5] sm:$0xf] }
 0x1e7   :  { %v1111_v44 = vsel %vm5814_vm0, %v5762_v34, %v1107_v33  ;;  %v1149_v49 = vmul.f32 %v5808_v59, %v5766_v53  ;;  %5154 = vrcp.f32 %v5805_v58  ;;  %v1172_v34 = vand.u32 2147483647, %v5782_v40  ;;  %v4862_v33 = vld [vmem:[#allocation5 + $0x4c] sm:$0xf]  ;;  %1421 = vmatpush.bf16.msrb.mxu0 %v4016_v21  ;;  %v4857_v53 = vld [vmem:[#allocation5 + $0x24] sm:$0xf] }
 0x1e8   :  { %v1116_v38 = vsel %vm5787_vm14, %v1115_v61, %v1111_v44  ;;  %v1126_v63 = vsel %vm5800_vm15, %v5768_v62, %v1122_v22  ;;  %vm1154_vm4 = vweird.f32 %v5808_v59  ;;  %v1135_v42 = vsub.f32 1.0, %v5826_v25  ;;  %v4859_v25 = vld [vmem:[#allocation5 + $0x2c] sm:$0xf0]  ;;  %1436 = vmatpush.bf16.msrb.mxu1 %v4004_v12  ;;  %v3975_v21 = vld [vmem:[#allocation5 + $0x8] sm:$0xf] }
 0x1e9   :  { %v5844_v52 = vpop.eup %5150  ;;  %v1131_v48 = vsel %vm5819_vm1, %v1130_v19, %v1126_v63  ;;  %v1197_v39 = vmul.f32 %v5143_v31, %v1116_v38  ;;  %v1150_v36 = vsub.f32 1.0, %v1149_v49  ;;  %vm5864_vm5 = vmor %vm1153_vm3, %vm1154_vm4  ;;  %v3985_v49 = vld [vmem:[#allocation5 + $0x30] sm:$0xf0]  ;;  %v4008_v35 = vor.u32 %v4864_v47, %v4007_v23  ;;  %v4860_v63 = vld [vmem:[#allocation5 + $0x34] sm:$0xf0] }
 0x1ea   :  { %v1195_v46 = vmul.f32 %v1131_v48, %v5710_v54  ;;  %v1164_v62 = vmul.f32 %v5844_v52, %v5782_v40  ;;  %v5153_v19 = vpop.eup %5152  ;;  %vm1169_vm6 = vweird.f32 %v5844_v52  ;;  %v4012_v38 = vor.u32 %v4862_v33, %v4009_v27  ;;  %v3993_v48 = vld [vmem:[#allocation5 + $0x38] sm:$0xf0]  ;;  %v4856_v47 = vld [vmem:[#allocation5 + $0x14] sm:$0xf0] }
 0x1eb   :  { %v1151_v31 = vmul.f32 %v5808_v59, %v1150_v36  ;;  %vm5882_vm8 = vmor %vm1168_vm7, %vm1169_vm6  ;;  %vm5886_vm9 = vcmp.eq.f32.partialorder %v1172_v34, 8.507059e+37  ;;  %1422 = vmatpush.bf16.msrb.mxu0 %v4000_v16  ;;  %v3988_v24 = vor.u32 %v4857_v53, %v3985_v49  ;;  %1450 = vmatpush.bf16.msrb.mxu2 %v4008_v35  ;;  %v3992_v32 = vor.u32 %v4860_v63, %v3991_v60 }
 0x1ec   :  { %v5855_v54 = vadd.f32 %v1197_v39, %v1195_v46  ;;  %v1165_v61 = vsub.f32 1.0, %v1164_v62  ;;  %v1136_v39 = vmul.f32 %v5794_v29, %v1135_v42  ;;  %v3984_v62 = vor.u32 %v4859_v25, %v3983_v20  ;;  %1464 = vmatpush.bf16.msrb.mxu3 %v4012_v38  ;;  %v4853_v42 = vld [vmem:[#allocation5 + $0x4] sm:$0xf] }
 0x1ed   :  { %v5857_v0 = vpop.eup %5154  ;;  %v1152_v22 = vadd.f32 %v5808_v59, %v1151_v31  ;;  %v3996_v34 = vor.u32 %v4858_v1, %v3993_v48  ;;  %v3969_v31 = vld [vmem:[#allocation5 + $0x10] sm:$0xf0]  ;;  %vm1139_vm10 = vweird.f32 %v5794_v29  ;;  %v1144_v17 = vand.u32 2147483648, %v5760_v11  ;;  %1437 = vmatpush.bf16.msrb.mxu1 %v3988_v24 }
 0x1ee   :  { %v1166_v44 = vmul.f32 %v5844_v52, %v1165_v61  ;;  %v1179_v14 = vmul.f32 %v5857_v0, %v5805_v58  ;;  %5156 = vtanh.f32 %v5855_v54  ;;  %v3977_v61 = vld [vmem:[#allocation5 + $0x18] sm:$0xf0]  ;;  %v1137_v56 = vadd.f32 %v5794_v29, %v1136_v39  ;;  %vm5905_vm12 = vmor %vm1138_vm11, %vm1139_vm10 }
 0x1ef   :  { %v1156_v30 = vsel %vm5864_vm5, %v5808_v59, %v1152_v22  ;;  %1423 = vmatpush.bf16.msrb.mxu0 %v3984_v62  ;;  %v3968_v33 = vor.u32 %v4855_v50, %v3967_v15  ;;  %v3972_v27 = vor.u32 %v4853_v42, %v3969_v31  ;;  %v1142_v22 = vand.u32 2147483647, %v5760_v11  ;;  %1451 = vmatpush.bf16.msrb.mxu2 %v3992_v32 }
 0x1f0   :  { %v1180_v36 = vsub.f32 1.0, %v1179_v14  ;;  %v1161_v45 = vsel %vm5839_vm2, %v1160_v55, %v1156_v30  ;;  %v1167_v57 = vadd.f32 %v5844_v52, %v1166_v44  ;;  %1465 = vmatpush.bf16.msrb.mxu3 %v3996_v34  ;;  %vm1184_vm13 = vweird.f32 %v5857_v0 }
 0x1f1   :  { %v1198_v46 = vmul.f32 %v5153_v19, %v1161_v45  ;;  %v4854_v19 = vld [vmem:[#allocation5 + $0xc] sm:$0xf]  ;;  %v1141_v12 = vsel %vm5905_vm12, %v5794_v29, %v1137_v56  ;;  %v1145_v25 = vor.u32 1.1754944e-38, %v1144_v17  ;;  %v1189_v44 = vand.u32 2147483648, %v5805_v58  ;;  %1438 = vmatpush.bf16.msrb.mxu1 %v3972_v27  ;;  %v4916_v27 = vld [vmem:[#allocation5 + $0xf4] sm:$0xf0] }
 0x1f2   :  { %v1171_v55 = vsel %vm5882_vm8, %v5844_v52, %v1167_v57  ;;  %v1181_v18 = vmul.f32 %v5857_v0, %v1180_v36  ;;  %v3980_v16 = vor.u32 %v4854_v19, %v3977_v61  ;;  %vm1183_vm14 = vweird.f32 %v5805_v58  ;;  %v4217_v61 = vld [vmem:[#allocation5 + $0xf0] sm:$0xf0] }
 0x1f3   :  { %v1176_v23 = vsel %vm5886_vm9, %v1175_v26, %v1171_v55  ;;  %1424 = vmatpush.bf16.msrb.mxu0 %v3968_v33  ;;  %vm1143_vm15 = vcmp.eq.f32.partialorder %v1142_v22, 8.507059e+37  ;;  %v1187_v14 = vand.u32 2147483647, %v5805_v58  ;;  %vm1185_vm0 = vmor %vm1183_vm14, %vm1184_vm13  ;;  %v1190_v60 = vor.u32 1.1754944e-38, %v1189_v44  ;;  %v4199_v44 = vld [vmem:[#allocation5 + $0xc0] sm:$0xf] }
 0x1f4   :  { %v1196_v52 = vmul.f32 %v1176_v23, %v5730_v41  ;;  %v3976_v41 = vor.u32 %v4856_v47, %v3975_v21  ;;  %v1182_v11 = vadd.f32 %v5857_v0, %v1181_v18  ;;  %v5157_v20 = vpop.eup %5156  ;;  %1466 = vmatpush.bf16.msrb.mxu3 %v3980_v16  ;;  %v1146_v53 = vsel %vm1143_vm15, %v1145_v25, %v1141_v12  ;;  %v4215_v21 = vld [vmem:[#allocation5 + $0xe0] sm:$0xf]  ;;  %v4915_v18 = vld [vmem:[#allocation5 + $0xec] sm:$0xf0]  ;;  %v4913_v23 = vld [vmem:[#allocation5 + $0xe4] sm:$0xf] }
 0x1f5   :  { %v1203_v49 = vmul.f32 %v5157_v20, %v1146_v53  ;;  %vm1188_vm1 = vcmp.eq.f32.partialorder %v1187_v14, 8.507059e+37  ;;  %v218_v45 = vadd.f32 %v5507_v3, %v5602_v37  ;;  %v267_v15 = vadd.f32 %v5509_v4, %v5612_v43  ;;  %v4223_v4 = vld [vmem:[#allocation5 + $0xe8] sm:$0xf]  ;;  %v4225_v16 = vld [vmem:[#allocation5 + $0xf8] sm:$0xf0] }
 0x1f6   :  { %v5909_v13 = vadd.f32 %v1198_v46, %v1196_v52  ;;  %1452 = vmatpush.bf16.msrb.mxu2 %v3976_v41  ;;  %v1186_v29 = vsel %vm1185_vm0, %v5857_v0, %v1182_v11  ;;  %v169_v0 = vadd.f32 %v5505_v2, %v5600_v51  ;;  %v171_v50 = vadd.f32 %v5513_v6, %v5600_v51  ;;  %v4914_v41 = vld [vmem:[#allocation5 + $0xec] sm:$0xf]  ;;  %v4911_v14 = vld [vmem:[#allocation5 + $0xcc] sm:$0xf0] }
 0x1f7   :  { %v1191_v35 = vsel %vm1188_vm1, %v1190_v60, %v1186_v29  ;;  %v1205_v63 = vpack.c.bf16 %v1203_v49, %v1203_v49  ;;  %v220_v2 = vadd.f32 %v5515_v7, %v5602_v37  ;;  %v4216_v19 = vor.u32 %v4915_v18, %v4215_v21 }
 0x1f8   :  { %5158 = vtanh.f32 %v5909_v13  ;;  %v4220_v33 = vor.u32 %v4913_v23, %v4217_v61  ;;  %v4224_v26 = vor.u32 %v4916_v27, %v4223_v4  ;;  %v316_v12 = vadd.f32 %v5511_v5, %v5616_v28  ;;  %v4201_v5 = vld [vmem:[#allocation5 + $0xd0] sm:$0xf0] }
 0x1f9   :  { %v1253_v58 = vunpack.c.l.b16 %v1205_v63  ;;  %1819 = vmatpush.bf16.msra.mxu0 %v4216_v19  ;;  %v4228_v20 = vor.u32 %v4914_v41, %v4225_v16  ;;  %v269_v25 = vadd.f32 %v5517_v8, %v5612_v43  ;;  %v4910_v63 = vld [vmem:[#allocation5 + $0xcc] sm:$0xf] }
 0x1fa   :  { %1833 = vmatpush.bf16.msra.mxu1 %v4220_v33  ;;  %1847 = vmatpush.bf16.msra.mxu2 %v4224_v26 }
 0x1fb   :  { %1861 = vmatpush.bf16.msra.mxu3 %v4228_v20 }
 0x1fe   :  { %v5159_v30 = vpop.eup %5158 }
 0x1ff   :  { %v1204_v38 = vmul.f32 %v5159_v30, %v1191_v35  ;;  %v4207_v30 = vld [vmem:[#allocation5 + $0xc8] sm:$0xf]  ;;  %v4912_v35 = vld [vmem:[#allocation5 + $0xd4] sm:$0xf0] }
 0x201   :  { %v1206_v1 = vpack.c.bf16 %v1204_v38, %v1204_v38  ;;  %v5053_v48 = vpack.c.bf16 %v1204_v38, %v1203_v49  ;;  %v4909_v49 = vld [vmem:[#allocation5 + $0xc4] sm:$0xf]  ;;  %v4200_v38 = vor.u32 %v4911_v14, %v4199_v44 }
 0x203   :  { %5085 = vst [vmem:[%s6878_s4 + $0x8] sm:$0xff] %v5053_v48   ;;  %v1254_v39 = vunpack.c.l.b16 %v1206_v1  ;;  %v4209_v1 = vld [vmem:[#allocation5 + $0xd8] sm:$0xf0]  ;;  %1820 = vmatpush.bf16.msra.mxu0 %v4200_v38  ;;  %v4167_v38 = vld [vmem:[#allocation5 + $0x80] sm:$0xf] }
 0x205   :  { %v1255_v36 = vpack.c.b16 %v1254_v39, %v1253_v58  ;;  %v4204_v58 = vor.u32 %v4909_v49, %v4201_v5  ;;  %v4208_v39 = vor.u32 %v4912_v35, %v4207_v30  ;;  %v4143_v30 = vld [vmem:[#allocation5 + $0x48] sm:$0xf] }
 0x207   :  { %1425 = vmatmul.bf16.vlgmr.msrb.gmra.mxu0 %v1255_v36  ;;  %1439 = vmatmul.bf16.vlgmr.msrb.gmra.mxu1 %v1255_v36 }
 0x208   :  { %1453 = vmatmul.bf16.vlgmr.msrb.gmra.mxu2 %v1255_v36  ;;  %1467 = vmatmul.bf16.vlgmr.msrb.gmra.mxu3 %v1255_v36  ;;  %v4212_v36 = vor.u32 %v4910_v63, %v4209_v1  ;;  %v4903_v63 = vld [vmem:[#allocation5 + $0x8c] sm:$0xf0]  ;;  %v4901_v1 = vld [vmem:[#allocation5 + $0x84] sm:$0xf] }
 0x209   :  { %1834 = vmatpush.bf16.msra.mxu1 %v4204_v58  ;;  %1848 = vmatpush.bf16.msra.mxu2 %v4208_v39  ;;  %v4169_v58 = vld [vmem:[#allocation5 + $0x90] sm:$0xf0]  ;;  %v4175_v39 = vld [vmem:[#allocation5 + $0x88] sm:$0xf] }
 0x20a   :  { %1862 = vmatpush.bf16.msra.mxu3 %v4212_v36  ;;  %v4904_v36 = vld [vmem:[#allocation5 + $0x94] sm:$0xf0] }
 0x284   :  { %v1426_v57 = vpop.f32.mrf.mxu0  ;;  %v1440_v40 = vpop.f32.mrf.mxu1 }
 0x285   :  { %v1473_v59 = vadd.f32 %v1426_v57, %v169_v0  ;;  %v1474_v46 = vadd.f32 %v1440_v40, %v218_v45  ;;  %v4183_v0 = vld [vmem:[#allocation5 + $0xa0] sm:$0xf]  ;;  %v4907_v45 = vld [vmem:[#allocation5 + $0xac] sm:$0xf0] }
 0x287   :  { %v4093_v62 = vmul.f32 -1.442695, %v1473_v59  ;;  %v4094_v24 = vmul.f32 -1.442695, %v1474_v46  ;;  %v4184_v59 = vor.u32 %v4907_v45, %v4183_v0  ;;  %v4905_v46 = vld [vmem:[#allocation5 + $0xa4] sm:$0xf] }
 0x289   :  { %5160 = vpow2.f32 %v4093_v62  ;;  %v4185_v62 = vld [vmem:[#allocation5 + $0xb0] sm:$0xf0]  ;;  %1821 = vmatpush.bf16.msra.mxu0 %v4184_v59 }
 0x28a   :  { %5162 = vpow2.f32 %v4094_v24 }
 0x28b   :  { %v1454_v55 = vpop.f32.mrf.mxu2  ;;  %v1468_v52 = vpop.f32.mrf.mxu3 }
 0x28c   :  { %v1475_v32 = vadd.f32 %v1454_v55, %v267_v15  ;;  %v1428_v3 = vpop.f32.mrf.mxu0  ;;  %v1442_v34 = vpop.f32.mrf.mxu1  ;;  %v1476_v53 = vadd.f32 %v1468_v52, %v316_v12  ;;  %v318_v15 = vadd.f32 %v5519_v9, %v5616_v28  ;;  %v4191_v9 = vld [vmem:[#allocation5 + $0xa8] sm:$0xf] }
 0x28d   :  { %v1477_v42 = vadd.f32 %v1428_v3, %v171_v50  ;;  %v1478_v31 = vadd.f32 %v1442_v34, %v220_v2  ;;  %v4188_v2 = vor.u32 %v4905_v46, %v4185_v62  ;;  %v4902_v46 = vld [vmem:[#allocation5 + $0x8c] sm:$0xf] }
 0x28e   :  { %v4095_v47 = vmul.f32 -1.442695, %v1475_v32 }
 0x28f   :  { %v5161_v17 = vpop.eup %5160  ;;  %v4096_v56 = vmul.f32 -1.442695, %v1477_v42  ;;  %v4097_v6 = vmul.f32 -1.442695, %v1478_v31  ;;  %v4908_v42 = vld [vmem:[#allocation5 + $0xb4] sm:$0xf0]  ;;  %1835 = vmatpush.bf16.msra.mxu1 %v4188_v2 }
 0x290   :  { %v5163_v7 = vpop.eup %5162  ;;  %v5934_v22 = vadd.f32 1.0, %v5161_v17  ;;  %5164 = vpow2.f32 %v4095_v47  ;;  %v4192_v52 = vor.u32 %v4908_v42, %v4191_v9  ;;  %v4899_v42 = vld [vmem:[#allocation5 + $0x6c] sm:$0xf0] }
 0x291   :  { %v5938_v11 = vadd.f32 1.0, %v5163_v7  ;;  %5166 = vpow2.f32 %v4096_v56  ;;  %v4906_v56 = vld [vmem:[#allocation5 + $0xac] sm:$0xf]  ;;  %v4161_v7 = vld [vmem:[#allocation5 + $0x78] sm:$0xf0] }
 0x292   :  { %5168 = vrcp.f32 %v5934_v22  ;;  %vm1510_vm2 = vweird.f32 %v5934_v22  ;;  %v1514_v3 = vand.u32 2147483647, %v5934_v22  ;;  %v1516_v23 = vand.u32 2147483648, %v5934_v22  ;;  %1849 = vmatpush.bf16.msra.mxu2 %v4192_v52 }
 0x293   :  { %5170 = vrcp.f32 %v5938_v11  ;;  %v1456_v29 = vpop.f32.mrf.mxu2  ;;  %v1470_v34 = vpop.f32.mrf.mxu3  ;;  %v1531_v18 = vand.u32 2147483648, %v5938_v11  ;;  %vm1525_vm3 = vweird.f32 %v5938_v11  ;;  %v1529_v19 = vand.u32 2147483647, %v5938_v11 }
 0x294   :  { %5172 = vpow2.f32 %v4097_v6  ;;  %v1479_v60 = vadd.f32 %v1456_v29, %v269_v25  ;;  %v1480_v17 = vadd.f32 %v1470_v34, %v318_v15  ;;  %v4193_v6 = vld [vmem:[#allocation5 + $0xb8] sm:$0xf0]  ;;  %vm5971_vm6 = vcmp.eq.f32.partialorder %v1514_v3, 8.507059e+37  ;;  %v4151_v34 = vld [vmem:[#allocation5 + $0x60] sm:$0xf] }
 0x295   :  { %5174 = vtanh.f32 %v1476_v53  ;;  %v1532_v16 = vor.u32 1.1754944e-38, %v1531_v18  ;;  %v1517_v12 = vor.u32 1.1754944e-38, %v1516_v23  ;;  %v4196_v49 = vor.u32 %v4906_v56, %v4193_v6  ;;  %v4177_v3 = vld [vmem:[#allocation5 + $0x98] sm:$0xf0] }
 0x296   :  { %v5165_v8 = vpop.eup %5164  ;;  %v4098_v48 = vmul.f32 -1.442695, %v1479_v60  ;;  %vm6003_vm9 = vcmp.eq.f32.partialorder %v1529_v19, 8.507059e+37  ;;  %v4172_v19 = vor.u32 %v4901_v1, %v4169_v58  ;;  %v4176_v6 = vor.u32 %v4904_v36, %v4175_v39  ;;  %v4896_v1 = vld [vmem:[#allocation5 + $0x54] sm:$0xf0] }
 0x297   :  { %v5167_v57 = vpop.eup %5166  ;;  %v5944_v40 = vadd.f32 1.0, %v5165_v8  ;;  %1863 = vmatpush.bf16.msra.mxu3 %v4196_v49 }
 0x298   :  { %v5946_v24 = vpop.eup %5168  ;;  %v5950_v50 = vadd.f32 1.0, %v5167_v57  ;;  %5176 = vpow2.f32 %v4098_v48  ;;  %1836 = vmatpush.bf16.msra.mxu1 %v4172_v19  ;;  %1850 = vmatpush.bf16.msra.mxu2 %v4176_v6 }
 0x299   :  { %v5952_v55 = vpop.eup %5170  ;;  %v1506_v32 = vmul.f32 %v5946_v24, %v5934_v22  ;;  %5178 = vrcp.f32 %v5944_v40  ;;  %vm1511_vm5 = vweird.f32 %v5946_v24 }
 0x29a   :  { %v5173_v31 = vpop.eup %5172  ;;  %v1521_v21 = vmul.f32 %v5952_v55, %v5938_v11  ;;  %5180 = vrcp.f32 %v5950_v50  ;;  %vm1526_vm4 = vweird.f32 %v5952_v55  ;;  %v1559_v20 = vand.u32 2147483647, %v5950_v50  ;;  %vm5998_vm8 = vmor %vm1510_vm2, %vm1511_vm5 }
 0x29b   :  { %v1507_v47 = vsub.f32 1.0, %v1506_v32  ;;  %v5966_v61 = vadd.f32 1.0, %v5173_v31  ;;  %v5175_v33 = vpop.eup %5174  ;;  %vm5984_vm7 = vmor %vm1525_vm3, %vm1526_vm4  ;;  %v1561_v29 = vand.u32 2147483648, %v5950_v50  ;;  %vm1555_vm11 = vweird.f32 %v5950_v50  ;;  %v4897_v31 = vld [vmem:[#allocation5 + $0x64] sm:$0xf] }
 0x29c   :  { %v1522_v4 = vsub.f32 1.0, %v1521_v21  ;;  %vm6023_vm10 = vcmp.eq.f32.partialorder %v1559_v20, 8.507059e+37  ;;  %v4153_v21 = vld [vmem:[#allocation5 + $0x70] sm:$0xf0]  ;;  %v4152_v20 = vor.u32 %v4899_v42, %v4151_v34  ;;  %v4127_v34 = vld [vmem:[#allocation5 + $0x28] sm:$0xf]  ;;  %vm1540_vm3 = vweird.f32 %v5944_v40 }
 0x29d   :  { %v1508_v27 = vmul.f32 %v5946_v24, %v1507_v47  ;;  %5182 = vrcp.f32 %v5966_v61  ;;  %v1576_v35 = vand.u32 2147483648, %v5966_v61  ;;  %v1574_v59 = vand.u32 2147483647, %v5966_v61  ;;  %v4892_v42 = vld [vmem:[#allocation5 + $0x34] sm:$0xf0] }
 0x29e   :  { %v5177_v26 = vpop.eup %5176  ;;  %v1523_v41 = vmul.f32 %v5952_v55, %v1522_v4  ;;  %5184 = vtanh.f32 %v1480_v17  ;;  %v1562_v32 = vor.u32 1.1754944e-38, %v1561_v29  ;;  %v4168_v47 = vor.u32 %v4903_v63, %v4167_v38  ;;  %v4159_v4 = vld [vmem:[#allocation5 + $0x68] sm:$0xf]  ;;  %v4900_v17 = vld [vmem:[#allocation5 + $0x74] sm:$0xf0] }
 0x29f   :  { %v5978_v25 = vpop.eup %5178  ;;  %v1509_v14 = vadd.f32 %v5946_v24, %v1508_v27  ;;  %v5989_v53 = vadd.f32 1.0, %v5177_v26  ;;  %v4898_v27 = vld [vmem:[#allocation5 + $0x6c] sm:$0xf]  ;;  %v4156_v44 = vor.u32 %v4897_v31, %v4153_v21  ;;  %v4895_v29 = vld [vmem:[#allocation5 + $0x4c] sm:$0xf0]  ;;  %vm1570_vm14 = vweird.f32 %v5966_v61 }
 0x2a0   :  { %v5992_v5 = vpop.eup %5180  ;;  %v1524_v11 = vadd.f32 %v5952_v55, %v1523_v41  ;;  %v6010_v8 = vmul.f32 %v5978_v25, %v5944_v40  ;;  %v1577_v41 = vor.u32 1.1754944e-38, %v1576_v35  ;;  %1822 = vmatpush.bf16.msra.mxu0 %v4168_v47  ;;  %vm1541_vm0 = vweird.f32 %v5978_v25  ;;  %v4890_v31 = vld [vmem:[#allocation5 + $0x2c] sm:$0xf]  ;;  %v4129_v21 = vld [vmem:[#allocation5 + $0x38] sm:$0xf0] }
 0x2a1   :  { %v1513_v22 = vsel %vm5998_vm8, %v5946_v24, %v1509_v14  ;;  %v1551_v48 = vmul.f32 %v5992_v5, %v5950_v50  ;;  %5186 = vrcp.f32 %v5989_v53  ;;  %vm1556_vm12 = vweird.f32 %v5992_v5  ;;  %v4135_v14 = vld [vmem:[#allocation5 + $0x40] sm:$0xf]  ;;  %v4893_v50 = vld [vmem:[#allocation5 + $0x44] sm:$0xf]  ;;  %1837 = vmatpush.bf16.msra.mxu1 %v4156_v44  ;;  %vm6089_vm4 = vmor %vm1540_vm3, %vm1541_vm0 }
 0x2a2   :  { %v1518_v0 = vsel %vm5971_vm6, %v1517_v12, %v1513_v22  ;;  %v1528_v45 = vsel %vm5984_vm7, %v5952_v55, %v1524_v11  ;;  %v1537_v18 = vsub.f32 1.0, %v6010_v8  ;;  %vm6048_vm13 = vmor %vm1555_vm11, %vm1556_vm12  ;;  %v4137_v11 = vld [vmem:[#allocation5 + $0x50] sm:$0xf0]  ;;  %v4160_v38 = vor.u32 %v4900_v17, %v4159_v4  ;;  %v4894_v8 = vld [vmem:[#allocation5 + $0x4c] sm:$0xf] }
 0x2a3   :  { %v6028_v62 = vpop.eup %5182  ;;  %v1533_v24 = vsel %vm6003_vm9, %v1532_v16, %v1528_v45  ;;  %v1599_v15 = vmul.f32 %v5175_v33, %v1518_v0  ;;  %v1552_v2 = vsub.f32 1.0, %v1551_v48  ;;  %v4180_v33 = vor.u32 %v4902_v46, %v4177_v3  ;;  %v4145_v22 = vld [vmem:[#allocation5 + $0x58] sm:$0xf0]  ;;  %v4121_v3 = vld [vmem:[#allocation5 + $0x30] sm:$0xf0] }
 0x2a4   :  { %v1597_v9 = vmul.f32 %v1533_v24, %v5855_v54  ;;  %v1566_v55 = vmul.f32 %v6028_v62, %v5966_v61  ;;  %v5185_v52 = vpop.eup %5184  ;;  %vm1571_vm15 = vweird.f32 %v6028_v62  ;;  %v4164_v63 = vor.u32 %v4898_v27, %v4161_v7  ;;  %1823 = vmatpush.bf16.msra.mxu0 %v4152_v20  ;;  %v4119_v24 = vld [vmem:[#allocation5 + $0x20] sm:$0xf]  ;;  %1851 = vmatpush.bf16.msra.mxu2 %v4160_v38  ;;  %v4887_v17 = vld [vmem:[#allocation5 + $0xc] sm:$0xf0]  ;;  %v4885_v27 = vld [vmem:[#allocation5 + $0x4] sm:$0xf] }
 0x2a5   :  { %v1553_v23 = vmul.f32 %v5992_v5, %v1552_v2  ;;  %1864 = vmatpush.bf16.msra.mxu3 %v4180_v33  ;;  %v1538_v48 = vmul.f32 %v5978_v25, %v1537_v18  ;;  %vm6069_vm1 = vmor %vm1570_vm14, %vm1571_vm15  ;;  %vm6073_vm2 = vcmp.eq.f32.partialorder %v1574_v59, 8.507059e+37  ;;  %v4136_v46 = vor.u32 %v4895_v29, %v4135_v14  ;;  %v4103_v4 = vld [vmem:[#allocation5] sm:$0xf]  ;;  %v4105_v7 = vld [vmem:[#allocation5 + $0x10] sm:$0xf0] }
 0x2a6   :  { %v6039_v54 = vadd.f32 %v1599_v15, %v1597_v9  ;;  %v1567_v56 = vsub.f32 1.0, %v1566_v55  ;;  %v4140_v57 = vor.u32 %v4893_v50, %v4137_v11  ;;  %v4891_v15 = vld [vmem:[#allocation5 + $0x2c] sm:$0xf0]  ;;  %v4144_v2 = vor.u32 %v4896_v1, %v4143_v30  ;;  %v4886_v12 = vld [vmem:[#allocation5 + $0xc] sm:$0xf] }
 0x2a7   :  { %v6041_v26 = vpop.eup %5186  ;;  %v1554_v16 = vadd.f32 %v5992_v5, %v1553_v23  ;;  %v4148_v59 = vor.u32 %v4894_v8, %v4145_v22  ;;  %v1546_v18 = vand.u32 2147483648, %v5944_v40  ;;  %v4120_v47 = vor.u32 %v4891_v15, %v4119_v24  ;;  %v4113_v20 = vld [vmem:[#allocation5 + $0x18] sm:$0xf0] }
 0x2a8   :  { %v1568_v49 = vmul.f32 %v6028_v62, %v1567_v56  ;;  %v1581_v60 = vmul.f32 %v6041_v26, %v5989_v53  ;;  %5188 = vtanh.f32 %v6039_v54  ;;  %1824 = vmatpush.bf16.msra.mxu0 %v4136_v46  ;;  %1838 = vmatpush.bf16.msra.mxu1 %v4140_v57  ;;  %v1544_v56 = vand.u32 2147483647, %v5944_v40  ;;  %v6962_v46 = vld [vmem:[#allocation8_spill] sm:$0xff] }
 0x2a9   :  { %v1558_v35 = vsel %vm6048_vm13, %v5992_v5, %v1554_v16  ;;  %1865 = vmatpush.bf16.msra.mxu3 %v4164_v63  ;;  %1852 = vmatpush.bf16.msra.mxu2 %v4144_v2  ;;  %v4132_v33 = vor.u32 %v4890_v31, %v4129_v21  ;;  %vm1586_vm5 = vweird.f32 %v6041_v26  ;;  %v4888_v16 = vld [vmem:[#allocation5 + $0x14] sm:$0xf0]  ;;  %v1547_v29 = vor.u32 1.1754944e-38, %v1546_v18 }
 0x2aa   :  { %v1582_v58 = vsub.f32 1.0, %v1581_v60  ;;  %v1563_v39 = vsel %vm6023_vm10, %v1562_v32, %v1558_v35  ;;  %v1569_v36 = vadd.f32 %v6028_v62, %v1568_v49  ;;  %v4889_v32 = vld [vmem:[#allocation5 + $0x24] sm:$0xf]  ;;  %vm1585_vm6 = vweird.f32 %v5989_v53 }
 0x2ab   :  { %v1600_v45 = vmul.f32 %v5185_v52, %v1563_v39  ;;  %v4124_v19 = vor.u32 %v4889_v32, %v4121_v3  ;;  %v1539_v52 = vadd.f32 %v5978_v25, %v1538_v48  ;;  %v1591_v49 = vand.u32 2147483648, %v5989_v53  ;;  %vm6108_vm8 = vmor %vm1585_vm6, %vm1586_vm5  ;;  %v6963_v3 = vld [vmem:[#allocation9_spill] sm:$0xff] }
 0x2ac   :  { %v1573_v61 = vsel %vm6069_vm1, %v6028_v62, %v1569_v36  ;;  %v1583_v9 = vmul.f32 %v6041_v26, %v1582_v58  ;;  %1825 = vmatpush.bf16.msra.mxu0 %v4120_v47  ;;  %v4104_v60 = vor.u32 %v4887_v17, %v4103_v4  ;;  %v4108_v50 = vor.u32 %v4885_v27, %v4105_v7  ;;  %v4351_v27 = vld [vmem:[#allocation5 + $0xe0] sm:$0xf]  ;;  %v4947_v7 = vld [vmem:[#allocation5 + $0xec] sm:$0xf0] }
 0x2ad   :  { %v1578_v55 = vsel %vm6073_vm2, %v1577_v41, %v1573_v61  ;;  %1866 = vmatpush.bf16.msra.mxu3 %v4148_v59  ;;  %v4111_v41 = vld [vmem:[#allocation5 + $0x8] sm:$0xf]  ;;  %v1543_v44 = vsel %vm6089_vm4, %v5978_v25, %v1539_v52  ;;  %1839 = vmatpush.bf16.msra.mxu1 %v4124_v19  ;;  %vm1545_vm7 = vcmp.eq.f32.partialorder %v1544_v56, 8.507059e+37  ;;  %v1589_v11 = vand.u32 2147483647, %v5989_v53 }
 0x2ae   :  { %v1598_v62 = vmul.f32 %v1578_v55, %v5909_v13  ;;  %v4128_v13 = vor.u32 %v4892_v42, %v4127_v34  ;;  %v1584_v40 = vadd.f32 %v6041_v26, %v1583_v9  ;;  %v5189_v14 = vpop.eup %5188  ;;  %v4112_v30 = vor.u32 %v4888_v16, %v4111_v41  ;;  %v6964_v9 = vld [vmem:[#allocation11_spill] sm:$0xff]  ;;  %v6965_v42 = vld [vmem:[#allocation12_spill] sm:$0xff]  ;;  %v4946_v25 = vld [vmem:[#allocation5 + $0xec] sm:$0xf] }
 0x2af   :  { %v4116_v35 = vor.u32 %v4886_v12, %v4113_v20  ;;  %v1548_v38 = vsel %vm1545_vm7, %v1547_v29, %v1543_v44  ;;  %v1592_v8 = vor.u32 1.1754944e-38, %v1591_v49  ;;  %vm1590_vm9 = vcmp.eq.f32.partialorder %v1589_v11, 8.507059e+37  ;;  %v6966_v12 = vld [vmem:[#allocation13_spill] sm:$0xff]  ;;  %v4945_v44 = vld [vmem:[#allocation5 + $0xe4] sm:$0xf] }
 0x2b0   :  { %v6095_v6 = vadd.f32 %v1600_v45, %v1598_v62  ;;  %1853 = vmatpush.bf16.msra.mxu2 %v4128_v13  ;;  %v1588_v63 = vsel %vm6108_vm8, %v6041_v26, %v1584_v40  ;;  %v1605_v1 = vmul.f32 %v5189_v14, %v1548_v38  ;;  %1826 = vmatpush.bf16.msra.mxu0 %v4104_v60  ;;  %v4353_v40 = vld [vmem:[#allocation5 + $0xf0] sm:$0xf0]  ;;  %v4359_v60 = vld [vmem:[#allocation5 + $0xe8] sm:$0xf] }
 0x2b1   :  { %1867 = vmatpush.bf16.msra.mxu3 %v4132_v33  ;;  %1840 = vmatpush.bf16.msra.mxu1 %v4108_v50  ;;  %v1593_v22 = vsel %vm1590_vm9, %v1592_v8, %v1588_v63  ;;  %v174_v45 = vadd.f32 %v5521_v10, %v5600_v51  ;;  %v223_v57 = vadd.f32 %v6962_v46, %v5602_v37  ;;  %v6967_v14 = vld [vmem:[#allocation10_spill] sm:$0xff]  ;;  %v4948_v50 = vld [vmem:[#allocation5 + $0xf4] sm:$0xf0]  ;;  %v4335_v63 = vld [vmem:[#allocation5 + $0xc0] sm:$0xf] }
 0x2b2   :  { %5190 = vtanh.f32 %v6095_v6  ;;  %v1607_v58 = vpack.c.bf16 %v1605_v1, %v1605_v1  ;;  %v272_v34 = vadd.f32 %v6963_v3, %v5612_v43  ;;  %v176_v55 = vadd.f32 %v6964_v9, %v5600_v51  ;;  %v4944_v46 = vld [vmem:[#allocation5 + $0xd4] sm:$0xf0] }
 0x2b3   :  { %v225_v10 = vadd.f32 %v6965_v42, %v5602_v37  ;;  %v4352_v16 = vor.u32 %v4947_v7, %v4351_v27  ;;  %v274_v20 = vadd.f32 %v6966_v12, %v5612_v43  ;;  %v321_v29 = vadd.f32 %v6967_v14, %v5616_v28 }
 0x2b4   :  { %1854 = vmatpush.bf16.msra.mxu2 %v4112_v30  ;;  %v1655_v0 = vunpack.c.l.b16 %v1607_v58  ;;  %v4361_v30 = vld [vmem:[#allocation5 + $0xf8] sm:$0xf0]  ;;  %v4356_v38 = vor.u32 %v4945_v44, %v4353_v40 }
 0x2b5   :  { %1868 = vmatpush.bf16.msra.mxu3 %v4116_v35  ;;  %2221 = vmatpush.bf16.msrb.mxu0 %v4352_v16 }
 0x2b6   :  { %2235 = vmatpush.bf16.msrb.mxu1 %v4356_v38 }
 0x2b8   :  { %v5191_v53 = vpop.eup %5190 }
 0x2b9   :  { %v1606_v48 = vmul.f32 %v5191_v53, %v1593_v22  ;;  %v4360_v22 = vor.u32 %v4948_v50, %v4359_v60 }
 0x2bb   :  { %v1608_v39 = vpack.c.bf16 %v1606_v48, %v1606_v48  ;;  %v5058_v36 = vpack.c.bf16 %v1606_v48, %v1605_v1  ;;  %v4943_v1 = vld [vmem:[#allocation5 + $0xcc] sm:$0xf0]  ;;  %v4364_v48 = vor.u32 %v4946_v25, %v4361_v30  ;;  %2249 = vmatpush.bf16.msrb.mxu2 %v4360_v22  ;;  %v4321_v22 = vld [vmem:[#allocation5 + $0xb0] sm:$0xf0] }
 0x2bc   :  { %v4336_v58 = vor.u32 %v4943_v1, %v4335_v63  ;;  %v4319_v1 = vld [vmem:[#allocation5 + $0xa0] sm:$0xf] }
 0x2bd   :  { %5086 = vst [vmem:[%s6878_s4 + $0x10] sm:$0xff] %v5058_v36   ;;  %v1656_v5 = vunpack.c.l.b16 %v1608_v39  ;;  %v4941_v39 = vld [vmem:[#allocation5 + $0xc4] sm:$0xf]  ;;  %v4337_v36 = vld [vmem:[#allocation5 + $0xd0] sm:$0xf0]  ;;  %2263 = vmatpush.bf16.msrb.mxu3 %v4364_v48 }
 0x2be   :  { %2222 = vmatpush.bf16.msrb.mxu0 %v4336_v58  ;;  %v4327_v48 = vld [vmem:[#allocation5 + $0xa8] sm:$0xf]  ;;  %v4940_v58 = vld [vmem:[#allocation5 + $0xb4] sm:$0xf0] }
 0x2bf   :  { %v1657_v26 = vpack.c.b16 %v1656_v5, %v1655_v0 }
 0x2c1   :  { %1827 = vmatmul.bf16.vlgmr.msra.gmra.mxu0 %v1657_v26  ;;  %1841 = vmatmul.bf16.vlgmr.msra.gmra.mxu1 %v1657_v26 }
 0x2c2   :  { %1855 = vmatmul.bf16.vlgmr.msra.gmra.mxu2 %v1657_v26  ;;  %1869 = vmatmul.bf16.vlgmr.msra.gmra.mxu3 %v1657_v26  ;;  %v4340_v26 = vor.u32 %v4941_v39, %v4337_v36 }
 0x2c4   :  { %2236 = vmatpush.bf16.msrb.mxu1 %v4340_v26 }
 0x33e   :  { %v1828_v24 = vpop.f32.mrf.mxu0  ;;  %v1842_v15 = vpop.f32.mrf.mxu1 }
 0x33f   :  { %v1875_v61 = vadd.f32 %v1828_v24, %v174_v45  ;;  %v1876_v2 = vadd.f32 %v1842_v15, %v223_v57  ;;  %v4343_v45 = vld [vmem:[#allocation5 + $0xc8] sm:$0xf] }
 0x341   :  { %v4229_v59 = vmul.f32 -1.442695, %v1875_v61  ;;  %v4230_v32 = vmul.f32 -1.442695, %v1876_v2  ;;  %v4344_v2 = vor.u32 %v4944_v46, %v4343_v45  ;;  %v4938_v45 = vld [vmem:[#allocation5 + $0xac] sm:$0xf] }
 0x342   :  { %v4329_v46 = vld [vmem:[#allocation5 + $0xb8] sm:$0xf0] }
 0x343   :  { %5192 = vpow2.f32 %v4229_v59  ;;  %2250 = vmatpush.bf16.msrb.mxu2 %v4344_v2 }
 0x344   :  { %5194 = vpow2.f32 %v4230_v32  ;;  %v6968_v32 = vld [vmem:[#allocation14_spill] sm:$0xff] }
 0x345   :  { %v1856_v31 = vpop.f32.mrf.mxu2  ;;  %v1870_v4 = vpop.f32.mrf.mxu3  ;;  %v323_v3 = vadd.f32 %v6968_v32, %v5616_v28 }
 0x346   :  { %v1877_v21 = vadd.f32 %v1856_v31, %v272_v34  ;;  %v1830_v18 = vpop.f32.mrf.mxu0  ;;  %v1844_v62 = vpop.f32.mrf.mxu1  ;;  %v1878_v35 = vadd.f32 %v1870_v4, %v321_v29  ;;  %v4345_v4 = vld [vmem:[#allocation5 + $0xd8] sm:$0xf0] }
 0x347   :  { %v1879_v23 = vadd.f32 %v1830_v18, %v176_v55  ;;  %v1880_v47 = vadd.f32 %v1844_v62, %v225_v10 }
 0x348   :  { %v4231_v19 = vmul.f32 -1.442695, %v1877_v21 }
 0x349   :  { %v5193_v17 = vpop.eup %5192  ;;  %v4232_v52 = vmul.f32 -1.442695, %v1879_v23  ;;  %v4233_v56 = vmul.f32 -1.442695, %v1880_v47 }
 0x34a   :  { %v5195_v13 = vpop.eup %5194  ;;  %v6128_v33 = vadd.f32 1.0, %v5193_v17  ;;  %5196 = vpow2.f32 %v4231_v19  ;;  %v4942_v19 = vld [vmem:[#allocation5 + $0xcc] sm:$0xf] }
 0x34b   :  { %v6130_v41 = vadd.f32 1.0, %v5195_v13  ;;  %5198 = vpow2.f32 %v4232_v52  ;;  %v4348_v44 = vor.u32 %v4942_v19, %v4345_v4  ;;  %v4328_v4 = vor.u32 %v4940_v58, %v4327_v48  ;;  %v4930_v48 = vld [vmem:[#allocation5 + $0x6c] sm:$0xf]  ;;  %v4297_v58 = vld [vmem:[#allocation5 + $0x78] sm:$0xf0] }
 0x34c   :  { %5200 = vrcp.f32 %v6128_v33  ;;  %v1916_v24 = vand.u32 2147483647, %v6128_v33  ;;  %v1918_v9 = vand.u32 2147483648, %v6128_v33  ;;  %vm1912_vm11 = vweird.f32 %v6128_v33 }
 0x34d   :  { %5202 = vrcp.f32 %v6130_v41  ;;  %v1858_v49 = vpop.f32.mrf.mxu2  ;;  %v1872_v61 = vpop.f32.mrf.mxu3  ;;  %v1933_v10 = vand.u32 2147483648, %v6130_v41  ;;  %v1931_v31 = vand.u32 2147483647, %v6130_v41  ;;  %vm1927_vm10 = vweird.f32 %v6130_v41  ;;  %2264 = vmatpush.bf16.msrb.mxu3 %v4348_v44  ;;  %v4287_v44 = vld [vmem:[#allocation5 + $0x60] sm:$0xf]  ;;  %2251 = vmatpush.bf16.msrb.mxu2 %v4328_v4 }
 0x34e   :  { %5204 = vpow2.f32 %v4233_v56  ;;  %v1881_v11 = vadd.f32 %v1858_v49, %v274_v20  ;;  %v1882_v62 = vadd.f32 %v1872_v61, %v323_v3  ;;  %vm6159_vm12 = vcmp.eq.f32.partialorder %v1916_v24, 8.507059e+37  ;;  %v4923_v4 = vld [vmem:[#allocation5 + $0x2c] sm:$0xf0] }
 0x34f   :  { %v1919_v52 = vor.u32 1.1754944e-38, %v1918_v9  ;;  %v1934_v27 = vor.u32 1.1754944e-38, %v1933_v10  ;;  %vm6166_vm15 = vcmp.eq.f32.partialorder %v1931_v31, 8.507059e+37  ;;  %v4273_v9 = vld [vmem:[#allocation5 + $0x50] sm:$0xf0] }
 0x350   :  { %v5197_v8 = vpop.eup %5196  ;;  %v4234_v53 = vmul.f32 -1.442695, %v1881_v11  ;;  %v4931_v11 = vld [vmem:[#allocation5 + $0x6c] sm:$0xf0] }
 0x351   :  { %v5199_v0 = vpop.eup %5198  ;;  %v6138_v5 = vadd.f32 1.0, %v5197_v8  ;;  %v4939_v8 = vld [vmem:[#allocation5 + $0xac] sm:$0xf0] }
 0x352   :  { %v5201_v57 = vpop.eup %5200  ;;  %v6141_v15 = vadd.f32 1.0, %v5199_v0  ;;  %5206 = vpow2.f32 %v4234_v53  ;;  %v4937_v53 = vld [vmem:[#allocation5 + $0xa4] sm:$0xf]  ;;  %v4320_v47 = vor.u32 %v4939_v8, %v4319_v1  ;;  %v4295_v1 = vld [vmem:[#allocation5 + $0x68] sm:$0xf] }
 0x353   :  { %v6143_v59 = vpop.eup %5202  ;;  %v1908_v34 = vmul.f32 %v5201_v57, %v6128_v33  ;;  %5208 = vrcp.f32 %v6138_v5  ;;  %vm1913_vm13 = vweird.f32 %v5201_v57  ;;  %v1946_v29 = vand.u32 2147483647, %v6138_v5  ;;  %v4932_v8 = vld [vmem:[#allocation5 + $0x74] sm:$0xf0] }
 0x354   :  { %v5205_v55 = vpop.eup %5204  ;;  %v1923_v42 = vmul.f32 %v6143_v59, %v6130_v41  ;;  %5210 = vtanh.f32 %v1878_v35  ;;  %vm1928_vm14 = vweird.f32 %v6143_v59  ;;  %v1948_v49 = vand.u32 2147483648, %v6138_v5  ;;  %vm1914_vm0 = vmor %vm1912_vm11, %vm1913_vm13  ;;  %2223 = vmatpush.bf16.msrb.mxu0 %v4320_v47 }
 0x355   :  { %v1909_v21 = vsub.f32 1.0, %v1908_v34  ;;  %5212 = vrcp.f32 %v6141_v15  ;;  %v6155_v18 = vadd.f32 1.0, %v5205_v55  ;;  %vm6188_vm1 = vmor %vm1927_vm10, %vm1928_vm14  ;;  %v1961_v33 = vand.u32 2147483647, %v6141_v15  ;;  %v4935_v55 = vld [vmem:[#allocation5 + $0x8c] sm:$0xf0] }
 0x356   :  { %v1924_v23 = vsub.f32 1.0, %v1923_v42  ;;  %vm1957_vm2 = vweird.f32 %v6141_v15  ;;  %v1963_v26 = vand.u32 2147483648, %v6141_v15  ;;  %vm1942_vm3 = vweird.f32 %v6138_v5  ;;  %v4933_v42 = vld [vmem:[#allocation5 + $0x84] sm:$0xf] }
 0x357   :  { %v1910_v17 = vmul.f32 %v5201_v57, %v1909_v21  ;;  %5214 = vrcp.f32 %v6155_v18  ;;  %v1978_v30 = vand.u32 2147483648, %v6155_v18  ;;  %v1976_v2 = vand.u32 2147483647, %v6155_v18  ;;  %v4305_v21 = vld [vmem:[#allocation5 + $0x90] sm:$0xf0] }
 0x358   :  { %v5207_v56 = vpop.eup %5206  ;;  %v1925_v13 = vmul.f32 %v6143_v59, %v1924_v23  ;;  %5216 = vtanh.f32 %v1882_v62  ;;  %vm1972_vm4 = vweird.f32 %v6155_v18  ;;  %vm6215_vm5 = vcmp.eq.f32.partialorder %v1961_v33, 8.507059e+37  ;;  %v4311_v62 = vld [vmem:[#allocation5 + $0x88] sm:$0xf] }
 0x359   :  { %v6170_v16 = vpop.eup %5208  ;;  %v1911_v12 = vadd.f32 %v5201_v57, %v1910_v17  ;;  %v6172_v20 = vadd.f32 1.0, %v5207_v56  ;;  %v1979_v34 = vor.u32 1.1754944e-38, %v1978_v30  ;;  %v4324_v19 = vor.u32 %v4937_v53, %v4321_v22  ;;  %v4934_v56 = vld [vmem:[#allocation5 + $0x8c] sm:$0xf]  ;;  %v4289_v30 = vld [vmem:[#allocation5 + $0x70] sm:$0xf0] }
 0x35a   :  { %v5211_v40 = vpop.eup %5210  ;;  %v1938_v14 = vmul.f32 %v6170_v16, %v6138_v5  ;;  %v1926_v60 = vadd.f32 %v6143_v59, %v1925_v13  ;;  %v4332_v17 = vor.u32 %v4938_v45, %v4329_v46  ;;  %v4313_v13 = vld [vmem:[#allocation5 + $0x98] sm:$0xf0]  ;;  %vm1943_vm8 = vweird.f32 %v6170_v16  ;;  %v4926_v5 = vld [vmem:[#allocation5 + $0x4c] sm:$0xf] }
 0x35b   :  { %v6182_v50 = vpop.eup %5212  ;;  %v1915_v25 = vsel %vm1914_vm0, %v5201_v57, %v1911_v12  ;;  %5218 = vrcp.f32 %v6172_v20  ;;  %v1964_v12 = vor.u32 1.1754944e-38, %v1963_v26  ;;  %2237 = vmatpush.bf16.msrb.mxu1 %v4324_v19  ;;  %vm6243_vm10 = vcmp.eq.f32.partialorder %v1946_v29, 8.507059e+37  ;;  %vm6262_vm13 = vmor %vm1942_vm3, %vm1943_vm8  ;;  %v4255_v19 = vld [vmem:[#allocation5 + $0x20] sm:$0xf]  ;;  %v4918_v22 = vld [vmem:[#allocation5 + $0xc] sm:$0xf] }
 0x35c   :  { %v1939_v35 = vsub.f32 1.0, %v1938_v14  ;;  %v1920_v38 = vsel %vm6159_vm12, %v1919_v52, %v1915_v25  ;;  %v1930_v41 = vsel %vm6188_vm1, %v6143_v59, %v1926_v60  ;;  %v1953_v63 = vmul.f32 %v6182_v50, %v6141_v15  ;;  %v4303_v59 = vld [vmem:[#allocation5 + $0x80] sm:$0xf]  ;;  %v4936_v52 = vld [vmem:[#allocation5 + $0x94] sm:$0xf0]  ;;  %2265 = vmatpush.bf16.msrb.mxu3 %v4332_v17 }
 0x35d   :  { %v6202_v39 = vpop.eup %5214  ;;  %v1935_v36 = vsel %vm6166_vm15, %v1934_v27, %v1930_v41  ;;  %v2001_v0 = vmul.f32 %v5211_v40, %v1920_v38  ;;  %vm1958_vm6 = vweird.f32 %v6182_v50  ;;  %v4304_v14 = vor.u32 %v4935_v55, %v4303_v59  ;;  %v4929_v25 = vld [vmem:[#allocation5 + $0x64] sm:$0xf]  ;;  %v4279_v55 = vld [vmem:[#allocation5 + $0x48] sm:$0xf] }
 0x35e   :  { %v1999_v57 = vmul.f32 %v1935_v36, %v6039_v54  ;;  %v1954_v24 = vsub.f32 1.0, %v1953_v63  ;;  %v1968_v61 = vmul.f32 %v6202_v39, %v6155_v18  ;;  %v5217_v32 = vpop.eup %5216  ;;  %v1940_v3 = vmul.f32 %v6170_v16, %v1939_v35  ;;  %vm6235_vm9 = vmor %vm1957_vm2, %vm1958_vm6 }
 0x35f   :  { %vm1973_vm7 = vweird.f32 %v6202_v39  ;;  %v4308_v60 = vor.u32 %v4933_v42, %v4305_v21  ;;  %v4312_v41 = vor.u32 %v4936_v52, %v4311_v62  ;;  %v4316_v63 = vor.u32 %v4934_v56, %v4313_v13  ;;  %2224 = vmatpush.bf16.msrb.mxu0 %v4304_v14  ;;  %v4928_v42 = vld [vmem:[#allocation5 + $0x54] sm:$0xf0]  ;;  %v4921_v52 = vld [vmem:[#allocation5 + $0x24] sm:$0xf]  ;;  %v4257_v56 = vld [vmem:[#allocation5 + $0x30] sm:$0xf0] }
 0x360   :  { %v6219_v54 = vadd.f32 %v2001_v0, %v1999_v57  ;;  %v1969_v10 = vsub.f32 1.0, %v1968_v61  ;;  %v1955_v31 = vmul.f32 %v6182_v50, %v1954_v24  ;;  %v1941_v53 = vadd.f32 %v6170_v16, %v1940_v3  ;;  %vm1974_vm11 = vmor %vm1972_vm4, %vm1973_vm7  ;;  %v4927_v24 = vld [vmem:[#allocation5 + $0x4c] sm:$0xf0]  ;;  %v4925_v3 = vld [vmem:[#allocation5 + $0x44] sm:$0xf] }
 0x361   :  { %v6223_v23 = vpop.eup %5218  ;;  %vm1977_vm12 = vcmp.eq.f32.partialorder %v1976_v2, 8.507059e+37  ;;  %v4288_v0 = vor.u32 %v4931_v11, %v4287_v44  ;;  %v4292_v26 = vor.u32 %v4929_v25, %v4289_v30  ;;  %2238 = vmatpush.bf16.msrb.mxu1 %v4308_v60  ;;  %2252 = vmatpush.bf16.msrb.mxu2 %v4312_v41  ;;  %v4296_v2 = vor.u32 %v4932_v8, %v4295_v1  ;;  %v4263_v13 = vld [vmem:[#allocation5 + $0x28] sm:$0xf]  ;;  %v4239_v30 = vld [vmem:[#allocation5] sm:$0xf] }
 0x362   :  { %v1970_v27 = vmul.f32 %v6202_v39, %v1969_v10  ;;  %v1983_v7 = vmul.f32 %v6223_v23, %v6172_v20  ;;  %v1956_v40 = vadd.f32 %v6182_v50, %v1955_v31  ;;  %5220 = vtanh.f32 %v6219_v54  ;;  %2266 = vmatpush.bf16.msrb.mxu3 %v4316_v63  ;;  %v4917_v63 = vld [vmem:[#allocation5 + $0x4] sm:$0xf]  ;;  %v4241_v1 = vld [vmem:[#allocation5 + $0x10] sm:$0xf0]  ;;  %v4247_v8 = vld [vmem:[#allocation5 + $0x8] sm:$0xf] }
 0x363   :  { %v4300_v59 = vor.u32 %v4930_v48, %v4297_v58  ;;  %v1993_v10 = vand.u32 2147483648, %v6172_v20  ;;  %vm1988_vm14 = vweird.f32 %v6223_v23  ;;  %2225 = vmatpush.bf16.msrb.mxu0 %v4288_v0  ;;  %v4276_v47 = vor.u32 %v4925_v3, %v4273_v9 }
 0x364   :  { %v1984_v33 = vsub.f32 1.0, %v1983_v7  ;;  %v1971_v38 = vadd.f32 %v6202_v39, %v1970_v27  ;;  %v1960_v15 = vsel %vm6235_vm9, %v6182_v50, %v1956_v40  ;;  %v1949_v50 = vor.u32 1.1754944e-38, %v1948_v49  ;;  %v4281_v49 = vld [vmem:[#allocation5 + $0x58] sm:$0xf0]  ;;  %v4924_v27 = vld [vmem:[#allocation5 + $0x34] sm:$0xf0] }
 0x365   :  { %v1965_v29 = vsel %vm6215_vm5, %v1964_v12, %v1960_v15  ;;  %2239 = vmatpush.bf16.msrb.mxu1 %v4292_v26  ;;  %2253 = vmatpush.bf16.msrb.mxu2 %v4296_v2  ;;  %v4284_v17 = vor.u32 %v4926_v5, %v4281_v49  ;;  %vm1987_vm15 = vweird.f32 %v6172_v20  ;;  %v4922_v7 = vld [vmem:[#allocation5 + $0x2c] sm:$0xf]  ;;  %v4265_v12 = vld [vmem:[#allocation5 + $0x38] sm:$0xf0]  ;;  %v4256_v14 = vor.u32 %v4923_v4, %v4255_v19  ;;  %v6988_v2 = vld [vmem:[#allocation16_spill] sm:$0xff] }
 0x366   :  { %v1975_v36 = vsel %vm1974_vm11, %v6202_v39, %v1971_v38  ;;  %v1985_v45 = vmul.f32 %v6223_v23, %v1984_v33  ;;  %v2002_v57 = vmul.f32 %v5217_v32, %v1965_v29  ;;  %v4271_v39 = vld [vmem:[#allocation5 + $0x40] sm:$0xf]  ;;  %v1945_v32 = vsel %vm6262_vm13, %v6170_v16, %v1941_v53  ;;  %2267 = vmatpush.bf16.msrb.mxu3 %v4300_v59  ;;  %vm6283_vm0 = vmor %vm1987_vm15, %vm1988_vm14  ;;  %v4919_v33 = vld [vmem:[#allocation5 + $0xc] sm:$0xf0] }
 0x367   :  { %v1980_v46 = vsel %vm1977_vm12, %v1979_v34, %v1975_v36  ;;  %v1991_v34 = vand.u32 2147483647, %v6172_v20  ;;  %v4272_v62 = vor.u32 %v4927_v24, %v4271_v39  ;;  %v4280_v16 = vor.u32 %v4928_v42, %v4279_v55  ;;  %v4920_v53 = vld [vmem:[#allocation5 + $0x14] sm:$0xf0]  ;;  %v4249_v15 = vld [vmem:[#allocation5 + $0x18] sm:$0xf0] }
 0x368   :  { %v2000_v61 = vmul.f32 %v1980_v46, %v6095_v6  ;;  %v5221_v6 = vpop.eup %5220  ;;  %v1986_v21 = vadd.f32 %v6223_v23, %v1985_v45  ;;  %v1950_v60 = vsel %vm6243_vm10, %v1949_v50, %v1945_v32  ;;  %v1994_v11 = vor.u32 1.1754944e-38, %v1993_v10  ;;  %v6987_v24 = vld [vmem:[#allocation15_spill] sm:$0xff]  ;;  %v6989_v32 = vld [vmem:[#allocation17_spill] sm:$0xff]  ;;  %v4489_v40 = vld [vmem:[#allocation5 + $0xf0] sm:$0xf0] }
 0x369   :  { %vm6287_vm1 = vcmp.eq.f32.partialorder %v1991_v34, 8.507059e+37  ;;  %2226 = vmatpush.bf16.msrb.mxu0 %v4272_v62  ;;  %2240 = vmatpush.bf16.msrb.mxu1 %v4276_v47  ;;  %v4260_v25 = vor.u32 %v4921_v52, %v4257_v56  ;;  %v2007_v35 = vmul.f32 %v5221_v6, %v1950_v60  ;;  %v4264_v38 = vor.u32 %v4924_v27, %v4263_v13  ;;  %v6990_v10 = vld [vmem:[#allocation19_spill] sm:$0xff]  ;;  %v4487_v56 = vld [vmem:[#allocation5 + $0xe0] sm:$0xf]  ;;  %v4979_v13 = vld [vmem:[#allocation5 + $0xec] sm:$0xf0] }
 0x36a   :  { %v6275_v31 = vadd.f32 %v2002_v57, %v2000_v61  ;;  %v1990_v20 = vsel %vm6283_vm0, %v6223_v23, %v1986_v21  ;;  %2254 = vmatpush.bf16.msrb.mxu2 %v4280_v16  ;;  %2268 = vmatpush.bf16.msrb.mxu3 %v4284_v17  ;;  %v4268_v41 = vor.u32 %v4922_v7, %v4265_v12  ;;  %v6991_v21 = vld [vmem:[#allocation20_spill] sm:$0xff] }
 0x36b   :  { %v4240_v58 = vor.u32 %v4919_v33, %v4239_v30  ;;  %v1995_v23 = vsel %vm6287_vm1, %v1994_v11, %v1990_v20  ;;  %v4244_v29 = vor.u32 %v4917_v63, %v4241_v1  ;;  %v2009_v0 = vpack.c.bf16 %v2007_v35, %v2007_v35  ;;  %v4977_v27 = vld [vmem:[#allocation5 + $0xe4] sm:$0xf]  ;;  %v4980_v30 = vld [vmem:[#allocation5 + $0xf4] sm:$0xf0]  ;;  %v4497_v63 = vld [vmem:[#allocation5 + $0xf8] sm:$0xf0] }
 0x36c   :  { %5222 = vtanh.f32 %v6275_v31  ;;  %v4248_v26 = vor.u32 %v4920_v53, %v4247_v8  ;;  %v4252_v18 = vor.u32 %v4918_v22, %v4249_v15  ;;  %v179_v61 = vadd.f32 %v6987_v24, %v5600_v51  ;;  %v6992_v53 = vld [vmem:[#allocation21_spill] sm:$0xff]  ;;  %v4471_v15 = vld [vmem:[#allocation5 + $0xc0] sm:$0xf] }
 0x36d   :  { %2227 = vmatpush.bf16.msrb.mxu0 %v4256_v14  ;;  %2241 = vmatpush.bf16.msrb.mxu1 %v4260_v25  ;;  %v2057_v46 = vunpack.c.l.b16 %v2009_v0  ;;  %v228_v59 = vadd.f32 %v6988_v2, %v5602_v37  ;;  %v277_v34 = vadd.f32 %v6989_v32, %v5612_v43  ;;  %v181_v6 = vadd.f32 %v6990_v10, %v5600_v51  ;;  %v4495_v14 = vld [vmem:[#allocation5 + $0xe8] sm:$0xf]  ;;  %v4473_v0 = vld [vmem:[#allocation5 + $0xd0] sm:$0xf0]  ;;  %v4969_v32 = vld [vmem:[#allocation5 + $0xa4] sm:$0xf] }
 0x36e   :  { %2255 = vmatpush.bf16.msrb.mxu2 %v4264_v38  ;;  %2269 = vmatpush.bf16.msrb.mxu3 %v4268_v41  ;;  %v230_v62 = vadd.f32 %v6991_v21, %v5602_v37  ;;  %v4488_v44 = vor.u32 %v4979_v13, %v4487_v56  ;;  %v4492_v25 = vor.u32 %v4977_v27, %v4489_v40  ;;  %v4978_v41 = vld [vmem:[#allocation5 + $0xec] sm:$0xf] }
 0x36f   :  { %v4496_v38 = vor.u32 %v4980_v30, %v4495_v14  ;;  %v4500_v8 = vor.u32 %v4978_v41, %v4497_v63  ;;  %v279_v22 = vadd.f32 %v6992_v53, %v5612_v43 }
 0x371   :  { %2228 = vmatpush.bf16.msrb.mxu0 %v4240_v58  ;;  %2242 = vmatpush.bf16.msrb.mxu1 %v4244_v29  ;;  %v6993_v58 = vld [vmem:[#allocation18_spill] sm:$0xff] }
 0x372   :  { %v5223_v48 = vpop.eup %5222  ;;  %2256 = vmatpush.bf16.msrb.mxu2 %v4248_v26  ;;  %2270 = vmatpush.bf16.msrb.mxu3 %v4252_v18  ;;  %v4479_v18 = vld [vmem:[#allocation5 + $0xc8] sm:$0xf] }
 0x373   :  { %v2008_v36 = vmul.f32 %v5223_v48, %v1995_v23  ;;  %v4975_v48 = vld [vmem:[#allocation5 + $0xcc] sm:$0xf0]  ;;  %v326_v23 = vadd.f32 %v6993_v58, %v5616_v28 }
 0x375   :  { %v2010_v50 = vpack.c.bf16 %v2008_v36, %v2008_v36  ;;  %v5063_v45 = vpack.c.bf16 %v2008_v36, %v2007_v35  ;;  %2623 = vmatpush.bf16.msra.mxu0 %v4488_v44  ;;  %2637 = vmatpush.bf16.msra.mxu1 %v4492_v25  ;;  %v4973_v36 = vld [vmem:[#allocation5 + $0xc4] sm:$0xf] }
 0x376   :  { %2651 = vmatpush.bf16.msra.mxu2 %v4496_v38  ;;  %2665 = vmatpush.bf16.msra.mxu3 %v4500_v8  ;;  %v4476_v2 = vor.u32 %v4973_v36, %v4473_v0 }
 0x377   :  { %5087 = vst [vmem:[%s6878_s4 + $0x18] sm:$0xff] %v5063_v45   ;;  %v2058_v57 = vunpack.c.l.b16 %v2010_v50  ;;  %v4976_v50 = vld [vmem:[#allocation5 + $0xd4] sm:$0xf0] }
 0x379   :  { %v2059_v39 = vpack.c.b16 %v2058_v57, %v2057_v46  ;;  %v4472_v46 = vor.u32 %v4975_v48, %v4471_v15  ;;  %v4974_v57 = vld [vmem:[#allocation5 + $0xcc] sm:$0xf]  ;;  %2638 = vmatpush.bf16.msra.mxu1 %v4476_v2  ;;  %v4967_v2 = vld [vmem:[#allocation5 + $0x8c] sm:$0xf0] }
 0x37b   :  { %2229 = vmatmul.bf16.vlgmr.msrb.gmra.mxu0 %v2059_v39  ;;  %2243 = vmatmul.bf16.vlgmr.msrb.gmra.mxu1 %v2059_v39 }
 0x37c   :  { %2257 = vmatmul.bf16.vlgmr.msrb.gmra.mxu2 %v2059_v39  ;;  %2271 = vmatmul.bf16.vlgmr.msrb.gmra.mxu3 %v2059_v39  ;;  %v4481_v39 = vld [vmem:[#allocation5 + $0xd8] sm:$0xf0] }
 0x37d   :  { %2624 = vmatpush.bf16.msra.mxu0 %v4472_v46 }
 0x3f8   :  { %v2230_v3 = vpop.f32.mrf.mxu0  ;;  %v2244_v9 = vpop.f32.mrf.mxu1 }
 0x3f9   :  { %v2277_v55 = vadd.f32 %v2230_v3, %v179_v61  ;;  %v2278_v42 = vadd.f32 %v2244_v9, %v228_v59  ;;  %v4480_v59 = vor.u32 %v4976_v50, %v4479_v18  ;;  %v4484_v3 = vor.u32 %v4974_v57, %v4481_v39  ;;  %v4455_v9 = vld [vmem:[#allocation5 + $0xa0] sm:$0xf]  ;;  %v4970_v39 = vld [vmem:[#allocation5 + $0xac] sm:$0xf] }
 0x3fb   :  { %v4365_v5 = vmul.f32 -1.442695, %v2277_v55  ;;  %v4366_v49 = vmul.f32 -1.442695, %v2278_v42  ;;  %v4971_v55 = vld [vmem:[#allocation5 + $0xac] sm:$0xf0]  ;;  %2652 = vmatpush.bf16.msra.mxu2 %v4480_v59  ;;  %2666 = vmatpush.bf16.msra.mxu3 %v4484_v3 }
 0x3fc   :  { %v4965_v59 = vld [vmem:[#allocation5 + $0x84] sm:$0xf]  ;;  %v4441_v3 = vld [vmem:[#allocation5 + $0x90] sm:$0xf0] }
 0x3fd   :  { %5224 = vpow2.f32 %v4365_v5 }
 0x3fe   :  { %5226 = vpow2.f32 %v4366_v49  ;;  %v4456_v49 = vor.u32 %v4971_v55, %v4455_v9 }
 0x3ff   :  { %v2258_v47 = vpop.f32.mrf.mxu2  ;;  %v2272_v12 = vpop.f32.mrf.mxu3 }
 0x400   :  { %v2279_v19 = vadd.f32 %v2258_v47, %v277_v34  ;;  %v2232_v4 = vpop.f32.mrf.mxu0  ;;  %v2246_v16 = vpop.f32.mrf.mxu1  ;;  %v2280_v45 = vadd.f32 %v2272_v12, %v326_v23  ;;  %v4457_v34 = vld [vmem:[#allocation5 + $0xb0] sm:$0xf0]  ;;  %2625 = vmatpush.bf16.msra.mxu0 %v4456_v49 }
 0x401   :  { %v2281_v17 = vadd.f32 %v2232_v4, %v181_v6  ;;  %v2282_v52 = vadd.f32 %v2246_v16, %v230_v62  ;;  %v4460_v47 = vor.u32 %v4969_v32, %v4457_v34  ;;  %v6994_v4 = vld [vmem:[#allocation22_spill] sm:$0xff]  ;;  %v4447_v32 = vld [vmem:[#allocation5 + $0x88] sm:$0xf]  ;;  %v4968_v34 = vld [vmem:[#allocation5 + $0x94] sm:$0xf0] }
 0x402   :  { %v4367_v7 = vmul.f32 -1.442695, %v2279_v19  ;;  %v328_v16 = vadd.f32 %v6994_v4, %v5616_v28 }
 0x403   :  { %v5225_v60 = vpop.eup %5224  ;;  %v4368_v20 = vmul.f32 -1.442695, %v2281_v17  ;;  %v4369_v11 = vmul.f32 -1.442695, %v2282_v52  ;;  %2639 = vmatpush.bf16.msra.mxu1 %v4460_v47 }
 0x404   :  { %v5227_v33 = vpop.eup %5226  ;;  %v6311_v35 = vadd.f32 1.0, %v5225_v60  ;;  %5228 = vpow2.f32 %v4367_v7 }
 0x405   :  { %v6313_v1 = vadd.f32 1.0, %v5227_v33  ;;  %5230 = vpow2.f32 %v4368_v20  ;;  %v4463_v20 = vld [vmem:[#allocation5 + $0xa8] sm:$0xf] }
 0x406   :  { %5232 = vrcp.f32 %v6311_v35  ;;  %v2318_v6 = vand.u32 2147483647, %v6311_v35  ;;  %v2320_v52 = vand.u32 2147483648, %v6311_v35  ;;  %vm2314_vm3 = vweird.f32 %v6311_v35 }
 0x407   :  { %5234 = vrcp.f32 %v6313_v1  ;;  %v2260_v29 = vpop.f32.mrf.mxu2  ;;  %v2274_v62 = vpop.f32.mrf.mxu3  ;;  %v2335_v27 = vand.u32 2147483648, %v6313_v1  ;;  %v2333_v7 = vand.u32 2147483647, %v6313_v1  ;;  %vm2329_vm2 = vweird.f32 %v6313_v1 }
 0x408   :  { %5236 = vpow2.f32 %v4369_v11  ;;  %v2283_v26 = vadd.f32 %v2260_v29, %v279_v22  ;;  %v2284_v40 = vadd.f32 %v2274_v62, %v328_v16  ;;  %vm6342_vm4 = vcmp.eq.f32.partialorder %v2318_v6, 8.507059e+37  ;;  %v4972_v11 = vld [vmem:[#allocation5 + $0xb4] sm:$0xf0] }
 0x409   :  { %v2321_v30 = vor.u32 1.1754944e-38, %v2320_v52  ;;  %v2336_v41 = vor.u32 1.1754944e-38, %v2335_v27  ;;  %vm6349_vm7 = vcmp.eq.f32.partialorder %v2333_v7, 8.507059e+37  ;;  %v4464_v15 = vor.u32 %v4972_v11, %v4463_v20  ;;  %v4955_v52 = vld [vmem:[#allocation5 + $0x2c] sm:$0xf0] }
 0x40a   :  { %v5229_v24 = vpop.eup %5228  ;;  %v4370_v61 = vmul.f32 -1.442695, %v2283_v26  ;;  %v4444_v11 = vor.u32 %v4965_v59, %v4441_v3  ;;  %v4433_v26 = vld [vmem:[#allocation5 + $0x78] sm:$0xf0]  ;;  %v4415_v59 = vld [vmem:[#allocation5 + $0x48] sm:$0xf] }
 0x40b   :  { %v5231_v42 = vpop.eup %5230  ;;  %v6321_v5 = vadd.f32 1.0, %v5229_v24  ;;  %2653 = vmatpush.bf16.msra.mxu2 %v4464_v15  ;;  %v4465_v24 = vld [vmem:[#allocation5 + $0xb8] sm:$0xf0]  ;;  %v4962_v15 = vld [vmem:[#allocation5 + $0x6c] sm:$0xf] }
 0x40c   :  { %v5233_v10 = vpop.eup %5232  ;;  %v6324_v21 = vadd.f32 1.0, %v5231_v42  ;;  %5238 = vpow2.f32 %v4370_v61  ;;  %v4439_v61 = vld [vmem:[#allocation5 + $0x80] sm:$0xf]  ;;  %v4468_v60 = vor.u32 %v4970_v39, %v4465_v24  ;;  %2640 = vmatpush.bf16.msra.mxu1 %v4444_v11  ;;  %v4957_v39 = vld [vmem:[#allocation5 + $0x44] sm:$0xf] }
 0x40d   :  { %v6326_v19 = vpop.eup %5234  ;;  %v2310_v17 = vmul.f32 %v5233_v10, %v6311_v35  ;;  %5240 = vrcp.f32 %v6321_v5  ;;  %vm2315_vm5 = vweird.f32 %v5233_v10  ;;  %v2348_v23 = vand.u32 2147483647, %v6321_v5  ;;  %v4409_v24 = vld [vmem:[#allocation5 + $0x50] sm:$0xf0]  ;;  %v4960_v3 = vld [vmem:[#allocation5 + $0x54] sm:$0xf0] }
 0x40e   :  { %v5237_v56 = vpop.eup %5236  ;;  %v2325_v13 = vmul.f32 %v6326_v19, %v6313_v1  ;;  %5242 = vtanh.f32 %v2280_v45  ;;  %vm2330_vm6 = vweird.f32 %v6326_v19  ;;  %v2350_v29 = vand.u32 2147483648, %v6321_v5  ;;  %vm2316_vm8 = vmor %vm2314_vm3, %vm2315_vm5  ;;  %2667 = vmatpush.bf16.msra.mxu3 %v4468_v60  ;;  %v4401_v11 = vld [vmem:[#allocation5 + $0x38] sm:$0xf0] }
 0x40f   :  { %v2311_v12 = vsub.f32 1.0, %v2310_v17  ;;  %5244 = vrcp.f32 %v6324_v21  ;;  %v6338_v44 = vadd.f32 1.0, %v5237_v56  ;;  %vm6371_vm9 = vmor %vm2329_vm2, %vm2330_vm6  ;;  %v2363_v35 = vand.u32 2147483647, %v6324_v21  ;;  %v4449_v56 = vld [vmem:[#allocation5 + $0x98] sm:$0xf0] }
 0x410   :  { %v2326_v14 = vsub.f32 1.0, %v2325_v13  ;;  %vm2359_vm10 = vweird.f32 %v6324_v21  ;;  %v2365_v49 = vand.u32 2147483648, %v6324_v21  ;;  %vm2344_vm11 = vweird.f32 %v6321_v5  ;;  %v4423_v13 = vld [vmem:[#allocation5 + $0x60] sm:$0xf] }
 0x411   :  { %v2312_v25 = vmul.f32 %v5233_v10, %v2311_v12  ;;  %5246 = vrcp.f32 %v6338_v44  ;;  %v2380_v50 = vand.u32 2147483648, %v6338_v44  ;;  %v2378_v47 = vand.u32 2147483647, %v6338_v44  ;;  %v4963_v12 = vld [vmem:[#allocation5 + $0x6c] sm:$0xf0] }
 0x412   :  { %v5239_v33 = vpop.eup %5238  ;;  %v2327_v38 = vmul.f32 %v6326_v19, %v2326_v14  ;;  %5248 = vtanh.f32 %v2284_v40  ;;  %vm2374_vm12 = vweird.f32 %v6338_v44  ;;  %vm6398_vm13 = vcmp.eq.f32.partialorder %v2363_v35, 8.507059e+37  ;;  %v4961_v40 = vld [vmem:[#allocation5 + $0x64] sm:$0xf] }
 0x413   :  { %v6353_v8 = vpop.eup %5240  ;;  %v2313_v53 = vadd.f32 %v5233_v10, %v2312_v25  ;;  %v6355_v22 = vadd.f32 1.0, %v5239_v33  ;;  %v2381_v17 = vor.u32 1.1754944e-38, %v2380_v50  ;;  %v4440_v20 = vor.u32 %v4967_v2, %v4439_v61  ;;  %v4431_v33 = vld [vmem:[#allocation5 + $0x68] sm:$0xf]  ;;  %v4959_v50 = vld [vmem:[#allocation5 + $0x4c] sm:$0xf0] }
 0x414   :  { %v5243_v48 = vpop.eup %5242  ;;  %v2340_v58 = vmul.f32 %v6353_v8, %v6321_v5  ;;  %v2328_v36 = vadd.f32 %v6326_v19, %v2327_v38  ;;  %v4448_v25 = vor.u32 %v4968_v34, %v4447_v32  ;;  %v4964_v38 = vld [vmem:[#allocation5 + $0x74] sm:$0xf0]  ;;  %vm2345_vm0 = vweird.f32 %v6353_v8  ;;  %v4399_v5 = vld [vmem:[#allocation5 + $0x28] sm:$0xf] }
 0x415   :  { %v6365_v0 = vpop.eup %5244  ;;  %v2317_v18 = vsel %vm2316_vm8, %v5233_v10, %v2313_v53  ;;  %5250 = vrcp.f32 %v6355_v22  ;;  %v2366_v53 = vor.u32 1.1754944e-38, %v2365_v49  ;;  %2626 = vmatpush.bf16.msra.mxu0 %v4440_v20  ;;  %vm6426_vm2 = vcmp.eq.f32.partialorder %v2348_v23, 8.507059e+37  ;;  %vm6445_vm5 = vmor %vm2344_vm11, %vm2345_vm0  ;;  %v4954_v20 = vld [vmem:[#allocation5 + $0x2c] sm:$0xf] }
 0x416   :  { %v2341_v45 = vsub.f32 1.0, %v2340_v58  ;;  %v2322_v46 = vsel %vm6342_vm4, %v2321_v30, %v2317_v18  ;;  %v2332_v1 = vsel %vm6371_vm9, %v6326_v19, %v2328_v36  ;;  %v2355_v57 = vmul.f32 %v6365_v0, %v6324_v21  ;;  %v4966_v19 = vld [vmem:[#allocation5 + $0x8c] sm:$0xf]  ;;  %v4425_v30 = vld [vmem:[#allocation5 + $0x70] sm:$0xf0]  ;;  %2654 = vmatpush.bf16.msra.mxu2 %v4448_v25 }
 0x417   :  { %v6385_v9 = vpop.eup %5246  ;;  %v2337_v55 = vsel %vm6349_vm7, %v2336_v41, %v2332_v1  ;;  %v2403_v42 = vmul.f32 %v5243_v48, %v2322_v46  ;;  %vm2360_vm14 = vweird.f32 %v6365_v0  ;;  %v4452_v58 = vor.u32 %v4966_v19, %v4449_v56  ;;  %v4407_v18 = vld [vmem:[#allocation5 + $0x40] sm:$0xf]  ;;  %v4953_v56 = vld [vmem:[#allocation5 + $0x24] sm:$0xf] }
 0x418   :  { %v2401_v10 = vmul.f32 %v2337_v55, %v6219_v54  ;;  %v2356_v6 = vsub.f32 1.0, %v2355_v57  ;;  %v2370_v62 = vmul.f32 %v6385_v9, %v6338_v44  ;;  %v5249_v4 = vpop.eup %5248  ;;  %v2342_v16 = vmul.f32 %v6353_v8, %v2341_v45  ;;  %vm6418_vm1 = vmor %vm2359_vm10, %vm2360_vm14  ;;  %v4950_v45 = vld [vmem:[#allocation5 + $0xc] sm:$0xf] }
 0x419   :  { %vm2375_vm15 = vweird.f32 %v6385_v9  ;;  %v4424_v36 = vor.u32 %v4963_v12, %v4423_v13  ;;  %v4428_v1 = vor.u32 %v4961_v40, %v4425_v30  ;;  %v4432_v57 = vor.u32 %v4964_v38, %v4431_v33  ;;  %2668 = vmatpush.bf16.msra.mxu3 %v4452_v58  ;;  %v4393_v13 = vld [vmem:[#allocation5 + $0x30] sm:$0xf0]  ;;  %v4375_v30 = vld [vmem:[#allocation5] sm:$0xf]  ;;  %v4951_v33 = vld [vmem:[#allocation5 + $0xc] sm:$0xf0] }
 0x41a   :  { %v6402_v54 = vadd.f32 %v2403_v42, %v2401_v10  ;;  %v2371_v27 = vsub.f32 1.0, %v2370_v62  ;;  %v2357_v7 = vmul.f32 %v6365_v0, %v2356_v6  ;;  %v2343_v61 = vadd.f32 %v6353_v8, %v2342_v16  ;;  %vm2376_vm3 = vmor %vm2374_vm12, %vm2375_vm15  ;;  %v4417_v6 = vld [vmem:[#allocation5 + $0x58] sm:$0xf0]  ;;  %v4391_v16 = vld [vmem:[#allocation5 + $0x20] sm:$0xf] }
 0x41b   :  { %v6406_v14 = vpop.eup %5250  ;;  %vm2379_vm4 = vcmp.eq.f32.partialorder %v2378_v47, 8.507059e+37  ;;  %v4436_v42 = vor.u32 %v4962_v15, %v4433_v26  ;;  %v4408_v49 = vor.u32 %v4959_v50, %v4407_v18  ;;  %2627 = vmatpush.bf16.msra.mxu0 %v4424_v36  ;;  %2641 = vmatpush.bf16.msra.mxu1 %v4428_v1  ;;  %v4412_v47 = vor.u32 %v4957_v39, %v4409_v24  ;;  %v4949_v38 = vld [vmem:[#allocation5 + $0x4] sm:$0xf]  ;;  %v5007_v15 = vld [vmem:[#allocation5 + $0xcc] sm:$0xf0] }
 0x41c   :  { %v2372_v41 = vmul.f32 %v6385_v9, %v2371_v27  ;;  %v2385_v63 = vmul.f32 %v6406_v14, %v6355_v22  ;;  %v2358_v48 = vadd.f32 %v6365_v0, %v2357_v7  ;;  %5252 = vtanh.f32 %v6402_v54  ;;  %2655 = vmatpush.bf16.msra.mxu2 %v4432_v57 }
 0x41d   :  { %v4416_v19 = vor.u32 %v4960_v3, %v4415_v59  ;;  %v2395_v27 = vand.u32 2147483648, %v6355_v22  ;;  %vm2390_vm6 = vweird.f32 %v6406_v14  ;;  %2669 = vmatpush.bf16.msra.mxu3 %v4436_v42  ;;  %v4392_v60 = vor.u32 %v4955_v52, %v4391_v16  ;;  %v7012_v42 = vld [vmem:[#allocation24_spill] sm:$0xff]  ;;  %v7014_v52 = vld [vmem:[#allocation27_spill] sm:$0xff] }
 0x41e   :  { %v2386_v35 = vsub.f32 1.0, %v2385_v63  ;;  %v2373_v46 = vadd.f32 %v6385_v9, %v2372_v41  ;;  %v2362_v21 = vsel %vm6418_vm1, %v6365_v0, %v2358_v48  ;;  %v2351_v0 = vor.u32 1.1754944e-38, %v2350_v29  ;;  %v4956_v29 = vld [vmem:[#allocation5 + $0x34] sm:$0xf0]  ;;  %v4377_v41 = vld [vmem:[#allocation5 + $0x10] sm:$0xf0] }
 0x41f   :  { %v2367_v23 = vsel %vm6398_vm13, %v2366_v53, %v2362_v21  ;;  %2628 = vmatpush.bf16.msra.mxu0 %v4408_v49  ;;  %2642 = vmatpush.bf16.msra.mxu1 %v4412_v47  ;;  %v4400_v25 = vor.u32 %v4956_v29, %v4399_v5  ;;  %vm2389_vm7 = vweird.f32 %v6355_v22  ;;  %v4383_v63 = vld [vmem:[#allocation5 + $0x8] sm:$0xf]  ;;  %v4952_v53 = vld [vmem:[#allocation5 + $0x14] sm:$0xf0]  ;;  %v4404_v48 = vor.u32 %v4954_v20, %v4401_v11  ;;  %v4623_v47 = vld [vmem:[#allocation5 + $0xe0] sm:$0xf] }
 0x420   :  { %v2377_v55 = vsel %vm2376_vm3, %v6385_v9, %v2373_v46  ;;  %v2387_v32 = vmul.f32 %v6406_v14, %v2386_v35  ;;  %v2404_v10 = vmul.f32 %v5249_v4, %v2367_v23  ;;  %v4958_v9 = vld [vmem:[#allocation5 + $0x4c] sm:$0xf]  ;;  %v2347_v4 = vsel %vm6445_vm5, %v6353_v8, %v2343_v61  ;;  %2656 = vmatpush.bf16.msra.mxu2 %v4416_v19  ;;  %vm6466_vm8 = vmor %vm2389_vm7, %vm2390_vm6  ;;  %v4385_v46 = vld [vmem:[#allocation5 + $0x18] sm:$0xf0] }
 0x421   :  { %v2382_v34 = vsel %vm2379_vm4, %v2381_v17, %v2377_v55  ;;  %v2393_v17 = vand.u32 2147483647, %v6355_v22  ;;  %v4420_v40 = vor.u32 %v4958_v9, %v4417_v6  ;;  %v4396_v8 = vor.u32 %v4953_v56, %v4393_v13  ;;  %v7011_v23 = vld [vmem:[#allocation23_spill] sm:$0xff]  ;;  %v7013_v6 = vld [vmem:[#allocation25_spill] sm:$0xff]  ;;  %v5011_v19 = vld [vmem:[#allocation5 + $0xec] sm:$0xf0] }
 0x422   :  { %v2402_v62 = vmul.f32 %v2382_v34, %v6275_v31  ;;  %v5253_v31 = vpop.eup %5252  ;;  %v2388_v12 = vadd.f32 %v6406_v14, %v2387_v32  ;;  %v2352_v58 = vsel %vm6426_vm2, %v2351_v0, %v2347_v4  ;;  %v4376_v22 = vor.u32 %v4951_v33, %v4375_v30  ;;  %v5009_v16 = vld [vmem:[#allocation5 + $0xe4] sm:$0xf] }
 0x423   :  { %2670 = vmatpush.bf16.msra.mxu3 %v4420_v40  ;;  %2629 = vmatpush.bf16.msra.mxu0 %v4392_v60  ;;  %v2409_v26 = vmul.f32 %v5253_v31, %v2352_v58  ;;  %v2396_v18 = vor.u32 1.1754944e-38, %v2395_v27  ;;  %v4380_v50 = vor.u32 %v4949_v38, %v4377_v41  ;;  %v4384_v35 = vor.u32 %v4952_v53, %v4383_v63  ;;  %v7015_v13 = vld [vmem:[#allocation28_spill] sm:$0xff]  ;;  %v4631_v27 = vld [vmem:[#allocation5 + $0xe8] sm:$0xf]  ;;  %v5012_v31 = vld [vmem:[#allocation5 + $0xf4] sm:$0xf0] }
 0x424   :  { %v6458_v7 = vadd.f32 %v2404_v10, %v2402_v62  ;;  %v2392_v36 = vsel %vm6466_vm8, %v6406_v14, %v2388_v12  ;;  %2643 = vmatpush.bf16.msra.mxu1 %v4396_v8  ;;  %2657 = vmatpush.bf16.msra.mxu2 %v4400_v25  ;;  %vm2394_vm9 = vcmp.eq.f32.partialorder %v2393_v17, 8.507059e+37  ;;  %v4388_v39 = vor.u32 %v4950_v45, %v4385_v46  ;;  %v4625_v17 = vld [vmem:[#allocation5 + $0xf0] sm:$0xf0]  ;;  %v5010_v8 = vld [vmem:[#allocation5 + $0xec] sm:$0xf] }
 0x425   :  { %v2397_v57 = vsel %vm2394_vm9, %v2396_v18, %v2392_v36  ;;  %v2411_v61 = vpack.c.bf16 %v2409_v26, %v2409_v26  ;;  %v184_v55 = vadd.f32 %v7011_v23, %v5600_v51  ;;  %v233_v49 = vadd.f32 %v7012_v42, %v5602_v37  ;;  %v4633_v25 = vld [vmem:[#allocation5 + $0xf8] sm:$0xf0]  ;;  %v4607_v53 = vld [vmem:[#allocation5 + $0xc0] sm:$0xf]  ;;  %v5001_v42 = vld [vmem:[#allocation5 + $0xa4] sm:$0xf] }
 0x426   :  { %5254 = vtanh.f32 %v6458_v7  ;;  %v282_v62 = vadd.f32 %v7013_v6, %v5612_v43  ;;  %v186_v56 = vadd.f32 %v7014_v52, %v5600_v51  ;;  %v235_v5 = vadd.f32 %v7015_v13, %v5602_v37  ;;  %v4601_v13 = vld [vmem:[#allocation5 + $0xb8] sm:$0xf0] }
 0x427   :  { %2671 = vmatpush.bf16.msra.mxu3 %v4404_v48  ;;  %2630 = vmatpush.bf16.msra.mxu0 %v4376_v22  ;;  %v2459_v21 = vunpack.c.l.b16 %v2411_v61  ;;  %v4624_v4 = vor.u32 %v5011_v19, %v4623_v47  ;;  %v4628_v20 = vor.u32 %v5009_v16, %v4625_v17  ;;  %v4632_v11 = vor.u32 %v5012_v31, %v4631_v27  ;;  %v5005_v22 = vld [vmem:[#allocation5 + $0xc4] sm:$0xf]  ;;  %v7017_v61 = vld [vmem:[#allocation26_spill] sm:$0xff]  ;;  %v5004_v47 = vld [vmem:[#allocation5 + $0xb4] sm:$0xf0] }
 0x428   :  { %2644 = vmatpush.bf16.msra.mxu1 %v4380_v50  ;;  %2658 = vmatpush.bf16.msra.mxu2 %v4384_v35  ;;  %v4636_v38 = vor.u32 %v5010_v8, %v4633_v25  ;;  %v4608_v36 = vor.u32 %v5007_v15, %v4607_v53  ;;  %v4609_v35 = vld [vmem:[#allocation5 + $0xd0] sm:$0xf0]  ;;  %v5002_v19 = vld [vmem:[#allocation5 + $0xac] sm:$0xf]  ;;  %v4575_v15 = vld [vmem:[#allocation5 + $0x80] sm:$0xf] }
 0x429   :  { %v4612_v46 = vor.u32 %v5005_v22, %v4609_v35  ;;  %v4604_v27 = vor.u32 %v5002_v19, %v4601_v13  ;;  %v4995_v13 = vld [vmem:[#allocation5 + $0x6c] sm:$0xf0] }
 0x42b   :  { %2672 = vmatpush.bf16.msra.mxu3 %v4388_v39  ;;  %3025 = vmatpush.bf16.msrb.mxu0 %v4624_v4  ;;  %v4615_v39 = vld [vmem:[#allocation5 + $0xc8] sm:$0xf] }
 0x42c   :  { %v5255_v1 = vpop.eup %5254  ;;  %3039 = vmatpush.bf16.msrb.mxu1 %v4628_v20  ;;  %3053 = vmatpush.bf16.msrb.mxu2 %v4632_v11 }
 0x42d   :  { %v2410_v24 = vmul.f32 %v5255_v1, %v2397_v57  ;;  %v7016_v1 = vld [vmem:[#allocation29_spill] sm:$0xff] }
 0x42e   :  { %v284_v57 = vadd.f32 %v7016_v1, %v5612_v43 }
 0x42f   :  { %v2412_v14 = vpack.c.bf16 %v2410_v24, %v2410_v24  ;;  %v5068_v2 = vpack.c.bf16 %v2410_v24, %v2409_v26  ;;  %3067 = vmatpush.bf16.msrb.mxu3 %v4636_v38  ;;  %3026 = vmatpush.bf16.msrb.mxu0 %v4608_v36  ;;  %v5008_v24 = vld [vmem:[#allocation5 + $0xd4] sm:$0xf0] }
 0x430   :  { %3040 = vmatpush.bf16.msrb.mxu1 %v4612_v46 }
 0x431   :  { %5088 = vst [vmem:[%s6878_s4 + $0x20] sm:$0xff] %v5068_v2   ;;  %v2460_v59 = vunpack.c.l.b16 %v2412_v14  ;;  %v331_v14 = vadd.f32 %v7017_v61, %v5616_v28 }
 0x433   :  { %v2461_v3 = vpack.c.b16 %v2460_v59, %v2459_v21  ;;  %v5006_v21 = vld [vmem:[#allocation5 + $0xcc] sm:$0xf]  ;;  %v4617_v59 = vld [vmem:[#allocation5 + $0xd8] sm:$0xf0] }
 0x435   :  { %2631 = vmatmul.bf16.vlgmr.msra.gmra.mxu0 %v2461_v3  ;;  %2645 = vmatmul.bf16.vlgmr.msra.gmra.mxu1 %v2461_v3 }
 0x436   :  { %2659 = vmatmul.bf16.vlgmr.msra.gmra.mxu2 %v2461_v3  ;;  %2673 = vmatmul.bf16.vlgmr.msra.gmra.mxu3 %v2461_v3  ;;  %v4591_v3 = vld [vmem:[#allocation5 + $0xa0] sm:$0xf] }
 0x4b2   :  { %v2632_v44 = vpop.f32.mrf.mxu0  ;;  %v2646_v0 = vpop.f32.mrf.mxu1 }
 0x4b3   :  { %v2679_v32 = vadd.f32 %v2632_v44, %v184_v55  ;;  %v2680_v34 = vadd.f32 %v2646_v0, %v233_v49  ;;  %v5003_v55 = vld [vmem:[#allocation5 + $0xac] sm:$0xf0]  ;;  %v4616_v44 = vor.u32 %v5008_v24, %v4615_v39  ;;  %v4593_v0 = vld [vmem:[#allocation5 + $0xb0] sm:$0xf0] }
 0x4b4   :  { %v4592_v6 = vor.u32 %v5003_v55, %v4591_v3  ;;  %v4545_v3 = vld [vmem:[#allocation5 + $0x50] sm:$0xf0] }
 0x4b5   :  { %v4501_v10 = vmul.f32 -1.442695, %v2679_v32  ;;  %v4502_v9 = vmul.f32 -1.442695, %v2680_v34  ;;  %v4599_v32 = vld [vmem:[#allocation5 + $0xa8] sm:$0xf]  ;;  %3054 = vmatpush.bf16.msrb.mxu2 %v4616_v44 }
 0x4b6   :  { %3027 = vmatpush.bf16.msrb.mxu0 %v4592_v6  ;;  %v4585_v6 = vld [vmem:[#allocation5 + $0x98] sm:$0xf0] }
 0x4b7   :  { %5256 = vpow2.f32 %v4501_v10 }
 0x4b8   :  { %5258 = vpow2.f32 %v4502_v9  ;;  %v4620_v9 = vor.u32 %v5006_v21, %v4617_v59 }
 0x4b9   :  { %v2660_v29 = vpop.f32.mrf.mxu2  ;;  %v2674_v63 = vpop.f32.mrf.mxu3 }
 0x4ba   :  { %v2681_v12 = vadd.f32 %v2660_v29, %v282_v62  ;;  %v2634_v40 = vpop.f32.mrf.mxu0  ;;  %v2648_v60 = vpop.f32.mrf.mxu1  ;;  %v2682_v49 = vadd.f32 %v2674_v63, %v331_v14  ;;  %v4596_v62 = vor.u32 %v5001_v42, %v4593_v0  ;;  %3068 = vmatpush.bf16.msrb.mxu3 %v4620_v9  ;;  %v4997_v0 = vld [vmem:[#allocation5 + $0x84] sm:$0xf]  ;;  %v4998_v9 = vld [vmem:[#allocation5 + $0x8c] sm:$0xf] }
 0x4bb   :  { %v2683_v30 = vadd.f32 %v2634_v40, %v186_v56  ;;  %v2684_v33 = vadd.f32 %v2648_v60, %v235_v5  ;;  %v4600_v56 = vor.u32 %v5004_v47, %v4599_v32  ;;  %v4577_v32 = vld [vmem:[#allocation5 + $0x90] sm:$0xf0] }
 0x4bc   :  { %v4503_v41 = vmul.f32 -1.442695, %v2681_v12  ;;  %v7018_v12 = vld [vmem:[#allocation30_spill] sm:$0xff]  ;;  %3041 = vmatpush.bf16.msrb.mxu1 %v4596_v62  ;;  %v4580_v53 = vor.u32 %v4997_v0, %v4577_v32  ;;  %v4990_v0 = vld [vmem:[#allocation5 + $0x4c] sm:$0xf] }
 0x4bd   :  { %v5257_v48 = vpop.eup %5256  ;;  %v4504_v58 = vmul.f32 -1.442695, %v2683_v30  ;;  %v4505_v50 = vmul.f32 -1.442695, %v2684_v33  ;;  %v333_v40 = vadd.f32 %v7018_v12, %v5616_v28  ;;  %3055 = vmatpush.bf16.msrb.mxu2 %v4600_v56  ;;  %v4559_v56 = vld [vmem:[#allocation5 + $0x60] sm:$0xf] }
 0x4be   :  { %v5259_v26 = vpop.eup %5258  ;;  %v6488_v18 = vadd.f32 1.0, %v5257_v48  ;;  %5260 = vpow2.f32 %v4503_v41  ;;  %3069 = vmatpush.bf16.msrb.mxu3 %v4604_v27  ;;  %v4999_v48 = vld [vmem:[#allocation5 + $0x8c] sm:$0xf0]  ;;  %v4553_v32 = vld [vmem:[#allocation5 + $0x58] sm:$0xf0] }
 0x4bf   :  { %v6490_v45 = vadd.f32 1.0, %v5259_v26  ;;  %5262 = vpow2.f32 %v4504_v58  ;;  %v4576_v39 = vor.u32 %v4999_v48, %v4575_v15  ;;  %v4588_v48 = vor.u32 %v4998_v9, %v4585_v6  ;;  %v4987_v9 = vld [vmem:[#allocation5 + $0x2c] sm:$0xf0] }
 0x4c0   :  { %5264 = vrcp.f32 %v6488_v18  ;;  %v2720_v29 = vand.u32 2147483647, %v6488_v18  ;;  %v2722_v20 = vand.u32 2147483648, %v6488_v18  ;;  %vm2716_vm11 = vweird.f32 %v6488_v18  ;;  %3042 = vmatpush.bf16.msrb.mxu1 %v4580_v53 }
 0x4c1   :  { %5266 = vrcp.f32 %v6490_v45  ;;  %v2662_v2 = vpop.f32.mrf.mxu2  ;;  %v2676_v17 = vpop.f32.mrf.mxu3  ;;  %v2737_v25 = vand.u32 2147483648, %v6490_v45  ;;  %v2735_v30 = vand.u32 2147483647, %v6490_v45  ;;  %vm2731_vm10 = vweird.f32 %v6490_v45  ;;  %3028 = vmatpush.bf16.msrb.mxu0 %v4576_v39  ;;  %v4989_v39 = vld [vmem:[#allocation5 + $0x44] sm:$0xf] }
 0x4c2   :  { %5268 = vpow2.f32 %v4505_v50  ;;  %v2685_v23 = vadd.f32 %v2662_v2, %v284_v57  ;;  %v2686_v41 = vadd.f32 %v2676_v17, %v333_v40  ;;  %vm6519_vm12 = vcmp.eq.f32.partialorder %v2720_v29, 8.507059e+37  ;;  %3070 = vmatpush.bf16.msrb.mxu3 %v4588_v48  ;;  %v4513_v48 = vld [vmem:[#allocation5 + $0x10] sm:$0xf0] }
 0x4c3   :  { %v2723_v36 = vor.u32 1.1754944e-38, %v2722_v20  ;;  %v2738_v50 = vor.u32 1.1754944e-38, %v2737_v25  ;;  %vm6526_vm15 = vcmp.eq.f32.partialorder %v2735_v30, 8.507059e+37  ;;  %v4986_v20 = vld [vmem:[#allocation5 + $0x2c] sm:$0xf] }
 0x4c4   :  { %v5261_v34 = vpop.eup %5260  ;;  %v4506_v10 = vmul.f32 -1.442695, %v2685_v23 }
 0x4c5   :  { %v5263_v16 = vpop.eup %5262  ;;  %v6498_v52 = vadd.f32 1.0, %v5261_v34  ;;  %v4583_v34 = vld [vmem:[#allocation5 + $0x88] sm:$0xf] }
 0x4c6   :  { %v5265_v5 = vpop.eup %5264  ;;  %v6501_v4 = vadd.f32 1.0, %v5263_v16  ;;  %5270 = vpow2.f32 %v4506_v10  ;;  %v5000_v10 = vld [vmem:[#allocation5 + $0x94] sm:$0xf0] }
 0x4c7   :  { %v6503_v31 = vpop.eup %5266  ;;  %v2712_v60 = vmul.f32 %v5265_v5, %v6488_v18  ;;  %5272 = vrcp.f32 %v6498_v52  ;;  %vm2717_vm13 = vweird.f32 %v5265_v5  ;;  %v2750_v14 = vand.u32 2147483647, %v6498_v52 }
 0x4c8   :  { %v5269_v11 = vpop.eup %5268  ;;  %v2727_v8 = vmul.f32 %v6503_v31, %v6490_v45  ;;  %5274 = vtanh.f32 %v2682_v49  ;;  %vm2732_vm14 = vweird.f32 %v6503_v31  ;;  %v2752_v2 = vand.u32 2147483648, %v6498_v52  ;;  %vm2718_vm0 = vmor %vm2716_vm11, %vm2717_vm13 }
 0x4c9   :  { %v2713_v33 = vsub.f32 1.0, %v2712_v60  ;;  %5276 = vrcp.f32 %v6501_v4  ;;  %v6515_v38 = vadd.f32 1.0, %v5269_v11  ;;  %vm6548_vm1 = vmor %vm2731_vm10, %vm2732_vm14  ;;  %v2765_v18 = vand.u32 2147483647, %v6501_v4  ;;  %v4561_v11 = vld [vmem:[#allocation5 + $0x70] sm:$0xf0] }
 0x4ca   :  { %v2728_v63 = vsub.f32 1.0, %v2727_v8  ;;  %vm2761_vm2 = vweird.f32 %v6501_v4  ;;  %v2767_v16 = vand.u32 2147483648, %v6501_v4  ;;  %vm2746_vm3 = vweird.f32 %v6498_v52  ;;  %v4567_v8 = vld [vmem:[#allocation5 + $0x68] sm:$0xf] }
 0x4cb   :  { %v2714_v58 = vmul.f32 %v5265_v5, %v2713_v33  ;;  %5278 = vrcp.f32 %v6515_v38  ;;  %v2782_v55 = vand.u32 2147483648, %v6515_v38  ;;  %v2780_v27 = vand.u32 2147483647, %v6515_v38  ;;  %v4996_v33 = vld [vmem:[#allocation5 + $0x74] sm:$0xf0] }
 0x4cc   :  { %v5271_v22 = vpop.eup %5270  ;;  %v2729_v26 = vmul.f32 %v6503_v31, %v2728_v63  ;;  %5280 = vtanh.f32 %v2686_v41  ;;  %vm2776_vm4 = vweird.f32 %v6515_v38  ;;  %vm6575_vm5 = vcmp.eq.f32.partialorder %v2765_v18, 8.507059e+37  ;;  %v4994_v41 = vld [vmem:[#allocation5 + $0x6c] sm:$0xf] }
 0x4cd   :  { %v6530_v46 = vpop.eup %5272  ;;  %v2715_v1 = vadd.f32 %v5265_v5, %v2714_v58  ;;  %v6532_v57 = vadd.f32 1.0, %v5271_v22  ;;  %v2783_v60 = vor.u32 1.1754944e-38, %v2782_v55  ;;  %v4584_v15 = vor.u32 %v5000_v10, %v4583_v34  ;;  %v4543_v22 = vld [vmem:[#allocation5 + $0x40] sm:$0xf]  ;;  %v4992_v55 = vld [vmem:[#allocation5 + $0x54] sm:$0xf0] }
 0x4ce   :  { %v5275_v24 = vpop.eup %5274  ;;  %v2742_v61 = vmul.f32 %v6530_v46, %v6498_v52  ;;  %v2730_v21 = vadd.f32 %v6503_v31, %v2729_v26  ;;  %v4560_v58 = vor.u32 %v4995_v13, %v4559_v56  ;;  %v4991_v26 = vld [vmem:[#allocation5 + $0x4c] sm:$0xf0]  ;;  %vm2747_vm8 = vweird.f32 %v6530_v46  ;;  %v4527_v10 = vld [vmem:[#allocation5 + $0x20] sm:$0xf] }
 0x4cf   :  { %v6542_v59 = vpop.eup %5276  ;;  %v2719_v23 = vsel %vm2718_vm0, %v5265_v5, %v2715_v1  ;;  %5282 = vrcp.f32 %v6532_v57  ;;  %v2768_v1 = vor.u32 1.1754944e-38, %v2767_v16  ;;  %3056 = vmatpush.bf16.msrb.mxu2 %v4584_v15  ;;  %vm2781_vm11 = vcmp.eq.f32.partialorder %v2780_v27, 8.507059e+37  ;;  %v4981_v15 = vld [vmem:[#allocation5 + $0x4] sm:$0xf] }
 0x4d0   :  { %v2743_v42 = vsub.f32 1.0, %v2742_v61  ;;  %v2724_v49 = vsel %vm6519_vm12, %v2723_v36, %v2719_v23  ;;  %v2734_v45 = vsel %vm6548_vm1, %v6503_v31, %v2730_v21  ;;  %v2757_v44 = vmul.f32 %v6542_v59, %v6501_v4  ;;  %v4993_v31 = vld [vmem:[#allocation5 + $0x64] sm:$0xf]  ;;  %v4569_v36 = vld [vmem:[#allocation5 + $0x78] sm:$0xf0]  ;;  %3029 = vmatpush.bf16.msrb.mxu0 %v4560_v58  ;;  %vm6616_vm12 = vmor %vm2746_vm3, %vm2747_vm8 }
 0x4d1   :  { %v6562_v62 = vpop.eup %5278  ;;  %v2739_v47 = vsel %vm6526_vm15, %v2738_v50, %v2734_v45  ;;  %v2805_v19 = vmul.f32 %v5275_v24, %v2724_v49  ;;  %vm2762_vm6 = vweird.f32 %v6542_v59  ;;  %v4564_v61 = vor.u32 %v4993_v31, %v4561_v11  ;;  %v4551_v23 = vld [vmem:[#allocation5 + $0x48] sm:$0xf]  ;;  %v4537_v11 = vld [vmem:[#allocation5 + $0x38] sm:$0xf0] }
 0x4d2   :  { %v2803_v5 = vmul.f32 %v2739_v47, %v6402_v54  ;;  %v2758_v29 = vsub.f32 1.0, %v2757_v44  ;;  %v2772_v17 = vmul.f32 %v6562_v62, %v6515_v38  ;;  %v5281_v12 = vpop.eup %5280  ;;  %v2744_v40 = vmul.f32 %v6530_v46, %v2743_v42  ;;  %vm6595_vm9 = vmor %vm2761_vm2, %vm2762_vm6  ;;  %v4535_v31 = vld [vmem:[#allocation5 + $0x28] sm:$0xf]  ;;  %v4759_v38 = vld [vmem:[#allocation5 + $0xe0] sm:$0xf] }
 0x4d3   :  { %vm2777_vm7 = vweird.f32 %v6562_v62  ;;  %v4568_v21 = vor.u32 %v4996_v33, %v4567_v8  ;;  %v4572_v45 = vor.u32 %v4994_v41, %v4569_v36  ;;  %v4544_v44 = vor.u32 %v4991_v26, %v4543_v22  ;;  %3043 = vmatpush.bf16.msrb.mxu1 %v4564_v61  ;;  %v4511_v8 = vld [vmem:[#allocation5] sm:$0xf]  ;;  %v4519_v58 = vld [vmem:[#allocation5 + $0x8] sm:$0xf]  ;;  %v4984_v36 = vld [vmem:[#allocation5 + $0x14] sm:$0xf0] }
 0x4d4   :  { %v6579_v54 = vadd.f32 %v2805_v19, %v2803_v5  ;;  %v2773_v25 = vsub.f32 1.0, %v2772_v17  ;;  %v2759_v30 = vmul.f32 %v6542_v59, %v2758_v29  ;;  %v2745_v34 = vadd.f32 %v6530_v46, %v2744_v40  ;;  %vm2778_vm10 = vmor %vm2776_vm4, %vm2777_vm7  ;;  %v4985_v5 = vld [vmem:[#allocation5 + $0x24] sm:$0xf]  ;;  %v4529_v29 = vld [vmem:[#allocation5 + $0x30] sm:$0xf0] }
 0x4d5   :  { %v6583_v63 = vpop.eup %5282  ;;  %v4548_v19 = vor.u32 %v4989_v39, %v4545_v3  ;;  %v4552_v16 = vor.u32 %v4992_v55, %v4551_v23  ;;  %3057 = vmatpush.bf16.msrb.mxu2 %v4568_v21  ;;  %3071 = vmatpush.bf16.msrb.mxu3 %v4572_v45  ;;  %v4556_v17 = vor.u32 %v4990_v0, %v4553_v32  ;;  %v4988_v40 = vld [vmem:[#allocation5 + $0x34] sm:$0xf0]  ;;  %vm6627_vm13 = vcmp.eq.f32.partialorder %v2750_v14, 8.507059e+37  ;;  %v4982_v26 = vld [vmem:[#allocation5 + $0xc] sm:$0xf] }
 0x4d6   :  { %v2774_v50 = vmul.f32 %v6562_v62, %v2773_v25  ;;  %v2787_v35 = vmul.f32 %v6583_v63, %v6532_v57  ;;  %v2760_v24 = vadd.f32 %v6542_v59, %v2759_v30  ;;  %5284 = vtanh.f32 %v6579_v54  ;;  %3030 = vmatpush.bf16.msrb.mxu0 %v4544_v44  ;;  %v4983_v25 = vld [vmem:[#allocation5 + $0xc] sm:$0xf0]  ;;  %v7033_v0 = vld [vmem:[#allocation31_spill] sm:$0xff] }
 0x4d7   :  { %v4528_v27 = vor.u32 %v4987_v9, %v4527_v10  ;;  %vm2792_vm14 = vweird.f32 %v6583_v63  ;;  %3044 = vmatpush.bf16.msrb.mxu1 %v4548_v19  ;;  %v4532_v53 = vor.u32 %v4985_v5, %v4529_v29  ;;  %v2797_v14 = vand.u32 2147483648, %v6532_v57 }
 0x4d8   :  { %v2788_v18 = vsub.f32 1.0, %v2787_v35  ;;  %v2775_v49 = vadd.f32 %v6562_v62, %v2774_v50  ;;  %v2764_v4 = vsel %vm6595_vm9, %v6542_v59, %v2760_v24  ;;  %v4540_v52 = vor.u32 %v4986_v20, %v4537_v11  ;;  %v4521_v50 = vld [vmem:[#allocation5 + $0x18] sm:$0xf0] }
 0x4d9   :  { %v2769_v6 = vsel %vm6575_vm5, %v2768_v1, %v2764_v4  ;;  %3058 = vmatpush.bf16.msrb.mxu2 %v4552_v16  ;;  %3072 = vmatpush.bf16.msrb.mxu3 %v4556_v17  ;;  %vm2791_vm15 = vweird.f32 %v6532_v57  ;;  %v2795_v22 = vand.u32 2147483647, %v6532_v57  ;;  %v4516_v35 = vor.u32 %v4981_v15, %v4513_v48  ;;  %v5044_v17 = vld [vmem:[#allocation5 + $0xf4] sm:$0xf0]  ;;  %v4769_v11 = vld [vmem:[#allocation5 + $0xf8] sm:$0xf0] }
 0x4da   :  { %v2779_v47 = vsel %vm2778_vm10, %v6562_v62, %v2775_v49  ;;  %v2789_v59 = vmul.f32 %v6583_v63, %v2788_v18  ;;  %v2806_v13 = vmul.f32 %v5281_v12, %v2769_v6  ;;  %v2749_v12 = vsel %vm6616_vm12, %v6530_v46, %v2745_v34  ;;  %3031 = vmatpush.bf16.msrb.mxu0 %v4528_v27  ;;  %vm2793_vm0 = vmor %vm2791_vm15, %vm2792_vm14  ;;  %v7034_v34 = vld [vmem:[#allocation32_spill] sm:$0xff]  ;;  %v5042_v27 = vld [vmem:[#allocation5 + $0xec] sm:$0xf] }
 0x4db   :  { %v2784_v56 = vsel %vm2781_vm11, %v2783_v60, %v2779_v47  ;;  %v4536_v46 = vor.u32 %v4988_v40, %v4535_v31  ;;  %3045 = vmatpush.bf16.msrb.mxu1 %v4532_v53  ;;  %v4520_v24 = vor.u32 %v4984_v36, %v4519_v58  ;;  %v2798_v21 = vor.u32 1.1754944e-38, %v2797_v14  ;;  %v7035_v31 = vld [vmem:[#allocation33_spill] sm:$0xff]  ;;  %v5039_v53 = vld [vmem:[#allocation5 + $0xcc] sm:$0xf0]  ;;  %v5040_v36 = vld [vmem:[#allocation5 + $0xd4] sm:$0xf0] }
 0x4dc   :  { %v2804_v62 = vmul.f32 %v2784_v56, %v6458_v7  ;;  %v2753_v7 = vor.u32 1.1754944e-38, %v2752_v2  ;;  %v5285_v33 = vpop.eup %5284  ;;  %v2790_v41 = vadd.f32 %v6583_v63, %v2789_v59  ;;  %v4512_v2 = vor.u32 %v4983_v25, %v4511_v8  ;;  %v5043_v59 = vld [vmem:[#allocation5 + $0xec] sm:$0xf0]  ;;  %v5041_v56 = vld [vmem:[#allocation5 + $0xe4] sm:$0xf]  ;;  %v7036_v8 = vld [vmem:[#allocation35_spill] sm:$0xff] }
 0x4dd   :  { %3059 = vmatpush.bf16.msrb.mxu2 %v4536_v46  ;;  %3073 = vmatpush.bf16.msrb.mxu3 %v4540_v52  ;;  %v4524_v3 = vor.u32 %v4982_v26, %v4521_v50  ;;  %vm2796_vm1 = vcmp.eq.f32.partialorder %v2795_v22, 8.507059e+37  ;;  %v189_v32 = vadd.f32 %v7033_v0, %v5600_v51  ;;  %v238_v4 = vadd.f32 %v7034_v34, %v5602_v37  ;;  %v5037_v46 = vld [vmem:[#allocation5 + $0xc4] sm:$0xf]  ;;  %v4751_v58 = vld [vmem:[#allocation5 + $0xc8] sm:$0xf] }
 0x4de   :  { %v6633_v30 = vadd.f32 %v2806_v13, %v2804_v62  ;;  %v2754_v1 = vsel %vm6627_vm13, %v2753_v7, %v2749_v12  ;;  %v2794_v39 = vsel %vm2793_vm0, %v6583_v63, %v2790_v41  ;;  %3032 = vmatpush.bf16.msrb.mxu0 %v4512_v2  ;;  %v4761_v13 = vld [vmem:[#allocation5 + $0xf0] sm:$0xf0]  ;;  %v4760_v5 = vor.u32 %v5043_v59, %v4759_v38  ;;  %v4767_v62 = vld [vmem:[#allocation5 + $0xe8] sm:$0xf]  ;;  %v7037_v12 = vld [vmem:[#allocation36_spill] sm:$0xff] }
 0x4df   :  { %v2811_v61 = vmul.f32 %v5285_v33, %v2754_v1  ;;  %v2799_v23 = vsel %vm2796_vm1, %v2798_v21, %v2794_v39  ;;  %3046 = vmatpush.bf16.msrb.mxu1 %v4516_v35  ;;  %v4764_v29 = vor.u32 %v5041_v56, %v4761_v13  ;;  %v287_v40 = vadd.f32 %v7035_v31, %v5612_v43  ;;  %v4743_v41 = vld [vmem:[#allocation5 + $0xc0] sm:$0xf]  ;;  %v4745_v2 = vld [vmem:[#allocation5 + $0xd0] sm:$0xf0]  ;;  %v5038_v1 = vld [vmem:[#allocation5 + $0xcc] sm:$0xf] }
 0x4e0   :  { %5286 = vtanh.f32 %v6633_v30  ;;  %v4768_v20 = vor.u32 %v5044_v17, %v4767_v62  ;;  %v191_v25 = vadd.f32 %v7036_v8, %v5600_v51  ;;  %v240_v60 = vadd.f32 %v7037_v12, %v5602_v37  ;;  %v4753_v39 = vld [vmem:[#allocation5 + $0xd8] sm:$0xf0]  ;;  %v4729_v34 = vld [vmem:[#allocation5 + $0xb0] sm:$0xf0]  ;;  %v4711_v59 = vld [vmem:[#allocation5 + $0x80] sm:$0xf] }
 0x4e1   :  { %3060 = vmatpush.bf16.msrb.mxu2 %v4520_v24  ;;  %v2813_v18 = vpack.c.bf16 %v2811_v61, %v2811_v61  ;;  %3074 = vmatpush.bf16.msrb.mxu3 %v4524_v3  ;;  %v4772_v33 = vor.u32 %v5042_v27, %v4769_v11  ;;  %v4744_v52 = vor.u32 %v5039_v53, %v4743_v41  ;;  %v4737_v38 = vld [vmem:[#allocation5 + $0xb8] sm:$0xf0]  ;;  %v4719_v11 = vld [vmem:[#allocation5 + $0x88] sm:$0xf] }
 0x4e2   :  { %3427 = vmatpush.bf16.msra.mxu0 %v4760_v5  ;;  %v4748_v50 = vor.u32 %v5037_v46, %v4745_v2  ;;  %v4752_v35 = vor.u32 %v5040_v36, %v4751_v58  ;;  %v5031_v5 = vld [vmem:[#allocation5 + $0x8c] sm:$0xf0] }
 0x4e3   :  { %v2861_v63 = vunpack.c.l.b16 %v2813_v18  ;;  %3441 = vmatpush.bf16.msra.mxu1 %v4764_v29  ;;  %v5029_v29 = vld [vmem:[#allocation5 + $0x84] sm:$0xf]  ;;  %v7040_v46 = vld [vmem:[#allocation38_spill] sm:$0xff] }
 0x4e5   :  { %3455 = vmatpush.bf16.msra.mxu2 %v4768_v20  ;;  %3469 = vmatpush.bf16.msra.mxu3 %v4772_v33  ;;  %v4713_v20 = vld [vmem:[#allocation5 + $0x90] sm:$0xf0] }
 0x4e6   :  { %v5287_v57 = vpop.eup %5286  ;;  %3428 = vmatpush.bf16.msra.mxu0 %v4744_v52  ;;  %v4716_v12 = vor.u32 %v5029_v29, %v4713_v20  ;;  %v5025_v29 = vld [vmem:[#allocation5 + $0x64] sm:$0xf] }
 0x4e7   :  { %v2812_v55 = vmul.f32 %v5287_v57, %v2799_v23  ;;  %3442 = vmatpush.bf16.msra.mxu1 %v4748_v50  ;;  %v4727_v23 = vld [vmem:[#allocation5 + $0xa0] sm:$0xf] }
 0x4e9   :  { %v2814_v42 = vpack.c.bf16 %v2812_v55, %v2812_v55  ;;  %v5073_v49 = vpack.c.bf16 %v2812_v55, %v2811_v61  ;;  %v4756_v61 = vor.u32 %v5038_v1, %v4753_v39  ;;  %3456 = vmatpush.bf16.msra.mxu2 %v4752_v35 }
 0x4eb   :  { %5089 = vst [vmem:[%s6878_s4 + $0x28] sm:$0xff] %v5073_v49   ;;  %v2862_v45 = vunpack.c.l.b16 %v2814_v42  ;;  %v5035_v49 = vld [vmem:[#allocation5 + $0xac] sm:$0xf0]  ;;  %3470 = vmatpush.bf16.msra.mxu3 %v4756_v61  ;;  %v4721_v61 = vld [vmem:[#allocation5 + $0x98] sm:$0xf0] }
 0x4ed   :  { %v2863_v44 = vpack.c.b16 %v2862_v45, %v2861_v63  ;;  %v4728_v45 = vor.u32 %v5035_v49, %v4727_v23 }
 0x4ef   :  { %3033 = vmatmul.bf16.vlgmr.msrb.gmra.mxu0 %v2863_v44  ;;  %3047 = vmatmul.bf16.vlgmr.msrb.gmra.mxu1 %v2863_v44 }
 0x4f0   :  { %3061 = vmatmul.bf16.vlgmr.msrb.gmra.mxu2 %v2863_v44  ;;  %3075 = vmatmul.bf16.vlgmr.msrb.gmra.mxu3 %v2863_v44  ;;  %v7038_v44 = vld [vmem:[#allocation37_spill] sm:$0xff] }
 0x4f1   :  { %v289_v0 = vadd.f32 %v7038_v44, %v5612_v43  ;;  %3429 = vmatpush.bf16.msra.mxu0 %v4728_v45  ;;  %v4663_v44 = vld [vmem:[#allocation5 + $0x20] sm:$0xf] }
 0x56c   :  { %v3034_v10 = vpop.f32.mrf.mxu0  ;;  %v3048_v9 = vpop.f32.mrf.mxu1 }
 0x56d   :  { %v3081_v6 = vadd.f32 %v3034_v10, %v189_v32  ;;  %v3082_v47 = vadd.f32 %v3048_v9, %v238_v4  ;;  %v5033_v32 = vld [vmem:[#allocation5 + $0xa4] sm:$0xf]  ;;  %v7039_v4 = vld [vmem:[#allocation34_spill] sm:$0xff] }
 0x56e   :  { %v336_v10 = vadd.f32 %v7039_v4, %v5616_v28  ;;  %v4732_v13 = vor.u32 %v5033_v32, %v4729_v34 }
 0x56f   :  { %v4637_v19 = vmul.f32 -1.442695, %v3081_v6  ;;  %v4638_v16 = vmul.f32 -1.442695, %v3082_v47  ;;  %v4735_v6 = vld [vmem:[#allocation5 + $0xa8] sm:$0xf] }
 0x570   :  { %v5036_v47 = vld [vmem:[#allocation5 + $0xb4] sm:$0xf0]  ;;  %3443 = vmatpush.bf16.msra.mxu1 %v4732_v13  ;;  %v4695_v13 = vld [vmem:[#allocation5 + $0x60] sm:$0xf] }
 0x571   :  { %5288 = vpow2.f32 %v4637_v19  ;;  %v5034_v19 = vld [vmem:[#allocation5 + $0xac] sm:$0xf]  ;;  %v4736_v27 = vor.u32 %v5036_v47, %v4735_v6  ;;  %v5017_v47 = vld [vmem:[#allocation5 + $0x24] sm:$0xf] }
 0x572   :  { %5290 = vpow2.f32 %v4638_v16  ;;  %v4740_v31 = vor.u32 %v5034_v19, %v4737_v38 }
 0x573   :  { %v3062_v7 = vpop.f32.mrf.mxu2  ;;  %v3076_v3 = vpop.f32.mrf.mxu3  ;;  %3457 = vmatpush.bf16.msra.mxu2 %v4736_v27  ;;  %v5028_v27 = vld [vmem:[#allocation5 + $0x74] sm:$0xf0] }
 0x574   :  { %v3083_v15 = vadd.f32 %v3062_v7, %v287_v40  ;;  %v3036_v48 = vpop.f32.mrf.mxu0  ;;  %v3050_v14 = vpop.f32.mrf.mxu1  ;;  %v3084_v56 = vadd.f32 %v3076_v3, %v336_v10  ;;  %v4712_v40 = vor.u32 %v5031_v5, %v4711_v59  ;;  %3471 = vmatpush.bf16.msra.mxu3 %v4740_v31  ;;  %3444 = vmatpush.bf16.msra.mxu1 %v4716_v12  ;;  %v5027_v5 = vld [vmem:[#allocation5 + $0x6c] sm:$0xf0]  ;;  %v4705_v12 = vld [vmem:[#allocation5 + $0x78] sm:$0xf0]  ;;  %v5024_v3 = vld [vmem:[#allocation5 + $0x54] sm:$0xf0] }
 0x575   :  { %v3085_v22 = vadd.f32 %v3036_v48, %v191_v25  ;;  %v3086_v26 = vadd.f32 %v3050_v14, %v240_v60  ;;  %v5032_v60 = vld [vmem:[#allocation5 + $0x94] sm:$0xf0] }
 0x576   :  { %v4639_v24 = vmul.f32 -1.442695, %v3083_v15  ;;  %v4720_v41 = vor.u32 %v5032_v60, %v4719_v11  ;;  %v338_v15 = vadd.f32 %v7040_v46, %v5616_v28  ;;  %3430 = vmatpush.bf16.msra.mxu0 %v4712_v40  ;;  %v4679_v46 = vld [vmem:[#allocation5 + $0x40] sm:$0xf] }
 0x577   :  { %v5289_v21 = vpop.eup %5288  ;;  %v4640_v57 = vmul.f32 -1.442695, %v3085_v22  ;;  %v4641_v42 = vmul.f32 -1.442695, %v3086_v26 }
 0x578   :  { %v5291_v55 = vpop.eup %5290  ;;  %v6659_v18 = vadd.f32 1.0, %v5289_v21  ;;  %5292 = vpow2.f32 %v4639_v24  ;;  %3458 = vmatpush.bf16.msra.mxu2 %v4720_v41  ;;  %v5030_v24 = vld [vmem:[#allocation5 + $0x8c] sm:$0xf] }
 0x579   :  { %v6661_v63 = vadd.f32 1.0, %v5291_v55  ;;  %5294 = vpow2.f32 %v4640_v57  ;;  %v4724_v32 = vor.u32 %v5030_v24, %v4721_v61 }
 0x57a   :  { %5296 = vrcp.f32 %v6659_v18  ;;  %v3122_v14 = vand.u32 2147483647, %v6659_v18  ;;  %v3124_v22 = vand.u32 2147483648, %v6659_v18  ;;  %vm3118_vm3 = vweird.f32 %v6659_v18 }
 0x57b   :  { %5298 = vrcp.f32 %v6661_v63  ;;  %v3064_v9 = vpop.f32.mrf.mxu2  ;;  %v3078_v52 = vpop.f32.mrf.mxu3  ;;  %v3139_v36 = vand.u32 2147483648, %v6661_v63  ;;  %v3137_v50 = vand.u32 2147483647, %v6661_v63  ;;  %vm3133_vm2 = vweird.f32 %v6661_v63  ;;  %3472 = vmatpush.bf16.msra.mxu3 %v4724_v32 }
 0x57c   :  { %5300 = vpow2.f32 %v4641_v42  ;;  %v3087_v16 = vadd.f32 %v3064_v9, %v289_v0  ;;  %v3088_v39 = vadd.f32 %v3078_v52, %v338_v15  ;;  %vm6690_vm5 = vcmp.eq.f32.partialorder %v3122_v14, 8.507059e+37  ;;  %v5023_v52 = vld [vmem:[#allocation5 + $0x4c] sm:$0xf0]  ;;  %v4655_v14 = vld [vmem:[#allocation5 + $0x8] sm:$0xf] }
 0x57d   :  { %v3140_v55 = vor.u32 1.1754944e-38, %v3139_v36  ;;  %v3125_v42 = vor.u32 1.1754944e-38, %v3124_v22  ;;  %vm6699_vm7 = vcmp.eq.f32.partialorder %v3137_v50, 8.507059e+37  ;;  %v4687_v50 = vld [vmem:[#allocation5 + $0x48] sm:$0xf] }
 0x57e   :  { %v5293_v62 = vpop.eup %5292  ;;  %v4642_v17 = vmul.f32 -1.442695, %v3087_v16 }
 0x57f   :  { %v5295_v8 = vpop.eup %5294  ;;  %v6669_v25 = vadd.f32 1.0, %v5293_v62  ;;  %v4697_v62 = vld [vmem:[#allocation5 + $0x70] sm:$0xf0] }
 0x580   :  { %v5297_v7 = vpop.eup %5296  ;;  %v6671_v33 = vadd.f32 1.0, %v5295_v8  ;;  %5302 = vpow2.f32 %v4642_v17  ;;  %v4703_v17 = vld [vmem:[#allocation5 + $0x68] sm:$0xf]  ;;  %v5026_v8 = vld [vmem:[#allocation5 + $0x6c] sm:$0xf]  ;;  %v4700_v24 = vor.u32 %v5025_v29, %v4697_v62 }
 0x581   :  { %v6673_v53 = vpop.eup %5298  ;;  %v3114_v48 = vmul.f32 %v5297_v7, %v6659_v18  ;;  %5304 = vrcp.f32 %v6669_v25  ;;  %vm3119_vm4 = vweird.f32 %v5297_v7  ;;  %v3154_v10 = vand.u32 2147483648, %v6669_v25  ;;  %v5018_v29 = vld [vmem:[#allocation5 + $0x2c] sm:$0xf]  ;;  %v4673_v62 = vld [vmem:[#allocation5 + $0x38] sm:$0xf0] }
 0x582   :  { %v5301_v2 = vpop.eup %5300  ;;  %v3129_v58 = vmul.f32 %v6673_v53, %v6661_v63  ;;  %5306 = vtanh.f32 %v3084_v56  ;;  %vm3134_vm6 = vweird.f32 %v6673_v53  ;;  %vm3120_vm8 = vmor %vm3118_vm3, %vm3119_vm4  ;;  %v3167_v18 = vand.u32 2147483647, %v6671_v33  ;;  %3445 = vmatpush.bf16.msra.mxu1 %v4700_v24 }
 0x583   :  { %v3115_v26 = vsub.f32 1.0, %v3114_v48  ;;  %5308 = vrcp.f32 %v6671_v33  ;;  %v6686_v35 = vadd.f32 1.0, %v5301_v2  ;;  %vm6718_vm9 = vmor %vm3133_vm2, %vm3134_vm6  ;;  %vm3163_vm10 = vweird.f32 %v6671_v33  ;;  %v5021_v2 = vld [vmem:[#allocation5 + $0x44] sm:$0xf] }
 0x584   :  { %v3130_v1 = vsub.f32 1.0, %v3129_v58  ;;  %v3169_v11 = vand.u32 2147483648, %v6671_v33  ;;  %vm3148_vm11 = vweird.f32 %v6669_v25  ;;  %vm6745_vm13 = vcmp.eq.f32.partialorder %v3167_v18, 8.507059e+37 }
 0x585   :  { %v3116_v21 = vmul.f32 %v5297_v7, %v3115_v26  ;;  %5310 = vrcp.f32 %v6686_v35  ;;  %v3184_v16 = vand.u32 2147483648, %v6686_v35  ;;  %vm3178_vm12 = vweird.f32 %v6686_v35  ;;  %v4681_v26 = vld [vmem:[#allocation5 + $0x50] sm:$0xf0] }
 0x586   :  { %v5303_v57 = vpop.eup %5302  ;;  %v3131_v23 = vmul.f32 %v6673_v53, %v3130_v1  ;;  %5312 = vtanh.f32 %v3088_v39  ;;  %v4696_v39 = vor.u32 %v5027_v5, %v4695_v13  ;;  %v4704_v61 = vor.u32 %v5028_v27, %v4703_v17  ;;  %v5020_v13 = vld [vmem:[#allocation5 + $0x34] sm:$0xf0] }
 0x587   :  { %v6697_v49 = vpop.eup %5304  ;;  %v3117_v45 = vadd.f32 %v5297_v7, %v3116_v21  ;;  %v6703_v0 = vadd.f32 1.0, %v5303_v57  ;;  %v3185_v48 = vor.u32 1.1754944e-38, %v3184_v16  ;;  %v4708_v21 = vor.u32 %v5026_v8, %v4705_v12  ;;  %v5022_v57 = vld [vmem:[#allocation5 + $0x4c] sm:$0xf] }
 0x588   :  { %v5307_v34 = vpop.eup %5306  ;;  %v3144_v4 = vmul.f32 %v6697_v49, %v6669_v25  ;;  %v3132_v9 = vadd.f32 %v6673_v53, %v3131_v23  ;;  %v4689_v23 = vld [vmem:[#allocation5 + $0x58] sm:$0xf0]  ;;  %vm3149_vm0 = vweird.f32 %v6697_v49  ;;  %3431 = vmatpush.bf16.msra.mxu0 %v4696_v39  ;;  %3459 = vmatpush.bf16.msra.mxu2 %v4704_v61 }
 0x589   :  { %v6712_v6 = vpop.eup %5308  ;;  %v3121_v19 = vsel %vm3120_vm8, %v5297_v7, %v3117_v45  ;;  %5314 = vrcp.f32 %v6703_v0  ;;  %v3170_v45 = vor.u32 1.1754944e-38, %v3169_v11  ;;  %3473 = vmatpush.bf16.msra.mxu3 %v4708_v21  ;;  %vm6786_vm4 = vmor %vm3148_vm11, %vm3149_vm0  ;;  %v3199_v24 = vand.u32 2147483648, %v6703_v0 }
 0x58a   :  { %v3145_v38 = vsub.f32 1.0, %v3144_v4  ;;  %v3126_v59 = vsel %vm6690_vm5, %v3125_v42, %v3121_v19  ;;  %v3136_v63 = vsel %vm6718_vm9, %v6673_v53, %v3132_v9  ;;  %v3159_v56 = vmul.f32 %v6712_v6, %v6671_v33  ;;  %v5019_v9 = vld [vmem:[#allocation5 + $0x2c] sm:$0xf0]  ;;  %v4665_v19 = vld [vmem:[#allocation5 + $0x30] sm:$0xf0] }
 0x58b   :  { %v6732_v31 = vpop.eup %5310  ;;  %v3141_v40 = vsel %vm6699_vm7, %v3140_v55, %v3136_v63  ;;  %v3207_v20 = vmul.f32 %v5307_v34, %v3126_v59  ;;  %v3182_v53 = vand.u32 2147483647, %v6686_v35  ;;  %vm3164_vm14 = vweird.f32 %v6712_v6 }
 0x58c   :  { %v3205_v60 = vmul.f32 %v3141_v40, %v6579_v54  ;;  %v3160_v7 = vsub.f32 1.0, %v3159_v56  ;;  %v3174_v41 = vmul.f32 %v6732_v31, %v6686_v35  ;;  %v3146_v15 = vmul.f32 %v6697_v49, %v3145_v38  ;;  %v5313_v58 = vpop.eup %5312  ;;  %vm6765_vm1 = vmor %vm3163_vm10, %vm3164_vm14  ;;  %v4671_v56 = vld [vmem:[#allocation5 + $0x28] sm:$0xf] }
 0x58d   :  { %vm3179_vm15 = vweird.f32 %v6732_v31  ;;  %v4680_v34 = vor.u32 %v5023_v52, %v4679_v46  ;;  %v4684_v4 = vor.u32 %v5021_v2, %v4681_v26  ;;  %v4688_v59 = vor.u32 %v5024_v3, %v4687_v50  ;;  %v5013_v46 = vld [vmem:[#allocation5 + $0x4] sm:$0xf]  ;;  %v5016_v52 = vld [vmem:[#allocation5 + $0x14] sm:$0xf0]  ;;  %v5014_v2 = vld [vmem:[#allocation5 + $0xc] sm:$0xf] }
 0x58e   :  { %v6749_v54 = vadd.f32 %v3207_v20, %v3205_v60  ;;  %v3175_v36 = vsub.f32 1.0, %v3174_v41  ;;  %v3161_v22 = vmul.f32 %v6712_v6, %v3160_v7  ;;  %v4692_v63 = vor.u32 %v5022_v57, %v4689_v23  ;;  %vm3180_vm2 = vmor %vm3178_vm12, %vm3179_vm15  ;;  %v4647_v60 = vld [vmem:[#allocation5] sm:$0xf] }
 0x58f   :  { %v6753_v1 = vpop.eup %5314  ;;  %v3147_v5 = vadd.f32 %v6697_v49, %v3146_v15  ;;  %vm3183_vm3 = vcmp.eq.f32.partialorder %v3182_v53, 8.507059e+37  ;;  %v4664_v40 = vor.u32 %v5019_v9, %v4663_v44  ;;  %v4668_v20 = vor.u32 %v5017_v47, %v4665_v19  ;;  %3432 = vmatpush.bf16.msra.mxu0 %v4680_v34  ;;  %3446 = vmatpush.bf16.msra.mxu1 %v4684_v4  ;;  %v4649_v15 = vld [vmem:[#allocation5 + $0x10] sm:$0xf0]  ;;  %v7053_v4 = vld [vmem:[#allocation39_spill] sm:$0xff]  ;;  %v7054_v47 = vld [vmem:[#allocation40_spill] sm:$0xff] }
 0x590   :  { %v3176_v55 = vmul.f32 %v6732_v31, %v3175_v36  ;;  %v3189_v42 = vmul.f32 %v6753_v1, %v6703_v0  ;;  %v3162_v32 = vadd.f32 %v6712_v6, %v3161_v22  ;;  %5316 = vtanh.f32 %v6749_v54  ;;  %3460 = vmatpush.bf16.msra.mxu2 %v4688_v59  ;;  %3474 = vmatpush.bf16.msra.mxu3 %v4692_v63  ;;  %v4657_v36 = vld [vmem:[#allocation5 + $0x18] sm:$0xf0] }
 0x591   :  { %v4672_v41 = vor.u32 %v5020_v13, %v4671_v56  ;;  %v4676_v53 = vor.u32 %v5018_v29, %v4673_v62  ;;  %vm3194_vm5 = vweird.f32 %v6753_v1  ;;  %v4652_v39 = vor.u32 %v5013_v46, %v4649_v15  ;;  %v7055_v13 = vld [vmem:[#allocation41_spill] sm:$0xff]  ;;  %v7057_v62 = vld [vmem:[#allocation44_spill] sm:$0xff] }
 0x592   :  { %v3190_v16 = vsub.f32 1.0, %v3189_v42  ;;  %v3177_v38 = vadd.f32 %v6732_v31, %v3176_v55  ;;  %v3166_v33 = vsel %vm6765_vm1, %v6712_v6, %v3162_v32  ;;  %v3152_v6 = vand.u32 2147483647, %v6669_v25 }
 0x593   :  { %v3171_v17 = vsel %vm6745_vm13, %v3170_v45, %v3166_v33  ;;  %3433 = vmatpush.bf16.msra.mxu0 %v4664_v40  ;;  %3447 = vmatpush.bf16.msra.mxu1 %v4668_v20  ;;  %v4660_v25 = vor.u32 %v5014_v2, %v4657_v36  ;;  %vm3193_vm7 = vweird.f32 %v6703_v0  ;;  %v3200_v57 = vor.u32 1.1754944e-38, %v3199_v24  ;;  %v7056_v33 = vld [vmem:[#allocation43_spill] sm:$0xff] }
 0x594   :  { %v3181_v27 = vsel %vm3180_vm2, %v6732_v31, %v3177_v38  ;;  %v3191_v11 = vmul.f32 %v6753_v1, %v3190_v16  ;;  %v3208_v12 = vmul.f32 %v5313_v58, %v3171_v17  ;;  %v5015_v31 = vld [vmem:[#allocation5 + $0xc] sm:$0xf0]  ;;  %v3155_v58 = vor.u32 1.1754944e-38, %v3154_v10  ;;  %3461 = vmatpush.bf16.msra.mxu2 %v4672_v41  ;;  %3475 = vmatpush.bf16.msra.mxu3 %v4676_v53  ;;  %vm3195_vm8 = vmor %vm3193_vm7, %vm3194_vm5 }
 0x595   :  { %v3186_v8 = vsel %vm3183_vm3, %v3185_v48, %v3181_v27  ;;  %v3151_v48 = vsel %vm6786_vm4, %v6697_v49, %v3147_v5  ;;  %v4648_v50 = vor.u32 %v5015_v31, %v4647_v60  ;;  %v4656_v49 = vor.u32 %v5016_v52, %v4655_v14  ;;  %v7059_v14 = vld [vmem:[#allocation42_spill] sm:$0xff] }
 0x596   :  { %v3206_v7 = vmul.f32 %v3186_v8, %v6633_v30  ;;  %v5317_v30 = vpop.eup %5316  ;;  %v3192_v26 = vadd.f32 %v6753_v1, %v3191_v11  ;;  %vm3153_vm6 = vcmp.eq.f32.partialorder %v3152_v6, 8.507059e+37  ;;  %v3197_v10 = vand.u32 2147483647, %v6703_v0 }
 0x597   :  { %v3156_v61 = vsel %vm3153_vm6, %v3155_v58, %v3151_v48  ;;  %3434 = vmatpush.bf16.msra.mxu0 %v4648_v50  ;;  %3448 = vmatpush.bf16.msra.mxu1 %v4652_v39  ;;  %v194_v9 = vadd.f32 %v7053_v4, %v5600_v51  ;;  %v243_v19 = vadd.f32 %v7054_v47, %v5602_v37 }
 0x598   :  { %v6798_v22 = vadd.f32 %v3208_v12, %v3206_v7  ;;  %v3196_v21 = vsel %vm3195_vm8, %v6753_v1, %v3192_v26  ;;  %v3213_v3 = vmul.f32 %v5317_v30, %v3156_v61  ;;  %3462 = vmatpush.bf16.msra.mxu2 %v4656_v49  ;;  %3476 = vmatpush.bf16.msra.mxu3 %v4660_v25  ;;  %vm3198_vm9 = vcmp.eq.f32.partialorder %v3197_v10, 8.507059e+37  ;;  %v7060_v10 = vld [vmem:[#allocation46_spill] sm:$0xff] }
 0x599   :  { %v3201_v55 = vsel %vm3198_vm9, %v3200_v57, %v3196_v21  ;;  %v292_v5 = vadd.f32 %v7055_v13, %v5612_v43  ;;  %v196_v29 = vadd.f32 %v7056_v33, %v5600_v51  ;;  %v245_v17 = vadd.f32 %v7057_v62, %v5602_v37  ;;  %v7058_v51 = vld [vmem:[#allocation45_spill] sm:$0xff] }
 0x59a   :  { %5318 = vtanh.f32 %v6798_v22  ;;  %v3215_v45 = vpack.c.bf16 %v3213_v3, %v3213_v3  ;;  %v294_v46 = vadd.f32 %v7058_v51, %v5612_v43  ;;  %v341_v52 = vadd.f32 %v7059_v14, %v5616_v28 }
 0x59b   :  { %v343_v61 = vadd.f32 %v7060_v10, %v5616_v28 }
 0x59c   :  { %v3263_v0 = vunpack.c.l.b16 %v3215_v45 }
 0x5a0   :  { %v5319_v23 = vpop.eup %5318 }
 0x5a1   :  { %v3214_v42 = vmul.f32 %v5319_v23, %v3201_v55 }
 0x5a3   :  { %v3216_v44 = vpack.c.bf16 %v3214_v42, %v3214_v42  ;;  %v5078_v32 = vpack.c.bf16 %v3214_v42, %v3213_v3 }
 0x5a5   :  { %5090 = vst [vmem:[%s6878_s4 + $0x30] sm:$0xff] %v5078_v32   ;;  %v3264_v34 = vunpack.c.l.b16 %v3216_v44 }
 0x5a7   :  { %v3265_v1 = vpack.c.b16 %v3264_v34, %v3263_v0 }
 0x5a9   :  { %3435 = vmatmul.bf16.vlgmr.msra.gmra.mxu0 %v3265_v1  ;;  %3449 = vmatmul.bf16.vlgmr.msra.gmra.mxu1 %v3265_v1 }
 0x5aa   :  { %3463 = vmatmul.bf16.vlgmr.msra.gmra.mxu2 %v3265_v1  ;;  %3477 = vmatmul.bf16.vlgmr.msra.gmra.mxu3 %v3265_v1 }
 0x626   :  { %v3436_v16 = vpop.f32.mrf.mxu0  ;;  %v3450_v18 = vpop.f32.mrf.mxu1 }
 0x627   :  { %v3483_v38 = vadd.f32 %v3436_v16, %v194_v9  ;;  %v3484_v59 = vadd.f32 %v3450_v18, %v243_v19 }
 0x629   :  { %v4773_v63 = vmul.f32 -1.442695, %v3483_v38  ;;  %v4774_v56 = vmul.f32 -1.442695, %v3484_v59 }
 0x62b   :  { %5320 = vpow2.f32 %v4773_v63 }
 0x62c   :  { %5322 = vpow2.f32 %v4774_v56 }
 0x62d   :  { %v3464_v27 = vpop.f32.mrf.mxu2  ;;  %v3478_v37 = vpop.f32.mrf.mxu3 }
 0x62e   :  { %v3485_v40 = vadd.f32 %v3464_v27, %v292_v5  ;;  %v3438_v20 = vpop.f32.mrf.mxu0  ;;  %v3452_v35 = vpop.f32.mrf.mxu1  ;;  %v3486_v48 = vadd.f32 %v3478_v37, %v341_v52 }
 0x62f   :  { %v3487_v6 = vadd.f32 %v3438_v20, %v196_v29  ;;  %v3488_v11 = vadd.f32 %v3452_v35, %v245_v17 }
 0x630   :  { %v4775_v8 = vmul.f32 -1.442695, %v3485_v40 }
 0x631   :  { %v5321_v12 = vpop.eup %5320  ;;  %v4776_v60 = vmul.f32 -1.442695, %v3487_v6  ;;  %v4777_v41 = vmul.f32 -1.442695, %v3488_v11 }
 0x632   :  { %v5323_v31 = vpop.eup %5322  ;;  %v3509_v7 = vadd.f32 1.0, %v5321_v12  ;;  %5324 = vpow2.f32 %v4775_v8 }
 0x633   :  { %v3510_v53 = vadd.f32 1.0, %v5323_v31  ;;  %5326 = vpow2.f32 %v4776_v60 }
 0x634   :  { %5328 = vrcp.f32 %v3509_v7  ;;  %v3524_v55 = vand.u32 2147483647, %v3509_v7  ;;  %v3526_v42 = vand.u32 2147483648, %v3509_v7  ;;  %vm3520_vm12 = vweird.f32 %v3509_v7 }
 0x635   :  { %5330 = vrcp.f32 %v3510_v53  ;;  %v3466_v15 = vpop.f32.mrf.mxu2  ;;  %v3541_v23 = vand.u32 2147483648, %v3510_v53  ;;  %v3480_v45 = vpop.f32.mrf.mxu3  ;;  %v3539_v32 = vand.u32 2147483647, %v3510_v53  ;;  %vm3535_vm13 = vweird.f32 %v3510_v53 }
 0x636   :  { %5332 = vpow2.f32 %v4777_v41  ;;  %v3489_v2 = vadd.f32 %v3466_v15, %v294_v46  ;;  %v3490_v9 = vadd.f32 %v3480_v45, %v343_v61  ;;  %vm3525_vm15 = vcmp.eq.f32.partialorder %v3524_v55, 8.507059e+37 }
 0x637   :  { %v3527_v16 = vor.u32 1.1754944e-38, %v3526_v42  ;;  %v3542_v59 = vor.u32 1.1754944e-38, %v3541_v23  ;;  %vm3540_vm1 = vcmp.eq.f32.partialorder %v3539_v32, 8.507059e+37 }
 0x638   :  { %v5325_v36 = vpop.eup %5324  ;;  %v4778_v58 = vmul.f32 -1.442695, %v3489_v2 }
 0x639   :  { %v5327_v30 = vpop.eup %5326  ;;  %v6824_v26 = vadd.f32 1.0, %v5325_v36 }
 0x63a   :  { %v5329_v50 = vpop.eup %5328  ;;  %v6826_v39 = vadd.f32 1.0, %v5327_v30  ;;  %5334 = vpow2.f32 %v4778_v58 }
 0x63b   :  { %v5331_v43 = vpop.eup %5330  ;;  %v3516_v24 = vmul.f32 %v5329_v50, %v3509_v7  ;;  %5336 = vrcp.f32 %v6824_v26  ;;  %vm3521_vm10 = vweird.f32 %v5329_v50  ;;  %vm3550_vm2 = vweird.f32 %v6824_v26 }
 0x63c   :  { %v5333_v49 = vpop.eup %5332  ;;  %v3531_v25 = vmul.f32 %v5331_v43, %v3510_v53  ;;  %5338 = vtanh.f32 %v3486_v48  ;;  %vm3536_vm11 = vweird.f32 %v5331_v43  ;;  %vm3522_vm14 = vmor %vm3520_vm12, %vm3521_vm10  ;;  %v3556_v6 = vand.u32 2147483648, %v6824_v26 }
 0x63d   :  { %v3517_v21 = vsub.f32 1.0, %v3516_v24  ;;  %5340 = vrcp.f32 %v6826_v39  ;;  %v6832_v3 = vadd.f32 1.0, %v5333_v49  ;;  %vm3537_vm0 = vmor %vm3535_vm13, %vm3536_vm11  ;;  %v3569_v11 = vand.u32 2147483647, %v6826_v39 }
 0x63e   :  { %v3532_v57 = vsub.f32 1.0, %v3531_v25  ;;  %v3571_v8 = vand.u32 2147483648, %v6826_v39  ;;  %v3554_v14 = vand.u32 2147483647, %v6824_v26  ;;  %vm3565_vm7 = vweird.f32 %v6826_v39 }
 0x63f   :  { %v3518_v44 = vmul.f32 %v5329_v50, %v3517_v21  ;;  %5342 = vrcp.f32 %v6832_v3  ;;  %v3584_v53 = vand.u32 2147483647, %v6832_v3  ;;  %vm3580_vm8 = vweird.f32 %v6832_v3 }
 0x640   :  { %v5335_v0 = vpop.eup %5334  ;;  %v3533_v34 = vmul.f32 %v5331_v43, %v3532_v57  ;;  %v3572_v36 = vor.u32 1.1754944e-38, %v3571_v8  ;;  %vm3570_vm11 = vcmp.eq.f32.partialorder %v3569_v11, 8.507059e+37  ;;  %vm3555_vm13 = vcmp.eq.f32.partialorder %v3554_v14, 8.507059e+37 }
 0x641   :  { %v6835_v28 = vpop.eup %5336  ;;  %v3519_v1 = vadd.f32 %v5329_v50, %v3518_v44  ;;  %v6837_v4 = vadd.f32 1.0, %v5335_v0  ;;  %vm3585_vm12 = vcmp.eq.f32.partialorder %v3584_v53, 8.507059e+37 }
 0x642   :  { %v5339_v47 = vpop.eup %5338  ;;  %v3546_v19 = vmul.f32 %v6835_v28, %v6824_v26  ;;  %v3534_v18 = vadd.f32 %v5331_v43, %v3533_v34  ;;  %vm3551_vm3 = vweird.f32 %v6835_v28 }
 0x643   :  { %v5341_v38 = vpop.eup %5340  ;;  %v3523_v63 = vsel %vm3522_vm14, %v5329_v50, %v3519_v1  ;;  %5344 = vrcp.f32 %v6837_v4  ;;  %vm6857_vm6 = vmor %vm3550_vm2, %vm3551_vm3  ;;  %v3601_v55 = vand.u32 2147483648, %v6837_v4  ;;  %v3599_v42 = vand.u32 2147483647, %v6837_v4 }
 0x644   :  { %v3547_v56 = vsub.f32 1.0, %v3546_v19  ;;  %v3528_v13 = vsel %vm3525_vm15, %v3527_v16, %v3523_v63  ;;  %v3538_v5 = vsel %vm3537_vm0, %v5331_v43, %v3534_v18  ;;  %v3561_v33 = vmul.f32 %v5341_v38, %v6826_v39 }
 0x645   :  { %v5343_v29 = vpop.eup %5342  ;;  %v3543_v62 = vsel %vm3540_vm1, %v3542_v59, %v3538_v5  ;;  %v3609_v17 = vmul.f32 %v5339_v47, %v3528_v13  ;;  %5346 = vtanh.f32 %v3490_v9  ;;  %vm3566_vm4 = vweird.f32 %v5341_v38 }
 0x646   :  { %v3548_v27 = vmul.f32 %v6835_v28, %v3547_v56  ;;  %v3607_v40 = vmul.f32 %v3543_v62, %v6749_v54  ;;  %v3562_v20 = vsub.f32 1.0, %v3561_v33  ;;  %v3576_v35 = vmul.f32 %v5343_v29, %v6832_v3  ;;  %vm3567_vm9 = vmor %vm3565_vm7, %vm3566_vm4 }
 0x647   :  { %v3586_v54 = vand.u32 2147483648, %v6832_v3  ;;  %vm3581_vm5 = vweird.f32 %v5343_v29  ;;  %v3557_v43 = vor.u32 1.1754944e-38, %v3556_v6  ;;  %vm3595_vm15 = vweird.f32 %v6837_v4 }
 0x648   :  { %v3611_v12 = vadd.f32 %v3609_v17, %v3607_v40  ;;  %v3577_v60 = vsub.f32 1.0, %v3576_v35  ;;  %v3563_v31 = vmul.f32 %v5341_v38, %v3562_v20  ;;  %v3549_v41 = vadd.f32 %v6835_v28, %v3548_v27  ;;  %vm3582_vm10 = vmor %vm3580_vm8, %vm3581_vm5 }
 0x649   :  { %v5345_v7 = vpop.eup %5344  ;;  %v3587_v30 = vor.u32 1.1754944e-38, %v3586_v54  ;;  %v3602_v44 = vor.u32 1.1754944e-38, %v3601_v55  ;;  %vm3600_vm1 = vcmp.eq.f32.partialorder %v3599_v42, 8.507059e+37 }
 0x64a   :  { %5348 = vtanh.f32 %v3611_v12  ;;  %v3578_v51 = vmul.f32 %v5343_v29, %v3577_v60  ;;  %v3591_v46 = vmul.f32 %v5345_v7, %v6837_v4  ;;  %v3564_v52 = vadd.f32 %v5341_v38, %v3563_v31 }
 0x64b   :  { %v5347_v37 = vpop.eup %5346  ;;  %v3553_v58 = vsel %vm6857_vm6, %v6835_v28, %v3549_v41  ;;  %vm3596_vm14 = vweird.f32 %v5345_v7 }
 0x64c   :  { %v3592_v2 = vsub.f32 1.0, %v3591_v46  ;;  %v3579_v48 = vadd.f32 %v5343_v29, %v3578_v51  ;;  %v3568_v50 = vsel %vm3567_vm9, %v5341_v38, %v3564_v52  ;;  %v3558_v61 = vsel %vm3555_vm13, %v3557_v43, %v3553_v58  ;;  %vm3597_vm0 = vmor %vm3595_vm15, %vm3596_vm14 }
 0x64d   :  { %v3573_v24 = vsel %vm3570_vm11, %v3572_v36, %v3568_v50 }
 0x64e   :  { %v3583_v26 = vsel %vm3582_vm10, %v5343_v29, %v3579_v48  ;;  %v3593_v39 = vmul.f32 %v5345_v7, %v3592_v2  ;;  %v3610_v25 = vmul.f32 %v5347_v37, %v3573_v24 }
 0x64f   :  { %v3588_v49 = vsel %vm3585_vm12, %v3587_v30, %v3583_v26 }
 0x650   :  { %v5349_v10 = vpop.eup %5348  ;;  %v3608_v21 = vmul.f32 %v3588_v49, %v6798_v22  ;;  %v3594_v23 = vadd.f32 %v5345_v7, %v3593_v39 }
 0x651   :  { %v3615_v3 = vmul.f32 %v5349_v10, %v3558_v61 }
 0x652   :  { %v3612_v57 = vadd.f32 %v3610_v25, %v3608_v21  ;;  %v3598_v45 = vsel %vm3597_vm0, %v5345_v7, %v3594_v23 }
 0x653   :  { %v3603_v0 = vsel %vm3600_vm1, %v3602_v44, %v3598_v45 }
 0x654   :  { %5350 = vtanh.f32 %v3612_v57 }
 0x65a   :  { %v5351_v32 = vpop.eup %5350 }
 0x65b   :  { %v3616_v34 = vmul.f32 %v5351_v32, %v3603_v0 }
 0x65d   :  { %v5083_v28 = vpack.c.bf16 %v3616_v34, %v3615_v3 }
 0x65f   :  { %5091 = vst [vmem:[%s6878_s4 + $0x38] sm:$0xff] %v5083_v28  }
 0x660   :  { %3630 = vsyncpa [#allocation6], 1 }

</bundles_post_ra>
